<compile_context>
chip_gen: v5e
topology: v5e:2x2
jax: 0.10.0
libtpu: 0.0.40
codegen_flags: <defaults>
</compile_context>

<pallas_src>
import functools

import jax
import jax.numpy as jnp
from jax.experimental import pallas as pl
from jax.experimental.pallas import tpu as pltpu


def _mhsa_kernel(x_ref, w_ref, o_ref, *, heads, head_dim, wb, n_tok):
    """Multi-head self-attention over a block of `wb` windows.

    x_ref: (wb, N, C)   tokens of wb windows (N = window_size**2, C = embed_dim)
    w_ref: (C, 3C)      qkv projection weight (y = x @ w); softmax scale is
                        already folded into the Q columns.
    o_ref: (wb, N, C)   attention output for these windows.
    """
    C = heads * head_dim
    x = x_ref[...]                                    # (wb, N, C)
    w = w_ref[...]                                    # (C, 3C)

    # Single large QKV projection: wb*N rows fill the MXU M dimension.
    x2 = x.reshape(wb * n_tok, C)
    qkv = jnp.dot(x2, w, preferred_element_type=jnp.float32)   # (wb*N, 3C)
    qkv = qkv.reshape(wb, n_tok, 3 * C)

    # Per-head attention, batched over the window axis.  `heads` is small and
    # static, so the loop unrolls; every matmul below carries the full window
    # batch, so the per-head lane slicing is amortized over wb windows.
    for h in range(heads):
        lo = h * head_dim
        q = qkv[:, :, lo:lo + head_dim]                         # (wb, N, d), pre-scaled
        k = qkv[:, :, C + lo:C + lo + head_dim]                 # (wb, N, d)
        v = qkv[:, :, 2 * C + lo:2 * C + lo + head_dim]         # (wb, N, d)

        # scores: contract last dims directly (no k transpose), batch over wb
        s = jax.lax.dot_general(
            q, k, (((2,), (2,)), ((0,), (0,))),
            preferred_element_type=jnp.float32)                 # (wb, N, N)

        # numerically stable softmax over j; divide goes to the EUP slot
        m = jnp.max(s, axis=-1, keepdims=True)
        p = jnp.exp(s - m)
        denom = jnp.sum(p, axis=-1, keepdims=True)
        p = p * pl.reciprocal(denom, approx=True)

        # context for this head, batched over windows
        ctx = jax.lax.dot_general(
            p, v, (((2,), (1,)), ((0,), (0,))),
            preferred_element_type=jnp.float32)                 # (wb, N, d)

        # write this head's lanes of the output block directly (no concat)
        o_ref[:, :, lo:lo + head_dim] = ctx.astype(o_ref.dtype)


def _pick_window_block(num_windows, n_tok, channels, window_block):
    """Windows per grid step: fill the MXU M dim, stay within a VMEM budget."""
    # Rough per-window VMEM footprint (f32): x (double-buffered), qkv, two
    # (N, N) score/prob temporaries, out (double-buffered), ctx slack.
    bytes_per_window = 4 * (8 * n_tok * channels + 2 * n_tok * n_tok)
    budget = 12 * 1024 * 1024        # safe under the v5e 16 MiB scoped default
    vmem_cap = max(1, budget // max(1, bytes_per_window))
    wb = min(window_block, vmem_cap, max(1, -(-num_windows // 2)))
    # Even so wb*N stays a multiple of 128 rows (v5e MXU granularity).
    if wb > 1 and wb % 2:
        wb += 1
    return wb


def multi_head_self_attention_ieu(x, w_qkv, *, window_size=8, window_block=64):
    """x: (B, C, H, W) float32.  w_qkv: (3C, C) PyTorch Linear weight (no bias)."""
    B, C, H, W = x.shape
    ws = window_size
    assert H % ws == 0 and W % ws == 0
    nx, ny = H // ws, W // ws
    N = ws * ws
    heads = C // (C // 4)                 # matches the PyTorch module (== 4)
    head_dim = C // heads
    scale = float((C // 4) ** (-0.5))

    # ---- glue: NCHW -> (num_windows, N, C) ----
    # TODO(synk): at production sizes these XLA transposes round-trip the whole
    # tensor through HBM; fuse with producer/consumer or fold into the kernel.
    xw = x.reshape(B, C, nx, ws, ny, ws)
    xw = jnp.transpose(xw, (0, 2, 4, 3, 5, 1)).reshape(B * nx * ny, N, C)
    NW = xw.shape[0]

    # qkv weight: (3C, C) PyTorch layout -> (C, 3C) so y = x @ w_t.
    # Fold the softmax scale into the Q columns (free at trace time).
    w_t = jnp.transpose(w_qkv)
    col_scale = jnp.concatenate(
        [jnp.full((C,), scale, w_t.dtype), jnp.ones((2 * C,), w_t.dtype)])
    w_t = w_t * col_scale[None, :]

    wb = _pick_window_block(NW, N, C, window_block)
    nblk = -(-NW // wb)
    NW_pad = nblk * wb
    if NW_pad != NW:
        xw = jnp.pad(xw, ((0, NW_pad - NW), (0, 0), (0, 0)))

    kernel = functools.partial(
        _mhsa_kernel, heads=heads, head_dim=head_dim, wb=wb, n_tok=N)

    # TODO(synk): on v6e/v7x, casting xw/w_t to bfloat16 for the matmuls (with
    # f32 accumulation) would roughly double MXU throughput; kept f32 here to
    # stay bit-close to the PyTorch reference.
    out_win = pl.pallas_call(
        kernel,
        out_shape=jax.ShapeDtypeStruct((NW_pad, N, C), x.dtype),
        grid_spec=pltpu.PrefetchScalarGridSpec(
            num_scalar_prefetch=0,
            grid=(nblk,),
            in_specs=[
                pl.BlockSpec((wb, N, C), lambda i: (i, 0, 0)),
                # constant block index -> weight stays resident in VMEM
                pl.BlockSpec((C, 3 * C), lambda i: (0, 0)),
            ],
            out_specs=pl.BlockSpec((wb, N, C), lambda i: (i, 0, 0)),
        ),
        compiler_params=pltpu.CompilerParams(
            dimension_semantics=("parallel",)),
    )(xw, w_t)

    # ---- glue: (num_windows, N, C) -> NCHW ----
    out = out_win[:NW].reshape(B, nx, ny, ws, ws, C)
    out = jnp.transpose(out, (0, 5, 1, 3, 2, 4)).reshape(B, C, H, W)
    # TODO(synk): nn.Dropout(drop=0.0) is identity in eval / with p=0, omitted.
    return out


def _reference(x, w_qkv, *, window_size=8):
    """Plain-JAX reference mirroring the PyTorch forward."""
    B, C, H, W = x.shape
    ws = window_size
    nx, ny = H // ws, W // ws
    N = ws * ws
    heads = C // (C // 4)
    hd = C // heads
    scale = (C // 4) ** (-0.5)

    xw = x.reshape(B, C, nx, ws, ny, ws)
    xw = jnp.transpose(xw, (0, 2, 4, 3, 5, 1)).reshape(B * nx * ny, N, C)
    qkv = xw @ w_qkv.T                                 # (BW, N, 3C)
    q, k, v = jnp.split(qkv, 3, axis=-1)

    def split_heads(t):
        return jnp.transpose(t.reshape(-1, N, heads, hd), (0, 2, 1, 3))

    q, k, v = map(split_heads, (q, k, v))
    q = q * scale
    att = jnp.einsum('bhid,bhjd->bhij', q, k)
    att = jax.nn.softmax(att, axis=-1)
    ctx = jnp.einsum('bhij,bhjd->bhid', att, v)        # (BW, h, N, d)
    ctx = jnp.transpose(ctx, (0, 2, 1, 3)).reshape(B * nx * ny, N, C)
    out = ctx.reshape(B, nx, ny, ws, ws, C)
    out = jnp.transpose(out, (0, 5, 1, 3, 2, 4)).reshape(B, C, H, W)
    return out


if __name__ == "__main__":
    key = jax.random.PRNGKey(0)
    k_x, k_w = jax.random.split(key)

    B, C, H, W = 2, 16, 16, 16            # embed_dim = 16, heads = 4, head_dim = 4
    x = jax.random.normal(k_x, (B, C, H, W), dtype=jnp.float32)
    # Deterministic synthetic weight for nn.Linear(embed_dim, 3*embed_dim, bias=False)
    w_qkv = 0.05 * jax.random.normal(k_w, (3 * C, C), dtype=jnp.float32)

    out = multi_head_self_attention_ieu(x, w_qkv, window_size=8)
    out = jax.block_until_ready(out)

    ref = _reference(x, w_qkv, window_size=8)
    assert out.shape == (B, C, H, W)
    # tolerance loosened slightly to accommodate pl.reciprocal(approx=True)
    assert jnp.allclose(out, ref, atol=2e-3, rtol=2e-3)
    print("KERNEL_OK")
</pallas_src>

<mosaic_0001>
module attributes {stable_mosaic.version = 11 : i64} {
  func.func @_mhsa_kernel(%arg0: i32, %arg1: memref<4x64x16xf32, #tpu.memory_space<vmem>>, %arg2: memref<16x48xf32, #tpu.memory_space<vmem>>, %arg3: memref<4x64x16xf32, #tpu.memory_space<vmem>>) attributes {dimension_semantics = [#tpu.dimension_semantics<parallel>], iteration_bounds = array<i64: 2>, scalar_prefetch = 0 : i64, scratch_operands = 0 : i64, tpu.core_type = #tpu.core_type<tc>, window_params = [{transform_indices = @transform_0, window_bounds = array<i64: 4, 64, 16>}, {pipeline_mode = #tpu.pipeline_mode<synchronous>, transform_indices = @transform_1, window_bounds = array<i64: 16, 48>}, {transform_indices = @transform_2, window_bounds = array<i64: 4, 64, 16>}]} {
    %c0 = arith.constant 0 : index
    %c0_0 = arith.constant 0 : index
    %c0_1 = arith.constant 0 : index
    %0 = vector.load %arg1[%c0, %c0_0, %c0_1] : memref<4x64x16xf32, #tpu.memory_space<vmem>>, vector<4x64x16xf32>
    %c0_2 = arith.constant 0 : index
    %c0_3 = arith.constant 0 : index
    %1 = vector.load %arg2[%c0_2, %c0_3] : memref<16x48xf32, #tpu.memory_space<vmem>>, vector<16x48xf32>
    %2 = vector.shape_cast %0 : vector<4x64x16xf32> to vector<256x16xf32>
    %cst = arith.constant dense<0.000000e+00> : vector<256x48xf32>
    %3 = tpu.matmul %2, %1, %cst {dimension_numbers = #tpu.dot_dimension_numbers<[1], [0], [0], [1], [0, 0, 1, 1], [], []>} : vector<256x16xf32>, vector<16x48xf32>, vector<256x48xf32> -> vector<256x48xf32>
    %4 = vector.shape_cast %3 : vector<256x48xf32> to vector<4x64x48xf32>
    %5 = vector.extract_strided_slice %4 {offsets = [0, 0, 0], sizes = [4, 64, 4], strides = [1, 1, 1]} : vector<4x64x48xf32> to vector<4x64x4xf32>
    %6 = vector.extract_strided_slice %4 {offsets = [0, 0, 16], sizes = [4, 64, 4], strides = [1, 1, 1]} : vector<4x64x48xf32> to vector<4x64x4xf32>
    %7 = vector.extract_strided_slice %4 {offsets = [0, 0, 32], sizes = [4, 64, 4], strides = [1, 1, 1]} : vector<4x64x48xf32> to vector<4x64x4xf32>
    %cst_4 = arith.constant dense<0.000000e+00> : vector<4x64x64xf32>
    %8 = tpu.matmul %5, %6, %cst_4 {dimension_numbers = #tpu.dot_dimension_numbers<[2], [2], [1], [1], [0, 0, 0, 1, 1, 1], [0], [0]>} : vector<4x64x4xf32>, vector<4x64x4xf32>, vector<4x64x64xf32> -> vector<4x64x64xf32>
    %cst_5 = arith.constant dense<0xFF800000> : vector<4x64xf32>
    %9 = vector.multi_reduction <maximumf>, %8, %cst_5 [2] : vector<4x64x64xf32> to vector<4x64xf32>
    %10 = vector.shape_cast %9 : vector<4x64xf32> to vector<4x64x1xf32>
    %11 = vector.broadcast %10 : vector<4x64x1xf32> to vector<4x64x64xf32>
    %12 = arith.subf %8, %11 : vector<4x64x64xf32>
    %13 = math.exp %12 : vector<4x64x64xf32>
    %cst_6 = arith.constant dense<0.000000e+00> : vector<4x64xf32>
    %14 = vector.multi_reduction <add>, %13, %cst_6 [2] : vector<4x64x64xf32> to vector<4x64xf32>
    %15 = vector.shape_cast %14 : vector<4x64xf32> to vector<4x64x1xf32>
    %16 = tpu.reciprocal %15 {approx = true} : vector<4x64x1xf32> -> vector<4x64x1xf32>
    %17 = vector.broadcast %16 : vector<4x64x1xf32> to vector<4x64x64xf32>
    %18 = arith.mulf %13, %17 : vector<4x64x64xf32>
    %cst_7 = arith.constant dense<0.000000e+00> : vector<4x64x4xf32>
    %19 = tpu.matmul %18, %7, %cst_7 {dimension_numbers = #tpu.dot_dimension_numbers<[2], [1], [1], [2], [0, 0, 0, 1, 1, 2], [0], [0]>} : vector<4x64x64xf32>, vector<4x64x4xf32>, vector<4x64x4xf32> -> vector<4x64x4xf32>
    %c0_8 = arith.constant 0 : index
    %c0_9 = arith.constant 0 : index
    %c0_10 = arith.constant 0 : index
    %20 = vector.load %arg3[%c0_8, %c0_9, %c0_10] : memref<4x64x16xf32, #tpu.memory_space<vmem>>, vector<4x64x4xf32>
    tpu.vector_store %arg3[%c0_8, %c0_9, %c0_10], %19 {strides = array<i32>} : memref<4x64x16xf32, #tpu.memory_space<vmem>>, vector<4x64x4xf32>,
    %21 = vector.extract_strided_slice %4 {offsets = [0, 0, 4], sizes = [4, 64, 4], strides = [1, 1, 1]} : vector<4x64x48xf32> to vector<4x64x4xf32>
    %22 = vector.extract_strided_slice %4 {offsets = [0, 0, 20], sizes = [4, 64, 4], strides = [1, 1, 1]} : vector<4x64x48xf32> to vector<4x64x4xf32>
    %23 = vector.extract_strided_slice %4 {offsets = [0, 0, 36], sizes = [4, 64, 4], strides = [1, 1, 1]} : vector<4x64x48xf32> to vector<4x64x4xf32>
    %cst_11 = arith.constant dense<0.000000e+00> : vector<4x64x64xf32>
    %24 = tpu.matmul %21, %22, %cst_11 {dimension_numbers = #tpu.dot_dimension_numbers<[2], [2], [1], [1], [0, 0, 0, 1, 1, 1], [0], [0]>} : vector<4x64x4xf32>, vector<4x64x4xf32>, vector<4x64x64xf32> -> vector<4x64x64xf32>
    %cst_12 = arith.constant dense<0xFF800000> : vector<4x64xf32>
    %25 = vector.multi_reduction <maximumf>, %24, %cst_12 [2] : vector<4x64x64xf32> to vector<4x64xf32>
    %26 = vector.shape_cast %25 : vector<4x64xf32> to vector<4x64x1xf32>
    %27 = vector.broadcast %26 : vector<4x64x1xf32> to vector<4x64x64xf32>
    %28 = arith.subf %24, %27 : vector<4x64x64xf32>
    %29 = math.exp %28 : vector<4x64x64xf32>
    %cst_13 = arith.constant dense<0.000000e+00> : vector<4x64xf32>
    %30 = vector.multi_reduction <add>, %29, %cst_13 [2] : vector<4x64x64xf32> to vector<4x64xf32>
    %31 = vector.shape_cast %30 : vector<4x64xf32> to vector<4x64x1xf32>
    %32 = tpu.reciprocal %31 {approx = true} : vector<4x64x1xf32> -> vector<4x64x1xf32>
    %33 = vector.broadcast %32 : vector<4x64x1xf32> to vector<4x64x64xf32>
    %34 = arith.mulf %29, %33 : vector<4x64x64xf32>
    %cst_14 = arith.constant dense<0.000000e+00> : vector<4x64x4xf32>
    %35 = tpu.matmul %34, %23, %cst_14 {dimension_numbers = #tpu.dot_dimension_numbers<[2], [1], [1], [2], [0, 0, 0, 1, 1, 2], [0], [0]>} : vector<4x64x64xf32>, vector<4x64x4xf32>, vector<4x64x4xf32> -> vector<4x64x4xf32>
    %c0_15 = arith.constant 0 : index
    %c0_16 = arith.constant 0 : index
    %c4 = arith.constant 4 : index
    %36 = vector.load %arg3[%c0_15, %c0_16, %c4] : memref<4x64x16xf32, #tpu.memory_space<vmem>>, vector<4x64x4xf32>
    tpu.vector_store %arg3[%c0_15, %c0_16, %c4], %35 {strides = array<i32>} : memref<4x64x16xf32, #tpu.memory_space<vmem>>, vector<4x64x4xf32>,
    %37 = vector.extract_strided_slice %4 {offsets = [0, 0, 8], sizes = [4, 64, 4], strides = [1, 1, 1]} : vector<4x64x48xf32> to vector<4x64x4xf32>
    %38 = vector.extract_strided_slice %4 {offsets = [0, 0, 24], sizes = [4, 64, 4], strides = [1, 1, 1]} : vector<4x64x48xf32> to vector<4x64x4xf32>
    %39 = vector.extract_strided_slice %4 {offsets = [0, 0, 40], sizes = [4, 64, 4], strides = [1, 1, 1]} : vector<4x64x48xf32> to vector<4x64x4xf32>
    %cst_17 = arith.constant dense<0.000000e+00> : vector<4x64x64xf32>
    %40 = tpu.matmul %37, %38, %cst_17 {dimension_numbers = #tpu.dot_dimension_numbers<[2], [2], [1], [1], [0, 0, 0, 1, 1, 1], [0], [0]>} : vector<4x64x4xf32>, vector<4x64x4xf32>, vector<4x64x64xf32> -> vector<4x64x64xf32>
    %cst_18 = arith.constant dense<0xFF800000> : vector<4x64xf32>
    %41 = vector.multi_reduction <maximumf>, %40, %cst_18 [2] : vector<4x64x64xf32> to vector<4x64xf32>
    %42 = vector.shape_cast %41 : vector<4x64xf32> to vector<4x64x1xf32>
    %43 = vector.broadcast %42 : vector<4x64x1xf32> to vector<4x64x64xf32>
    %44 = arith.subf %40, %43 : vector<4x64x64xf32>
    %45 = math.exp %44 : vector<4x64x64xf32>
    %cst_19 = arith.constant dense<0.000000e+00> : vector<4x64xf32>
    %46 = vector.multi_reduction <add>, %45, %cst_19 [2] : vector<4x64x64xf32> to vector<4x64xf32>
    %47 = vector.shape_cast %46 : vector<4x64xf32> to vector<4x64x1xf32>
    %48 = tpu.reciprocal %47 {approx = true} : vector<4x64x1xf32> -> vector<4x64x1xf32>
    %49 = vector.broadcast %48 : vector<4x64x1xf32> to vector<4x64x64xf32>
    %50 = arith.mulf %45, %49 : vector<4x64x64xf32>
    %cst_20 = arith.constant dense<0.000000e+00> : vector<4x64x4xf32>
    %51 = tpu.matmul %50, %39, %cst_20 {dimension_numbers = #tpu.dot_dimension_numbers<[2], [1], [1], [2], [0, 0, 0, 1, 1, 2], [0], [0]>} : vector<4x64x64xf32>, vector<4x64x4xf32>, vector<4x64x4xf32> -> vector<4x64x4xf32>
    %c0_21 = arith.constant 0 : index
    %c0_22 = arith.constant 0 : index
    %c8 = arith.constant 8 : index
    %52 = vector.load %arg3[%c0_21, %c0_22, %c8] : memref<4x64x16xf32, #tpu.memory_space<vmem>>, vector<4x64x4xf32>
    tpu.vector_store %arg3[%c0_21, %c0_22, %c8], %51 {strides = array<i32>} : memref<4x64x16xf32, #tpu.memory_space<vmem>>, vector<4x64x4xf32>,
    %53 = vector.extract_strided_slice %4 {offsets = [0, 0, 12], sizes = [4, 64, 4], strides = [1, 1, 1]} : vector<4x64x48xf32> to vector<4x64x4xf32>
    %54 = vector.extract_strided_slice %4 {offsets = [0, 0, 28], sizes = [4, 64, 4], strides = [1, 1, 1]} : vector<4x64x48xf32> to vector<4x64x4xf32>
    %55 = vector.extract_strided_slice %4 {offsets = [0, 0, 44], sizes = [4, 64, 4], strides = [1, 1, 1]} : vector<4x64x48xf32> to vector<4x64x4xf32>
    %cst_23 = arith.constant dense<0.000000e+00> : vector<4x64x64xf32>
    %56 = tpu.matmul %53, %54, %cst_23 {dimension_numbers = #tpu.dot_dimension_numbers<[2], [2], [1], [1], [0, 0, 0, 1, 1, 1], [0], [0]>} : vector<4x64x4xf32>, vector<4x64x4xf32>, vector<4x64x64xf32> -> vector<4x64x64xf32>
    %cst_24 = arith.constant dense<0xFF800000> : vector<4x64xf32>
    %57 = vector.multi_reduction <maximumf>, %56, %cst_24 [2] : vector<4x64x64xf32> to vector<4x64xf32>
    %58 = vector.shape_cast %57 : vector<4x64xf32> to vector<4x64x1xf32>
    %59 = vector.broadcast %58 : vector<4x64x1xf32> to vector<4x64x64xf32>
    %60 = arith.subf %56, %59 : vector<4x64x64xf32>
    %61 = math.exp %60 : vector<4x64x64xf32>
    %cst_25 = arith.constant dense<0.000000e+00> : vector<4x64xf32>
    %62 = vector.multi_reduction <add>, %61, %cst_25 [2] : vector<4x64x64xf32> to vector<4x64xf32>
    %63 = vector.shape_cast %62 : vector<4x64xf32> to vector<4x64x1xf32>
    %64 = tpu.reciprocal %63 {approx = true} : vector<4x64x1xf32> -> vector<4x64x1xf32>
    %65 = vector.broadcast %64 : vector<4x64x1xf32> to vector<4x64x64xf32>
    %66 = arith.mulf %61, %65 : vector<4x64x64xf32>
    %cst_26 = arith.constant dense<0.000000e+00> : vector<4x64x4xf32>
    %67 = tpu.matmul %66, %55, %cst_26 {dimension_numbers = #tpu.dot_dimension_numbers<[2], [1], [1], [2], [0, 0, 0, 1, 1, 2], [0], [0]>} : vector<4x64x64xf32>, vector<4x64x4xf32>, vector<4x64x4xf32> -> vector<4x64x4xf32>
    %c0_27 = arith.constant 0 : index
    %c0_28 = arith.constant 0 : index
    %c12 = arith.constant 12 : index
    %68 = vector.load %arg3[%c0_27, %c0_28, %c12] : memref<4x64x16xf32, #tpu.memory_space<vmem>>, vector<4x64x4xf32>
    tpu.vector_store %arg3[%c0_27, %c0_28, %c12], %67 {strides = array<i32>} : memref<4x64x16xf32, #tpu.memory_space<vmem>>, vector<4x64x4xf32>,
    return
  }
  func.func @transform_0(%arg0: i32) -> (i32, i32, i32) {
    %c0_i32 = arith.constant 0 : i32
    %c0_i32_0 = arith.constant 0 : i32
    %c0_i32_1 = arith.constant 0 : i32
    return %arg0, %c0_i32, %c0_i32_0 : i32, i32, i32
  }
  func.func @transform_1(%arg0: i32) -> (i32, i32) {
    %c0_i32 = arith.constant 0 : i32
    %c0_i32_0 = arith.constant 0 : i32
    %c0_i32_1 = arith.constant 0 : i32
    return %c0_i32, %c0_i32_0 : i32, i32
  }
  func.func @transform_2(%arg0: i32) -> (i32, i32, i32) {
    %c0_i32 = arith.constant 0 : i32
    %c0_i32_0 = arith.constant 0 : i32
    %c0_i32_1 = arith.constant 0 : i32
    return %arg0, %c0_i32, %c0_i32_0 : i32, i32, i32
  }
}

</mosaic_0001>

<bundles_post_ra>
// kernel: tpu_custom_call.1
= control target key start
LH: loop header
LB: loop body
LE: loop exit
PB: predicated region body
PF: predicated region fallthrough
CT: control target
= control target key end

     0   :  { %s6773_s9 = smov 0   ;;  %s10780_s0 = inlined_call_operand.vmem [shape: f32[8,64,16], index: 0, kind: input, shape index: {}]   ;;  %s10781_s1 = inlined_call_operand.vmem [shape: f32[16,48], index: 1, kind: input, shape index: {}]   ;;  %s10782_s2 = inlined_call_operand.vmem [shape: f32[8,64,16], index: 2, kind: output, shape index: {}]  }
   0x1 LB: > { %s5451_s10 = sadd.s32 4294967295, %s6742_s9   ;;  %p5455_p0 = scmp.ge.s32.totalorder %s6742_s9, 1  ;;  %s6742_s9 = sphi %s6773_s9, %s12_s9  }
   0x2   : > { %p114_p1 = scmp.lt.s32.totalorder %s6742_s9, 3 }
   0x4   : > { %p115_p2 = pnand %p5455_p0, %p114_p1 }
   0x6   : > { %118 = sbr.rel (%p115_p2) target bundleno = 4291 (0x10c3), region = 28 }
   0xb   : > { %v185_v0 = vld [vmem:[%s10781_s1 + $0x8] sm:$0xff]  ;;  %v184_v1 = vld [vmem:[%s10781_s1] sm:$0xff]  ;;  %s5456_s15 = sshll.u32 %s5451_s10, 2  ;;  %vm186_vm0 = vcmask 130048   ;;  %s6744_s20 = smov 120   ;;  %vm420_vm1 = vcmask 31744  }
   0xc   : > { %297 = vmatpush.msra.mxu0 %v185_v0  ;;  %p139_p3 = scmp.lt.s32.totalorder %s5456_s15, 7  ;;  %s6745_s21 = smov 124   ;;  %vm785_vm2 = vcmask 523264   ;;  %vm2782_vm3 = vcmask 64544   ;;  %vm4071_vm4 = vcmask 97344   ;;  %vm5360_vm5 = vcmask 130144  }
   0xd   : > { %s6746_s22 = smov 112   ;;  %s6747_s23 = smov 108  }
   0xe   : > { %298 = vmatpush.msra.mxu0 %v184_v1  ;;  %s11354_s15 = smov (!%p139_p3, %s5456_s15), 7  ;;  %s6748_s24 = smov 96  }
   0xf   : > { %s5880_s16 = sshll.u32 %s11354_s15, 6  ;;  %s6749_s25 = smov 92  }
  0x10   : > { %s6795_s19 = scalar_lea.vmem %s10780_s0, %s5880_s16  ;;  %s6750_s26 = smov 104  }
  0x11   : > { %v152_v2 = vld [vmem:[%s6795_s19] sm:$0xff]  ;;  %v153_v3 = vld [vmem:[%s6795_s19 + $0x8] sm:$0xff]  ;;  %v154_v4 = vld [vmem:[%s6795_s19 + $0x10] sm:$0xff]  ;;  %s8080_s29 = scalar_lea.vmem %s10782_s2, %s5880_s16  ;;  %s6751_s30 = smov 88  }
  0x12   : > { %5462 = vmatmul.msk.f32.vlgmr.msra.gmra.mxu0 %vm186_vm0, %v152_v2  ;;  %v155_v5 = vld [vmem:[%s6795_s19 + $0x18] sm:$0xff]  ;;  %v156_v6 = vld [vmem:[%s6795_s19 + $0x20] sm:$0xff]  ;;  %v157_v7 = vld [vmem:[%s6795_s19 + $0x28] sm:$0xff]  ;;  %s6752_s3 = smov 116   ;;  %s6753_s4 = smov 100  }
  0x13   : > { %v158_v8 = vld [vmem:[%s6795_s19 + $0x30] sm:$0xff]  ;;  %v159_v9 = vld [vmem:[%s6795_s19 + $0x38] sm:$0xff]  ;;  %v160_v10 = vld [vmem:[%s6795_s19 + $0x40] sm:$0xff]  ;;  %s6754_s5 = smov 84   ;;  %s6755_s6 = smov 4  }
  0x14   : > { %v161_v11 = vld [vmem:[%s6795_s19 + $0x48] sm:$0xff]  ;;  %v162_v12 = vld [vmem:[%s6795_s19 + $0x50] sm:$0xff]  ;;  %v163_v13 = vld [vmem:[%s6795_s19 + $0x58] sm:$0xff]  ;;  %s6756_s7 = smov 8   ;;  %s6757_s8 = smov 12  }
  0x15   : > { %v164_v14 = vld [vmem:[%s6795_s19 + $0x60] sm:$0xff]  ;;  %v165_v15 = vld [vmem:[%s6795_s19 + $0x68] sm:$0xff]  ;;  %v166_v16 = vld [vmem:[%s6795_s19 + $0x70] sm:$0xff] }
  0x16   : > { %v167_v17 = vld [vmem:[%s6795_s19 + $0x78] sm:$0xff]  ;;  %v168_v19 = vld [vmem:[%s6795_s19 + $0x80] sm:$0xff]  ;;  %v169_v21 = vld [vmem:[%s6795_s19 + $0x88] sm:$0xff] }
  0x17   : > { %v170_v24 = vld [vmem:[%s6795_s19 + $0x90] sm:$0xff]  ;;  %v171_v25 = vld [vmem:[%s6795_s19 + $0x98] sm:$0xff]  ;;  %v172_v27 = vld [vmem:[%s6795_s19 + $0xa0] sm:$0xff] }
  0x18   : > { %v173_v28 = vld [vmem:[%s6795_s19 + $0xa8] sm:$0xff]  ;;  %v174_v31 = vld [vmem:[%s6795_s19 + $0xb0] sm:$0xff]  ;;  %v175_v34 = vld [vmem:[%s6795_s19 + $0xb8] sm:$0xff] }
  0x19   : > { %v176_v35 = vld [vmem:[%s6795_s19 + $0xc0] sm:$0xff]  ;;  %v177_v37 = vld [vmem:[%s6795_s19 + $0xc8] sm:$0xff]  ;;  %v178_v39 = vld [vmem:[%s6795_s19 + $0xd0] sm:$0xff] }
  0x1a   : > { %5463 = vmatmul.msk.f32.gmra.mxu0 %vm186_vm0, %v153_v3  ;;  %v179_v42 = vld [vmem:[%s6795_s19 + $0xd8] sm:$0xff]  ;;  %v180_v44 = vld [vmem:[%s6795_s19 + $0xe0] sm:$0xff]  ;;  %v181_v47 = vld [vmem:[%s6795_s19 + $0xe8] sm:$0xff] }
  0x1b   : > { %v182_v50 = vld [vmem:[%s6795_s19 + $0xf0] sm:$0xff]  ;;  %v183_v57 = vld [vmem:[%s6795_s19 + $0xf8] sm:$0xff] }
  0x22   : > { %5464 = vmatmul.msk.f32.gmra.mxu0 %vm186_vm0, %v154_v4 }
  0x2a   : > { %5465 = vmatmul.msk.f32.gmra.mxu0 %vm186_vm0, %v155_v5 }
  0x32   : > { %5466 = vmatmul.msk.f32.gmra.mxu0 %vm186_vm0, %v156_v6 }
  0x3a   : > { %5467 = vmatmul.msk.f32.gmra.mxu0 %vm186_vm0, %v157_v7 }
  0x42   : > { %5468 = vmatmul.msk.f32.gmra.mxu0 %vm186_vm0, %v158_v8 }
  0x4a   : > { %5469 = vmatmul.msk.f32.gmra.mxu0 %vm186_vm0, %v159_v9 }
  0x52   : > { %5470 = vmatmul.msk.f32.gmra.mxu0 %vm186_vm0, %v160_v10 }
  0x5a   : > { %5471 = vmatmul.msk.f32.gmra.mxu0 %vm186_vm0, %v161_v11 }
  0x62   : > { %5472 = vmatmul.msk.f32.gmra.mxu0 %vm186_vm0, %v162_v12 }
  0x6a   : > { %5473 = vmatmul.msk.f32.gmra.mxu0 %vm186_vm0, %v163_v13 }
  0x72   : > { %5474 = vmatmul.msk.f32.gmra.mxu0 %vm186_vm0, %v164_v14 }
  0x7a   : > { %5475 = vmatmul.msk.f32.gmra.mxu0 %vm186_vm0, %v165_v15 }
  0x82   : > { %5476 = vmatmul.msk.f32.gmra.mxu0 %vm186_vm0, %v166_v16 }
  0x8a   : > { %5477 = vmatmul.msk.f32.gmra.mxu0 %vm186_vm0, %v167_v17 }
  0x8f   : > { %v6829_v18 = vpop.f32.mrf.mxu0 }
  0x90   : > { %10897 = vst [vmem:[#allocation2_spill] sm:$0xff] %v6829_v18  ;;  %2815 = vrot.lane.b32.xlu1 %v6829_v18, %s6744_s20  ;;  %1526 = vrot.lane.b32.xlu2 %v6829_v18, %s6745_s21 }
  0x91   : > { %404 = vrot.lane.b32.xlu0 %v6829_v18, %s6746_s22 }
  0x92   : > { %5478 = vmatmul.msk.f32.gmra.mxu0 %vm186_vm0, %v168_v19 }
  0x97   : > { %v6839_v20 = vpop.f32.mrf.mxu0 }
  0x98   : > { %10898 = vst [vmem:[#allocation3_spill] sm:$0xff] %v6839_v20  ;;  %1528 = vrot.lane.b32.xlu1 %v6839_v20, %s6745_s21  ;;  %v6846_v22 = vpack.i.bf16 %v6839_v20, %v6829_v18 }
  0x99   : > { %1542 = vrot.lane.b32.xlu0 %v6829_v18, %s6747_s23 }
  0x9a   : > { %10899 = vst [vmem:[#allocation4_spill] sm:$0xff] %v6846_v22  ;;  %5479 = vmatmul.msk.f32.gmra.mxu0 %vm186_vm0, %v169_v21  ;;  %5905 = vrot.lane.b32.xlu2 %v6846_v22, %s6748_s24 }
  0x9f   : > { %v6853_v23 = vpop.f32.mrf.mxu0 }
  0xa0   : > { %10900 = vst [vmem:[#allocation5_spill] sm:$0xff] %v6853_v23  ;;  %408 = vrot.lane.b32.xlu1 %v6853_v23, %s6746_s22 }
  0xa1   : > { %406 = vrot.lane.b32.xlu0 %v6839_v20, %s6746_s22 }
  0xa2   : > { %5480 = vmatmul.msk.f32.gmra.mxu0 %vm186_vm0, %v170_v24  ;;  %1544 = vrot.lane.b32.xlu2 %v6839_v20, %s6747_s23 }
  0xa7   : > { %v6871_v26 = vpop.f32.mrf.mxu0 }
  0xa8   : > { %1546 = vrot.lane.b32.xlu1 %v6853_v23, %s6747_s23  ;;  %10901 = vst [vmem:[#allocation6_spill] sm:$0xff] %v6871_v26  ;;  %v6886_v29 = vpack.i.bf16 %v6871_v26, %v6853_v23 }
  0xa9   : > { %5910 = vrot.lane.b32.xlu0 %v6846_v22, %s6749_s25 }
  0xaa   : > { %5481 = vmatmul.msk.f32.gmra.mxu0 %vm186_vm0, %v171_v25  ;;  %2817 = vrot.lane.b32.xlu2 %v6839_v20, %s6744_s20  ;;  %10902 = vst [vmem:[#allocation7_spill] sm:$0xff] %v6886_v29 }
  0xaf   : > { %v6893_v30 = vpop.f32.mrf.mxu0 }
  0xb0   : > { %410 = vrot.lane.b32.xlu1 %v6871_v26, %s6746_s22  ;;  %10903 = vst [vmem:[#allocation8_spill] sm:$0xff] %v6893_v30 }
  0xb1   : > { %1530 = vrot.lane.b32.xlu0 %v6853_v23, %s6745_s21 }
  0xb2   : > { %5482 = vmatmul.msk.f32.gmra.mxu0 %vm186_vm0, %v172_v27  ;;  %1532 = vrot.lane.b32.xlu2 %v6871_v26, %s6745_s21 }
  0xb7   : > { %v6903_v32 = vpop.f32.mrf.mxu0 }
  0xb8   : > { %2821 = vrot.lane.b32.xlu1 %v6871_v26, %s6744_s20  ;;  %10904 = vst [vmem:[#allocation9_spill] sm:$0xff] %v6903_v32  ;;  %v6907_v33 = vpack.i.bf16 %v6903_v32, %v6893_v30 }
  0xb9   : > { %2819 = vrot.lane.b32.xlu0 %v6853_v23, %s6744_s20 }
  0xba   : > { %5483 = vmatmul.msk.f32.gmra.mxu0 %vm186_vm0, %v173_v28  ;;  %5920 = vrot.lane.b32.xlu2 %v6886_v29, %s6749_s25  ;;  %10905 = vst [vmem:[#allocation10_spill] sm:$0xff] %v6907_v33 }
  0xbf   : > { %v6925_v36 = vpop.f32.mrf.mxu0 }
  0xc0   : > { %1534 = vrot.lane.b32.xlu1 %v6893_v30, %s6745_s21  ;;  %10906 = vst [vmem:[#allocation11_spill] sm:$0xff] %v6925_v36 }
  0xc1   : > { %5915 = vrot.lane.b32.xlu0 %v6886_v29, %s6748_s24 }
  0xc2   : > { %5484 = vmatmul.msk.f32.gmra.mxu0 %vm186_vm0, %v174_v31  ;;  %412 = vrot.lane.b32.xlu2 %v6893_v30, %s6746_s22 }
  0xc7   : > { %v6935_v38 = vpop.f32.mrf.mxu0 }
  0xc8   : > { %5925 = vrot.lane.b32.xlu1 %v6907_v33, %s6748_s24  ;;  %10907 = vst [vmem:[#allocation12_spill] sm:$0xff] %v6935_v38  ;;  %v6949_v41 = vpack.i.bf16 %v6935_v38, %v6925_v36 }
  0xc9   : > { %1548 = vrot.lane.b32.xlu0 %v6871_v26, %s6747_s23 }
  0xca   : > { %5485 = vmatmul.msk.f32.gmra.mxu0 %vm186_vm0, %v175_v34  ;;  %1550 = vrot.lane.b32.xlu2 %v6893_v30, %s6747_s23  ;;  %10909 = vst [vmem:[#allocation14_spill] sm:$0xff] %v6949_v41 }
  0xcf   : > { %v6945_v40 = vpop.f32.mrf.mxu0 }
  0xd0   : > { %1552 = vrot.lane.b32.xlu1 %v6903_v32, %s6747_s23  ;;  %10908 = vst [vmem:[#allocation13_spill] sm:$0xff] %v6945_v40 }
  0xd1   : > { %1536 = vrot.lane.b32.xlu0 %v6903_v32, %s6745_s21 }
  0xd2   : > { %5486 = vmatmul.msk.f32.gmra.mxu0 %vm186_vm0, %v176_v35  ;;  %2823 = vrot.lane.b32.xlu2 %v6893_v30, %s6744_s20 }
  0xd7   : > { %v6964_v45 = vpop.f32.mrf.mxu0 }
  0xd8   : > { %5930 = vrot.lane.b32.xlu1 %v6907_v33, %s6749_s25  ;;  %10911 = vst [vmem:[#allocation16_spill] sm:$0xff] %v6964_v45  ;;  %v6990_v51 = vpack.i.bf16 %v6964_v45, %v6945_v40 }
  0xd9   : > { %416 = vrot.lane.b32.xlu0 %v6925_v36, %s6746_s22 }
  0xda   : > { %5487 = vmatmul.msk.f32.gmra.mxu0 %vm186_vm0, %v177_v37  ;;  %414 = vrot.lane.b32.xlu2 %v6903_v32, %s6746_s22  ;;  %10913 = vst [vmem:[#allocation18_spill] sm:$0xff] %v6990_v51 }
  0xdf   : > { %v6981_v48 = vpop.f32.mrf.mxu0 }
  0xe0   : > { %418 = vrot.lane.b32.xlu1 %v6935_v38, %s6746_s22  ;;  %10912 = vst [vmem:[#allocation17_spill] sm:$0xff] %v6981_v48 }
  0xe1   : > { %1554 = vrot.lane.b32.xlu0 %v6925_v36, %s6747_s23 }
  0xe2   : > { %5488 = vmatmul.msk.f32.gmra.mxu0 %vm186_vm0, %v178_v39  ;;  %1538 = vrot.lane.b32.xlu2 %v6925_v36, %s6745_s21 }
  0xe7   : > { %v7003_v55 = vpop.f32.mrf.mxu0 }
  0xe8   : > { %1540 = vrot.lane.b32.xlu1 %v6935_v38, %s6745_s21  ;;  %10916 = vst [vmem:[#allocation21_spill] sm:$0xff] %v7003_v55  ;;  %v7007_v56 = vpack.i.bf16 %v7003_v55, %v6981_v48 }
  0xe9   : > { %5935 = vrot.lane.b32.xlu0 %v6949_v41, %s6748_s24 }
  0xea   : > { %5489 = vmatmul.msk.f32.gmra.mxu0 %vm186_vm0, %v179_v42  ;;  %1556 = vrot.lane.b32.xlu2 %v6935_v38, %s6747_s23  ;;  %v6959_v43 = vpop.permute.xlu2 %1526  ;;  %10917 = vst [vmem:[#allocation22_spill] sm:$0xff] %v7007_v56 }
  0xeb   : > { %10910 = vst [vmem:[#allocation15_spill] sm:$0xff] %v6959_v43 }
  0xef   : > { %v7035_v0 = vpop.f32.mrf.mxu0 }
  0xf0   : > { %1631 = vrot.lane.b32.xlu1 %v6945_v40, %s6745_s21  ;;  %10920 = vst [vmem:[#allocation25_spill] sm:$0xff] %v7035_v0 }
  0xf1   : > { %5940 = vrot.lane.b32.xlu0 %v6949_v41, %s6749_s25 }
  0xf2   : > { %5490 = vmatmul.msk.f32.gmra.mxu0 %vm186_vm0, %v180_v44  ;;  %502 = vrot.lane.b32.xlu2 %v6945_v40, %s6746_s22 }
  0xf4   : > { %v6971_v46 = vpop.permute.xlu2 %5905 }
  0xf7   : > { %v7049_v4 = vpop.f32.mrf.mxu0 }
  0xf8   : > { %1649 = vrot.lane.b32.xlu1 %v6964_v45, %s6747_s23  ;;  %10921 = vst [vmem:[#allocation26_spill] sm:$0xff] %v7049_v4  ;;  %v7065_v8 = vpack.i.bf16 %v7049_v4, %v7035_v0 }
  0xf9   : > { %504 = vrot.lane.b32.xlu0 %v6964_v45, %s6746_s22 }
  0xfa   : > { %5491 = vmatmul.msk.f32.gmra.mxu0 %vm186_vm0, %v181_v47  ;;  %1647 = vrot.lane.b32.xlu2 %v6945_v40, %s6747_s23  ;;  %10923 = vst [vmem:[#allocation28_spill] sm:$0xff] %v7065_v8 }
  0xfc   : > { %v6983_v49 = vpop.permute.xlu2 %1544 }
  0xff   : > { %v7069_v9 = vpop.f32.mrf.mxu0 }
 0x100   : > { %506 = vrot.lane.b32.xlu1 %v6981_v48, %s6746_s22  ;;  %10924 = vst [vmem:[#allocation29_spill] sm:$0xff] %v7069_v9 }
 0x101   : > { %1633 = vrot.lane.b32.xlu0 %v6964_v45, %s6745_s21 }
 0x102   : > { %v6994_v52 = vpop.permute.xlu1 %2815  ;;  %5492 = vmatmul.msk.f32.gmra.mxu0 %vm186_vm0, %v182_v50  ;;  %5945 = vrot.lane.b32.xlu2 %v6990_v51, %s6748_s24 }
 0x103   : > { %10914 = vst [vmem:[#allocation19_spill] sm:$0xff] %v6994_v52  ;;  %v6999_v53 = vpop.permute.xlu0 %404 }
 0x104   : > { %v7001_v54 = vpop.permute.xlu2 %2817 }
 0x105   : > { %10915 = vst [vmem:[#allocation20_spill] sm:$0xff] %v7001_v54 }
 0x107   : > { %v7089_v14 = vpop.f32.mrf.mxu0 }
 0x108   : > { %5955 = vrot.lane.b32.xlu1 %v7007_v56, %s6748_s24  ;;  %10929 = vst [vmem:[#allocation34_spill] sm:$0xff] %v7089_v14  ;;  %v7111_v25 = vpack.i.bf16 %v7089_v14, %v7069_v9 }
 0x109   : > { %1651 = vrot.lane.b32.xlu0 %v6981_v48, %s6747_s23 }
 0x10a   : > { %v7014_v58 = vpop.permute.xlu1 %1528  ;;  %5493 = vmatmul.msk.f32.gmra.mxu0 %vm186_vm0, %v183_v57  ;;  %5950 = vrot.lane.b32.xlu2 %v6990_v51, %s6749_s25  ;;  %10932 = vst [vmem:[#allocation37_spill] sm:$0xff] %v7111_v25 }
 0x10b   : > { %10918 = vst [vmem:[#allocation23_spill] sm:$0xff] %v7014_v58  ;;  %v7019_v59 = vpop.permute.xlu0 %1542 }
 0x10c   : > { %v7021_v60 = vpop.permute.xlu2 %1532 }
 0x10d   : > { %10919 = vst [vmem:[#allocation24_spill] sm:$0xff] %v7021_v60 }
 0x10f   : > { %v7105_v24 = vpop.f32.mrf.mxu0 }
 0x110   : > { %1637 = vrot.lane.b32.xlu1 %v7003_v55, %s6745_s21  ;;  %10931 = vst [vmem:[#allocation36_spill] sm:$0xff] %v7105_v24 }
 0x111   : > { %5960 = vrot.lane.b32.xlu0 %v7007_v56, %s6749_s25 }
 0x112   : > { %v7027_v61 = vpop.permute.xlu1 %408  ;;  %1635 = vrot.lane.b32.xlu2 %v6981_v48, %s6745_s21 }
 0x113   : > { %v7031_v62 = vpop.permute.xlu0 %406 }
 0x114   : > { %v7033_v63 = vpop.permute.xlu2 %5920 }
 0x117   : > { %v7123_v34 = vpop.f32.mrf.mxu0 }
 0x118   : > { %1655 = vrot.lane.b32.xlu1 %v7035_v0, %s6747_s23  ;;  %10934 = vst [vmem:[#allocation39_spill] sm:$0xff] %v7123_v34  ;;  %v7135_v42 = vpack.i.bf16 %v7123_v34, %v7105_v24 }
 0x119   : > { %510 = vrot.lane.b32.xlu0 %v7035_v0, %s6746_s22 }
 0x11a   : > { %v7041_v1 = vpop.permute.xlu1 %1546  ;;  %508 = vrot.lane.b32.xlu2 %v7003_v55, %s6746_s22  ;;  %10935 = vst [vmem:[#allocation40_spill] sm:$0xff] %v7135_v42 }
 0x11b   : > { %v7045_v2 = vpop.permute.xlu0 %5910 }
 0x11c   : > { %v7047_v3 = vpop.permute.xlu2 %412 }
 0x11f   : > { %v7139_v44 = vpop.f32.mrf.mxu0 }
 0x120   : > { %512 = vrot.lane.b32.xlu1 %v7049_v4, %s6746_s22  ;;  %10936 = vst [vmem:[#allocation41_spill] sm:$0xff] %v7139_v44 }
 0x121   : > { %1639 = vrot.lane.b32.xlu0 %v7035_v0, %s6745_s21 }
 0x122   : > { %v7055_v5 = vpop.permute.xlu1 %410  ;;  %1653 = vrot.lane.b32.xlu2 %v7003_v55, %s6747_s23 }
 0x123   : > { %v7059_v6 = vpop.permute.xlu0 %1530 }
 0x124   : > { %10922 = vst [vmem:[#allocation27_spill] sm:$0xff] %v7059_v6  ;;  %v7061_v7 = vpop.permute.xlu2 %1550 }
 0x128   : > { %5970 = vrot.lane.b32.xlu1 %v7065_v8, %s6749_s25 }
 0x129   : > { %5965 = vrot.lane.b32.xlu0 %v7065_v8, %s6748_s24 }
 0x12a   : > { %v7073_v10 = vpop.permute.xlu1 %2821  ;;  %1641 = vrot.lane.b32.xlu2 %v7049_v4, %s6745_s21 }
 0x12b   : > { %10925 = vst [vmem:[#allocation30_spill] sm:$0xff] %v7073_v10  ;;  %v7077_v11 = vpop.permute.xlu0 %2819  ;;  %v7159_v10 = vpop.f32.mrf.mxu0 }
 0x12c   : > { %10926 = vst [vmem:[#allocation31_spill] sm:$0xff] %v7077_v11  ;;  %v7079_v12 = vpop.permute.xlu2 %2823 }
 0x12d   : > { %10927 = vst [vmem:[#allocation32_spill] sm:$0xff] %v7079_v12 }
 0x12e   : > { %10939 = vst [vmem:[#allocation44_spill] sm:$0xff] %v7159_v10 }
 0x130   : > { %1643 = vrot.lane.b32.xlu1 %v7069_v9, %s6745_s21 }
 0x131   : > { %1657 = vrot.lane.b32.xlu0 %v7049_v4, %s6747_s23 }
 0x132   : > { %v7085_v13 = vpop.permute.xlu1 %1534  ;;  %514 = vrot.lane.b32.xlu2 %v7069_v9, %s6746_s22 }
 0x133   : > { %10928 = vst [vmem:[#allocation33_spill] sm:$0xff] %v7085_v13  ;;  %v7091_v15 = vpop.permute.xlu0 %5915 }
 0x134   : > { %v415_v16 = vpop.permute.xlu2 %414 }
 0x138   : > { %1661 = vrot.lane.b32.xlu1 %v7089_v14, %s6747_s23 }
 0x139   : > { %516 = vrot.lane.b32.xlu0 %v7089_v14, %s6746_s22 }
 0x13a   : > { %v7097_v17 = vpop.permute.xlu1 %5925  ;;  %1659 = vrot.lane.b32.xlu2 %v7069_v9, %s6747_s23 }
 0x13b   : > { %v7101_v19 = vpop.permute.xlu0 %1548 }
 0x13c   : > { %v7103_v21 = vpop.permute.xlu2 %1538 }
 0x13d   : > { %10930 = vst [vmem:[#allocation35_spill] sm:$0xff] %v7103_v21 }
 0x140   : > { %599 = vrot.lane.b32.xlu1 %v7105_v24, %s6746_s22 }
 0x141   : > { %1645 = vrot.lane.b32.xlu0 %v7089_v14, %s6745_s21 }
 0x142   : > { %v7115_v27 = vpop.permute.xlu1 %1552  ;;  %5975 = vrot.lane.b32.xlu2 %v7111_v25, %s6748_s24 }
 0x143   : > { %v7119_v28 = vpop.permute.xlu0 %1536 }
 0x144   : > { %10933 = vst [vmem:[#allocation38_spill] sm:$0xff] %v7119_v28  ;;  %v7121_v31 = vpop.permute.xlu2 %1556 }
 0x148   : > { %1752 = vrot.lane.b32.xlu1 %v7105_v24, %s6747_s23 }
 0x149   : > { %1736 = vrot.lane.b32.xlu0 %v7105_v24, %s6745_s21 }
 0x14a   : > { %v5931_v35 = vpop.permute.xlu1 %5930  ;;  %5980 = vrot.lane.b32.xlu2 %v7111_v25, %s6749_s25 }
 0x14b   : > { %v417_v37 = vpop.permute.xlu0 %416  ;;  %v5933_v21 = vunpack.i.h.bf16 %v5931_v35 }
 0x14c   : > { %v7131_v39 = vpop.permute.xlu2 %502 }
 0x150   : > { %5985 = vrot.lane.b32.xlu1 %v7135_v42, %s6748_s24 }
 0x151   : > { %1754 = vrot.lane.b32.xlu0 %v7123_v34, %s6747_s23 }
 0x152   : > { %v419_v47 = vpop.permute.xlu1 %418  ;;  %601 = vrot.lane.b32.xlu2 %v7123_v34, %s6746_s22 }
 0x153   : > { %v7145_v50 = vpop.permute.xlu0 %1554  ;;  %5494 = vmatpush.xpose.msk.msra.mxu1 %vm420_vm1, %v419_v47 }
 0x154   : > { %v7148_v57 = vpop.permute.xlu2 %1647 }
 0x155   : > { %10937 = vst [vmem:[#allocation42_spill] sm:$0xff] %v7148_v57 }
 0x157   : > { %5495 = vmatpush.xpose.msk.msra.mxu1 %vm420_vm1, %v417_v37 }
 0x158   : > { %1740 = vrot.lane.b32.xlu1 %v7139_v44, %s6745_s21 }
 0x159   : > { %5990 = vrot.lane.b32.xlu0 %v7135_v42, %s6749_s25 }
 0x15a   : > { %v7155_v12 = vpop.permute.xlu1 %1540  ;;  %1738 = vrot.lane.b32.xlu2 %v7123_v34, %s6745_s21 }
 0x15b   : > { %10938 = vst [vmem:[#allocation43_spill] sm:$0xff] %v7155_v12  ;;  %v7161_v11 = vpop.permute.xlu0 %5935  ;;  %5496 = vmatpush.xpose.msk.msra.mxu1 %vm420_vm1, %v415_v16  ;;  %v7180_v12 = vpop.f32.mrf.mxu0 }
 0x15c   : > { %v7164_v47 = vpop.permute.xlu2 %5945  ;;  %10942 = vst [vmem:[#allocation47_spill] sm:$0xff] %v7180_v12 }
 0x15f   : > { %5497 = vmatpush.xpose.msk.msra.mxu1 %vm420_vm1, %v7047_v3 }
 0x160   : > { %605 = vrot.lane.b32.xlu1 %v7159_v10, %s6746_s22 }
 0x161   : > { %603 = vrot.lane.b32.xlu0 %v7139_v44, %s6746_s22 }
 0x162   : > { %v7172_v37 = vpop.permute.xlu1 %1631  ;;  %1756 = vrot.lane.b32.xlu2 %v7139_v44, %s6747_s23 }
 0x163   : > { %10940 = vst [vmem:[#allocation45_spill] sm:$0xff] %v7172_v37  ;;  %v5941_v54 = vpop.permute.xlu0 %5940  ;;  %5498 = vmatpush.xpose.msk.msra.mxu1 %vm420_vm1, %v7055_v5  ;;  %v7186_v37 = vpack.i.bf16 %v7159_v10, %v7139_v44 }
 0x164   : > { %v7178_v16 = vpop.permute.xlu2 %5950  ;;  %v5943_v52 = vunpack.i.h.bf16 %v5941_v54  ;;  %v5942_v3 = vunpack.i.l.bf16 %v5941_v54 }
 0x165   : > { %10941 = vst [vmem:[#allocation46_spill] sm:$0xff] %v7178_v16  ;;  %v5922_v16 = vunpack.i.l.bf16 %v7033_v63 }
 0x166   : > { %2354 = vmatpush.msrb.mxu0 %v5943_v52  ;;  %10943 = vst [vmem:[#allocation48_spill] sm:$0xff] %v7186_v37  ;;  %v5932_v52 = vunpack.i.l.bf16 %v5931_v35  ;;  %v5913_v35 = vunpack.i.h.bf16 %v7045_v2 }
 0x167   : > { %5499 = vmatpush.xpose.msk.msra.mxu1 %vm420_vm1, %v7027_v61 }
 0x168   : > { %2355 = vmatpush.msrb.mxu0 %v5942_v3  ;;  %1758 = vrot.lane.b32.xlu1 %v7159_v10, %s6747_s23  ;;  %v5923_v3 = vunpack.i.h.bf16 %v7033_v63  ;;  %v5912_v63 = vunpack.i.l.bf16 %v7045_v2 }
 0x169   : > { %5995 = vrot.lane.b32.xlu0 %v7186_v37, %s6748_s24 }
 0x16a   : > { %2356 = vmatpush.msrb.mxu0 %v5933_v21  ;;  %v7192_v5 = vpop.permute.xlu1 %1649  ;;  %607 = vrot.lane.b32.xlu2 %v7180_v12, %s6746_s22  ;;  %v7204_v21 = vpop.f32.mrf.mxu0 }
 0x16b   : > { %10944 = vst [vmem:[#allocation49_spill] sm:$0xff] %v7192_v5  ;;  %v7196_v54 = vpop.permute.xlu0 %504  ;;  %5500 = vmatpush.xpose.msk.msra.mxu1 %vm420_vm1, %v7031_v62 }
 0x16c   : > { %2357 = vmatpush.msrb.mxu0 %v5932_v52  ;;  %v7200_v61 = vpop.permute.xlu2 %1635  ;;  %10946 = vst [vmem:[#allocation51_spill] sm:$0xff] %v7204_v21 }
 0x16d   : > { %10945 = vst [vmem:[#allocation50_spill] sm:$0xff] %v7200_v61 }
 0x16e   : > { %2358 = vmatpush.msrb.mxu0 %v5923_v3  ;;  %v7232_v3 = vpack.i.bf16 %v7204_v21, %v7180_v12 }
 0x16f   : > { %5501 = vmatpush.xpose.msk.msra.mxu1 %vm420_vm1, %v6999_v53 }
 0x170   : > { %2359 = vmatpush.msrb.mxu0 %v5922_v16  ;;  %6000 = vrot.lane.b32.xlu1 %v7186_v37, %s6749_s25  ;;  %10949 = vst [vmem:[#allocation54_spill] sm:$0xff] %v7232_v3 }
 0x171   : > { %1742 = vrot.lane.b32.xlu0 %v7159_v10, %s6745_s21 }
 0x172   : > { %2360 = vmatpush.msrb.mxu0 %v5913_v35  ;;  %5502 = vmatmul.msk.f32.vlgmr.msra.gmra.mxu1 %vm420_vm1, %v6829_v18  ;;  %v7215_v62 = vpop.permute.xlu1 %506  ;;  %v7226_v16 = vpop.f32.mrf.mxu0 }
 0x173   : > { %v7218_v52 = vpop.permute.xlu0 %1633  ;;  %1744 = vrot.lane.b32.xlu2 %v7180_v12, %s6745_s21  ;;  %10948 = vst [vmem:[#allocation53_spill] sm:$0xff] %v7226_v16 }
 0x174   : > { %10947 = vst [vmem:[#allocation52_spill] sm:$0xff] %v7218_v52  ;;  %2361 = vmatpush.msrb.mxu0 %v5912_v63  ;;  %v7222_v53 = vpop.permute.xlu2 %508 }
 0x178   : > { %1746 = vrot.lane.b32.xlu1 %v7204_v21, %s6745_s21 }
 0x179   : > { %1760 = vrot.lane.b32.xlu0 %v7180_v12, %s6747_s23 }
 0x17a   : > { %5503 = vmatmul.msk.f32.gmra.mxu1 %vm420_vm1, %v6839_v20  ;;  %v7236_v2 = vpop.permute.xlu1 %5955  ;;  %v7252_v52 = vpop.f32.mrf.mxu0 }
 0x17b   : > { %v7238_v35 = vpop.permute.xlu0 %1651  ;;  %6005 = vrot.lane.b32.xlu2 %v7232_v3, %s6748_s24 }
 0x17c   : > { %v7242_v63 = vpop.permute.xlu2 %1653 }
 0x180   : > { %611 = vrot.lane.b32.xlu1 %v7226_v16, %s6746_s22 }
 0x181   : > { %609 = vrot.lane.b32.xlu0 %v7204_v21, %s6746_s22 }
 0x182   : > { %5504 = vmatmul.msk.f32.gmra.mxu1 %vm420_vm1, %v6853_v23  ;;  %v7250_v61 = vpop.permute.xlu1 %1637  ;;  %v7270_v6 = vpop.f32.mrf.mxu0 }
 0x183   : > { %10950 = vst [vmem:[#allocation55_spill] sm:$0xff] %v7250_v61  ;;  %v7254_v28 = vpop.permute.xlu0 %5960  ;;  %1762 = vrot.lane.b32.xlu2 %v7204_v21, %s6747_s23 }
 0x184   : > { %10951 = vst [vmem:[#allocation56_spill] sm:$0xff] %v7254_v28  ;;  %v7258_v13 = vpop.permute.xlu2 %1641 }
 0x185   : > { %10952 = vst [vmem:[#allocation57_spill] sm:$0xff] %v7258_v13  ;;  %v7274_v13 = vpack.i.bf16 %v7252_v52, %v7226_v16 }
 0x186   : > { %10953 = vst [vmem:[#allocation58_spill] sm:$0xff] %v7270_v6 }
 0x187   : > { %10954 = vst [vmem:[#allocation59_spill] sm:$0xff] %v7274_v13 }
 0x188   : > { %1764 = vrot.lane.b32.xlu1 %v7226_v16, %s6747_s23 }
 0x189   : > { %1748 = vrot.lane.b32.xlu0 %v7226_v16, %s6745_s21 }
 0x18a   : > { %5505 = vmatmul.msk.f32.gmra.mxu1 %vm420_vm1, %v6871_v26  ;;  %v7266_v60 = vpop.permute.xlu1 %1655  ;;  %v7288_v25 = vpop.f32.mrf.mxu0 }
 0x18b   : > { %v511_v61 = vpop.permute.xlu0 %510  ;;  %6010 = vrot.lane.b32.xlu2 %v7232_v3, %s6749_s25  ;;  %10956 = vst [vmem:[#allocation61_spill] sm:$0xff] %v7288_v25  ;;  %v7322_v56 = vpack.i.bf16 %v7288_v25, %v7270_v6 }
 0x18c   : > { %v515_v28 = vpop.permute.xlu2 %514 }
 0x18d   : > { %10961 = vst [vmem:[#allocation66_spill] sm:$0xff] %v7322_v56 }
 0x190   : > { %6015 = vrot.lane.b32.xlu1 %v7274_v13, %s6748_s24 }
 0x191   : > { %1766 = vrot.lane.b32.xlu0 %v7252_v52, %s6747_s23 }
 0x192   : > { %5506 = vmatmul.msk.f32.gmra.mxu1 %vm420_vm1, %v6893_v30  ;;  %v513_v58 = vpop.permute.xlu1 %512  ;;  %v7312_v8 = vpop.f32.mrf.mxu0 }
 0x193   : > { %v7282_v43 = vpop.permute.xlu0 %1639  ;;  %613 = vrot.lane.b32.xlu2 %v7252_v52, %s6746_s22  ;;  %10959 = vst [vmem:[#allocation64_spill] sm:$0xff] %v7312_v8 }
 0x194   : > { %10955 = vst [vmem:[#allocation60_spill] sm:$0xff] %v7282_v43  ;;  %v7286_v3 = vpop.permute.xlu2 %1659 }
 0x198   : > { %698 = vrot.lane.b32.xlu1 %v7288_v25, %s6746_s22 }
 0x199   : > { %6020 = vrot.lane.b32.xlu0 %v7274_v13, %s6749_s25 }
 0x19a   : > { %5507 = vmatmul.msk.f32.gmra.mxu1 %vm420_vm1, %v6903_v32  ;;  %v7296_v51 = vpop.permute.xlu1 %5970  ;;  %v7337_v33 = vpop.f32.mrf.mxu0 }
 0x19b   : > { %10957 = vst [vmem:[#allocation62_spill] sm:$0xff] %v7296_v51  ;;  %v7298_v37 = vpop.permute.xlu0 %5965  ;;  %1750 = vrot.lane.b32.xlu2 %v7252_v52, %s6745_s21 }
 0x19c   : > { %v7302_v43 = vpop.permute.xlu2 %5975  ;;  %10962 = vst [vmem:[#allocation67_spill] sm:$0xff] %v7337_v33 }
 0x1a0   : > { %1843 = vrot.lane.b32.xlu1 %v7288_v25, %s6745_s21 }
 0x1a1   : > { %696 = vrot.lane.b32.xlu0 %v7270_v6, %s6746_s22 }
 0x1a2   : > { %5508 = vmatmul.msk.f32.gmra.mxu1 %vm420_vm1, %v6925_v36  ;;  %v7310_v13 = vpop.permute.xlu1 %1643  ;;  %v7353_v57 = vpop.f32.mrf.mxu0 }
 0x1a3   : > { %10958 = vst [vmem:[#allocation63_spill] sm:$0xff] %v7310_v13  ;;  %v7314_v51 = vpop.permute.xlu0 %1657  ;;  %1841 = vrot.lane.b32.xlu2 %v7270_v6, %s6745_s21 }
 0x1a4   : > { %v7318_v42 = vpop.permute.xlu2 %5980  ;;  %10965 = vst [vmem:[#allocation70_spill] sm:$0xff] %v7353_v57 }
 0x1a5   : > { %10960 = vst [vmem:[#allocation65_spill] sm:$0xff] %v7318_v42 }
 0x1a8   : > { %6030 = vrot.lane.b32.xlu1 %v7322_v56, %s6749_s25 }
 0x1a9   : > { %1857 = vrot.lane.b32.xlu0 %v7270_v6, %s6747_s23 }
 0x1aa   : > { %5509 = vmatmul.msk.f32.gmra.mxu1 %vm420_vm1, %v6935_v38  ;;  %v7330_v13 = vpop.permute.xlu1 %1661 }
 0x1ab   : > { %v517_v29 = vpop.permute.xlu0 %516  ;;  %1859 = vrot.lane.b32.xlu2 %v7288_v25, %s6747_s23 }
 0x1ac   : > { %5510 = vmatpush.xpose.msk.msra.mxu2 %vm420_vm1, %v517_v29  ;;  %v7335_v42 = vpop.permute.xlu2 %601 }
 0x1b0   : > { %5511 = vmatpush.xpose.msk.msra.mxu2 %vm420_vm1, %v515_v28  ;;  %1861 = vrot.lane.b32.xlu1 %v7312_v8, %s6747_s23  ;;  %v7362_v28 = vpack.i.bf16 %v7337_v33, %v7312_v8 }
 0x1b1   : > { %6025 = vrot.lane.b32.xlu0 %v7322_v56, %s6748_s24 }
 0x1b2   : > { %v7344_v41 = vpop.permute.xlu1 %599  ;;  %10966 = vst [vmem:[#allocation71_spill] sm:$0xff] %v7362_v28 }
 0x1b3   : > { %v7346_v22 = vpop.permute.xlu0 %1645  ;;  %700 = vrot.lane.b32.xlu2 %v7312_v8, %s6746_s22 }
 0x1b4   : > { %10963 = vst [vmem:[#allocation68_spill] sm:$0xff] %v7346_v22  ;;  %5512 = vmatpush.xpose.msk.msra.mxu2 %vm420_vm1, %v513_v58  ;;  %v7351_v29 = vpop.permute.xlu2 %1738 }
 0x1b5   : > { %10964 = vst [vmem:[#allocation69_spill] sm:$0xff] %v7351_v29  ;;  %v7382_v29 = vpop.f32.mrf.mxu0 }
 0x1b6   : > { %10970 = vst [vmem:[#allocation75_spill] sm:$0xff] %v7382_v29 }
 0x1b8   : > { %5513 = vmatpush.xpose.msk.msra.mxu2 %vm420_vm1, %v511_v61  ;;  %704 = vrot.lane.b32.xlu1 %v7353_v57, %s6746_s22 }
 0x1b9   : > { %1845 = vrot.lane.b32.xlu0 %v7312_v8, %s6745_s21 }
 0x1ba   : > { %v7364_v22 = vpop.permute.xlu1 %1752 }
 0x1bb   : > { %10967 = vst [vmem:[#allocation72_spill] sm:$0xff] %v7364_v22  ;;  %v7366_v56 = vpop.permute.xlu0 %1736  ;;  %6035 = vrot.lane.b32.xlu2 %v7362_v28, %s6748_s24  ;;  %v5938_v22 = vunpack.i.h.bf16 %v7161_v11 }
 0x1bc   : > { %10968 = vst [vmem:[#allocation73_spill] sm:$0xff] %v7366_v56  ;;  %5514 = vmatpush.xpose.msk.msra.mxu2 %vm420_vm1, %v7222_v53  ;;  %v7372_v58 = vpop.permute.xlu2 %1756 }
 0x1bd   : > { %10969 = vst [vmem:[#allocation74_spill] sm:$0xff] %v7372_v58  ;;  %v7413_v5 = vpop.f32.mrf.mxu0 }
 0x1c0   : > { %5515 = vmatpush.xpose.msk.msra.mxu2 %vm420_vm1, %v7215_v62  ;;  %1849 = vrot.lane.b32.xlu1 %v7353_v57, %s6745_s21  ;;  %v7394_v62 = vpack.i.bf16 %v7382_v29, %v7353_v57 }
 0x1c1   : > { %702 = vrot.lane.b32.xlu0 %v7337_v33, %s6746_s22 }
 0x1c2   : > { %v7380_v61 = vpop.permute.xlu1 %5985  ;;  %10972 = vst [vmem:[#allocation77_spill] sm:$0xff] %v7394_v62 }
 0x1c3   : > { %v7384_v56 = vpop.permute.xlu0 %1754  ;;  %1847 = vrot.lane.b32.xlu2 %v7337_v33, %s6745_s21 }
 0x1c4   : > { %10971 = vst [vmem:[#allocation76_spill] sm:$0xff] %v7384_v56  ;;  %5516 = vmatpush.xpose.msk.msra.mxu2 %vm420_vm1, %v7196_v54  ;;  %v7390_v53 = vpop.permute.xlu2 %607  ;;  %v5937_v54 = vunpack.i.l.bf16 %v7161_v11  ;;  %v5927_v11 = vunpack.i.l.bf16 %v7097_v17 }
 0x1c8   : > { %5517 = vmatpush.xpose.msk.msra.mxu2 %vm420_vm1, %v7131_v39  ;;  %6045 = vrot.lane.b32.xlu1 %v7394_v62, %s6748_s24  ;;  %v5928_v39 = vunpack.i.h.bf16 %v7097_v17  ;;  %v5908_v17 = vunpack.i.h.bf16 %v6971_v46 }
 0x1c9   : > { %1863 = vrot.lane.b32.xlu0 %v7337_v33, %s6747_s23 }
 0x1ca   : > { %v7404_v56 = vpop.permute.xlu1 %1740 }
 0x1cb   : > { %10973 = vst [vmem:[#allocation78_spill] sm:$0xff] %v7404_v56  ;;  %5518 = vmatmul.msk.f32.vlgmr.msra.gmra.mxu2 %vm420_vm1, %v6945_v40  ;;  %v7408_v58 = vpop.permute.xlu0 %5990  ;;  %6040 = vrot.lane.b32.xlu2 %v7362_v28, %s6749_s25  ;;  %v5918_v56 = vunpack.i.h.bf16 %v7091_v15  ;;  %v7432_v28 = vpop.f32.mrf.mxu0 }
 0x1cc   : > { %1194 = vmatpush.msrb.mxu2 %v5938_v22  ;;  %10974 = vst [vmem:[#allocation79_spill] sm:$0xff] %v7408_v58 }
 0x1cd   : > { %v7415_v22 = vpop.permute.xlu2 %1744  ;;  %10976 = vst [vmem:[#allocation81_spill] sm:$0xff] %v7432_v28 }
 0x1ce   : > { %1195 = vmatpush.msrb.mxu2 %v5937_v54  ;;  %10975 = vst [vmem:[#allocation80_spill] sm:$0xff] %v7415_v22  ;;  %v5917_v54 = vunpack.i.l.bf16 %v7091_v15 }
 0x1d0   : > { %1196 = vmatpush.msrb.mxu2 %v5928_v39  ;;  %1867 = vrot.lane.b32.xlu1 %v7382_v29, %s6747_s23 }
 0x1d1   : > { %1851 = vrot.lane.b32.xlu0 %v7382_v29, %s6745_s21 }
 0x1d2   : > { %1197 = vmatpush.msrb.mxu2 %v5927_v11  ;;  %v606_v58 = vpop.permute.xlu1 %605  ;;  %v5907_v11 = vunpack.i.l.bf16 %v6971_v46 }
 0x1d3   : > { %5519 = vmatmul.msk.f32.gmra.mxu2 %vm420_vm1, %v6964_v45  ;;  %v604_v22 = vpop.permute.xlu0 %603  ;;  %1865 = vrot.lane.b32.xlu2 %v7353_v57, %s6747_s23 }
 0x1d4   : > { %1198 = vmatpush.msrb.mxu2 %v5918_v56 }
 0x1d5   : > { %v7429_v39 = vpop.permute.xlu2 %6005 }
 0x1d6   : > { %1199 = vmatpush.msrb.mxu2 %v5917_v54 }
 0x1d8   : > { %1200 = vmatpush.msrb.mxu2 %v5908_v17  ;;  %710 = vrot.lane.b32.xlu1 %v7432_v28, %s6746_s22 }
 0x1d9   : > { %6050 = vrot.lane.b32.xlu0 %v7394_v62, %s6749_s25  ;;  %v7464_v62 = vpack.i.bf16 %v7432_v28, %v7413_v5 }
 0x1da   : > { %1201 = vmatpush.msrb.mxu2 %v5907_v11  ;;  %v7438_v56 = vpop.permute.xlu1 %1758 }
 0x1db   : > { %10977 = vst [vmem:[#allocation82_spill] sm:$0xff] %v7438_v56  ;;  %5520 = vmatmul.msk.f32.gmra.mxu2 %vm420_vm1, %v6981_v48  ;;  %v7442_v15 = vpop.permute.xlu0 %5995  ;;  %706 = vrot.lane.b32.xlu2 %v7382_v29, %s6746_s22 }
 0x1dc   : > { %10981 = vst [vmem:[#allocation86_spill] sm:$0xff] %v7464_v62 }
 0x1dd   : > { %v7446_v46 = vpop.permute.xlu2 %1762 }
 0x1e0   : > { %1855 = vrot.lane.b32.xlu1 %v7432_v28, %s6745_s21 }
 0x1e1   : > { %708 = vrot.lane.b32.xlu0 %v7413_v5, %s6746_s22 }
 0x1e2   : > { %v7452_v54 = vpop.permute.xlu1 %6000 }
 0x1e3   : > { %10978 = vst [vmem:[#allocation83_spill] sm:$0xff] %v7452_v54  ;;  %5521 = vmatmul.msk.f32.gmra.mxu2 %vm420_vm1, %v7003_v55  ;;  %v7456_v17 = vpop.permute.xlu0 %1742  ;;  %1853 = vrot.lane.b32.xlu2 %v7413_v5, %s6745_s21 }
 0x1e4   : > { %10979 = vst [vmem:[#allocation84_spill] sm:$0xff] %v7456_v17 }
 0x1e5   : > { %v7460_v11 = vpop.permute.xlu2 %6010 }
 0x1e6   : > { %10980 = vst [vmem:[#allocation85_spill] sm:$0xff] %v7460_v11 }
 0x1e8   : > { %6060 = vrot.lane.b32.xlu1 %v7464_v62, %s6749_s25 }
 0x1e9   : > { %1869 = vrot.lane.b32.xlu0 %v7413_v5, %s6747_s23 }
 0x1ea   : > { %v7470_v54 = vpop.permute.xlu1 %1746 }
 0x1eb   : > { %10982 = vst [vmem:[#allocation87_spill] sm:$0xff] %v7470_v54  ;;  %5522 = vmatmul.msk.f32.gmra.mxu2 %vm420_vm1, %v7035_v0  ;;  %v7474_v17 = vpop.permute.xlu0 %1760  ;;  %1871 = vrot.lane.b32.xlu2 %v7432_v28, %s6747_s23 }
 0x1ed   : > { %v614_v11 = vpop.permute.xlu2 %613 }
 0x1ee   : > { %5526 = vmatpush.xpose.msk.msra.mxu3 %vm420_vm1, %v614_v11 }
 0x1f0   : > { %2827 = vrot.lane.b32.xlu1 %v6925_v36, %s6744_s20 }
 0x1f1   : > { %6055 = vrot.lane.b32.xlu0 %v7464_v62, %s6748_s24 }
 0x1f2   : > { %v612_v56 = vpop.permute.xlu1 %611 }
 0x1f3   : > { %5523 = vmatmul.msk.f32.gmra.mxu2 %vm420_vm1, %v7049_v4  ;;  %v610_v54 = vpop.permute.xlu0 %609  ;;  %2829 = vrot.lane.b32.xlu2 %v6935_v38, %s6744_s20 }
 0x1f4   : > { %5527 = vmatpush.xpose.msk.msra.mxu3 %vm420_vm1, %v612_v56 }
 0x1f8   : > { %5528 = vmatpush.xpose.msk.msra.mxu3 %vm420_vm1, %v610_v54  ;;  %2833 = vrot.lane.b32.xlu1 %v6839_v20, %s6750_s26 }
 0x1f9   : > { %2825 = vrot.lane.b32.xlu0 %v6903_v32, %s6744_s20 }
 0x1fa   : > { %v7493_v11 = vpop.permute.xlu1 %1764 }
 0x1fb   : > { %5524 = vmatmul.msk.f32.gmra.mxu2 %vm420_vm1, %v7069_v9  ;;  %v7497_v62 = vpop.permute.xlu0 %1748  ;;  %2835 = vrot.lane.b32.xlu2 %v6853_v23, %s6750_s26 }
 0x1fc   : > { %10983 = vst [vmem:[#allocation88_spill] sm:$0xff] %v7497_v62  ;;  %5529 = vmatpush.xpose.msk.msra.mxu3 %vm420_vm1, %v7390_v53  ;;  %v7517_v53 = vpop.permute.xlu2 %1750 }
 0x1fd   : > { %10984 = vst [vmem:[#allocation89_spill] sm:$0xff] %v7517_v53 }
 0x200   : > { %5530 = vmatpush.xpose.msk.msra.mxu3 %vm420_vm1, %v606_v58  ;;  %2839 = vrot.lane.b32.xlu1 %v6893_v30, %s6750_s26 }
 0x201   : > { %2831 = vrot.lane.b32.xlu0 %v6829_v18, %s6750_s26 }
 0x202   : > { %v7508_v56 = vpop.permute.xlu1 %6015 }
 0x203   : > { %5525 = vmatmul.msk.f32.gmra.mxu2 %vm420_vm1, %v7089_v14  ;;  %v7512_v54 = vpop.permute.xlu0 %1766  ;;  %2841 = vrot.lane.b32.xlu2 %v6903_v32, %s6750_s26 }
 0x204   : > { %5531 = vmatpush.xpose.msk.msra.mxu3 %vm420_vm1, %v604_v22  ;;  %v5978_v22 = vunpack.i.h.bf16 %v7302_v43  ;;  %v7535_v53 = vpop.permute.xlu2 %1841 }
 0x205   : > { %10986 = vst [vmem:[#allocation91_spill] sm:$0xff] %v7535_v53 }
 0x208   : > { %5532 = vmatpush.xpose.msk.msra.mxu3 %vm420_vm1, %v7335_v42  ;;  %2845 = vrot.lane.b32.xlu1 %v6935_v38, %s6750_s26  ;;  %v5977_v42 = vunpack.i.l.bf16 %v7302_v43  ;;  %v5968_v38 = vunpack.i.h.bf16 %v7298_v37 }
 0x209   : > { %2837 = vrot.lane.b32.xlu0 %v6871_v26, %s6750_s26 }
 0x20a   : > { %v7525_v58 = vpop.permute.xlu1 %698 }
 0x20b   : > { %v7527_v62 = vpop.permute.xlu0 %6020  ;;  %2920 = vrot.lane.b32.xlu2 %v6945_v40, %s6744_s20 }
 0x20c   : > { %10985 = vst [vmem:[#allocation90_spill] sm:$0xff] %v7527_v62  ;;  %5533 = vmatpush.xpose.msk.msra.mxu3 %vm420_vm1, %v7344_v41  ;;  %v5967_v41 = vunpack.i.l.bf16 %v7298_v37  ;;  %v5957_v62 = vunpack.i.l.bf16 %v7236_v2  ;;  %v7558_v37 = vpop.permute.xlu2 %1859 }
 0x20f   : > { %5534 = vmatmul.msk.f32.vlgmr.msra.gmra.mxu3 %vm420_vm1, %v7105_v24 }
 0x210   : > { %1283 = vmatpush.msrb.mxu3 %v5978_v22  ;;  %2924 = vrot.lane.b32.xlu1 %v6981_v48, %s6744_s20 }
 0x211   : > { %2843 = vrot.lane.b32.xlu0 %v6925_v36, %s6750_s26 }
 0x212   : > { %1284 = vmatpush.msrb.mxu3 %v5977_v42  ;;  %v7545_v22 = vpop.permute.xlu1 %1843  ;;  %v5958_v42 = vunpack.i.h.bf16 %v7236_v2 }
 0x213   : > { %10987 = vst [vmem:[#allocation92_spill] sm:$0xff] %v7545_v22  ;;  %v7547_v43 = vpop.permute.xlu0 %696  ;;  %2926 = vrot.lane.b32.xlu2 %v7003_v55, %s6744_s20 }
 0x214   : > { %1285 = vmatpush.msrb.mxu3 %v5968_v38  ;;  %v5948_v38 = vunpack.i.h.bf16 %v7164_v47 }
 0x216   : > { %1286 = vmatpush.msrb.mxu3 %v5967_v41  ;;  %v5947_v41 = vunpack.i.l.bf16 %v7164_v47 }
 0x217   : > { %5535 = vmatmul.msk.f32.gmra.mxu3 %vm420_vm1, %v7123_v34 }
 0x218   : > { %1287 = vmatpush.msrb.mxu3 %v5958_v42  ;;  %2930 = vrot.lane.b32.xlu1 %v7049_v4, %s6744_s20 }
 0x219   : > { %2922 = vrot.lane.b32.xlu0 %v6964_v45, %s6744_s20 }
 0x21a   : > { %1288 = vmatpush.msrb.mxu3 %v5957_v62  ;;  %v7563_v42 = vpop.permute.xlu1 %6030  ;;  %v701_v62 = vpop.permute.xlu2 %700 }
 0x21b   : > { %v7565_v2 = vpop.permute.xlu0 %1857 }
 0x21c   : > { %1289 = vmatpush.msrb.mxu3 %v5948_v38 }
 0x21e   : > { %1290 = vmatpush.msrb.mxu3 %v5947_v41 }
 0x21f   : > { %5536 = vmatmul.msk.f32.gmra.mxu3 %vm420_vm1, %v7139_v44 }
 0x220   : > { %5590 = vmatpush.xpose.msk.msra.mxu3 %vm420_vm1, %v7121_v31  ;;  %2936 = vrot.lane.b32.xlu1 %v6945_v40, %s6750_s26 }
 0x221   : > { %2928 = vrot.lane.b32.xlu0 %v7035_v0, %s6744_s20 }
 0x222   : > { %v7577_v47 = vpop.permute.xlu1 %1861 }
 0x223   : > { %v7579_v38 = vpop.permute.xlu0 %6025 }
 0x224   : > { %5591 = vmatpush.xpose.msk.msra.mxu3 %vm420_vm1, %v7145_v50  ;;  %v7589_v50 = vpop.permute.xlu2 %6035 }
 0x227   : > { %5537 = vmatmul.msk.f32.gmra.mxu3 %vm420_vm1, %v7159_v10 }
 0x228   : > { %5592 = vmatpush.xpose.msk.msra.mxu3 %vm420_vm1, %v7115_v27  ;;  %v7597_v27 = vpop.f32.mrf.mxu1 }
 0x22a   : > { %v705_v31 = vpop.permute.xlu1 %704 }
 0x22b   : > { %v7587_v41 = vpop.permute.xlu0 %1845 }
 0x22c   : > { %5593 = vmatpush.xpose.msk.msra.mxu3 %vm420_vm1, %v7061_v7  ;;  %10988 = vst [vmem:[#allocation93_spill] sm:$0xff] %v7587_v41  ;;  %v7603_v7 = vpop.permute.xlu2 %1847 }
 0x22d   : > { %10990 = vst [vmem:[#allocation95_spill] sm:$0xff] %v7603_v7 }
 0x22f   : > { %5538 = vmatmul.msk.f32.gmra.mxu3 %vm420_vm1, %v7180_v12 }
 0x230   : > { %5594 = vmatpush.xpose.msk.msra.mxu3 %vm420_vm1, %v7101_v19  ;;  %v7613_v26 = vpop.f32.mrf.mxu1 }
 0x232   : > { %v7599_v40 = vpop.permute.xlu1 %1849 }
 0x233   : > { %10989 = vst [vmem:[#allocation94_spill] sm:$0xff] %v7599_v40  ;;  %v703_v30 = vpop.permute.xlu0 %702 }
 0x234   : > { %5595 = vmatpush.xpose.msk.msra.mxu3 %vm420_vm1, %v7041_v1  ;;  %v786_v1 = vsel %vm785_vm2, %v7597_v27, -inf }
 0x237   : > { %5539 = vmatmul.msk.f32.gmra.mxu3 %vm420_vm1, %v7204_v21 }
 0x238   : > { %5596 = vmatpush.xpose.msk.msra.mxu3 %vm420_vm1, %v6983_v49  ;;  %v7617_v49 = vpop.permute.xlu2 %6040  ;;  %v7623_v7 = vpop.f32.mrf.mxu1 }
 0x23a   : > { %v6046_v19 = vpop.permute.xlu1 %6045 }
 0x23b   : > { %v7609_v36 = vpop.permute.xlu0 %1863 }
 0x23c   : > { %5597 = vmatpush.xpose.msk.msra.mxu3 %vm420_vm1, %v7019_v59  ;;  %787 = vmax.xlane.f32.xlu2 %v786_v1  ;;  %v792_v59 = vsel %vm785_vm2, %v7623_v7, -inf  ;;  %v789_v1 = vsel %vm785_vm2, %v7613_v26, -inf }
 0x23f   : > { %5540 = vmatmul.msk.f32.gmra.mxu3 %vm420_vm1, %v7226_v16 }
 0x240   : > { %v7631_v18 = vpop.permute.xlu2 %1865 }
 0x242   : > { %v7619_v40 = vpop.permute.xlu1 %1867 }
 0x243   : > { %v7621_v20 = vpop.permute.xlu0 %1851 }
 0x244   : > { %10991 = vst [vmem:[#allocation96_spill] sm:$0xff] %v7621_v20 }
 0x247   : > { %5541 = vmatmul.msk.f32.gmra.mxu3 %vm420_vm1, %v7252_v52 }
 0x248   : > { %v707_v53 = vpop.permute.xlu2 %706 }
 0x24a   : > { %793 = vmax.xlane.f32.xlu1 %v792_v59  ;;  %v711_v41 = vpop.permute.xlu1 %710 }
 0x24b   : > { %v7633_v22 = vpop.permute.xlu0 %6050  ;;  %790 = vmax.xlane.f32.xlu0 %v789_v1  ;;  %5542 = vmatpush.xpose.msk.msrb.mxu1 %vm420_vm1, %v711_v41 }
 0x250   : > { %v7649_v41 = vpop.permute.xlu2 %1853 }
 0x251   : > { %10993 = vst [vmem:[#allocation98_spill] sm:$0xff] %v7649_v41 }
 0x252   : > { %v7636_v20 = vpop.permute.xlu1 %1855 }
 0x253   : > { %10992 = vst [vmem:[#allocation97_spill] sm:$0xff] %v7636_v20  ;;  %v709_v32 = vpop.permute.xlu0 %708 }
 0x254   : > { %2932 = vrot.lane.b32.xlu2 %v7069_v9, %s6744_s20  ;;  %5543 = vmatpush.xpose.msk.msrb.mxu1 %vm420_vm1, %v709_v32 }
 0x258   : > { %5544 = vmatpush.xpose.msk.msrb.mxu1 %vm420_vm1, %v707_v53 }
 0x25a   : > { %v7642_v59 = vpop.permute.xlu1 %6060 }
 0x25b   : > { %v7644_v23 = vpop.permute.xlu0 %1869 }
 0x25c   : > { %2938 = vrot.lane.b32.xlu2 %v6964_v45, %s6750_s26  ;;  %5545 = vmatpush.xpose.msk.msrb.mxu1 %vm420_vm1, %v705_v31  ;;  %v6048_v31 = vunpack.i.h.bf16 %v6046_v19 }
 0x25f   : > { %2934 = vrot.lane.b32.xlu0 %v7089_v14, %s6744_s20 }
 0x260   : > { %5546 = vmatpush.xpose.msk.msrb.mxu1 %vm420_vm1, %v703_v30  ;;  %v7663_v30 = vpop.permute.xlu2 %1871 }
 0x262   : > { %v7654_v32 = vpop.permute.xlu1 %2827 }
 0x263   : > { %10994 = vst [vmem:[#allocation99_spill] sm:$0xff] %v7654_v32  ;;  %v6056_v1 = vpop.permute.xlu0 %6055  ;;  %2942 = vrot.lane.b32.xlu1 %v7003_v55, %s6750_s26  ;;  %v6047_v32 = vunpack.i.l.bf16 %v6046_v19  ;;  %v6018_v55 = vunpack.i.h.bf16 %v7508_v56  ;;  %v6008_v19 = vunpack.i.h.bf16 %v7429_v39 }
 0x264   : > { %v6058_v53 = vunpack.i.h.bf16 %v6056_v1  ;;  %5547 = vmatpush.xpose.msk.msrb.mxu1 %vm420_vm1, %v701_v62  ;;  %v6057_v20 = vunpack.i.l.bf16 %v6056_v1  ;;  %v6038_v62 = vunpack.i.h.bf16 %v7589_v50  ;;  %v6028_v1 = vunpack.i.h.bf16 %v7579_v38 }
 0x266   : > { %1461 = vmatpush.msra.mxu2 %v6058_v53  ;;  %v5998_v53 = vunpack.i.h.bf16 %v7442_v15 }
 0x267   : > { %2940 = vrot.lane.b32.xlu0 %v6981_v48, %s6750_s26 }
 0x268   : > { %5548 = vmatpush.xpose.msk.msrb.mxu1 %vm420_vm1, %v7525_v58  ;;  %1462 = vmatpush.msra.mxu2 %v6057_v20  ;;  %v6017_v20 = vunpack.i.l.bf16 %v7508_v56  ;;  %v6037_v58 = vunpack.i.l.bf16 %v7589_v50  ;;  %v7685_v50 = vpop.permute.xlu2 %2829 }
 0x269   : > { %10996 = vst [vmem:[#allocation101_spill] sm:$0xff] %v7685_v50 }
 0x26a   : > { %1463 = vmatpush.msra.mxu2 %v6048_v31  ;;  %v7665_v45 = vpop.permute.xlu1 %2833  ;;  %v5997_v31 = vunpack.i.l.bf16 %v7442_v15 }
 0x26b   : > { %v7668_v41 = vpop.permute.xlu0 %2825  ;;  %2948 = vrot.lane.b32.xlu1 %v7069_v9, %s6750_s26 }
 0x26c   : > { %10995 = vst [vmem:[#allocation100_spill] sm:$0xff] %v7668_v41  ;;  %1464 = vmatpush.msra.mxu2 %v6047_v32  ;;  %5549 = vmatpush.xpose.msk.msrb.mxu1 %vm420_vm1, %v7547_v43  ;;  %v6007_v43 = vunpack.i.l.bf16 %v7429_v39  ;;  %v5988_v39 = vunpack.i.h.bf16 %v7380_v61 }
 0x26e   : > { %1465 = vmatpush.msra.mxu2 %v6038_v62 }
 0x26f   : > { %2946 = vrot.lane.b32.xlu0 %v7049_v4, %s6750_s26  ;;  %5550 = vmatmul.msk.f32.vlgmr.msrb.gmra.mxu1 %vm420_vm1, %v7270_v6 }
 0x270   : > { %1372 = vmatpush.msra.mxu1 %v6018_v55  ;;  %1466 = vmatpush.msra.mxu2 %v6037_v58  ;;  %v6027_v55 = vunpack.i.l.bf16 %v7579_v38  ;;  %v5987_v38 = vunpack.i.l.bf16 %v7380_v61 }
 0x272   : > { %1373 = vmatpush.msra.mxu1 %v6017_v20  ;;  %1467 = vmatpush.msra.mxu2 %v6028_v1  ;;  %v2840_v56 = vpop.permute.xlu1 %2839  ;;  %v7695_v20 = vpop.f32.mrf.mxu1 }
 0x273   : > { %v2832_v32 = vpop.permute.xlu0 %2831  ;;  %3027 = vrot.lane.b32.xlu1 %v7123_v34, %s6744_s20  ;;  %v795_v61 = vsel %vm785_vm2, %v7695_v20, -inf }
 0x274   : > { %1374 = vmatpush.msra.mxu1 %v6008_v19  ;;  %1468 = vmatpush.msra.mxu2 %v6027_v55  ;;  %v2836_v19 = vpop.permute.xlu2 %2835  ;;  %v10998_v55 = vld [vmem:[#allocation42_spill] sm:$0xff] }
 0x276   : > { %1375 = vmatpush.msra.mxu1 %v6007_v43 }
 0x277   : > { %5551 = vmatmul.msk.f32.gmra.mxu1 %vm420_vm1, %v7288_v25 }
 0x278   : > { %1376 = vmatpush.msra.mxu1 %v5998_v53 }
 0x27a   : > { %1377 = vmatpush.msra.mxu1 %v5997_v31  ;;  %v2846_v62 = vpop.permute.xlu1 %2845  ;;  %v7707_v1 = vpop.f32.mrf.mxu1 }
 0x27b   : > { %v2838_v58 = vpop.permute.xlu0 %2837  ;;  %5686 = vmatpush.xpose.msk.msra.mxu0 %vm420_vm1, %v2846_v62 }
 0x27c   : > { %1378 = vmatpush.msra.mxu1 %v5988_v39  ;;  %v2842_v43 = vpop.permute.xlu2 %2841 }
 0x27e   : > { %1379 = vmatpush.msra.mxu1 %v5987_v38 }
 0x27f   : > { %5552 = vmatmul.msk.f32.gmra.mxu1 %vm420_vm1, %v7312_v8 }
 0x280   : > { %5606 = vmatpush.xpose.msk.msrb.mxu1 %vm420_vm1, %v7330_v13  ;;  %v798_v13 = vsel %vm785_vm2, %v7707_v1, -inf }
 0x283   : > { %v2844_v15 = vpop.permute.xlu0 %2843 }
 0x284   : > { %5607 = vmatpush.xpose.msk.msrb.mxu1 %vm420_vm1, %v7286_v3  ;;  %5687 = vmatpush.xpose.msk.msra.mxu0 %vm420_vm1, %v2844_v15 }
 0x285   : > { %796 = vmax.xlane.f32.xlu2 %v795_v61 }
 0x287   : > { %5553 = vmatmul.msk.f32.gmra.mxu1 %vm420_vm1, %v7337_v33 }
 0x288   : > { %5608 = vmatpush.xpose.msk.msrb.mxu1 %vm420_vm1, %v7314_v51  ;;  %5688 = vmatpush.xpose.msk.msra.mxu0 %vm420_vm1, %v2842_v43  ;;  %v7721_v51 = vpop.f32.mrf.mxu1  ;;  %v7810_v43 = vpop.permute.xlu2 %2920 }
 0x289   : > { %v801_v3 = vsel %vm785_vm2, %v7721_v51, -inf }
 0x28c   : > { %5609 = vmatpush.xpose.msk.msrb.mxu1 %vm420_vm1, %v7266_v60  ;;  %5689 = vmatpush.xpose.msk.msra.mxu0 %vm420_vm1, %v2840_v56  ;;  %v10997_v60 = vld [vmem:[#allocation49_spill] sm:$0xff] }
 0x28d   : > { %799 = vmax.xlane.f32.xlu2 %v798_v13  ;;  %10999 = vst [vmem:[#allocation49_spill] sm:$0xff] %v7810_v43  ;;  %v7814_v13 = vpop.permute.xlu0 %2922 }
 0x28e   : > { %11000 = vst [vmem:[#allocation42_spill] sm:$0xff] %v7814_v13 }
 0x28f   : > { %5554 = vmatmul.msk.f32.gmra.mxu1 %vm420_vm1, %v7353_v57 }
 0x290   : > { %5610 = vmatpush.xpose.msk.msrb.mxu1 %vm420_vm1, %v7242_v63  ;;  %5690 = vmatpush.xpose.msk.msra.mxu0 %vm420_vm1, %v2838_v58  ;;  %v7737_v63 = vpop.f32.mrf.mxu1 }
 0x294   : > { %5611 = vmatpush.xpose.msk.msrb.mxu1 %vm420_vm1, %v7238_v35  ;;  %5691 = vmatpush.xpose.msk.msra.mxu0 %vm420_vm1, %v2836_v19  ;;  %v804_v35 = vsel %vm785_vm2, %v7737_v63, -inf }
 0x297   : > { %5555 = vmatmul.msk.f32.gmra.mxu1 %vm420_vm1, %v7382_v29 }
 0x298   : > { %5612 = vmatpush.xpose.msk.msrb.mxu1 %vm420_vm1, %v10997_v60  ;;  %5692 = vmatpush.xpose.msk.msra.mxu0 %vm420_vm1, %v7665_v45  ;;  %v7764_v45 = vpop.f32.mrf.mxu1  ;;  %v7816_v60 = vpop.permute.xlu2 %2926 }
 0x299   : > { %802 = vmax.xlane.f32.xlu0 %v801_v3  ;;  %v807_v56 = vsel %vm785_vm2, %v7764_v45, -inf  ;;  %11001 = vst [vmem:[#allocation102_spill] sm:$0xff] %v7816_v60  ;;  %v7818_v3 = vpop.permute.xlu0 %2928 }
 0x29a   : > { %11002 = vst [vmem:[#allocation103_spill] sm:$0xff] %v7818_v3 }
 0x29c   : > { %5613 = vmatpush.xpose.msk.msrb.mxu1 %vm420_vm1, %v10998_v55  ;;  %5693 = vmatpush.xpose.msk.msra.mxu0 %vm420_vm1, %v2832_v32  ;;  %v7768_v32 = vpop.f32.mrf.mxu2 }
 0x29d   : > { %805 = vmax.xlane.f32.xlu1 %v804_v35  ;;  %v810_v53 = vsel %vm785_vm2, %v7768_v32, -inf }
 0x29f   : > { %5556 = vmatmul.msk.f32.gmra.mxu1 %vm420_vm1, %v7413_v5 }
 0x2a4   : > { %v7772_v31 = vpop.f32.mrf.mxu2 }
 0x2a5   : > { %2944 = vrot.lane.b32.xlu2 %v7035_v0, %s6750_s26  ;;  %v813_v39 = vsel %vm785_vm2, %v7772_v31, -inf }
 0x2a7   : > { %5557 = vmatmul.msk.f32.gmra.mxu1 %vm420_vm1, %v7432_v28 }
 0x2ac   : > { %v7790_v38 = vpop.f32.mrf.mxu2 }
 0x2ad   : > { %2950 = vrot.lane.b32.xlu2 %v7089_v14, %s6750_s26  ;;  %3025 = vrot.lane.b32.xlu0 %v7105_v24, %s6744_s20  ;;  %v816_v62 = vsel %vm785_vm2, %v7790_v38, -inf }
 0x2af   : > { %v788_v35 = vpop.xlane.xlu2 %787 }
 0x2b4   : > { %v7794_v58 = vpop.f32.mrf.mxu2 }
 0x2b5   : > { %3031 = vrot.lane.b32.xlu0 %v7159_v10, %s6744_s20  ;;  %v819_v19 = vsel %vm785_vm2, %v7794_v58, -inf }
 0x2b6   : > { %3033 = vrot.lane.b32.xlu1 %v7180_v12, %s6744_s20 }
 0x2bc   : > { %v7798_v15 = vpop.f32.mrf.mxu2 }
 0x2bd   : > { %3037 = vrot.lane.b32.xlu0 %v7226_v16, %s6744_s20  ;;  %v822_v61 = vsel %vm785_vm2, %v7798_v15, -inf }
 0x2be   : > { %3039 = vrot.lane.b32.xlu1 %v7252_v52, %s6744_s20 }
 0x2c4   : > { %v7820_v55 = vpop.f32.mrf.mxu2 }
 0x2c6   : > { %3045 = vrot.lane.b32.xlu1 %v7139_v44, %s6750_s26 }
 0x2d6   : > { %808 = vmax.xlane.f32.xlu2 %v807_v56  ;;  %v882_v56 = vsub.f32 %v7597_v27, %v788_v35 }
 0x2e7   : > { %811 = vmax.xlane.f32.xlu0 %v810_v53  ;;  %v791_v53 = vpop.xlane.xlu0 %790 }
 0x2ee   : > { %3029 = vrot.lane.b32.xlu2 %v7139_v44, %s6744_s20 }
 0x2f0   : > { %814 = vmax.xlane.f32.xlu1 %v813_v39  ;;  %v914_v39 = vmul.f32 1.442695, %v882_v56 }
 0x2f2   : > { %6224 = vpow2.f32 %v914_v39 }
 0x2f6   : > { %3035 = vrot.lane.b32.xlu2 %v7204_v21, %s6744_s20 }
 0x2f8   : > { %v7831_v3 = vpop.eup %6224 }
 0x2f9   : > { %v978_v27 = vsel %vm785_vm2, %v7831_v3, 0.0 }
 0x2fb   : > { %3043 = vrot.lane.b32.xlu0 %v7123_v34, %s6750_s26 }
 0x2fe   : > { %3041 = vrot.lane.b32.xlu2 %v7105_v24, %s6750_s26 }
 0x303   : > { %3049 = vrot.lane.b32.xlu0 %v7180_v12, %s6750_s26 }
 0x309   : > { %3051 = vrot.lane.b32.xlu1 %v7204_v21, %s6750_s26 }
 0x311   : > { %3130 = vrot.lane.b32.xlu1 %v7270_v6, %s6744_s20 }
 0x327   : > { %817 = vmax.xlane.f32.xlu2 %v816_v62  ;;  %v7823_v62 = vpop.f32.mrf.mxu2 }
 0x328   : > { %v828_v60 = vsel %vm785_vm2, %v7823_v62, -inf }
 0x32d   : > { %820 = vmax.xlane.f32.xlu0 %v819_v19  ;;  %v825_v19 = vsel %vm785_vm2, %v7820_v55, -inf }
 0x32f   : > { %v7833_v13 = vpop.f32.mrf.mxu2 }
 0x330   : > { %v831_v56 = vsel %vm785_vm2, %v7833_v13, -inf }
 0x33b   : > { %823 = vmax.xlane.f32.xlu1 %v822_v61  ;;  %v7827_v61 = vpop.permute.xlu0 %2934 }
 0x33c   : > { %11003 = vst [vmem:[#allocation104_spill] sm:$0xff] %v7827_v61  ;;  %v7859_v61 = vpop.permute.xlu2 %2932 }
 0x33d   : > { %11008 = vst [vmem:[#allocation109_spill] sm:$0xff] %v7859_v61 }
 0x33f   : > { %3047 = vrot.lane.b32.xlu2 %v7159_v10, %s6750_s26 }
 0x341   : > { %3055 = vrot.lane.b32.xlu0 %v7252_v52, %s6750_s26 }
 0x343   : > { %v7837_v35 = vpop.permute.xlu0 %2940 }
 0x344   : > { %11004 = vst [vmem:[#allocation105_spill] sm:$0xff] %v7837_v35 }
 0x347   : > { %3053 = vrot.lane.b32.xlu2 %v7226_v16, %s6750_s26  ;;  %v7869_v16 = vpop.f32.mrf.mxu3 }
 0x349   : > { %3134 = vrot.lane.b32.xlu0 %v7312_v8, %s6744_s20 }
 0x34b   : > { %v7841_v39 = vpop.permute.xlu0 %2946 }
 0x34f   : > { %v7876_v21 = vpop.f32.mrf.mxu3 }
 0x354   : > { %3136 = vrot.lane.b32.xlu1 %v7337_v33, %s6744_s20 }
 0x370   : > { %826 = vmax.xlane.f32.xlu2 %v825_v19  ;;  %v7847_v19 = vpop.permute.xlu1 %2924 }
 0x371   : > { %11005 = vst [vmem:[#allocation106_spill] sm:$0xff] %v7847_v19  ;;  %v7865_v19 = vpop.permute.xlu2 %2938 }
 0x372   : > { %11011 = vst [vmem:[#allocation112_spill] sm:$0xff] %v7865_v19 }
 0x373   : > { %829 = vmax.xlane.f32.xlu0 %v828_v60  ;;  %v7845_v60 = vpop.xlane.xlu0 %802 }
 0x379   : > { %v797_v34 = vpop.xlane.xlu2 %796 }
 0x37a   : > { %v885_v44 = vsub.f32 %v7695_v20, %v797_v34 }
 0x37b   : > { %979 = vadd.xlane.f32.xlu0 %v978_v27  ;;  %v7853_v27 = vpop.permute.xlu0 %3025 }
 0x37c   : > { %11006 = vst [vmem:[#allocation107_spill] sm:$0xff] %v7853_v27 }
 0x37e   : > { %832 = vmax.xlane.f32.xlu1 %v831_v56  ;;  %v7857_v56 = vpop.permute.xlu1 %2930 }
 0x37f   : > { %11007 = vst [vmem:[#allocation108_spill] sm:$0xff] %v7857_v56  ;;  %v883_v56 = vsub.f32 %v7613_v26, %v791_v53 }
 0x381   : > { %v916_v12 = vmul.f32 1.442695, %v883_v56  ;;  %v800_v0 = vpop.xlane.xlu2 %799  ;;  %v7904_v56 = vpop.f32.mrf.mxu3 }
 0x383   : > { %v7861_v43 = vpop.permute.xlu0 %3031 }
 0x384   : > { %11009 = vst [vmem:[#allocation110_spill] sm:$0xff] %v7861_v43  ;;  %v920_v43 = vmul.f32 1.442695, %v885_v44 }
 0x386   : > { %v7863_v50 = vpop.permute.xlu1 %2936 }
 0x387   : > { %11010 = vst [vmem:[#allocation111_spill] sm:$0xff] %v7863_v50 }
 0x388   : > { %3132 = vrot.lane.b32.xlu2 %v7288_v25, %s6744_s20 }
 0x389   : > { %v7892_v20 = vpop.permute.xlu2 %2944  ;;  %v7938_v35 = vpop.f32.mrf.mxu3 }
 0x38a   : > { %11015 = vst [vmem:[#allocation116_spill] sm:$0xff] %v7892_v20 }
 0x38b   : > { %v7867_v41 = vpop.permute.xlu0 %3037 }
 0x38c   : > { %11012 = vst [vmem:[#allocation113_spill] sm:$0xff] %v7867_v41  ;;  %v834_v41 = vsel %vm785_vm2, %v7869_v16, -inf }
 0x38e   : > { %v794_v24 = vpop.xlane.xlu1 %793 }
 0x38f   : > { %3140 = vrot.lane.b32.xlu0 %v7382_v29, %s6744_s20  ;;  %v884_v27 = vsub.f32 %v7623_v7, %v794_v24  ;;  %v837_v24 = vsel %vm785_vm2, %v7876_v21, -inf }
 0x390   : > { %3138 = vrot.lane.b32.xlu2 %v7353_v57, %s6744_s20 }
 0x391   : > { %v918_v10 = vmul.f32 1.442695, %v884_v27 }
 0x393   : > { %v7874_v61 = vpop.xlane.xlu0 %811  ;;  %6226 = vpow2.f32 %v918_v10 }
 0x394   : > { %6228 = vpow2.f32 %v920_v43 }
 0x395   : > { %6230 = vpow2.f32 %v916_v12 }
 0x396   : > { %v7884_v34 = vpop.permute.xlu1 %2942 }
 0x397   : > { %3142 = vrot.lane.b32.xlu1 %v7413_v5, %s6744_s20  ;;  %11014 = vst [vmem:[#allocation115_spill] sm:$0xff] %v7884_v34 }
 0x399   : > { %v7886_v44 = vpop.eup %6226 }
 0x39a   : > { %v7888_v7 = vpop.eup %6228  ;;  %v984_v43 = vsel %vm785_vm2, %v7886_v44, 0.0 }
 0x39b   : > { %v7882_v26 = vpop.permute.xlu0 %3043  ;;  %v7890_v10 = vpop.eup %6230  ;;  %v987_v12 = vsel %vm785_vm2, %v7888_v7, 0.0 }
 0x39c   : > { %11013 = vst [vmem:[#allocation114_spill] sm:$0xff] %v7882_v26  ;;  %v7908_v26 = vpop.permute.xlu2 %2950 }
 0x39e   : > { %v7902_v27 = vpop.permute.xlu1 %2948 }
 0x3a3   : > { %v7900_v53 = vpop.permute.xlu0 %3049 }
 0x3a4   : > { %11016 = vst [vmem:[#allocation117_spill] sm:$0xff] %v7900_v53 }
 0x3ab   : > { %v7910_v4 = vpop.xlane.xlu0 %820 }
 0x3b3   : > { %v7916_v48 = vpop.permute.xlu0 %3055 }
 0x3b4   : > { %11018 = vst [vmem:[#allocation119_spill] sm:$0xff] %v7916_v48 }
 0x3b9   : > { %835 = vmax.xlane.f32.xlu2 %v834_v41  ;;  %838 = vmax.xlane.f32.xlu0 %v837_v24  ;;  %v981_v41 = vsel %vm785_vm2, %v7890_v10, 0.0  ;;  %v840_v24 = vsel %vm785_vm2, %v7904_v56, -inf }
 0x3bb   : > { %v7924_v50 = vpop.permute.xlu0 %3134 }
 0x3bc   : > { %11020 = vst [vmem:[#allocation121_spill] sm:$0xff] %v7924_v50 }
 0x3c1   : > { %988 = vadd.xlane.f32.xlu0 %v987_v12  ;;  %985 = vadd.xlane.f32.xlu2 %v984_v43  ;;  %v7912_v12 = vpop.permute.xlu1 %3027  ;;  %v7914_v43 = vpop.xlane.xlu2 %808 }
 0x3c2   : > { %982 = vadd.xlane.f32.xlu1 %v981_v41  ;;  %11017 = vst [vmem:[#allocation118_spill] sm:$0xff] %v7912_v12 }
 0x3c9   : > { %v806_v41 = vpop.xlane.xlu1 %805  ;;  %v7922_v53 = vpop.permute.xlu2 %3029 }
 0x3ca   : > { %841 = vmax.xlane.f32.xlu1 %v840_v24  ;;  %11019 = vst [vmem:[#allocation120_spill] sm:$0xff] %v7922_v53 }
 0x3d1   : > { %v7926_v24 = vpop.permute.xlu1 %3033  ;;  %v7930_v12 = vpop.permute.xlu2 %3035 }
 0x3d2   : > { %11021 = vst [vmem:[#allocation122_spill] sm:$0xff] %v7926_v24  ;;  %v888_v24 = vsub.f32 %v7737_v63, %v806_v41  ;;  %v11028_v63 = vld [vmem:[#allocation82_spill] sm:$0xff]  ;;  %v11032_v41 = vld [vmem:[#allocation76_spill] sm:$0xff] }
 0x3d3   : > { %11022 = vst [vmem:[#allocation123_spill] sm:$0xff] %v7930_v12  ;;  %v887_v12 = vsub.f32 %v7721_v51, %v7845_v60 }
 0x3d5   : > { %3146 = vrot.lane.b32.xlu0 %v7270_v6, %s6750_s26  ;;  %v924_v34 = vmul.f32 1.442695, %v887_v12 }
 0x3d9   : > { %3144 = vrot.lane.b32.xlu2 %v7432_v28, %s6744_s20  ;;  %v7934_v48 = vpop.permute.xlu1 %3039  ;;  %v7936_v19 = vpop.permute.xlu2 %3041 }
 0x3da   : > { %11023 = vst [vmem:[#allocation124_spill] sm:$0xff] %v7934_v48  ;;  %v926_v48 = vmul.f32 1.442695, %v888_v24 }
 0x3db   : > { %11024 = vst [vmem:[#allocation125_spill] sm:$0xff] %v7936_v19  ;;  %v886_v19 = vsub.f32 %v7707_v1, %v800_v0 }
 0x3dd   : > { %v922_v51 = vmul.f32 1.442695, %v886_v19 }
 0x3e1   : > { %v7940_v53 = vpop.permute.xlu1 %3045 }
 0x3e2   : > { %11025 = vst [vmem:[#allocation126_spill] sm:$0xff] %v7940_v53 }
 0x3e3   : > { %3148 = vrot.lane.b32.xlu1 %v7288_v25, %s6750_s26  ;;  %v7946_v25 = vpop.xlane.xlu2 %817 }
 0x3e6   : > { %v7932_v9 = vpop.xlane.xlu0 %829 }
 0x3e9   : > { %v815_v53 = vpop.xlane.xlu1 %814 }
 0x3ee   : > { %v980_v6 = vpop.xlane.xlu0 %979 }
 0x3ef   : > { %6232 = vrcp.f32 %v980_v6  ;;  %v7951_v6 = vpop.f32.mrf.mxu3 }
 0x3f0   : > { %6234 = vpow2.f32 %v926_v48 }
 0x3f1   : > { %6236 = vpow2.f32 %v924_v34  ;;  %v7966_v48 = vpop.permute.xlu1 %3051  ;;  %v11031_v34 = vld [vmem:[#allocation74_spill] sm:$0xff] }
 0x3f2   : > { %6238 = vpow2.f32 %v922_v51  ;;  %11027 = vst [vmem:[#allocation128_spill] sm:$0xff] %v7966_v48 }
 0x3f5   : > { %v6233_v50 = vpop.eup %6232 }
 0x3f6   : > { %v1106_v14 = vmul.f32 %v6233_v50, %v7831_v3  ;;  %v846_v50 = vsel %vm785_vm2, %v7951_v6, -inf  ;;  %v7964_v0 = vpop.eup %6234 }
 0x3f7   : > { %v996_v1 = vsel %vm785_vm2, %v7964_v0, 0.0  ;;  %v7988_v12 = vpop.f32.mrf.mxu3 }
 0x3f8   : > { %5558 = vmatmul.msk.f32.vlgmr.msrb.gmra.mxu2 %vm785_vm2, %v1106_v14  ;;  %v843_v14 = vsel %vm785_vm2, %v7938_v35, -inf }
 0x3f9   : > { %5622 = vmatpush.xpose.msk.msrb.mxu2 %vm420_vm1, %v7512_v54  ;;  %v7962_v54 = vpop.permute.xlu2 %3047  ;;  %v7984_v19 = vpop.permute.xlu1 %3130 }
 0x3fa   : > { %11026 = vst [vmem:[#allocation127_spill] sm:$0xff] %v7962_v54  ;;  %v891_v54 = vsub.f32 %v7772_v31, %v815_v53 }
 0x3fb   : > { %11030 = vst [vmem:[#allocation129_spill] sm:$0xff] %v7984_v19 }
 0x3fd   : > { %5623 = vmatpush.xpose.msk.msrb.mxu2 %vm420_vm1, %v7493_v11  ;;  %v7970_v11 = vpop.eup %6236 }
 0x3fe   : > { %v993_v3 = vsel %vm785_vm2, %v7970_v11, 0.0 }
 0x3ff   : > { %847 = vmax.xlane.f32.xlu0 %v846_v50  ;;  %v849_v50 = vsel %vm785_vm2, %v7988_v12, -inf }
 0x401   : > { %5624 = vmatpush.xpose.msk.msrb.mxu2 %vm420_vm1, %v7446_v46  ;;  %v7974_v46 = vpop.eup %6238  ;;  %v7980_v60 = vpop.permute.xlu2 %3053 }
 0x402   : > { %844 = vmax.xlane.f32.xlu2 %v843_v14  ;;  %11029 = vst [vmem:[#allocation82_spill] sm:$0xff] %v7980_v60  ;;  %v7996_v51 = vpop.xlane.xlu1 %823  ;;  %v11033_v14 = vld [vmem:[#allocation72_spill] sm:$0xff]  ;;  %v932_v60 = vmul.f32 1.442695, %v891_v54 }
 0x405   : > { %5625 = vmatpush.xpose.msk.msrb.mxu2 %vm420_vm1, %v7474_v17  ;;  %v990_v17 = vsel %vm785_vm2, %v7974_v46, 0.0 }
 0x407   : > { %997 = vadd.xlane.f32.xlu0 %v996_v1 }
 0x409   : > { %5626 = vmatpush.xpose.msk.msrb.mxu2 %vm420_vm1, %v11028_v63  ;;  %v7992_v24 = vpop.xlane.xlu2 %826 }
 0x40a   : > { %994 = vadd.xlane.f32.xlu2 %v993_v3  ;;  %v8002_v1 = vpop.permute.xlu1 %3136 }
 0x40b   : > { %11034 = vst [vmem:[#allocation74_spill] sm:$0xff] %v8002_v1  ;;  %v8020_v1 = vpop.f32.mrf.mxu3 }
 0x40d   : > { %5627 = vmatpush.xpose.msk.msrb.mxu2 %vm420_vm1, %v11031_v34  ;;  %991 = vadd.xlane.f32.xlu1 %v990_v17 }
 0x411   : > { %5628 = vmatpush.xpose.msk.msrb.mxu2 %vm420_vm1, %v11032_v41  ;;  %v8004_v63 = vpop.permute.xlu2 %3132  ;;  %v8016_v41 = vpop.permute.xlu0 %3140 }
 0x412   : > { %11035 = vst [vmem:[#allocation76_spill] sm:$0xff] %v8004_v63  ;;  %v8008_v3 = vpop.xlane.xlu1 %832 }
 0x413   : > { %11038 = vst [vmem:[#allocation131_spill] sm:$0xff] %v8016_v41  ;;  %v8029_v41 = vpop.f32.mrf.mxu3 }
 0x414   : > { %v855_v31 = vsel %vm785_vm2, %v8029_v41, -inf }
 0x415   : > { %5629 = vmatpush.xpose.msk.msrb.mxu2 %vm420_vm1, %v11033_v14  ;;  %850 = vmax.xlane.f32.xlu1 %v849_v50 }
 0x419   : > { %v8010_v17 = vpop.permute.xlu2 %3138 }
 0x41a   : > { %11036 = vst [vmem:[#allocation72_spill] sm:$0xff] %v8010_v17  ;;  %v8012_v34 = vpop.permute.xlu1 %3142  ;;  %v8025_v17 = vpop.f32.mrf.mxu1 }
 0x41b   : > { %3152 = vrot.lane.b32.xlu0 %v7337_v33, %s6750_s26  ;;  %11037 = vst [vmem:[#allocation130_spill] sm:$0xff] %v8012_v34 }
 0x422   : > { %3150 = vrot.lane.b32.xlu2 %v7312_v8, %s6750_s26  ;;  %v890_v8 = vsub.f32 %v7768_v32, %v7874_v61  ;;  %v852_v61 = vsel %vm785_vm2, %v8020_v1, -inf }
 0x424   : > { %v930_v53 = vmul.f32 1.442695, %v890_v8 }
 0x42c   : > { %v8018_v50 = vpop.xlane.xlu2 %835  ;;  %v8022_v63 = vpop.xlane.xlu0 %838 }
 0x42e   : > { %3154 = vrot.lane.b32.xlu1 %v7353_v57, %s6750_s26  ;;  %v893_v57 = vsub.f32 %v7794_v58, %v7910_v4 }
 0x434   : > { %v986_v19 = vpop.xlane.xlu2 %985 }
 0x435   : > { %v983_v14 = vpop.xlane.xlu1 %982 }
 0x436   : > { %6240 = vrcp.f32 %v983_v14  ;;  %v989_v14 = vpop.xlane.xlu0 %988 }
 0x437   : > { %6242 = vrcp.f32 %v986_v19 }
 0x438   : > { %6244 = vpow2.f32 %v932_v60 }
 0x439   : > { %6246 = vrcp.f32 %v989_v14 }
 0x43a   : > { %6248 = vpow2.f32 %v930_v53  ;;  %v858_v53 = vsel %vm785_vm2, %v8025_v17, -inf }
 0x43c   : > { %v6241_v48 = vpop.eup %6240 }
 0x43d   : > { %v1107_v34 = vmul.f32 %v6241_v48, %v7890_v10  ;;  %v6243_v33 = vpop.eup %6242  ;;  %v889_v10 = vsub.f32 %v7764_v45, %v7914_v43  ;;  %v8038_v48 = vpop.f32.mrf.mxu1 }
 0x43e   : > { %v1108_v54 = vmul.f32 %v6243_v33, %v7886_v44  ;;  %v8041_v19 = vpop.eup %6244 }
 0x43f   : > { %5559 = vmatmul.msk.f32.gmra.mxu2 %vm785_vm2, %v1107_v34  ;;  %v928_v32 = vmul.f32 1.442695, %v889_v10  ;;  %v6247_v60 = vpop.eup %6246  ;;  %v1005_v8 = vsel %vm785_vm2, %v8041_v19, 0.0  ;;  %v8067_v10 = vpop.xlane.xlu1 %841 }
 0x440   : > { %v1109_v33 = vmul.f32 %v6247_v60, %v7888_v7  ;;  %v8048_v45 = vpop.eup %6248 }
 0x441   : > { %6250 = vpow2.f32 %v928_v32  ;;  %v1002_v43 = vsel %vm785_vm2, %v8048_v45, 0.0 }
 0x445   : > { %856 = vmax.xlane.f32.xlu0 %v855_v31  ;;  %v8051_v44 = vpop.f32.mrf.mxu1  ;;  %v861_v31 = vsel %vm785_vm2, %v8038_v48, -inf }
 0x446   : > { %v864_v14 = vsel %vm785_vm2, %v8051_v44, -inf }
 0x447   : > { %5560 = vmatmul.msk.f32.gmra.mxu2 %vm785_vm2, %v1108_v54  ;;  %v8055_v34 = vpop.eup %6250  ;;  %v8069_v54 = vpop.permute.xlu2 %3144 }
 0x448   : > { %v999_v7 = vsel %vm785_vm2, %v8055_v34, 0.0  ;;  %11039 = vst [vmem:[#allocation132_spill] sm:$0xff] %v8069_v54 }
 0x44b   : > { %853 = vmax.xlane.f32.xlu2 %v852_v61  ;;  %v8084_v61 = vpop.permute.xlu0 %3146 }
 0x44d   : > { %1006 = vadd.xlane.f32.xlu0 %v1005_v8 }
 0x44f   : > { %5561 = vmatmul.msk.f32.gmra.mxu2 %vm785_vm2, %v1109_v33 }
 0x453   : > { %1003 = vadd.xlane.f32.xlu2 %v1002_v43  ;;  %v894_v43 = vsub.f32 %v7798_v15, %v7996_v51  ;;  %v936_v51 = vmul.f32 1.442695, %v893_v57 }
 0x455   : > { %865 = vmax.xlane.f32.xlu0 %v864_v14  ;;  %v8073_v32 = vpop.permute.xlu1 %3148 }
 0x458   : > { %1000 = vadd.xlane.f32.xlu1 %v999_v7  ;;  %v8094_v7 = vpop.f32.mrf.mxu1 }
 0x45b   : > { %862 = vmax.xlane.f32.xlu2 %v861_v31 }
 0x460   : > { %859 = vmax.xlane.f32.xlu1 %v858_v53  ;;  %v938_v53 = vmul.f32 1.442695, %v894_v43  ;;  %v8100_v15 = vpop.f32.mrf.mxu1  ;;  %v892_v43 = vsub.f32 %v7790_v38, %v7946_v25 }
 0x469   : > { %3158 = vrot.lane.b32.xlu0 %v7413_v5, %s6750_s26 }
 0x472   : > { %v8092_v14 = vpop.xlane.xlu0 %847 }
 0x473   : > { %3156 = vrot.lane.b32.xlu2 %v7382_v29, %s6750_s26 }
 0x475   : > { %v8086_v60 = vpop.xlane.xlu2 %844 }
 0x479   : > { %3160 = vrot.lane.b32.xlu1 %v7432_v28, %s6750_s26 }
 0x47b   : > { %v1203_v8 = vpop.f32.mrf.mxu2 }
 0x47c   : > { %1494 = vst.msk [vmem:[%s8080_s29] sm:$0xff] %vm420_vm1, %v1203_v8  ;;  %v998_v8 = vpop.xlane.xlu0 %997 }
 0x47d   : > { %v995_v31 = vpop.xlane.xlu2 %994 }
 0x480   : > { %v992_v33 = vpop.xlane.xlu1 %991 }
 0x481   : > { %6252 = vrcp.f32 %v992_v33 }
 0x482   : > { %6254 = vrcp.f32 %v995_v31 }
 0x483   : > { %6256 = vpow2.f32 %v938_v53 }
 0x484   : > { %6258 = vrcp.f32 %v998_v8 }
 0x485   : > { %6260 = vpow2.f32 %v936_v51  ;;  %v870_v51 = vsel %vm785_vm2, %v8100_v15, -inf }
 0x487   : > { %v6253_v54 = vpop.eup %6252 }
 0x488   : > { %v1110_v29 = vmul.f32 %v6253_v54, %v7974_v46  ;;  %v6255_v28 = vpop.eup %6254  ;;  %v897_v46 = vsub.f32 %v7833_v13, %v8008_v3  ;;  %v8112_v54 = vpop.f32.mrf.mxu1 }
 0x489   : > { %v8102_v33 = vpop.eup %6256  ;;  %v1111_v31 = vmul.f32 %v6255_v28, %v7970_v11  ;;  %v896_v28 = vsub.f32 %v7823_v62, %v7932_v9  ;;  %v873_v38 = vsel %vm785_vm2, %v8112_v54, -inf }
 0x48a   : > { %5562 = vmatmul.msk.f32.gmra.mxu2 %vm785_vm2, %v1110_v29  ;;  %v1014_v4 = vsel %vm785_vm2, %v8102_v33, 0.0  ;;  %v934_v29 = vmul.f32 1.442695, %v892_v43  ;;  %v6259_v57 = vpop.eup %6258  ;;  %v944_v58 = vmul.f32 1.442695, %v897_v46 }
 0x48b   : > { %v8114_v53 = vpop.eup %6260  ;;  %v1112_v25 = vmul.f32 %v6259_v57, %v7964_v0  ;;  %v942_v3 = vmul.f32 1.442695, %v896_v28  ;;  %v895_v0 = vsub.f32 %v7820_v55, %v7992_v24  ;;  %v867_v55 = vsel %vm785_vm2, %v8094_v7, -inf  ;;  %v11041_v28 = vld [vmem:[#allocation4_spill] sm:$0xff] }
 0x48c   : > { %6262 = vpow2.f32 %v934_v29  ;;  %v1011_v13 = vsel %vm785_vm2, %v8114_v53, 0.0 }
 0x48d   : > { %6264 = vpow2.f32 %v944_v58  ;;  %v940_v43 = vmul.f32 1.442695, %v895_v0 }
 0x48e   : > { %6266 = vpow2.f32 %v942_v3  ;;  %v8160_v3 = vpop.xlane.xlu1 %850 }
 0x48f   : > { %6268 = vpow2.f32 %v940_v43 }
 0x492   : > { %5563 = vmatmul.msk.f32.gmra.mxu2 %vm785_vm2, %v1111_v31  ;;  %v8124_v11 = vpop.eup %6262  ;;  %v8136_v31 = vpop.f32.mrf.mxu1 }
 0x493   : > { %1015 = vadd.xlane.f32.xlu0 %v1014_v4  ;;  %v8126_v8 = vpop.eup %6264  ;;  %v1008_v9 = vsel %vm785_vm2, %v8124_v11, 0.0 }
 0x494   : > { %v1023_v62 = vsel %vm785_vm2, %v8126_v8, 0.0  ;;  %v8138_v46 = vpop.eup %6266 }
 0x495   : > { %v1020_v24 = vsel %vm785_vm2, %v8138_v46, 0.0  ;;  %v8144_v4 = vpop.eup %6268 }
 0x496   : > { %v1017_v57 = vsel %vm785_vm2, %v8144_v4, 0.0 }
 0x49a   : > { %5564 = vmatmul.msk.f32.gmra.mxu2 %vm785_vm2, %v1112_v25  ;;  %v8146_v29 = vpop.f32.mrf.mxu1  ;;  %v8152_v25 = vpop.permute.xlu2 %3150 }
 0x49b   : > { %874 = vmax.xlane.f32.xlu0 %v873_v38  ;;  %11040 = vst [vmem:[#allocation133_spill] sm:$0xff] %v8146_v29  ;;  %v879_v58 = vsel %vm785_vm2, %v8146_v29, -inf  ;;  %v8156_v38 = vpop.permute.xlu0 %3152 }
 0x49c   : > { %1012 = vadd.xlane.f32.xlu2 %v1011_v13  ;;  %v876_v13 = vsel %vm785_vm2, %v8136_v31, -inf }
 0x4a3   : > { %1009 = vadd.xlane.f32.xlu1 %v1008_v9  ;;  %1024 = vadd.xlane.f32.xlu0 %v1023_v62  ;;  %v11042_v9 = vld [vmem:[#allocation14_spill] sm:$0xff] }
 0x4a4   : > { %871 = vmax.xlane.f32.xlu2 %v870_v51  ;;  %v8168_v51 = vpop.permute.xlu1 %3154 }
 0x4ab   : > { %868 = vmax.xlane.f32.xlu1 %v867_v55 }
 0x4ac   : > { %1021 = vadd.xlane.f32.xlu2 %v1020_v24 }
 0x4b3   : > { %1018 = vadd.xlane.f32.xlu1 %v1017_v57 }
 0x4b4   : > { %880 = vmax.xlane.f32.xlu2 %v879_v58 }
 0x4b7   : > { %6065 = vrot.lane.b32.xlu0 %v11041_v28, %s6751_s30  ;;  %v11043_v28 = vld [vmem:[#allocation10_spill] sm:$0xff] }
 0x4b8   : > { %v8166_v62 = vpop.xlane.xlu0 %856 }
 0x4bb   : > { %877 = vmax.xlane.f32.xlu1 %v876_v13 }
 0x4be   : > { %v8162_v0 = vpop.xlane.xlu2 %853 }
 0x4bf   : > { %6080 = vrot.lane.b32.xlu0 %v11042_v9, %s6751_s30 }
 0x4c0   : > { %v1007_v24 = vpop.xlane.xlu0 %1006 }
 0x4c2   : > { %v1206_v43 = vpop.f32.mrf.mxu2 }
 0x4c3   : > { %1495 = vst.msk [vmem:[%s8080_s29 + $0x8] sm:$0xff] %vm420_vm1, %v1206_v43 }
 0x4c6   : > { %v1004_v55 = vpop.xlane.xlu2 %1003 }
 0x4c7   : > { %6270 = vrcp.f32 %v1004_v55 }
 0x4ca   : > { %v1209_v57 = vpop.f32.mrf.mxu2 }
 0x4cb   : > { %v1001_v58 = vpop.xlane.xlu1 %1000  ;;  %1496 = vst.msk [vmem:[%s8080_s29 + $0x10] sm:$0xff] %vm420_vm1, %v1209_v57  ;;  %v11044_v57 = vld [vmem:[#allocation7_spill] sm:$0xff] }
 0x4cc   : > { %6272 = vrcp.f32 %v1001_v58  ;;  %6075 = vrot.lane.b32.xlu2 %v11043_v28, %s6751_s30  ;;  %v8234_v58 = vpop.xlane.xlu0 %865 }
 0x4cd   : > { %v6271_v13 = vpop.eup %6270  ;;  %6274 = vrcp.f32 %v1007_v24 }
 0x4ce   : > { %v1114_v9 = vmul.f32 %v6271_v13, %v8048_v45  ;;  %v11048_v13 = vld [vmem:[#allocation48_spill] sm:$0xff] }
 0x4d0   : > { %5566 = vmatmul.msk.f32.vlgmr.msrb.gmra.mxu3 %vm785_vm2, %v1114_v9 }
 0x4d1   : > { %5638 = vmatpush.xpose.msk.msrb.mxu3 %vm420_vm1, %v7663_v30  ;;  %v900_v30 = vsub.f32 %v7904_v56, %v8067_v10  ;;  %v11047_v10 = vld [vmem:[#allocation28_spill] sm:$0xff] }
 0x4d2   : > { %v6273_v43 = vpop.eup %6272  ;;  %v1212_v29 = vpop.f32.mrf.mxu2 }
 0x4d3   : > { %v6275_v55 = vpop.eup %6274  ;;  %v1113_v20 = vmul.f32 %v6273_v43, %v8055_v34  ;;  %1497 = vst.msk [vmem:[%s8080_s29 + $0x18] sm:$0xff] %vm420_vm1, %v1212_v29  ;;  %v950_v34 = vmul.f32 1.442695, %v900_v30  ;;  %v903_v30 = vsub.f32 %v7988_v12, %v8160_v3 }
 0x4d4   : > { %6070 = vrot.lane.b32.xlu1 %v11044_v57, %s6751_s30  ;;  %v1115_v45 = vmul.f32 %v6275_v55, %v8041_v19  ;;  %v8226_v19 = vpop.xlane.xlu2 %862  ;;  %v11049_v55 = vld [vmem:[#allocation18_spill] sm:$0xff] }
 0x4d5   : > { %5639 = vmatpush.xpose.msk.msrb.mxu3 %vm420_vm1, %v7644_v23  ;;  %5565 = vmatmul.msk.f32.gmra.mxu2 %vm785_vm2, %v1113_v20  ;;  %6276 = vpow2.f32 %v950_v34  ;;  %v899_v23 = vsub.f32 %v7876_v21, %v8022_v63 }
 0x4d7   : > { %v948_v56 = vmul.f32 1.442695, %v899_v23 }
 0x4d8   : > { %5567 = vmatmul.msk.f32.gmra.mxu3 %vm785_vm2, %v1115_v45 }
 0x4d9   : > { %5640 = vmatpush.xpose.msk.msrb.mxu3 %vm420_vm1, %v7619_v40  ;;  %6278 = vpow2.f32 %v948_v56  ;;  %v11050_v56 = vld [vmem:[#allocation37_spill] sm:$0xff] }
 0x4db   : > { %v8200_v20 = vpop.eup %6276  ;;  %v8244_v57 = vpop.permute.xlu0 %3158 }
 0x4dc   : > { %v1032_v40 = vsel %vm785_vm2, %v8200_v20, 0.0  ;;  %v8236_v28 = vpop.permute.xlu2 %3156 }
 0x4dd   : > { %5641 = vmatpush.xpose.msk.msrb.mxu3 %vm420_vm1, %v7631_v18  ;;  %v898_v18 = vsub.f32 %v7869_v16, %v8018_v50  ;;  %v8224_v50 = vpop.xlane.xlu1 %859 }
 0x4df   : > { %v8212_v21 = vpop.eup %6278 }
 0x4e1   : > { %5642 = vmatpush.xpose.msk.msrb.mxu3 %vm420_vm1, %v7609_v36  ;;  %v946_v36 = vmul.f32 1.442695, %v898_v18  ;;  %v956_v18 = vmul.f32 1.442695, %v903_v30 }
 0x4e3   : > { %6280 = vpow2.f32 %v946_v36 }
 0x4e5   : > { %5643 = vmatpush.xpose.msk.msrb.mxu3 %vm420_vm1, %v7577_v47  ;;  %v1029_v47 = vsel %vm785_vm2, %v8212_v21, 0.0 }
 0x4e9   : > { %5644 = vmatpush.xpose.msk.msrb.mxu3 %vm420_vm1, %v7558_v37  ;;  %1033 = vadd.xlane.f32.xlu0 %v1032_v40  ;;  %v8216_v63 = vpop.eup %6280  ;;  %v11045_v37 = vld [vmem:[#allocation22_spill] sm:$0xff] }
 0x4ea   : > { %v1026_v16 = vsel %vm785_vm2, %v8216_v63, 0.0 }
 0x4eb   : > { %v8230_v24 = vpop.permute.xlu1 %3160 }
 0x4ed   : > { %5645 = vmatpush.xpose.msk.msrb.mxu3 %vm420_vm1, %v7565_v2  ;;  %v11046_v2 = vld [vmem:[#allocation40_spill] sm:$0xff] }
 0x4f5   : > { %1030 = vadd.xlane.f32.xlu2 %v1029_v47 }
 0x4fd   : > { %6090 = vrot.lane.b32.xlu0 %v11045_v37, %s6751_s30 }
 0x4fe   : > { %1027 = vadd.xlane.f32.xlu1 %v1026_v16 }
 0x505   : > { %6105 = vrot.lane.b32.xlu0 %v11046_v2, %s6751_s30 }
 0x506   : > { %v1016_v47 = vpop.xlane.xlu0 %1015 }
 0x50d   : > { %6095 = vrot.lane.b32.xlu2 %v11047_v10, %s6751_s30  ;;  %v1215_v29 = vpop.f32.mrf.mxu2 }
 0x50e   : > { %1498 = vst.msk [vmem:[%s8080_s29 + $0x20] sm:$0xff] %vm420_vm1, %v1215_v29 }
 0x50f   : > { %v1013_v45 = vpop.xlane.xlu2 %1012 }
 0x515   : > { %6110 = vrot.lane.b32.xlu2 %v11048_v13, %s6751_s30  ;;  %v1218_v9 = vpop.f32.mrf.mxu2 }
 0x516   : > { %1499 = vst.msk [vmem:[%s8080_s29 + $0x28] sm:$0xff] %vm420_vm1, %v1218_v9  ;;  %v1010_v43 = vpop.xlane.xlu1 %1009 }
 0x517   : > { %6085 = vrot.lane.b32.xlu1 %v11049_v55, %s6751_s30  ;;  %6282 = vrcp.f32 %v1010_v43  ;;  %v8257_v3 = vpop.xlane.xlu2 %871 }
 0x518   : > { %6284 = vrcp.f32 %v1013_v45  ;;  %v901_v45 = vsub.f32 %v7938_v35, %v8086_v60  ;;  %v11051_v35 = vld [vmem:[#allocation59_spill] sm:$0xff] }
 0x519   : > { %6286 = vpow2.f32 %v956_v18 }
 0x51a   : > { %6288 = vrcp.f32 %v1016_v47  ;;  %v952_v30 = vmul.f32 1.442695, %v901_v45  ;;  %v11052_v47 = vld [vmem:[#allocation77_spill] sm:$0xff]  ;;  %v11056_v45 = vld [vmem:[#allocation86_spill] sm:$0xff] }
 0x51d   : > { %v1221_v34 = vpop.f32.mrf.mxu2  ;;  %v6283_v23 = vpop.eup %6282 }
 0x51e   : > { %1500 = vst.msk [vmem:[%s8080_s29 + $0x30] sm:$0xff] %vm420_vm1, %v1221_v34  ;;  %v1116_v40 = vmul.f32 %v6283_v23, %v8124_v11  ;;  %v8253_v36 = vpop.xlane.xlu1 %868  ;;  %v6285_v37 = vpop.eup %6284  ;;  %v902_v11 = vsub.f32 %v7951_v6, %v8092_v14 }
 0x51f   : > { %6100 = vrot.lane.b32.xlu1 %v11050_v56, %s6751_s30  ;;  %v1117_v12 = vmul.f32 %v6285_v37, %v8114_v53  ;;  %v8260_v16 = vpop.eup %6286  ;;  %v8267_v53 = vpop.xlane.xlu0 %874  ;;  %v11053_v37 = vld [vmem:[#allocation15_spill] sm:$0xff] }
 0x520   : > { %5568 = vmatmul.msk.f32.gmra.mxu3 %vm785_vm2, %v1116_v40  ;;  %v6289_v10 = vpop.eup %6288  ;;  %v1041_v29 = vsel %vm785_vm2, %v8260_v16, 0.0  ;;  %v954_v9 = vmul.f32 1.442695, %v902_v11  ;;  %v1022_v43 = vpop.xlane.xlu2 %1021  ;;  %v11054_v11 = vld [vmem:[#allocation66_spill] sm:$0xff] }
 0x521   : > { %v1118_v13 = vmul.f32 %v6289_v10, %v8102_v33  ;;  %v6052_v10 = vunpack.i.l.bf16 %v7633_v22 }
 0x526   : > { %v1019_v2 = vpop.xlane.xlu1 %1018 }
 0x527   : > { %6290 = vrcp.f32 %v1019_v2  ;;  %v1025_v33 = vpop.xlane.xlu0 %1024 }
 0x528   : > { %5569 = vmatmul.msk.f32.gmra.mxu3 %vm785_vm2, %v1117_v12  ;;  %6292 = vpow2.f32 %v954_v9  ;;  %v6062_v12 = vunpack.i.l.bf16 %v7642_v59  ;;  %v6042_v9 = vunpack.i.l.bf16 %v7617_v49 }
 0x529   : > { %6294 = vrcp.f32 %v1022_v43 }
 0x52a   : > { %6296 = vrcp.f32 %v1025_v33  ;;  %v906_v33 = vsub.f32 %v8025_v17, %v8224_v50 }
 0x52b   : > { %6298 = vpow2.f32 %v952_v30  ;;  %v11057_v30 = vld [vmem:[#allocation27_spill] sm:$0xff] }
 0x52d   : > { %v6291_v55 = vpop.eup %6290 }
 0x52e   : > { %v1119_v6 = vmul.f32 %v6291_v55, %v8144_v4  ;;  %v8274_v14 = vpop.eup %6292  ;;  %v6033_v55 = vunpack.i.h.bf16 %v7563_v42 }
 0x52f   : > { %1042 = vadd.xlane.f32.xlu0 %v1041_v29  ;;  %v6295_v34 = vpop.eup %6294  ;;  %v1038_v23 = vsel %vm785_vm2, %v8274_v14, 0.0  ;;  %v6043_v29 = vunpack.i.h.bf16 %v7617_v49  ;;  %v11058_v49 = vld [vmem:[#allocation54_spill] sm:$0xff] }
 0x530   : > { %5570 = vmatmul.msk.f32.gmra.mxu3 %vm785_vm2, %v1118_v13  ;;  %v1120_v56 = vmul.f32 %v6295_v34, %v8138_v46  ;;  %v6297_v60 = vpop.eup %6296  ;;  %v6063_v46 = vunpack.i.h.bf16 %v7642_v59  ;;  %v11055_v59 = vld [vmem:[#allocation23_spill] sm:$0xff]  ;;  %v8320_v34 = vpop.xlane.xlu2 %880 }
 0x531   : > { %v8282_v4 = vpop.eup %6298  ;;  %v1121_v40 = vmul.f32 %v6297_v60, %v8126_v8  ;;  %v6053_v8 = vunpack.i.h.bf16 %v7633_v22  ;;  %v6032_v22 = vunpack.i.l.bf16 %v7563_v42  ;;  %v8328_v60 = vpop.permute.xlu0 %6065 }
 0x532   : > { %v1035_v18 = vsel %vm785_vm2, %v8282_v4, 0.0 }
 0x538   : > { %5571 = vmatmul.msk.f32.gmra.mxu3 %vm785_vm2, %v1119_v6  ;;  %v8312_v6 = vpop.xlane.xlu1 %877 }
 0x53e   : > { %1039 = vadd.xlane.f32.xlu2 %v1038_v23  ;;  %v962_v23 = vmul.f32 1.442695, %v906_v33 }
 0x540   : > { %5572 = vmatmul.msk.f32.gmra.mxu3 %vm785_vm2, %v1120_v56  ;;  %v11059_v56 = vld [vmem:[#allocation24_spill] sm:$0xff]  ;;  %6300 = vpow2.f32 %v962_v23 }
 0x543   : > { %6120 = vrot.lane.b32.xlu0 %v11051_v35, %s6751_s30  ;;  %v11060_v35 = vld [vmem:[#allocation71_spill] sm:$0xff] }
 0x546   : > { %v8322_v42 = vpop.permute.xlu1 %6070 }
 0x548   : > { %5573 = vmatmul.msk.f32.gmra.mxu3 %vm785_vm2, %v1121_v40  ;;  %v8330_v40 = vpop.permute.xlu2 %6075 }
 0x549   : > { %1036 = vadd.xlane.f32.xlu1 %v1035_v18  ;;  %v8332_v18 = vpop.eup %6300 }
 0x54a   : > { %v1050_v50 = vsel %vm785_vm2, %v8332_v18, 0.0 }
 0x54b   : > { %6135 = vrot.lane.b32.xlu0 %v11052_v47, %s6751_s30  ;;  %v11061_v47 = vld [vmem:[#allocation33_spill] sm:$0xff] }
 0x550   : > { %5598 = vmatmul.msk.f32.vlgmr.msra.gmra.mxu3 %vm420_vm1, %v11053_v37  ;;  %v8340_v37 = vpop.permute.xlu0 %6080 }
 0x551   : > { %2621 = vmatpush.msra.mxu3 %v6063_v46  ;;  %v905_v46 = vsub.f32 %v8029_v41, %v8166_v62 }
 0x553   : > { %v1292_v2 = vpop.f32.mrf.mxu3  ;;  %2622 = vmatpush.msra.mxu3 %v6062_v12 }
 0x554   : > { %1502 = vst.msk [vmem:[%s8080_s29 + $0x40] sm:$0xff] %vm420_vm1, %v1292_v2 }
 0x555   : > { %2623 = vmatpush.msra.mxu3 %v6053_v8  ;;  %v960_v8 = vmul.f32 1.442695, %v905_v46 }
 0x556   : > { %6125 = vrot.lane.b32.xlu2 %v11054_v11, %s6751_s30  ;;  %v11062_v11 = vld [vmem:[#allocation38_spill] sm:$0xff] }
 0x557   : > { %2624 = vmatpush.msra.mxu3 %v6052_v10 }
 0x558   : > { %v1224_v13 = vpop.f32.mrf.mxu2  ;;  %5599 = vmatmul.msk.f32.gmra.mxu3 %vm420_vm1, %v11055_v59 }
 0x559   : > { %1501 = vst.msk [vmem:[%s8080_s29 + $0x38] sm:$0xff] %vm420_vm1, %v1224_v13  ;;  %2625 = vmatpush.msra.mxu3 %v6043_v29  ;;  %v11063_v29 = vld [vmem:[#allocation65_spill] sm:$0xff] }
 0x55a   : > { %v5983_v13 = vunpack.i.h.bf16 %v11063_v29  ;;  %v5982_v59 = vunpack.i.l.bf16 %v11063_v29 }
 0x55b   : > { %v1295_v43 = vpop.f32.mrf.mxu3  ;;  %2626 = vmatpush.msra.mxu3 %v6042_v9  ;;  %v11064_v9 = vld [vmem:[#allocation62_spill] sm:$0xff] }
 0x55c   : > { %1503 = vst.msk [vmem:[%s8080_s29 + $0x48] sm:$0xff] %vm420_vm1, %v1295_v43  ;;  %v1034_v41 = vpop.xlane.xlu0 %1033  ;;  %v5973_v43 = vunpack.i.h.bf16 %v11064_v9 }
 0x55d   : > { %2627 = vmatpush.msra.mxu3 %v6033_v55  ;;  %v5972_v55 = vunpack.i.l.bf16 %v11064_v9 }
 0x55e   : > { %6140 = vrot.lane.b32.xlu2 %v11056_v45, %s6751_s30  ;;  %v11066_v45 = vld [vmem:[#allocation56_spill] sm:$0xff] }
 0x55f   : > { %2628 = vmatpush.msra.mxu3 %v6032_v22  ;;  %v5962_v23 = vunpack.i.l.bf16 %v11066_v45 }
 0x560   : > { %5600 = vmatmul.msk.f32.gmra.mxu3 %vm420_vm1, %v11057_v30  ;;  %v5963_v30 = vunpack.i.h.bf16 %v11066_v45 }
 0x562   : > { %6115 = vrot.lane.b32.xlu1 %v11058_v49, %s6751_s30  ;;  %v904_v49 = vsub.f32 %v8020_v1, %v8162_v0  ;;  %v11068_v1 = vld [vmem:[#allocation43_spill] sm:$0xff]  ;;  %v11069_v0 = vld [vmem:[#allocation5_spill] sm:$0xff] }
 0x568   : > { %5601 = vmatmul.msk.f32.gmra.mxu3 %vm420_vm1, %v11059_v56  ;;  %v1031_v12 = vpop.xlane.xlu2 %1030 }
 0x56a   : > { %6130 = vrot.lane.b32.xlu1 %v11060_v35, %s6751_s30  ;;  %v11067_v35 = vld [vmem:[#allocation46_spill] sm:$0xff] }
 0x570   : > { %5602 = vmatmul.msk.f32.gmra.mxu3 %vm420_vm1, %v11061_v47  ;;  %v5953_v47 = vunpack.i.h.bf16 %v11067_v35 }
 0x571   : > { %v1028_v17 = vpop.xlane.xlu1 %1027 }
 0x572   : > { %6302 = vrcp.f32 %v1028_v17  ;;  %v958_v17 = vmul.f32 1.442695, %v904_v49 }
 0x573   : > { %6304 = vrcp.f32 %v1031_v12 }
 0x574   : > { %6306 = vpow2.f32 %v960_v8  ;;  %v11071_v8 = vld [vmem:[#allocation9_spill] sm:$0xff] }
 0x575   : > { %1051 = vadd.xlane.f32.xlu0 %v1050_v50  ;;  %6308 = vrcp.f32 %v1034_v41  ;;  %v5952_v50 = vunpack.i.l.bf16 %v11067_v35  ;;  %v8410_v41 = vpop.permute.xlu2 %6095 }
 0x576   : > { %6310 = vpow2.f32 %v958_v17 }
 0x578   : > { %v6303_v2 = vpop.eup %6302  ;;  %5603 = vmatmul.msk.f32.gmra.mxu3 %vm420_vm1, %v11062_v11  ;;  %v11073_v11 = vld [vmem:[#allocation2_spill] sm:$0xff] }
 0x579   : > { %v1122_v10 = vmul.f32 %v6303_v2, %v8216_v63  ;;  %v6305_v62 = vpop.eup %6304  ;;  %v11065_v63 = vld [vmem:[#allocation35_spill] sm:$0xff] }
 0x57a   : > { %v1123_v22 = vmul.f32 %v6305_v62, %v8212_v21  ;;  %v8356_v33 = vpop.eup %6306  ;;  %v11070_v2 = vld [vmem:[#allocation91_spill] sm:$0xff]  ;;  %v8422_v62 = vpop.permute.xlu0 %6090 }
 0x57b   : > { %5574 = vmatmul.msk.f32.vlgmr.msra.gmra.mxu1 %vm785_vm2, %v1122_v10  ;;  %v6309_v56 = vpop.eup %6308  ;;  %v1047_v21 = vsel %vm785_vm2, %v8356_v33, 0.0 }
 0x57c   : > { %2443 = vmatpush.msra.mxu1 %v5983_v13  ;;  %v1124_v46 = vmul.f32 %v6309_v56, %v8200_v20  ;;  %v8370_v12 = vpop.eup %6310  ;;  %v11072_v20 = vld [vmem:[#allocation92_spill] sm:$0xff] }
 0x57d   : > { %v1044_v10 = vsel %vm785_vm2, %v8370_v12, 0.0 }
 0x57e   : > { %2444 = vmatpush.msra.mxu1 %v5982_v59  ;;  %v11076_v59 = vld [vmem:[#allocation3_spill] sm:$0xff] }
 0x580   : > { %2445 = vmatpush.msra.mxu1 %v5973_v43  ;;  %5604 = vmatmul.msk.f32.gmra.mxu3 %vm420_vm1, %v11065_v63  ;;  %v8426_v43 = vpop.permute.xlu2 %6110 }
 0x581   : > { %11078 = vst [vmem:[#allocation4_spill] sm:$0xff] %v8426_v43  ;;  %v11149_v43 = vld [vmem:[#allocation69_spill] sm:$0xff] }
 0x582   : > { %2446 = vmatpush.msra.mxu1 %v5972_v55 }
 0x583   : > { %5575 = vmatmul.msk.f32.gmra.mxu1 %vm785_vm2, %v1123_v22 }
 0x584   : > { %2447 = vmatpush.msra.mxu1 %v5963_v30  ;;  %v11081_v30 = vld [vmem:[#allocation98_spill] sm:$0xff] }
 0x586   : > { %2448 = vmatpush.msra.mxu1 %v5962_v23 }
 0x587   : > { %1048 = vadd.xlane.f32.xlu2 %v1047_v21 }
 0x588   : > { %2449 = vmatpush.msra.mxu1 %v5953_v47  ;;  %5605 = vmatmul.msk.f32.gmra.mxu3 %vm420_vm1, %v11068_v1  ;;  %v907_v47 = vsub.f32 %v8038_v48, %v8226_v19 }
 0x589   : > { %4108 = vrot.lane.b32.xlu0 %v11069_v0, %s6752_s3  ;;  %v8402_v29 = vpop.permute.xlu1 %6085 }
 0x58a   : > { %2450 = vmatpush.msra.mxu1 %v5952_v50  ;;  %v964_v1 = vmul.f32 1.442695, %v907_v47  ;;  %v11092_v47 = vld [vmem:[#allocation79_spill] sm:$0xff] }
 0x58b   : > { %5576 = vmatmul.msk.f32.gmra.mxu1 %vm785_vm2, %v1124_v46  ;;  %v11082_v46 = vld [vmem:[#allocation97_spill] sm:$0xff] }
 0x590   : > { %5646 = vmatmul.msk.f32.vlgmr.msrb.gmra.mxu3 %vm420_vm1, %v11070_v2 }
 0x591   : > { %4114 = vrot.lane.b32.xlu0 %v11071_v8, %s6752_s3  ;;  %5734 = vmatpush.xpose.msk.msrb.mxu3 %vm420_vm1, %v8230_v24  ;;  %v11074_v24 = vld [vmem:[#allocation93_spill] sm:$0xff] }
 0x594   : > { %1045 = vadd.xlane.f32.xlu1 %v1044_v10 }
 0x595   : > { %5735 = vmatpush.xpose.msk.msrb.mxu3 %vm420_vm1, %v8244_v57 }
 0x598   : > { %5647 = vmatmul.msk.f32.gmra.mxu3 %vm420_vm1, %v11072_v20 }
 0x599   : > { %5736 = vmatpush.xpose.msk.msrb.mxu3 %vm420_vm1, %v8236_v28  ;;  %v909_v28 = vsub.f32 %v8094_v7, %v8253_v36  ;;  %v11077_v7 = vld [vmem:[#allocation94_spill] sm:$0xff]  ;;  %v908_v36 = vsub.f32 %v8051_v44, %v8234_v58  ;;  %v8434_v44 = vpop.permute.xlu0 %6105 }
 0x59a   : > { %11080 = vst [vmem:[#allocation14_spill] sm:$0xff] %v8434_v44  ;;  %v11145_v44 = vld [vmem:[#allocation73_spill] sm:$0xff] }
 0x59b   : > { %v966_v55 = vmul.f32 1.442695, %v908_v36 }
 0x59d   : > { %5737 = vmatpush.xpose.msk.msrb.mxu3 %vm420_vm1, %v8168_v51  ;;  %v11075_v51 = vld [vmem:[#allocation95_spill] sm:$0xff] }
 0x59f   : > { %4104 = vrot.lane.b32.xlu2 %v11073_v11, %s6752_s3 }
 0x5a0   : > { %5648 = vmatmul.msk.f32.gmra.mxu3 %vm420_vm1, %v11074_v24  ;;  %v11084_v24 = vld [vmem:[#allocation6_spill] sm:$0xff] }
 0x5a1   : > { %5738 = vmatpush.xpose.msk.msrb.mxu3 %vm420_vm1, %v8156_v38  ;;  %v968_v38 = vmul.f32 1.442695, %v909_v28  ;;  %v11085_v28 = vld [vmem:[#allocation11_spill] sm:$0xff] }
 0x5a2   : > { %v1043_v21 = vpop.xlane.xlu0 %1042 }
 0x5a3   : > { %v1298_v57 = vpop.f32.mrf.mxu3  ;;  %6312 = vpow2.f32 %v968_v38 }
 0x5a4   : > { %1504 = vst.msk [vmem:[%s8080_s29 + $0x50] sm:$0xff] %vm420_vm1, %v1298_v57 }
 0x5a5   : > { %5739 = vmatpush.xpose.msk.msrb.mxu3 %vm420_vm1, %v8152_v25  ;;  %v8416_v25 = vpop.permute.xlu1 %6100 }
 0x5a8   : > { %5649 = vmatmul.msk.f32.gmra.mxu3 %vm420_vm1, %v11075_v51 }
 0x5a9   : > { %5740 = vmatpush.xpose.msk.msrb.mxu3 %vm420_vm1, %v8073_v32  ;;  %v8424_v9 = vpop.eup %6312 }
 0x5aa   : > { %v1059_v63 = vsel %vm785_vm2, %v8424_v9, 0.0 }
 0x5ab   : > { %v1301_v13 = vpop.f32.mrf.mxu3 }
 0x5ac   : > { %1505 = vst.msk [vmem:[%s8080_s29 + $0x58] sm:$0xff] %vm420_vm1, %v1301_v13  ;;  %v912_v13 = vsub.f32 %v8136_v31, %v8312_v6  ;;  %v11090_v6 = vld [vmem:[#allocation12_spill] sm:$0xff] }
 0x5ad   : > { %4106 = vrot.lane.b32.xlu1 %v11076_v59, %s6752_s3  ;;  %5741 = vmatpush.xpose.msk.msrb.mxu3 %vm420_vm1, %v8084_v61  ;;  %v11079_v61 = vld [vmem:[#allocation96_spill] sm:$0xff] }
 0x5b0   : > { %5650 = vmatmul.msk.f32.gmra.mxu3 %vm420_vm1, %v11077_v7  ;;  %v11086_v7 = vld [vmem:[#allocation8_spill] sm:$0xff] }
 0x5b1   : > { %v1040_v58 = vpop.xlane.xlu2 %1039 }
 0x5b3   : > { %v1304_v32 = vpop.f32.mrf.mxu3 }
 0x5b4   : > { %1506 = vst.msk [vmem:[%s8080_s29 + $0x60] sm:$0xff] %vm420_vm1, %v1304_v32  ;;  %v11087_v32 = vld [vmem:[#allocation90_spill] sm:$0xff] }
 0x5b5   : > { %v8459_v20 = vpop.permute.xlu0 %6120  ;;  %v6023_v36 = vunpack.i.h.bf16 %v11087_v32 }
 0x5b6   : > { %11083 = vst [vmem:[#allocation10_spill] sm:$0xff] %v8459_v20  ;;  %v11158_v20 = vld [vmem:[#allocation84_spill] sm:$0xff] }
 0x5b8   : > { %5651 = vmatmul.msk.f32.gmra.mxu3 %vm420_vm1, %v11079_v61  ;;  %v6022_v61 = vunpack.i.l.bf16 %v11087_v32 }
 0x5bb   : > { %1060 = vadd.xlane.f32.xlu0 %v1059_v63  ;;  %v1307_v22 = vpop.f32.mrf.mxu3  ;;  %v11088_v63 = vld [vmem:[#allocation85_spill] sm:$0xff] }
 0x5bc   : > { %v1037_v45 = vpop.xlane.xlu1 %1036  ;;  %1507 = vst.msk [vmem:[%s8080_s29 + $0x68] sm:$0xff] %vm420_vm1, %v1307_v22  ;;  %v6013_v22 = vunpack.i.h.bf16 %v11088_v63  ;;  %v6012_v31 = vunpack.i.l.bf16 %v11088_v63  ;;  %v11097_v63 = vld [vmem:[#allocation50_spill] sm:$0xff] }
 0x5bd   : > { %6314 = vrcp.f32 %v1037_v45  ;;  %v8466_v57 = vpop.permute.xlu0 %6135 }
 0x5be   : > { %6316 = vpow2.f32 %v966_v55  ;;  %v974_v55 = vmul.f32 1.442695, %v912_v13  ;;  %v910_v13 = vsub.f32 %v8100_v15, %v8257_v3  ;;  %v11094_v3 = vld [vmem:[#allocation45_spill] sm:$0xff] }
 0x5bf   : > { %6318 = vrcp.f32 %v1040_v58  ;;  %v11091_v58 = vld [vmem:[#allocation83_spill] sm:$0xff] }
 0x5c0   : > { %5652 = vmatmul.msk.f32.gmra.mxu3 %vm420_vm1, %v11081_v30  ;;  %6320 = vrcp.f32 %v1043_v21  ;;  %v6003_v30 = vunpack.i.h.bf16 %v11091_v58  ;;  %v5992_v21 = vunpack.i.l.bf16 %v11092_v47 }
 0x5c1   : > { %6322 = vpow2.f32 %v964_v1 }
 0x5c3   : > { %v6315_v49 = vpop.eup %6314  ;;  %v1310_v56 = vpop.f32.mrf.mxu3 }
 0x5c4   : > { %v8438_v23 = vpop.eup %6316  ;;  %v1125_v35 = vmul.f32 %v6315_v49, %v8282_v4  ;;  %1508 = vst.msk [vmem:[%s8080_s29 + $0x70] sm:$0xff] %vm420_vm1, %v1310_v56  ;;  %v8487_v49 = vpop.permute.xlu2 %6125  ;;  %v6002_v56 = vunpack.i.l.bf16 %v11091_v58  ;;  %v11103_v58 = vld [vmem:[#allocation29_spill] sm:$0xff] }
 0x5c5   : > { %v1056_v17 = vsel %vm785_vm2, %v8438_v23, 0.0  ;;  %v6319_v50 = vpop.eup %6318 }
 0x5c6   : > { %5577 = vmatmul.msk.f32.gmra.mxu1 %vm785_vm2, %v1125_v35  ;;  %v1126_v4 = vmul.f32 %v6319_v50, %v8274_v14  ;;  %v6321_v48 = vpop.eup %6320  ;;  %v911_v50 = vsub.f32 %v8112_v54, %v8267_v53 }
 0x5c7   : > { %v8456_v19 = vpop.eup %6322  ;;  %v1127_v10 = vmul.f32 %v6321_v48, %v8260_v16 }
 0x5c8   : > { %1057 = vadd.xlane.f32.xlu2 %v1056_v17  ;;  %5653 = vmatmul.msk.f32.gmra.mxu3 %vm420_vm1, %v11082_v46  ;;  %v1053_v14 = vsel %vm785_vm2, %v8456_v19, 0.0  ;;  %v5993_v17 = vunpack.i.h.bf16 %v11092_v47  ;;  %v11106_v47 = vld [vmem:[#allocation60_spill] sm:$0xff] }
 0x5cb   : > { %v1313_v2 = vpop.f32.mrf.mxu3 }
 0x5cc   : > { %1509 = vst.msk [vmem:[%s8080_s29 + $0x78] sm:$0xff] %vm420_vm1, %v1313_v2  ;;  %v8504_v48 = vpop.permute.xlu2 %6140 }
 0x5ce   : > { %5578 = vmatmul.msk.f32.gmra.mxu1 %vm785_vm2, %v1126_v4  ;;  %v972_v4 = vmul.f32 1.442695, %v911_v50 }
 0x5cf   : > { %4120 = vrot.lane.b32.xlu0 %v11073_v11, %s6753_s4 }
 0x5d4   : > { %v8481_v45 = vpop.permute.xlu1 %6115 }
 0x5d5   : > { %11089 = vst [vmem:[#allocation7_spill] sm:$0xff] %v8481_v45  ;;  %v11151_v45 = vld [vmem:[#allocation117_spill] sm:$0xff] }
 0x5d6   : > { %5579 = vmatmul.msk.f32.gmra.mxu1 %vm785_vm2, %v1127_v10 }
 0x5d7   : > { %1054 = vadd.xlane.f32.xlu1 %v1053_v14  ;;  %4126 = vrot.lane.b32.xlu0 %v11084_v24, %s6753_s4 }
 0x5dc   : > { %v8498_v1 = vpop.permute.xlu1 %6130 }
 0x5e0   : > { %4110 = vrot.lane.b32.xlu2 %v11084_v24, %s6752_s3 }
 0x5e8   : > { %4116 = vrot.lane.b32.xlu2 %v11085_v28, %s6752_s3  ;;  %v1052_v16 = vpop.xlane.xlu0 %1051 }
 0x5e9   : > { %6324 = vrcp.f32 %v1052_v16 }
 0x5ea   : > { %6326 = vpow2.f32 %v974_v55 }
 0x5eb   : > { %6328 = vpow2.f32 %v972_v4  ;;  %v11111_v4 = vld [vmem:[#allocation81_spill] sm:$0xff] }
 0x5ef   : > { %v6325_v51 = vpop.eup %6324 }
 0x5f0   : > { %v1130_v38 = vmul.f32 %v6325_v51, %v8332_v18  ;;  %4112 = vrot.lane.b32.xlu1 %v11086_v7, %s6752_s3  ;;  %v8492_v35 = vpop.eup %6326 }
 0x5f1   : > { %v1068_v2 = vsel %vm785_vm2, %v8492_v35, 0.0  ;;  %v8508_v53 = vpop.eup %6328 }
 0x5f2   : > { %5582 = vmatmul.msk.f32.vlgmr.msra.gmra.mxu2 %vm785_vm2, %v1130_v38  ;;  %v1065_v38 = vsel %vm785_vm2, %v8508_v53, 0.0 }
 0x5f3   : > { %2532 = vmatpush.msra.mxu2 %v6023_v36  ;;  %v970_v36 = vmul.f32 1.442695, %v910_v13 }
 0x5f5   : > { %2533 = vmatpush.msra.mxu2 %v6022_v61 }
 0x5f7   : > { %2534 = vmatpush.msra.mxu2 %v6013_v22  ;;  %v11099_v22 = vld [vmem:[#allocation34_spill] sm:$0xff] }
 0x5f8   : > { %4118 = vrot.lane.b32.xlu1 %v11090_v6, %s6752_s3  ;;  %v1381_v18 = vpop.f32.mrf.mxu1 }
 0x5f9   : > { %1510 = vst.msk [vmem:[%s8080_s29 + $0x80] sm:$0xff] %vm420_vm1, %v1381_v18  ;;  %2535 = vmatpush.msra.mxu2 %v6012_v31  ;;  %v11101_v31 = vld [vmem:[#allocation55_spill] sm:$0xff]  ;;  %v11102_v18 = vld [vmem:[#allocation112_spill] sm:$0xff] }
 0x5fa   : > { %v1049_v54 = vpop.xlane.xlu2 %1048 }
 0x5fb   : > { %2536 = vmatpush.msra.mxu2 %v6003_v30  ;;  %v11104_v30 = vld [vmem:[#allocation111_spill] sm:$0xff]  ;;  %v8574_v50 = vpop.permute.xlu0 %4108 }
 0x5fc   : > { %11108 = vst [vmem:[#allocation40_spill] sm:$0xff] %v8574_v50 }
 0x5fd   : > { %2537 = vmatpush.msra.mxu2 %v6002_v56  ;;  %v11105_v56 = vld [vmem:[#allocation17_spill] sm:$0xff] }
 0x5ff   : > { %2538 = vmatpush.msra.mxu2 %v5993_v17 }
 0x600   : > { %v1384_v46 = vpop.f32.mrf.mxu1 }
 0x601   : > { %1511 = vst.msk [vmem:[%s8080_s29 + $0x88] sm:$0xff] %vm420_vm1, %v1384_v46  ;;  %2539 = vmatpush.msra.mxu2 %v5992_v21  ;;  %1069 = vadd.xlane.f32.xlu0 %v1068_v2  ;;  %v11109_v46 = vld [vmem:[#allocation26_spill] sm:$0xff] }
 0x602   : > { %v8580_v2 = vpop.permute.xlu2 %4104 }
 0x603   : > { %11110 = vst [vmem:[#allocation28_spill] sm:$0xff] %v8580_v2 }
 0x607   : > { %v1046_v10 = vpop.xlane.xlu1 %1045 }
 0x608   : > { %6330 = vrcp.f32 %v1046_v10  ;;  %v1387_v14 = vpop.f32.mrf.mxu1  ;;  %v11112_v10 = vld [vmem:[#allocation57_spill] sm:$0xff] }
 0x609   : > { %1512 = vst.msk [vmem:[%s8080_s29 + $0x90] sm:$0xff] %vm420_vm1, %v1387_v14  ;;  %6332 = vrcp.f32 %v1049_v54 }
 0x60a   : > { %6334 = vpow2.f32 %v970_v36  ;;  %v11116_v36 = vld [vmem:[#allocation63_spill] sm:$0xff] }
 0x60e   : > { %v6331_v16 = vpop.eup %6330 }
 0x60f   : > { %v1128_v51 = vmul.f32 %v6331_v16, %v8370_v12  ;;  %v6333_v32 = vpop.eup %6332  ;;  %v11093_v12 = vld [vmem:[#allocation16_spill] sm:$0xff]  ;;  %v11113_v16 = vld [vmem:[#allocation25_spill] sm:$0xff] }
 0x610   : > { %v1129_v61 = vmul.f32 %v6333_v32, %v8356_v33  ;;  %v8522_v15 = vpop.eup %6334  ;;  %v11095_v33 = vld [vmem:[#allocation52_spill] sm:$0xff]  ;;  %v11115_v32 = vld [vmem:[#allocation51_spill] sm:$0xff] }
 0x611   : > { %1066 = vadd.xlane.f32.xlu2 %v1065_v38  ;;  %5580 = vmatmul.msk.f32.gmra.mxu1 %vm785_vm2, %v1128_v51  ;;  %v1062_v55 = vsel %vm785_vm2, %v8522_v15, 0.0  ;;  %v8590_v51 = vpop.permute.xlu0 %4114 }
 0x612   : > { %11114 = vst [vmem:[#allocation48_spill] sm:$0xff] %v8590_v51 }
 0x615   : > { %4132 = vrot.lane.b32.xlu0 %v11085_v28, %s6753_s4 }
 0x619   : > { %5581 = vmatmul.msk.f32.gmra.mxu1 %vm785_vm2, %v1129_v61 }
 0x61d   : > { %4211 = vrot.lane.b32.xlu0 %v11093_v12, %s6752_s3 }
 0x61f   : > { %v8570_v17 = vpop.permute.xlu1 %4106 }
 0x620   : > { %11107 = vst [vmem:[#allocation22_spill] sm:$0xff] %v8570_v17 }
 0x621   : > { %5614 = vmatmul.msk.f32.vlgmr.msrb.gmra.mxu1 %vm420_vm1, %v11094_v3 }
 0x622   : > { %5702 = vmatpush.xpose.msk.msrb.mxu1 %vm420_vm1, %v7908_v26  ;;  %1063 = vadd.xlane.f32.xlu1 %v1062_v55  ;;  %v11096_v26 = vld [vmem:[#allocation116_spill] sm:$0xff]  ;;  %v11117_v55 = vld [vmem:[#allocation21_spill] sm:$0xff] }
 0x625   : > { %4344 = vrot.lane.b32.xlu0 %v7252_v52, %s6753_s4 }
 0x626   : > { %5703 = vmatpush.xpose.msk.msrb.mxu1 %vm420_vm1, %v7902_v27  ;;  %v11098_v27 = vld [vmem:[#allocation115_spill] sm:$0xff] }
 0x629   : > { %4122 = vrot.lane.b32.xlu2 %v11076_v59, %s6753_s4  ;;  %5615 = vmatmul.msk.f32.gmra.mxu1 %vm420_vm1, %v11095_v33 }
 0x62a   : > { %5704 = vmatpush.xpose.msk.msrb.mxu1 %vm420_vm1, %v7841_v39  ;;  %v11100_v39 = vld [vmem:[#allocation105_spill] sm:$0xff] }
 0x62d   : > { %4447 = vrot.lane.b32.xlu0 %v7413_v5, %s6753_s4 }
 0x62e   : > { %5705 = vmatpush.xpose.msk.msrb.mxu1 %vm420_vm1, %v11096_v26  ;;  %v1061_v33 = vpop.xlane.xlu0 %1060 }
 0x631   : > { %4128 = vrot.lane.b32.xlu2 %v11086_v7, %s6753_s4  ;;  %5616 = vmatmul.msk.f32.gmra.mxu1 %vm420_vm1, %v11097_v63  ;;  %v11118_v63 = vld [vmem:[#allocation47_spill] sm:$0xff] }
 0x632   : > { %5706 = vmatpush.xpose.msk.msrb.mxu1 %vm420_vm1, %v11098_v27  ;;  %v11119_v27 = vld [vmem:[#allocation68_spill] sm:$0xff]  ;;  %v11167_v7 = vld [vmem:[#allocation87_spill] sm:$0xff] }
 0x635   : > { %4239 = vrot.lane.b32.xlu0 %v11099_v22, %s6753_s4 }
 0x636   : > { %5707 = vmatpush.xpose.msk.msrb.mxu1 %vm420_vm1, %v11100_v39 }
 0x639   : > { %4134 = vrot.lane.b32.xlu2 %v11090_v6, %s6753_s4  ;;  %5617 = vmatmul.msk.f32.gmra.mxu1 %vm420_vm1, %v11101_v31 }
 0x63a   : > { %5708 = vmatpush.xpose.msk.msrb.mxu1 %vm420_vm1, %v11102_v18 }
 0x63b   : > { %4124 = vrot.lane.b32.xlu1 %v11069_v0, %s6753_s4  ;;  %v1058_v13 = vpop.xlane.xlu2 %1057 }
 0x63d   : > { %4237 = vrot.lane.b32.xlu0 %v11103_v58, %s6753_s4 }
 0x63e   : > { %5709 = vmatpush.xpose.msk.msrb.mxu1 %vm420_vm1, %v11104_v30 }
 0x641   : > { %4213 = vrot.lane.b32.xlu2 %v11105_v56, %s6752_s3  ;;  %5618 = vmatmul.msk.f32.gmra.mxu1 %vm420_vm1, %v11106_v47  ;;  %v11121_v47 = vld [vmem:[#allocation44_spill] sm:$0xff] }
 0x643   : > { %4130 = vrot.lane.b32.xlu1 %v11071_v8, %s6753_s4  ;;  %v1390_v21 = vpop.f32.mrf.mxu1 }
 0x644   : > { %1513 = vst.msk [vmem:[%s8080_s29 + $0x98] sm:$0xff] %vm420_vm1, %v1390_v21 }
 0x645   : > { %4235 = vrot.lane.b32.xlu0 %v11109_v46, %s6753_s4 }
 0x649   : > { %4449 = vrot.lane.b32.xlu2 %v11111_v4, %s6753_s4  ;;  %5619 = vmatmul.msk.f32.gmra.mxu1 %vm420_vm1, %v11112_v10 }
 0x64a   : > { %v1055_v14 = vpop.xlane.xlu1 %1054 }
 0x64b   : > { %6336 = vrcp.f32 %v1055_v14  ;;  %v1393_v54 = vpop.f32.mrf.mxu1  ;;  %v11123_v14 = vld [vmem:[#allocation61_spill] sm:$0xff] }
 0x64c   : > { %1514 = vst.msk [vmem:[%s8080_s29 + $0xa0] sm:$0xff] %vm420_vm1, %v1393_v54  ;;  %6338 = vrcp.f32 %v1058_v13  ;;  %v11125_v13 = vld [vmem:[#allocation36_spill] sm:$0xff] }
 0x64d   : > { %4233 = vrot.lane.b32.xlu0 %v11113_v16, %s6753_s4  ;;  %6340 = vrcp.f32 %v1061_v33 }
 0x651   : > { %v6337_v38 = vpop.eup %6336  ;;  %4340 = vrot.lane.b32.xlu2 %v11115_v32, %s6753_s4  ;;  %5620 = vmatmul.msk.f32.gmra.mxu1 %vm420_vm1, %v11116_v36 }
 0x652   : > { %v1131_v61 = vmul.f32 %v6337_v38, %v8456_v19  ;;  %v6339_v26 = vpop.eup %6338  ;;  %v11120_v19 = vld [vmem:[#allocation133_spill] sm:$0xff]  ;;  %v11126_v38 = vld [vmem:[#allocation70_spill] sm:$0xff] }
 0x653   : > { %v1396_v3 = vpop.f32.mrf.mxu1  ;;  %v1132_v39 = vmul.f32 %v6339_v26, %v8438_v23  ;;  %v913_v31 = vsub.f32 %v11120_v19, %v8320_v34  ;;  %v6341_v18 = vpop.eup %6340  ;;  %v11122_v23 = vld [vmem:[#allocation41_spill] sm:$0xff] }
 0x654   : > { %1515 = vst.msk [vmem:[%s8080_s29 + $0xa8] sm:$0xff] %vm420_vm1, %v1396_v3  ;;  %5583 = vmatmul.msk.f32.gmra.mxu2 %vm785_vm2, %v1131_v61  ;;  %v1133_v21 = vmul.f32 %v6341_v18, %v8424_v9  ;;  %v11124_v9 = vld [vmem:[#allocation39_spill] sm:$0xff]  ;;  %v11128_v61 = vld [vmem:[#allocation13_spill] sm:$0xff]  ;;  %v8642_v3 = vpop.permute.xlu2 %4110 }
 0x655   : > { %4231 = vrot.lane.b32.xlu0 %v11117_v55, %s6753_s4  ;;  %v976_v30 = vmul.f32 1.442695, %v913_v31  ;;  %11129 = vst [vmem:[#allocation37_spill] sm:$0xff] %v8642_v3  ;;  %v11133_v31 = vld [vmem:[#allocation53_spill] sm:$0xff] }
 0x657   : > { %6342 = vpow2.f32 %v976_v30  ;;  %v8662_v30 = vpop.f32.mrf.mxu3 }
 0x659   : > { %4338 = vrot.lane.b32.xlu2 %v11118_v63, %s6753_s4  ;;  %5621 = vmatmul.msk.f32.gmra.mxu1 %vm420_vm1, %v11119_v27  ;;  %v8650_v27 = vpop.permute.xlu0 %4120 }
 0x65a   : > { %11131 = vst [vmem:[#allocation77_spill] sm:$0xff] %v8650_v27 }
 0x65c   : > { %5584 = vmatmul.msk.f32.gmra.mxu2 %vm785_vm2, %v1132_v39  ;;  %v8654_v39 = vpop.permute.xlu2 %4116 }
 0x65d   : > { %4229 = vrot.lane.b32.xlu0 %v11105_v56, %s6753_s4  ;;  %v8618_v34 = vpop.eup %6342  ;;  %11132 = vst [vmem:[#allocation15_spill] sm:$0xff] %v8654_v39 }
 0x65e   : > { %v1071_v10 = vsel %vm785_vm2, %v8618_v34, 0.0 }
 0x661   : > { %4336 = vrot.lane.b32.xlu2 %v11121_v47, %s6753_s4 }
 0x662   : > { %v8638_v36 = vpop.permute.xlu1 %4112 }
 0x663   : > { %11127 = vst [vmem:[#allocation18_spill] sm:$0xff] %v8638_v36 }
 0x664   : > { %5585 = vmatmul.msk.f32.gmra.mxu2 %vm785_vm2, %v1133_v21  ;;  %v8664_v21 = vpop.permute.xlu0 %4126 }
 0x665   : > { %4227 = vrot.lane.b32.xlu0 %v11093_v12, %s6753_s4  ;;  %11134 = vst [vmem:[#allocation66_spill] sm:$0xff] %v8664_v21 }
 0x669   : > { %4334 = vrot.lane.b32.xlu2 %v11122_v23, %s6753_s4 }
 0x66a   : > { %v8646_v33 = vpop.permute.xlu1 %4118 }
 0x66b   : > { %11130 = vst [vmem:[#allocation59_spill] sm:$0xff] %v8646_v33  ;;  %v8674_v33 = vpop.f32.mrf.mxu3 }
 0x66d   : > { %1072 = vadd.xlane.f32.xlu1 %v1071_v10  ;;  %4421 = vrot.lane.b32.xlu0 %v11123_v14, %s6752_s3 }
 0x671   : > { %4332 = vrot.lane.b32.xlu2 %v11124_v9, %s6753_s4 }
 0x674   : > { %v1070_v11 = vpop.xlane.xlu0 %1069 }
 0x675   : > { %v1470_v54 = vpop.f32.mrf.mxu2  ;;  %4320 = vrot.lane.b32.xlu0 %v11121_v47, %s6752_s3 }
 0x676   : > { %1518 = vst.msk [vmem:[%s8080_s29 + $0xc0] sm:$0xff] %vm420_vm1, %v1470_v54  ;;  %v11135_v54 = vld [vmem:[#allocation67_spill] sm:$0xff] }
 0x679   : > { %4330 = vrot.lane.b32.xlu2 %v11125_v13, %s6753_s4 }
 0x67d   : > { %4427 = vrot.lane.b32.xlu0 %v11126_v38, %s6752_s3 }
 0x681   : > { %4314 = vrot.lane.b32.xlu2 %v11125_v13, %s6752_s3 }
 0x684   : > { %v1067_v10 = vpop.xlane.xlu2 %1066 }
 0x686   : > { %4209 = vrot.lane.b32.xlu1 %v11128_v61, %s6752_s3 }
 0x689   : > { %4225 = vrot.lane.b32.xlu2 %v11128_v61, %s6753_s4 }
 0x68e   : > { %4215 = vrot.lane.b32.xlu1 %v11117_v55, %s6752_s3  ;;  %v1399_v26 = vpop.f32.mrf.mxu1 }
 0x68f   : > { %1516 = vst.msk [vmem:[%s8080_s29 + $0xb0] sm:$0xff] %vm420_vm1, %v1399_v26 }
 0x691   : > { %4318 = vrot.lane.b32.xlu2 %v11122_v23, %s6752_s3 }
 0x695   : > { %v1064_v19 = vpop.xlane.xlu1 %1063 }
 0x696   : > { %6344 = vrcp.f32 %v1064_v19  ;;  %4342 = vrot.lane.b32.xlu1 %v11133_v31, %s6753_s4  ;;  %v1402_v18 = vpop.f32.mrf.mxu1  ;;  %v11136_v19 = vld [vmem:[#allocation75_spill] sm:$0xff] }
 0x697   : > { %1517 = vst.msk [vmem:[%s8080_s29 + $0xb8] sm:$0xff] %vm420_vm1, %v1402_v18  ;;  %6346 = vrcp.f32 %v1067_v10 }
 0x698   : > { %6348 = vrcp.f32 %v1070_v11  ;;  %v11137_v11 = vld [vmem:[#allocation64_spill] sm:$0xff] }
 0x699   : > { %4425 = vrot.lane.b32.xlu2 %v11135_v54, %s6752_s3 }
 0x69c   : > { %v6345_v26 = vpop.eup %6344 }
 0x69d   : > { %v1134_v61 = vmul.f32 %v6345_v26, %v8522_v15  ;;  %v6347_v18 = vpop.eup %6346  ;;  %v1949_v15 = vsel %vm785_vm2, %v8674_v33, -inf  ;;  %v8704_v26 = vpop.permute.xlu2 %4122 }
 0x69e   : > { %4445 = vrot.lane.b32.xlu1 %v11136_v19, %s6753_s4  ;;  %v1135_v39 = vmul.f32 %v6347_v18, %v8508_v53  ;;  %v8698_v53 = vpop.f32.mrf.mxu3  ;;  %11140 = vst [vmem:[#allocation86_spill] sm:$0xff] %v8704_v26 }
 0x69f   : > { %5586 = vmatmul.msk.f32.gmra.mxu2 %vm785_vm2, %v1134_v61  ;;  %v6349_v61 = vpop.eup %6348  ;;  %v1952_v18 = vsel %vm785_vm2, %v8698_v53, -inf }
 0x6a0   : > { %v1136_v10 = vmul.f32 %v6349_v61, %v8492_v35  ;;  %v11138_v35 = vld [vmem:[#allocation58_spill] sm:$0xff] }
 0x6a1   : > { %4324 = vrot.lane.b32.xlu2 %v11115_v32, %s6752_s3 }
 0x6a6   : > { %4443 = vrot.lane.b32.xlu1 %v11126_v38, %s6753_s4  ;;  %v8718_v51 = vpop.f32.mrf.mxu3 }
 0x6a7   : > { %1950 = vmax.xlane.f32.xlu0 %v1949_v15  ;;  %5587 = vmatmul.msk.f32.gmra.mxu2 %vm785_vm2, %v1135_v39 }
 0x6a9   : > { %4326 = vrot.lane.b32.xlu2 %v11133_v31, %s6752_s3 }
 0x6ad   : > { %v8700_v39 = vpop.permute.xlu1 %4124 }
 0x6ae   : > { %4441 = vrot.lane.b32.xlu1 %v11135_v54, %s6753_s4  ;;  %11139 = vst [vmem:[#allocation23_spill] sm:$0xff] %v8700_v39  ;;  %v8729_v2 = vpop.f32.mrf.mxu3 }
 0x6af   : > { %5588 = vmatmul.msk.f32.gmra.mxu2 %vm785_vm2, %v1136_v10  ;;  %v8714_v10 = vpop.permute.xlu2 %4128 }
 0x6b0   : > { %11142 = vst [vmem:[#allocation54_spill] sm:$0xff] %v8714_v10 }
 0x6b5   : > { %v8710_v61 = vpop.permute.xlu1 %4130 }
 0x6b6   : > { %4439 = vrot.lane.b32.xlu1 %v11137_v11, %s6753_s4  ;;  %11141 = vst [vmem:[#allocation27_spill] sm:$0xff] %v8710_v61 }
 0x6b7   : > { %v8722_v3 = vpop.permute.xlu2 %4134 }
 0x6b8   : > { %11143 = vst [vmem:[#allocation24_spill] sm:$0xff] %v8722_v3 }
 0x6bb   : > { %4217 = vrot.lane.b32.xlu0 %v11113_v16, %s6752_s3 }
 0x6be   : > { %4437 = vrot.lane.b32.xlu1 %v11123_v14, %s6753_s4 }
 0x6c3   : > { %4219 = vrot.lane.b32.xlu0 %v11109_v46, %s6752_s3 }
 0x6c6   : > { %4435 = vrot.lane.b32.xlu1 %v11138_v35, %s6753_s4 }
 0x6ce   : > { %4419 = vrot.lane.b32.xlu1 %v11138_v35, %s6752_s3 }
 0x6d2   : > { %1953 = vmax.xlane.f32.xlu2 %v1952_v18 }
 0x6d6   : > { %4316 = vrot.lane.b32.xlu1 %v11124_v9, %s6752_s3 }
 0x6d7   : > { %v1473_v15 = vpop.f32.mrf.mxu2 }
 0x6d8   : > { %1519 = vst.msk [vmem:[%s8080_s29 + $0xc8] sm:$0xff] %vm420_vm1, %v1473_v15 }
 0x6de   : > { %4423 = vrot.lane.b32.xlu1 %v11137_v11, %s6752_s3 }
 0x6df   : > { %v1476_v36 = vpop.f32.mrf.mxu2 }
 0x6e0   : > { %1520 = vst.msk [vmem:[%s8080_s29 + $0xd0] sm:$0xff] %vm420_vm1, %v1476_v36  ;;  %v1073_v18 = vpop.xlane.xlu1 %1072  ;;  %v1958_v36 = vsel %vm785_vm2, %v8729_v2, -inf }
 0x6e1   : > { %6350 = vrcp.f32 %v1073_v18  ;;  %v8736_v18 = vpop.permute.xlu2 %4213 }
 0x6e2   : > { %11144 = vst [vmem:[#allocation71_spill] sm:$0xff] %v8736_v18 }
 0x6e6   : > { %4322 = vrot.lane.b32.xlu1 %v11118_v63, %s6752_s3 }
 0x6e7   : > { %v6351_v50 = vpop.eup %6350  ;;  %v1479_v17 = vpop.f32.mrf.mxu2 }
 0x6e8   : > { %1521 = vst.msk [vmem:[%s8080_s29 + $0xd8] sm:$0xff] %vm420_vm1, %v1479_v17  ;;  %v1137_v15 = vmul.f32 %v6351_v50, %v8618_v34  ;;  %v11146_v17 = vld [vmem:[#allocation119_spill] sm:$0xff]  ;;  %v8744_v50 = vpop.f32.mrf.mxu3  ;;  %v11147_v34 = vld [vmem:[#allocation82_spill] sm:$0xff] }
 0x6ea   : > { %4328 = vrot.lane.b32.xlu2 %v7252_v52, %s6752_s3  ;;  %5589 = vmatmul.msk.f32.gmra.mxu2 %vm785_vm2, %v1137_v15  ;;  %v8748_v15 = vpop.permute.xlu2 %4449 }
 0x6eb   : > { %11148 = vst [vmem:[#allocation33_spill] sm:$0xff] %v8748_v15  ;;  %v11155_v15 = vld [vmem:[#allocation127_spill] sm:$0xff] }
 0x6ed   : > { %1959 = vmax.xlane.f32.xlu0 %v1958_v36  ;;  %v11150_v36 = vld [vmem:[#allocation128_spill] sm:$0xff] }
 0x6f0   : > { %v8754_v18 = vpop.f32.mrf.mxu3 }
 0x6f2   : > { %4223 = vrot.lane.b32.xlu2 %v11099_v22, %s6752_s3  ;;  %5630 = vmatmul.msk.f32.vlgmr.msrb.gmra.mxu2 %vm420_vm1, %v11145_v44  ;;  %v8760_v44 = vpop.permute.xlu2 %4340 }
 0x6f3   : > { %5718 = vmatpush.xpose.msk.msrb.mxu2 %vm420_vm1, %v11146_v17  ;;  %11152 = vst [vmem:[#allocation38_spill] sm:$0xff] %v8760_v44  ;;  %v11153_v17 = vld [vmem:[#allocation78_spill] sm:$0xff] }
 0x6f7   : > { %5719 = vmatpush.xpose.msk.msrb.mxu2 %vm420_vm1, %v11147_v34 }
 0x6f8   : > { %v8764_v34 = vpop.permute.xlu1 %4209 }
 0x6f9   : > { %11154 = vst [vmem:[#allocation65_spill] sm:$0xff] %v8764_v34  ;;  %v11163_v34 = vld [vmem:[#allocation80_spill] sm:$0xff] }
 0x6fa   : > { %5631 = vmatmul.msk.f32.gmra.mxu2 %vm420_vm1, %v11149_v43  ;;  %v11156_v43 = vld [vmem:[#allocation126_spill] sm:$0xff]  ;;  %v8776_v44 = vpop.permute.xlu2 %4338 }
 0x6fb   : > { %5720 = vmatpush.xpose.msk.msrb.mxu2 %vm420_vm1, %v11150_v36  ;;  %v8770_v36 = vpop.f32.mrf.mxu3  ;;  %11160 = vst [vmem:[#allocation35_spill] sm:$0xff] %v8776_v44 }
 0x6fc   : > { %11157 = vst [vmem:[#allocation62_spill] sm:$0xff] %v8770_v36 }
 0x6ff   : > { %5721 = vmatpush.xpose.msk.msrb.mxu2 %vm420_vm1, %v11151_v45  ;;  %v11159_v45 = vld [vmem:[#allocation114_spill] sm:$0xff] }
 0x700   : > { %v8778_v23 = vpop.permute.xlu1 %4215 }
 0x701   : > { %4221 = vrot.lane.b32.xlu0 %v11103_v58, %s6752_s3  ;;  %11161 = vst [vmem:[#allocation56_spill] sm:$0xff] %v8778_v23 }
 0x702   : > { %5632 = vmatmul.msk.f32.gmra.mxu2 %vm420_vm1, %v11153_v17  ;;  %v11162_v17 = vld [vmem:[#allocation125_spill] sm:$0xff]  ;;  %v8792_v44 = vpop.permute.xlu2 %4336 }
 0x703   : > { %5722 = vmatpush.xpose.msk.msrb.mxu2 %vm420_vm1, %v11155_v15  ;;  %v1946_v15 = vsel %vm785_vm2, %v8662_v30, -inf  ;;  %11165 = vst [vmem:[#allocation43_spill] sm:$0xff] %v8792_v44 }
 0x707   : > { %5723 = vmatpush.xpose.msk.msrb.mxu2 %vm420_vm1, %v11156_v43  ;;  %v8784_v43 = vpop.f32.mrf.mxu1 }
 0x708   : > { %v8794_v23 = vpop.permute.xlu1 %4342 }
 0x709   : > { %11166 = vst [vmem:[#allocation5_spill] sm:$0xff] %v8794_v23  ;;  %v11172_v23 = vld [vmem:[#allocation88_spill] sm:$0xff] }
 0x70a   : > { %5633 = vmatmul.msk.f32.gmra.mxu2 %vm420_vm1, %v11158_v20  ;;  %v8788_v20 = vpop.f32.mrf.mxu3  ;;  %v8806_v26 = vpop.permute.xlu2 %4334 }
 0x70b   : > { %5724 = vmatpush.xpose.msk.msrb.mxu2 %vm420_vm1, %v11159_v45  ;;  %v8790_v45 = vpop.permute.xlu0 %4132  ;;  %11170 = vst [vmem:[#allocation93_spill] sm:$0xff] %v8806_v26 }
 0x70c   : > { %11164 = vst [vmem:[#allocation46_spill] sm:$0xff] %v8790_v45 }
 0x70f   : > { %5725 = vmatpush.xpose.msk.msrb.mxu2 %vm420_vm1, %v11162_v17  ;;  %v1961_v17 = vsel %vm785_vm2, %v8744_v50, -inf }
 0x710   : > { %1947 = vmax.xlane.f32.xlu1 %v1946_v15  ;;  %v8800_v15 = vpop.f32.mrf.mxu1  ;;  %v8808_v39 = vpop.permute.xlu1 %4445 }
 0x711   : > { %11171 = vst [vmem:[#allocation95_spill] sm:$0xff] %v8808_v39 }
 0x712   : > { %5634 = vmatmul.msk.f32.gmra.mxu2 %vm420_vm1, %v11163_v34  ;;  %v8802_v27 = vpop.f32.mrf.mxu3  ;;  %v8824_v26 = vpop.permute.xlu2 %4332 }
 0x713   : > { %11168 = vst [vmem:[#allocation91_spill] sm:$0xff] %v8802_v27  ;;  %v8804_v34 = vpop.permute.xlu0 %4211  ;;  %v2021_v61 = vsel %vm785_vm2, %v8802_v27, -inf }
 0x714   : > { %11169 = vst [vmem:[#allocation92_spill] sm:$0xff] %v8804_v34 }
 0x715   : > { %11175 = vst [vmem:[#allocation96_spill] sm:$0xff] %v8824_v26 }
 0x718   : > { %v8832_v10 = vpop.permute.xlu1 %4443 }
 0x719   : > { %11177 = vst [vmem:[#allocation98_spill] sm:$0xff] %v8832_v10 }
 0x71a   : > { %5635 = vmatmul.msk.f32.gmra.mxu2 %vm420_vm1, %v11167_v7  ;;  %v1970_v7 = vsel %vm785_vm2, %v8784_v43, -inf  ;;  %v8818_v21 = vpop.f32.mrf.mxu3 }
 0x71b   : > { %1962 = vmax.xlane.f32.xlu2 %v1961_v17  ;;  %v8816_v17 = vpop.f32.mrf.mxu1  ;;  %v8820_v34 = vpop.permute.xlu0 %4344 }
 0x71c   : > { %11173 = vst [vmem:[#allocation3_spill] sm:$0xff] %v8816_v17 }
 0x71d   : > { %11174 = vst [vmem:[#allocation94_spill] sm:$0xff] %v8820_v34 }
 0x722   : > { %v1482_v44 = vpop.f32.mrf.mxu2  ;;  %5636 = vmatmul.msk.f32.gmra.mxu2 %vm420_vm1, %v11172_v23  ;;  %v11176_v23 = vld [vmem:[#allocation89_spill] sm:$0xff] }
 0x723   : > { %1522 = vst.msk [vmem:[%s8080_s29 + $0xe0] sm:$0xff] %vm420_vm1, %v1482_v44  ;;  %1971 = vmax.xlane.f32.xlu2 %v1970_v7  ;;  %v1967_v44 = vsel %vm785_vm2, %v8770_v36, -inf  ;;  %v2024_v7 = vsel %vm785_vm2, %v8818_v21, -inf  ;;  %v8836_v34 = vpop.f32.mrf.mxu1  ;;  %v8840_v26 = vpop.permute.xlu0 %4447 }
 0x724   : > { %11178 = vst [vmem:[#allocation97_spill] sm:$0xff] %v8840_v26  ;;  %v1979_v45 = vsel %vm785_vm2, %v8836_v34, -inf }
 0x729   : > { %4429 = vrot.lane.b32.xlu1 %v11136_v19, %s6752_s3 }
 0x72a   : > { %v1485_v39 = vpop.f32.mrf.mxu2  ;;  %5637 = vmatmul.msk.f32.gmra.mxu2 %vm420_vm1, %v11176_v23 }
 0x72b   : > { %1523 = vst.msk [vmem:[%s8080_s29 + $0xe8] sm:$0xff] %vm420_vm1, %v1485_v39  ;;  %1968 = vmax.xlane.f32.xlu0 %v1967_v44  ;;  %2025 = vmax.xlane.f32.xlu2 %v2024_v7  ;;  %v8848_v39 = vpop.permute.xlu2 %4330  ;;  %v8850_v44 = vpop.permute.xlu1 %4441  ;;  %v1976_v7 = vsel %vm785_vm2, %v8816_v17, -inf }
 0x72c   : > { %11179 = vst [vmem:[#allocation6_spill] sm:$0xff] %v8848_v39  ;;  %v8854_v10 = vpop.permute.xlu0 %4239 }
 0x72d   : > { %11180 = vst [vmem:[#allocation11_spill] sm:$0xff] %v8850_v44 }
 0x72e   : > { %11181 = vst [vmem:[#allocation90_spill] sm:$0xff] %v8854_v10 }
 0x731   : > { %4431 = vrot.lane.b32.xlu1 %v7413_v5, %s6752_s3 }
 0x732   : > { %v1488_v23 = vpop.f32.mrf.mxu2 }
 0x733   : > { %1524 = vst.msk [vmem:[%s8080_s29 + $0xf0] sm:$0xff] %vm420_vm1, %v1488_v23  ;;  %2022 = vmax.xlane.f32.xlu0 %v2021_v61  ;;  %1980 = vmax.xlane.f32.xlu2 %v1979_v45  ;;  %v8856_v26 = vpop.permute.xlu2 %4314  ;;  %v8858_v3 = vpop.permute.xlu1 %4439  ;;  %v6154_v45 = vpack.i.bf16 %v11115_v32, %v11090_v6  ;;  %v6149_v23 = vpack.i.bf16 %v7413_v5, %v11133_v31  ;;  %v1955_v6 = vsel %vm785_vm2, %v8718_v51, -inf }
 0x734   : > { %11182 = vst [vmem:[#allocation85_spill] sm:$0xff] %v8856_v26  ;;  %v8860_v54 = vpop.permute.xlu0 %4237  ;;  %v8882_v32 = vpop.f32.mrf.mxu3 }
 0x735   : > { %11183 = vst [vmem:[#allocation12_spill] sm:$0xff] %v8858_v3  ;;  %v8888_v31 = vpop.f32.mrf.mxu1 }
 0x736   : > { %11184 = vst [vmem:[#allocation83_spill] sm:$0xff] %v8860_v54 }
 0x73b   : > { %1977 = vmax.xlane.f32.xlu0 %v1976_v7  ;;  %v8862_v46 = vpop.permute.xlu2 %4225  ;;  %v8864_v61 = vpop.permute.xlu1 %4437 }
 0x73c   : > { %11185 = vst [vmem:[#allocation79_spill] sm:$0xff] %v8862_v46  ;;  %v8872_v7 = vpop.permute.xlu0 %4235 }
 0x73d   : > { %11186 = vst [vmem:[#allocation16_spill] sm:$0xff] %v8864_v61  ;;  %v8898_v44 = vpop.f32.mrf.mxu1 }
 0x73e   : > { %11187 = vst [vmem:[#allocation45_spill] sm:$0xff] %v8872_v7  ;;  %v1985_v10 = vsel %vm785_vm2, %v8898_v44, -inf }
 0x73f   : > { %11197 = vst [vmem:[#allocation111_spill] sm:$0xff] %v8898_v44 }
 0x743   : > { %v8874_v26 = vpop.permute.xlu2 %4318  ;;  %v8876_v39 = vpop.permute.xlu1 %4435 }
 0x744   : > { %11188 = vst [vmem:[#allocation52_spill] sm:$0xff] %v8874_v26  ;;  %v8878_v3 = vpop.permute.xlu0 %4233  ;;  %v8892_v26 = vpop.f32.mrf.mxu3 }
 0x745   : > { %11189 = vst [vmem:[#allocation116_spill] sm:$0xff] %v8876_v39  ;;  %v2030_v7 = vsel %vm785_vm2, %v8892_v26, -inf }
 0x746   : > { %11190 = vst [vmem:[#allocation50_spill] sm:$0xff] %v8878_v3 }
 0x747   : > { %11194 = vst [vmem:[#allocation55_spill] sm:$0xff] %v8892_v26 }
 0x74b   : > { %6155 = vrot.lane.b32.xlu2 %v6154_v45, %s6754_s5  ;;  %v8884_v45 = vpop.permute.xlu2 %4425  ;;  %v8886_v5 = vpop.permute.xlu1 %4419 }
 0x74c   : > { %11191 = vst [vmem:[#allocation115_spill] sm:$0xff] %v8884_v45  ;;  %v8904_v45 = vpop.f32.mrf.mxu3 }
 0x74d   : > { %11192 = vst [vmem:[#allocation34_spill] sm:$0xff] %v8886_v5 }
 0x74f   : > { %6150 = vrot.lane.b32.xlu0 %v6149_v23, %s6754_s5  ;;  %v8890_v23 = vpop.permute.xlu0 %4231 }
 0x750   : > { %11193 = vst [vmem:[#allocation105_spill] sm:$0xff] %v8890_v23  ;;  %v2033_v23 = vsel %vm785_vm2, %v8904_v45, -inf }
 0x753   : > { %v8894_v61 = vpop.permute.xlu2 %4324  ;;  %v8896_v39 = vpop.permute.xlu1 %4316 }
 0x754   : > { %11195 = vst [vmem:[#allocation112_spill] sm:$0xff] %v8894_v61 }
 0x755   : > { %11196 = vst [vmem:[#allocation29_spill] sm:$0xff] %v8896_v39  ;;  %v8916_v39 = vpop.f32.mrf.mxu1 }
 0x756   : > { %v1988_v54 = vsel %vm785_vm2, %v8916_v39, -inf }
 0x75b   : > { %1956 = vmax.xlane.f32.xlu1 %v1955_v6  ;;  %v8900_v6 = vpop.permute.xlu0 %4229  ;;  %v8906_v5 = vpop.permute.xlu2 %4326 }
 0x75c   : > { %11198 = vst [vmem:[#allocation17_spill] sm:$0xff] %v8900_v6  ;;  %v8908_v3 = vpop.permute.xlu1 %4423 }
 0x75d   : > { %11199 = vst [vmem:[#allocation60_spill] sm:$0xff] %v8906_v5  ;;  %v8922_v5 = vpop.f32.mrf.mxu3 }
 0x75e   : > { %11200 = vst [vmem:[#allocation81_spill] sm:$0xff] %v8908_v3 }
 0x763   : > { %v8918_v6 = vpop.permute.xlu0 %4227 }
 0x764   : > { %11202 = vst [vmem:[#allocation25_spill] sm:$0xff] %v8918_v6  ;;  %v8924_v3 = vpop.permute.xlu1 %4322 }
 0x765   : > { %11203 = vst [vmem:[#allocation51_spill] sm:$0xff] %v8924_v3  ;;  %v8937_v27 = vpop.f32.mrf.mxu3 }
 0x766   : > { %11206 = vst [vmem:[#allocation47_spill] sm:$0xff] %v8937_v27  ;;  %v2039_v8 = vsel %vm785_vm2, %v8937_v27, -inf }
 0x76b   : > { %v8932_v6 = vpop.permute.xlu0 %4421 }
 0x76c   : > { %11204 = vst [vmem:[#allocation63_spill] sm:$0xff] %v8932_v6 }
 0x76d   : > { %v1491_v46 = vpop.f32.mrf.mxu2 }
 0x76e   : > { %1525 = vst.msk [vmem:[%s8080_s29 + $0xf8] sm:$0xff] %vm420_vm1, %v1491_v46  ;;  %v1954_v46 = vpop.xlane.xlu2 %1953 }
 0x773   : > { %v8944_v44 = vpop.permute.xlu0 %4320 }
 0x774   : > { %4433 = vrot.lane.b32.xlu1 %v11111_v4, %s6752_s3  ;;  %2034 = vmax.xlane.f32.xlu2 %v2033_v23  ;;  %11207 = vst [vmem:[#allocation68_spill] sm:$0xff] %v8944_v44 }
 0x775   : > { %v8914_v61 = vpop.f32.mrf.mxu2 }
 0x776   : > { %11201 = vst [vmem:[#allocation57_spill] sm:$0xff] %v8914_v61  ;;  %v8934_v17 = vpop.permute.xlu2 %4328 }
 0x777   : > { %11205 = vst [vmem:[#allocation21_spill] sm:$0xff] %v8934_v17 }
 0x779   : > { %2031 = vmax.xlane.f32.xlu0 %v2030_v7 }
 0x77c   : > { %1989 = vmax.xlane.f32.xlu2 %v1988_v54  ;;  %v2044_v54 = vsub.f32 %v8698_v53, %v1954_v46  ;;  %v8958_v46 = vpop.permute.xlu0 %4427 }
 0x77d   : > { %v8928_v23 = vpop.f32.mrf.mxu2  ;;  %11211 = vst [vmem:[#allocation36_spill] sm:$0xff] %v8958_v46 }
 0x77e   : > { %v8946_v6 = vpop.permute.xlu2 %4223 }
 0x77f   : > { %11208 = vst [vmem:[#allocation133_spill] sm:$0xff] %v8946_v6 }
 0x781   : > { %1986 = vmax.xlane.f32.xlu0 %v1985_v10  ;;  %v2078_v10 = vmul.f32 1.442695, %v2044_v54  ;;  %v1997_v54 = vsel %vm785_vm2, %v8928_v23, -inf }
 0x783   : > { %v1948_v26 = vpop.xlane.xlu1 %1947 }
 0x784   : > { %v2042_v7 = vsub.f32 %v8662_v30, %v1948_v26  ;;  %v8969_v6 = vpop.xlane.xlu0 %1950 }
 0x785   : > { %v8939_v3 = vpop.f32.mrf.mxu2 }
 0x786   : > { %v2074_v47 = vmul.f32 1.442695, %v2042_v7 }
 0x788   : > { %6352 = vpow2.f32 %v2074_v47  ;;  %v1994_v47 = vsel %vm785_vm2, %v8914_v61, -inf }
 0x789   : > { %2040 = vmax.xlane.f32.xlu0 %v2039_v8  ;;  %6354 = vpow2.f32 %v2078_v10 }
 0x78d   : > { %v8950_v30 = vpop.f32.mrf.mxu2 }
 0x78e   : > { %v8948_v17 = vpop.eup %6352  ;;  %11209 = vst [vmem:[#allocation61_spill] sm:$0xff] %v8950_v30  ;;  %v1963_v53 = vpop.xlane.xlu2 %1962 }
 0x78f   : > { %v2138_v26 = vsel %vm785_vm2, %v8948_v17, 0.0  ;;  %v8956_v8 = vpop.eup %6354  ;;  %v2047_v7 = vsub.f32 %v8744_v50, %v1963_v53  ;;  %v2003_v50 = vsel %vm785_vm2, %v8950_v30, -inf }
 0x790   : > { %2139 = vadd.xlane.f32.xlu2 %v2138_v26  ;;  %11210 = vst [vmem:[#allocation39_spill] sm:$0xff] %v8956_v8  ;;  %v2144_v10 = vsel %vm785_vm2, %v8956_v8, 0.0 }
 0x791   : > { %1995 = vmax.xlane.f32.xlu0 %v1994_v47  ;;  %v2084_v26 = vmul.f32 1.442695, %v2047_v7  ;;  %v1964_v47 = vsel %vm785_vm2, %v8754_v18, -inf  ;;  %v8979_v7 = vpop.permute.xlu0 %4217 }
 0x792   : > { %11212 = vst [vmem:[#allocation70_spill] sm:$0xff] %v8979_v7 }
 0x793   : > { %6356 = vpow2.f32 %v2084_v26 }
 0x795   : > { %v8965_v44 = vpop.f32.mrf.mxu2 }
 0x796   : > { %v1972_v46 = vpop.xlane.xlu2 %1971 }
 0x797   : > { %v2050_v61 = vsub.f32 %v8784_v43, %v1972_v46 }
 0x798   : > { %1998 = vmax.xlane.f32.xlu2 %v1997_v54 }
 0x799   : > { %2145 = vadd.xlane.f32.xlu0 %v2144_v10  ;;  %v8975_v54 = vpop.eup %6356  ;;  %v2018_v10 = vsel %vm785_vm2, %v8788_v20, -inf  ;;  %v2090_v27 = vmul.f32 1.442695, %v2050_v61  ;;  %v8989_v8 = vpop.permute.xlu0 %4219  ;;  %v2027_v61 = vsel %vm785_vm2, %v8882_v32, -inf }
 0x79a   : > { %v2153_v26 = vsel %vm785_vm2, %v8975_v54, 0.0  ;;  %11214 = vst [vmem:[#allocation75_spill] sm:$0xff] %v8989_v8 }
 0x79b   : > { %6358 = vpow2.f32 %v2090_v27  ;;  %v9002_v8 = vpop.permute.xlu1 %4429 }
 0x79c   : > { %11215 = vst [vmem:[#allocation64_spill] sm:$0xff] %v9002_v8 }
 0x79d   : > { %v8973_v53 = vpop.f32.mrf.mxu2 }
 0x79e   : > { %1965 = vmax.xlane.f32.xlu1 %v1964_v47  ;;  %v2026_v47 = vpop.xlane.xlu2 %2025 }
 0x79f   : > { %v2068_v36 = vsub.f32 %v8818_v21, %v2026_v47 }
 0x7a1   : > { %2004 = vmax.xlane.f32.xlu0 %v2003_v50  ;;  %v1973_v50 = vsel %vm785_vm2, %v8800_v15, -inf  ;;  %v2126_v46 = vmul.f32 1.442695, %v2068_v36  ;;  %v8998_v27 = vpop.xlane.xlu0 %1959 }
 0x7a3   : > { %6360 = vpow2.f32 %v2126_v46 }
 0x7a5   : > { %v8984_v30 = vpop.f32.mrf.mxu2 }
 0x7a6   : > { %2019 = vmax.xlane.f32.xlu1 %v2018_v10  ;;  %11213 = vst [vmem:[#allocation53_spill] sm:$0xff] %v8984_v30  ;;  %v2012_v43 = vsel %vm785_vm2, %v8984_v30, -inf  ;;  %v1981_v10 = vpop.xlane.xlu2 %1980 }
 0x7a9   : > { %2154 = vadd.xlane.f32.xlu0 %v2153_v26  ;;  %v8993_v26 = vpop.eup %6358 }
 0x7aa   : > { %v2162_v21 = vsel %vm785_vm2, %v8993_v26, 0.0  ;;  %v9004_v36 = vpop.eup %6360 }
 0x7ab   : > { %11216 = vst [vmem:[#allocation58_spill] sm:$0xff] %v9004_v36 }
 0x7ae   : > { %1974 = vmax.xlane.f32.xlu1 %v1973_v50  ;;  %v2053_v50 = vsub.f32 %v8836_v34, %v1981_v10  ;;  %v2216_v34 = vsel %vm785_vm2, %v9004_v36, 0.0  ;;  %v9014_v10 = vpop.permute.xlu1 %4431 }
 0x7af   : > { %11219 = vst [vmem:[#allocation82_spill] sm:$0xff] %v9014_v10 }
 0x7b0   : > { %v2096_v47 = vmul.f32 1.442695, %v2053_v50 }
 0x7b1   : > { %2013 = vmax.xlane.f32.xlu0 %v2012_v43  ;;  %v1982_v43 = vsel %vm785_vm2, %v8888_v31, -inf }
 0x7b2   : > { %6362 = vpow2.f32 %v2096_v47 }
 0x7b6   : > { %2028 = vmax.xlane.f32.xlu1 %v2027_v61  ;;  %v9008_v61 = vpop.permute.xlu0 %4221 }
 0x7b7   : > { %11217 = vst [vmem:[#allocation73_spill] sm:$0xff] %v9008_v61 }
 0x7b8   : > { %v9012_v46 = vpop.eup %6362 }
 0x7b9   : > { %2163 = vadd.xlane.f32.xlu0 %v2162_v21  ;;  %11218 = vst [vmem:[#allocation119_spill] sm:$0xff] %v9012_v46  ;;  %v2171_v21 = vsel %vm785_vm2, %v9012_v46, 0.0 }
 0x7be   : > { %1983 = vmax.xlane.f32.xlu1 %v1982_v43  ;;  %v9016_v50 = vpop.xlane.xlu0 %1968 }
 0x7c1   : > { %2217 = vadd.xlane.f32.xlu0 %v2216_v34  ;;  %v6144_v34 = vpack.i.bf16 %v11111_v4, %v7252_v52  ;;  %v9039_v4 = vpop.permute.xlu2 %6155 }
 0x7c2   : > { %11221 = vst [vmem:[#allocation128_spill] sm:$0xff] %v9039_v4 }
 0x7c6   : > { %v9021_v7 = vpop.xlane.xlu0 %2022 }
 0x7c9   : > { %2172 = vadd.xlane.f32.xlu0 %v2171_v21  ;;  %v6194_v21 = vpack.i.bf16 %v11124_v9, %v11084_v24 }
 0x7ce   : > { %v1957_v8 = vpop.xlane.xlu1 %1956  ;;  %v9032_v30 = vpop.xlane.xlu0 %1977 }
 0x7cf   : > { %v2045_v43 = vsub.f32 %v8718_v51, %v1957_v8  ;;  %v2006_v51 = vsel %vm785_vm2, %v8965_v44, -inf }
 0x7d1   : > { %v2080_v47 = vmul.f32 1.442695, %v2045_v43 }
 0x7d3   : > { %6364 = vpow2.f32 %v2080_v47 }
 0x7d6   : > { %v9037_v52 = vpop.permute.xlu0 %6150 }
 0x7d7   : > { %6145 = vrot.lane.b32.xlu1 %v6144_v34, %s6754_s5  ;;  %11220 = vst [vmem:[#allocation69_spill] sm:$0xff] %v9037_v52 }
 0x7d9   : > { %v9026_v61 = vpop.eup %6364 }
 0x7da   : > { %v2147_v10 = vsel %vm785_vm2, %v9026_v61, 0.0 }
 0x7db   : > { %2148 = vadd.xlane.f32.xlu2 %v2147_v10 }
 0x7dd   : > { %6195 = vrot.lane.b32.xlu0 %v6194_v21, %s6754_s5 }
 0x7e3   : > { %2007 = vmax.xlane.f32.xlu2 %v2006_v51  ;;  %v2036_v51 = vsel %vm785_vm2, %v8922_v5, -inf }
 0x7e7   : > { %v2035_v43 = vpop.xlane.xlu2 %2034 }
 0x7e8   : > { %v2071_v10 = vsub.f32 %v8904_v45, %v2035_v43  ;;  %v9061_v43 = vpop.permute.xlu1 %4433 }
 0x7e9   : > { %11224 = vst [vmem:[#allocation127_spill] sm:$0xff] %v9061_v43  ;;  %v6078_v43 = vunpack.i.h.bf16 %v8330_v40 }
 0x7ea   : > { %v2132_v24 = vmul.f32 1.442695, %v2071_v10 }
 0x7ec   : > { %v9041_v8 = vpop.xlane.xlu0 %2031  ;;  %6366 = vpow2.f32 %v2132_v24 }
 0x7ef   : > { %v1990_v9 = vpop.xlane.xlu2 %1989 }
 0x7f0   : > { %v2056_v21 = vsub.f32 %v8916_v39, %v1990_v9 }
 0x7f2   : > { %v2102_v52 = vmul.f32 1.442695, %v2056_v21  ;;  %v9051_v4 = vpop.eup %6366  ;;  %v6083_v21 = vunpack.i.h.bf16 %v8340_v37 }
 0x7f3   : > { %11223 = vst [vmem:[#allocation78_spill] sm:$0xff] %v9051_v4  ;;  %v2225_v45 = vsel %vm785_vm2, %v9051_v4, 0.0 }
 0x7f4   : > { %v9043_v47 = vpop.xlane.xlu0 %1986 }
 0x7f5   : > { %11222 = vst [vmem:[#allocation117_spill] sm:$0xff] %v9043_v47  ;;  %v9055_v47 = vpop.f32.mrf.mxu1 }
 0x7f6   : > { %v1991_v39 = vsel %vm785_vm2, %v9055_v47, -inf }
 0x7fc   : > { %v9046_v34 = vpop.xlane.xlu0 %2040 }
 0x801   : > { %2037 = vmax.xlane.f32.xlu1 %v2036_v51 }
 0x803   : > { %v2140_v46 = vpop.xlane.xlu2 %2139 }
 0x804   : > { %6368 = vrcp.f32 %v2140_v46  ;;  %v9053_v36 = vpop.xlane.xlu0 %1995 }
 0x805   : > { %6370 = vpow2.f32 %v2102_v52 }
 0x807   : > { %2226 = vadd.xlane.f32.xlu0 %v2225_v45  ;;  %v6082_v45 = vunpack.i.l.bf16 %v8340_v37 }
 0x809   : > { %1992 = vmax.xlane.f32.xlu1 %v1991_v39 }
 0x80a   : > { %v6369_v10 = vpop.eup %6368 }
 0x80b   : > { %v9063_v24 = vpop.eup %6370  ;;  %v2266_v46 = vmul.f32 %v6369_v10, %v8948_v17  ;;  %v1999_v9 = vpop.xlane.xlu2 %1998  ;;  %v6077_v10 = vunpack.i.l.bf16 %v8330_v40  ;;  %v6068_v40 = vunpack.i.h.bf16 %v8328_v60 }
 0x80c   : > { %v2059_v52 = vsub.f32 %v8928_v23, %v1999_v9  ;;  %v9068_v51 = vpop.xlane.xlu0 %2145  ;;  %v2180_v39 = vsel %vm785_vm2, %v9063_v24, 0.0 }
 0x80d   : > { %5654 = vmatmul.msk.f32.vlgmr.msrb.gmra.mxu0 %vm785_vm2, %v2266_v46  ;;  %v6073_v46 = vunpack.i.h.bf16 %v8322_v42 }
 0x80e   : > { %v2108_v4 = vmul.f32 1.442695, %v2059_v52  ;;  %3643 = vmatpush.msrb.mxu0 %v6083_v21  ;;  %v6072_v52 = vunpack.i.l.bf16 %v8322_v42 }
 0x80f   : > { %2181 = vadd.xlane.f32.xlu0 %v2180_v39 }
 0x810   : > { %6372 = vpow2.f32 %v2108_v4  ;;  %3644 = vmatpush.msrb.mxu0 %v6082_v45 }
 0x811   : > { %v1966_v17 = vpop.xlane.xlu1 %1965 }
 0x812   : > { %3645 = vmatpush.msrb.mxu0 %v6078_v43  ;;  %v2048_v23 = vsub.f32 %v8754_v18, %v1966_v17  ;;  %v6067_v43 = vunpack.i.l.bf16 %v8328_v60 }
 0x814   : > { %v2086_v9 = vmul.f32 1.442695, %v2048_v23  ;;  %3646 = vmatpush.msrb.mxu0 %v6077_v10  ;;  %v9078_v37 = vpop.xlane.xlu0 %2004  ;;  %v6159_v23 = vpack.i.bf16 %v11136_v19, %v11099_v22 }
 0x816   : > { %v9080_v21 = vpop.eup %6372  ;;  %6374 = vpow2.f32 %v2086_v9  ;;  %3647 = vmatpush.msrb.mxu0 %v6073_v46  ;;  %v9096_v9 = vpop.f32.mrf.mxu2 }
 0x817   : > { %v2189_v4 = vsel %vm785_vm2, %v9080_v21, 0.0 }
 0x818   : > { %3648 = vmatpush.msrb.mxu0 %v6072_v52  ;;  %2190 = vadd.xlane.f32.xlu0 %v2189_v4  ;;  %v2015_v52 = vsel %vm785_vm2, %v9096_v9, -inf }
 0x819   : > { %v2020_v18 = vpop.xlane.xlu1 %2019 }
 0x81a   : > { %3649 = vmatpush.msrb.mxu0 %v6068_v40  ;;  %v2066_v39 = vsub.f32 %v8788_v20, %v2020_v18 }
 0x81c   : > { %v9087_v45 = vpop.eup %6374  ;;  %3650 = vmatpush.msrb.mxu0 %v6067_v43  ;;  %v9090_v17 = vpop.xlane.xlu0 %2154  ;;  %v2122_v10 = vmul.f32 1.442695, %v2066_v39 }
 0x81d   : > { %v2156_v42 = vsel %vm785_vm2, %v9087_v45, 0.0 }
 0x81e   : > { %2157 = vadd.xlane.f32.xlu2 %v2156_v42  ;;  %6376 = vpow2.f32 %v2122_v10 }
 0x821   : > { %v1975_v46 = vpop.xlane.xlu1 %1974 }
 0x822   : > { %6160 = vrot.lane.b32.xlu1 %v6159_v23, %s6754_s5  ;;  %v2051_v60 = vsub.f32 %v8800_v15, %v1975_v46 }
 0x824   : > { %v9100_v20 = vpop.xlane.xlu0 %2013  ;;  %v2092_v4 = vmul.f32 1.442695, %v2051_v60  ;;  %v9104_v18 = vpop.eup %6376  ;;  %v6103_v60 = vunpack.i.h.bf16 %v8416_v25 }
 0x825   : > { %v2210_v43 = vsel %vm785_vm2, %v9104_v18, 0.0 }
 0x826   : > { %2016 = vmax.xlane.f32.xlu2 %v2015_v52  ;;  %6378 = vpow2.f32 %v2092_v4  ;;  %v6102_v52 = vunpack.i.l.bf16 %v8416_v25 }
 0x829   : > { %v2029_v40 = vpop.xlane.xlu1 %2028 }
 0x82a   : > { %v2069_v22 = vsub.f32 %v8882_v32, %v2029_v40  ;;  %v6098_v40 = vunpack.i.h.bf16 %v8410_v41 }
 0x82c   : > { %v2164_v19 = vpop.xlane.xlu0 %2163  ;;  %v2128_v15 = vmul.f32 1.442695, %v2069_v22  ;;  %v9109_v42 = vpop.eup %6378 }
 0x82d   : > { %6380 = vrcp.f32 %v2164_v19  ;;  %v2165_v32 = vsel %vm785_vm2, %v9109_v42, 0.0  ;;  %v6093_v19 = vunpack.i.h.bf16 %v8422_v62 }
 0x82e   : > { %2211 = vadd.xlane.f32.xlu2 %v2210_v43  ;;  %6382 = vpow2.f32 %v2128_v15  ;;  %v6092_v15 = vunpack.i.l.bf16 %v8422_v62 }
 0x831   : > { %v1984_v39 = vpop.xlane.xlu1 %1983 }
 0x832   : > { %v2054_v46 = vsub.f32 %v8888_v31, %v1984_v39  ;;  %v2043_v31 = vsub.f32 %v8674_v33, %v8969_v6  ;;  %v6088_v39 = vunpack.i.h.bf16 %v8402_v29 }
 0x833   : > { %v6381_v10 = vpop.eup %6380 }
 0x834   : > { %v2274_v23 = vmul.f32 %v6381_v10, %v8993_v26  ;;  %v2098_v4 = vmul.f32 1.442695, %v2054_v46  ;;  %v9119_v22 = vpop.eup %6382  ;;  %v6097_v26 = vunpack.i.l.bf16 %v8410_v41  ;;  %v2076_v43 = vmul.f32 1.442695, %v2043_v31 }
 0x835   : > { %v2219_v25 = vsel %vm785_vm2, %v9119_v22, 0.0  ;;  %v6087_v41 = vunpack.i.l.bf16 %v8402_v29  ;;  %v2000_v46 = vsel %vm785_vm2, %v8939_v3, -inf  ;;  %v6199_v31 = vpack.i.bf16 %v11123_v14, %v11117_v55 }
 0x836   : > { %5662 = vmatmul.msk.f32.vlgmr.msra.gmra.mxu1 %vm785_vm2, %v2274_v23  ;;  %2166 = vadd.xlane.f32.xlu2 %v2165_v32  ;;  %6384 = vpow2.f32 %v2098_v4 }
 0x837   : > { %3732 = vmatpush.msra.mxu1 %v6103_v60  ;;  %6386 = vpow2.f32 %v2076_v43 }
 0x839   : > { %3733 = vmatpush.msra.mxu1 %v6102_v52  ;;  %v6189_v52 = vpack.i.bf16 %v11137_v11, %v11113_v16 }
 0x83b   : > { %3734 = vmatpush.msra.mxu1 %v6098_v40 }
 0x83c   : > { %v9129_v10 = vpop.eup %6384 }
 0x83d   : > { %3735 = vmatpush.msra.mxu1 %v6097_v26  ;;  %v2174_v33 = vsel %vm785_vm2, %v9129_v10, 0.0  ;;  %v9134_v6 = vpop.eup %6386  ;;  %v6204_v26 = vpack.i.bf16 %v11125_v13, %v11069_v0 }
 0x83e   : > { %2220 = vadd.xlane.f32.xlu2 %v2219_v25  ;;  %v2141_v62 = vsel %vm785_vm2, %v9134_v6, 0.0 }
 0x83f   : > { %3736 = vmatpush.msra.mxu1 %v6093_v19  ;;  %v2046_v19 = vsub.f32 %v8729_v2, %v8998_v27 }
 0x841   : > { %3737 = vmatpush.msra.mxu1 %v6092_v15  ;;  %v2082_v14 = vmul.f32 1.442695, %v2046_v19 }
 0x843   : > { %3738 = vmatpush.msra.mxu1 %v6088_v39 }
 0x845   : > { %3739 = vmatpush.msra.mxu1 %v6087_v41 }
 0x846   : > { %2175 = vadd.xlane.f32.xlu2 %v2174_v33  ;;  %v2009_v33 = vsel %vm785_vm2, %v8973_v53, -inf }
 0x849   : > { %v9159_v16 = vpop.permute.xlu1 %6145 }
 0x84a   : > { %11225 = vst [vmem:[#allocation126_spill] sm:$0xff] %v9159_v16 }
 0x84c   : > { %2142 = vadd.xlane.f32.xlu1 %v2141_v62 }
 0x84e   : > { %v9138_v23 = vpop.xlane.xlu2 %2148 }
 0x854   : > { %2001 = vmax.xlane.f32.xlu1 %v2000_v46 }
 0x856   : > { %v2008_v60 = vpop.xlane.xlu2 %2007 }
 0x857   : > { %v2062_v29 = vsub.f32 %v8965_v44, %v2008_v60  ;;  %v6164_v44 = vpack.i.bf16 %v11118_v63, %v11085_v28 }
 0x859   : > { %v2114_v32 = vmul.f32 1.442695, %v2062_v29 }
 0x85b   : > { %6388 = vpow2.f32 %v2114_v32 }
 0x85c   : > { %6390 = vpow2.f32 %v2082_v14  ;;  %v6128_v14 = vunpack.i.h.bf16 %v8487_v49 }
 0x85e   : > { %6190 = vrot.lane.b32.xlu2 %v6189_v52, %s6754_s5 }
 0x861   : > { %v9146_v4 = vpop.eup %6388 }
 0x862   : > { %v2198_v40 = vsel %vm785_vm2, %v9146_v4, 0.0  ;;  %v9167_v13 = vpop.eup %6390 }
 0x863   : > { %2199 = vadd.xlane.f32.xlu0 %v2198_v40  ;;  %v2150_v2 = vsel %vm785_vm2, %v9167_v13, 0.0  ;;  %v6143_v40 = vunpack.i.h.bf16 %v8504_v48 }
 0x866   : > { %6200 = vrot.lane.b32.xlu2 %v6199_v31, %s6754_s5  ;;  %v6142_v31 = vunpack.i.l.bf16 %v8504_v48  ;;  %v6209_v48 = vpack.i.bf16 %v11138_v35, %v11105_v56 }
 0x86d   : > { %6165 = vrot.lane.b32.xlu1 %v6164_v44, %s6754_s5  ;;  %v6138_v44 = vunpack.i.h.bf16 %v8466_v57 }
 0x86e   : > { %6205 = vrot.lane.b32.xlu2 %v6204_v26, %s6754_s5 }
 0x874   : > { %v2038_v11 = vpop.xlane.xlu1 %2037 }
 0x875   : > { %v2072_v55 = vsub.f32 %v8922_v5, %v2038_v11  ;;  %v6137_v11 = vunpack.i.l.bf16 %v8466_v57  ;;  %v6169_v57 = vpack.i.bf16 %v11126_v38, %v11103_v58 }
 0x877   : > { %v2134_v25 = vmul.f32 1.442695, %v2072_v55  ;;  %v6132_v55 = vunpack.i.l.bf16 %v8498_v1 }
 0x879   : > { %6392 = vpow2.f32 %v2134_v25 }
 0x87c   : > { %v1993_v43 = vpop.xlane.xlu1 %1992 }
 0x87d   : > { %v2057_v28 = vsub.f32 %v9055_v47, %v1993_v43 }
 0x87f   : > { %v2104_v0 = vmul.f32 1.442695, %v2057_v28  ;;  %v9169_v15 = vpop.eup %6392  ;;  %v11227_v28 = vld [vmem:[#allocation62_spill] sm:$0xff] }
 0x880   : > { %v2228_v5 = vsel %vm785_vm2, %v9169_v15, 0.0 }
 0x881   : > { %6394 = vpow2.f32 %v2104_v0  ;;  %v2049_v0 = vsub.f32 %v11227_v28, %v9016_v50 }
 0x887   : > { %v9176_v47 = vpop.eup %6394 }
 0x888   : > { %v2183_v62 = vsel %vm785_vm2, %v9176_v47, 0.0 }
 0x891   : > { %v9165_v63 = vpop.xlane.xlu2 %2157 }
 0x894   : > { %v9201_v25 = vpop.permute.xlu1 %6160 }
 0x897   : > { %2151 = vadd.xlane.f32.xlu1 %v2150_v2  ;;  %2229 = vadd.xlane.f32.xlu2 %v2228_v5  ;;  %v2088_v2 = vmul.f32 1.442695, %v2049_v0 }
 0x899   : > { %v2017_v27 = vpop.xlane.xlu2 %2016 }
 0x89a   : > { %v2065_v39 = vsub.f32 %v9096_v9, %v2017_v27 }
 0x89c   : > { %v2120_v41 = vmul.f32 1.442695, %v2065_v39 }
 0x89e   : > { %6396 = vpow2.f32 %v2120_v41  ;;  %v11228_v41 = vld [vmem:[#allocation9_spill] sm:$0xff] }
 0x89f   : > { %2010 = vmax.xlane.f32.xlu1 %v2009_v33  ;;  %2184 = vadd.xlane.f32.xlu2 %v2183_v62  ;;  %v11229_v33 = vld [vmem:[#allocation44_spill] sm:$0xff] }
 0x8a1   : > { %v2212_v46 = vpop.xlane.xlu2 %2211 }
 0x8a2   : > { %6398 = vrcp.f32 %v2212_v46 }
 0x8a4   : > { %v9182_v60 = vpop.eup %6396 }
 0x8a5   : > { %v2207_v29 = vsel %vm785_vm2, %v9182_v60, 0.0 }
 0x8a6   : > { %2208 = vadd.xlane.f32.xlu0 %v2207_v29 }
 0x8a8   : > { %v6399_v9 = vpop.eup %6398 }
 0x8a9   : > { %v2290_v32 = vmul.f32 %v6399_v9, %v9104_v18  ;;  %v2167_v52 = vpop.xlane.xlu2 %2166  ;;  %v6133_v18 = vunpack.i.h.bf16 %v8498_v1  ;;  %v6214_v1 = vpack.i.bf16 %v11093_v12, %v11076_v59  ;;  %v11230_v9 = vld [vmem:[#allocation91_spill] sm:$0xff] }
 0x8aa   : > { %6400 = vrcp.f32 %v2167_v52 }
 0x8ab   : > { %5678 = vmatmul.msk.f32.vlgmr.msra.gmra.mxu3 %vm785_vm2, %v2290_v32  ;;  %v2067_v32 = vsub.f32 %v11230_v9, %v9021_v7  ;;  %v11240_v9 = vld [vmem:[#allocation20_spill] sm:$0xff] }
 0x8ac   : > { %3910 = vmatpush.msra.mxu3 %v6143_v40 }
 0x8ae   : > { %3911 = vmatpush.msra.mxu3 %v6142_v31 }
 0x8b0   : > { %v6401_v26 = vpop.eup %6400  ;;  %3912 = vmatpush.msra.mxu3 %v6138_v44  ;;  %v2124_v44 = vmul.f32 1.442695, %v2067_v32 }
 0x8b1   : > { %v2275_v19 = vmul.f32 %v6401_v26, %v9109_v42  ;;  %v6127_v42 = vunpack.i.l.bf16 %v8487_v49  ;;  %v11226_v49 = vld [vmem:[#allocation39_spill] sm:$0xff] }
 0x8b2   : > { %3913 = vmatpush.msra.mxu3 %v6137_v11  ;;  %v11231_v11 = vld [vmem:[#allocation3_spill] sm:$0xff] }
 0x8b3   : > { %5663 = vmatmul.msk.f32.gmra.mxu1 %vm785_vm2, %v2275_v19 }
 0x8b4   : > { %3914 = vmatpush.msra.mxu3 %v6133_v18 }
 0x8b6   : > { %3915 = vmatpush.msra.mxu3 %v6132_v55 }
 0x8b7   : > { %6210 = vrot.lane.b32.xlu2 %v6209_v48, %s6754_s5 }
 0x8b8   : > { %3916 = vmatpush.msra.mxu3 %v6128_v14  ;;  %6170 = vrot.lane.b32.xlu1 %v6169_v57, %s6754_s5  ;;  %v9255_v14 = vpop.xlane.xlu2 %2220  ;;  %v2363_v57 = vpop.f32.mrf.mxu0 }
 0x8ba   : > { %3917 = vmatpush.msra.mxu3 %v6127_v42 }
 0x8bf   : > { %6215 = vrot.lane.b32.xlu2 %v6214_v1, %s6754_s5  ;;  %v2143_v56 = vpop.xlane.xlu1 %2142  ;;  %v11233_v1 = vld [vmem:[#allocation67_spill] sm:$0xff] }
 0x8c0   : > { %6402 = vrcp.f32 %v2143_v56  ;;  %v9258_v42 = vpop.xlane.xlu2 %2175 }
 0x8c1   : > { %6404 = vrcp.f32 %v9068_v51 }
 0x8c2   : > { %6406 = vrcp.f32 %v9138_v23 }
 0x8c3   : > { %6408 = vpow2.f32 %v2088_v2 }
 0x8c6   : > { %v6403_v35 = vpop.eup %6402 }
 0x8c7   : > { %v2267_v58 = vmul.f32 %v6403_v35, %v9134_v6  ;;  %v6405_v38 = vpop.eup %6404  ;;  %v2002_v59 = vpop.xlane.xlu1 %2001 }
 0x8c8   : > { %v2268_v43 = vmul.f32 %v6405_v38, %v11226_v49  ;;  %v6407_v12 = vpop.eup %6406  ;;  %v2060_v5 = vsub.f32 %v8939_v3, %v2002_v59  ;;  %v6174_v3 = vpack.i.bf16 %v11229_v33, %v11228_v41  ;;  %v11236_v41 = vld [vmem:[#allocation111_spill] sm:$0xff] }
 0x8c9   : > { %5655 = vmatmul.msk.f32.gmra.mxu0 %vm785_vm2, %v2267_v58  ;;  %v2269_v51 = vmul.f32 %v6407_v12, %v9026_v61  ;;  %v6409_v27 = vpop.eup %6408  ;;  %v9264_v58 = vpop.permute.xlu2 %6190 }
 0x8ca   : > { %v2110_v6 = vmul.f32 1.442695, %v2060_v5  ;;  %v2159_v23 = vsel %vm785_vm2, %v6409_v27, 0.0  ;;  %v11234_v5 = vld [vmem:[#allocation55_spill] sm:$0xff] }
 0x8cc   : > { %6410 = vpow2.f32 %v2110_v6 }
 0x8d1   : > { %5656 = vmatmul.msk.f32.gmra.mxu0 %vm785_vm2, %v2268_v43  ;;  %v9270_v43 = vpop.permute.xlu2 %6200 }
 0x8d2   : > { %v9221_v39 = vpop.eup %6410 }
 0x8d3   : > { %v2192_v50 = vsel %vm785_vm2, %v9221_v39, 0.0 }
 0x8d9   : > { %5657 = vmatmul.msk.f32.gmra.mxu0 %vm785_vm2, %v2269_v51  ;;  %v9273_v12 = vpop.permute.xlu2 %6205  ;;  %v2070_v51 = vsub.f32 %v11234_v5, %v9041_v8 }
 0x8db   : > { %v2130_v6 = vmul.f32 1.442695, %v2070_v51 }
 0x8df   : > { %v9228_v61 = vpop.permute.xlu1 %6165 }
 0x8e2   : > { %2160 = vadd.xlane.f32.xlu1 %v2159_v23 }
 0x8e8   : > { %2193 = vadd.xlane.f32.xlu2 %v2192_v50  ;;  %v11235_v50 = vld [vmem:[#allocation117_spill] sm:$0xff] }
 0x8e9   : > { %v2055_v33 = vsub.f32 %v11236_v41, %v11235_v50  ;;  %v11253_v50 = vld [vmem:[#allocation99_spill] sm:$0xff] }
 0x8fb   : > { %6175 = vrot.lane.b32.xlu1 %v6174_v3, %s6754_s5  ;;  %v11237_v3 = vld [vmem:[#allocation19_spill] sm:$0xff] }
 0x90a   : > { %v2152_v62 = vpop.xlane.xlu1 %2151  ;;  %v9278_v23 = vpop.xlane.xlu2 %2229 }
 0x90b   : > { %6412 = vrcp.f32 %v2152_v62  ;;  %v11238_v62 = vld [vmem:[#allocation24_spill] sm:$0xff] }
 0x90c   : > { %6414 = vrcp.f32 %v9090_v17  ;;  %v2052_v17 = vsub.f32 %v11231_v11, %v9032_v30 }
 0x90e   : > { %v2094_v7 = vmul.f32 1.442695, %v2052_v17 }
 0x911   : > { %v6413_v46 = vpop.eup %6412 }
 0x912   : > { %v2011_v29 = vpop.xlane.xlu1 %2010  ;;  %v2270_v40 = vmul.f32 %v6413_v46, %v9167_v13  ;;  %v6415_v26 = vpop.eup %6414  ;;  %v2100_v46 = vmul.f32 1.442695, %v2055_v33 }
 0x913   : > { %v2063_v52 = vsub.f32 %v8973_v53, %v2011_v29  ;;  %v2271_v19 = vmul.f32 %v6415_v26, %v8975_v54  ;;  %v11239_v29 = vld [vmem:[#allocation46_spill] sm:$0xff]  ;;  %v9290_v8 = vpop.xlane.xlu2 %2184  ;;  %v11243_v26 = vld [vmem:[#allocation31_spill] sm:$0xff] }
 0x914   : > { %5658 = vmatmul.msk.f32.gmra.mxu0 %vm785_vm2, %v2270_v40  ;;  %v2218_v40 = vpop.xlane.xlu0 %2217 }
 0x915   : > { %v2116_v31 = vmul.f32 1.442695, %v2063_v52  ;;  %v11241_v52 = vld [vmem:[#allocation27_spill] sm:$0xff] }
 0x917   : > { %6416 = vpow2.f32 %v2116_v31 }
 0x918   : > { %6418 = vrcp.f32 %v9165_v63 }
 0x919   : > { %6420 = vpow2.f32 %v2124_v44  ;;  %v11242_v44 = vld [vmem:[#allocation54_spill] sm:$0xff] }
 0x91a   : > { %6422 = vpow2.f32 %v2094_v7 }
 0x91b   : > { %v9306_v17 = vpop.permute.xlu2 %6210 }
 0x91c   : > { %5659 = vmatmul.msk.f32.gmra.mxu0 %vm785_vm2, %v2271_v19  ;;  %v11244_v19 = vld [vmem:[#allocation66_spill] sm:$0xff]  ;;  %v2173_v7 = vpop.xlane.xlu0 %2172 }
 0x91d   : > { %v9240_v18 = vpop.eup %6416 }
 0x91e   : > { %v2201_v53 = vsel %vm785_vm2, %v9240_v18, 0.0  ;;  %v6419_v13 = vpop.eup %6418 }
 0x91f   : > { %2202 = vadd.xlane.f32.xlu2 %v2201_v53  ;;  %v9245_v55 = vpop.eup %6420  ;;  %v2272_v63 = vmul.f32 %v6419_v13, %v9087_v45  ;;  %v11232_v45 = vld [vmem:[#allocation26_spill] sm:$0xff]  ;;  %v11245_v53 = vld [vmem:[#allocation23_spill] sm:$0xff] }
 0x920   : > { %v2213_v30 = vsel %vm785_vm2, %v9245_v55, 0.0  ;;  %v9251_v54 = vpop.eup %6422  ;;  %v6179_v56 = vpack.i.bf16 %v11233_v1, %v11232_v45  ;;  %v11246_v13 = vld [vmem:[#allocation30_spill] sm:$0xff]  ;;  %v11249_v45 = vld [vmem:[#allocation32_spill] sm:$0xff] }
 0x921   : > { %v2168_v48 = vsel %vm785_vm2, %v9251_v54, 0.0 }
 0x924   : > { %5660 = vmatmul.msk.f32.gmra.mxu0 %vm785_vm2, %v2272_v63  ;;  %v11247_v63 = vld [vmem:[#allocation86_spill] sm:$0xff] }
 0x925   : > { %2214 = vadd.xlane.f32.xlu1 %v2213_v30  ;;  %v9316_v30 = vpop.permute.xlu2 %6215 }
 0x92a   : > { %v9266_v38 = vpop.permute.xlu1 %6170 }
 0x92d   : > { %2169 = vadd.xlane.f32.xlu1 %v2168_v48  ;;  %v11248_v48 = vld [vmem:[#allocation77_spill] sm:$0xff] }
 0x937   : > { %2686 = vrot.lane.b32.xlu2 %v2363_v57, %s6755_s6  ;;  %v9320_v57 = vpop.permute.xlu0 %6195 }
 0x946   : > { %6180 = vrot.lane.b32.xlu1 %v6179_v56, %s6754_s5  ;;  %v2366_v35 = vpop.f32.mrf.mxu0  ;;  %v9326_v56 = vpop.xlane.xlu0 %2226 }
 0x947   : > { %2688 = vrot.lane.b32.xlu0 %v2366_v35, %s6755_s6  ;;  %v11250_v35 = vld [vmem:[#allocation100_spill] sm:$0xff] }
 0x94e   : > { %v9268_v49 = vpop.f32.mrf.mxu0 }
 0x955   : > { %v2161_v28 = vpop.xlane.xlu1 %2160 }
 0x956   : > { %6424 = vrcp.f32 %v2161_v28  ;;  %v2372_v0 = vpop.f32.mrf.mxu0  ;;  %v11251_v28 = vld [vmem:[#allocation8_spill] sm:$0xff] }
 0x957   : > { %2692 = vrot.lane.b32.xlu2 %v2372_v0, %s6755_s6  ;;  %6426 = vpow2.f32 %v2130_v6  ;;  %v11252_v0 = vld [vmem:[#allocation41_spill] sm:$0xff]  ;;  %v9338_v6 = vpop.xlane.xlu0 %2181 }
 0x958   : > { %6428 = vpow2.f32 %v2100_v46  ;;  %v11254_v46 = vld [vmem:[#allocation101_spill] sm:$0xff] }
 0x95b   : > { %v9324_v1 = vpop.xlane.xlu2 %2193 }
 0x95c   : > { %v6425_v59 = vpop.eup %6424 }
 0x95d   : > { %v2273_v2 = vmul.f32 %v6425_v59, %v6409_v27  ;;  %v9286_v27 = vpop.eup %6426  ;;  %v6184_v59 = vpack.i.bf16 %v11252_v0, %v11251_v28 }
 0x95e   : > { %v2222_v32 = vsel %vm785_vm2, %v9286_v27, 0.0  ;;  %v9298_v31 = vpop.eup %6428 }
 0x95f   : > { %5661 = vmatmul.msk.f32.gmra.mxu0 %vm785_vm2, %v2273_v2  ;;  %v2177_v11 = vsel %vm785_vm2, %v9298_v31, 0.0 }
 0x967   : > { %5694 = vmatmul.msk.f32.vlgmr.msra.gmra.mxu0 %vm420_vm1, %v11237_v3 }
 0x968   : > { %5782 = vmatpush.xpose.msk.msra.mxu0 %vm420_vm1, %v11238_v62 }
 0x96c   : > { %5783 = vmatpush.xpose.msk.msra.mxu0 %vm420_vm1, %v11239_v29 }
 0x96d   : > { %v9332_v2 = vpop.permute.xlu1 %6175 }
 0x96f   : > { %5695 = vmatmul.msk.f32.gmra.mxu0 %vm420_vm1, %v11240_v9 }
 0x970   : > { %5784 = vmatpush.xpose.msk.msra.mxu0 %vm420_vm1, %v11241_v52  ;;  %2223 = vadd.xlane.f32.xlu1 %v2222_v32  ;;  %v9349_v32 = vpop.xlane.xlu0 %2190 }
 0x974   : > { %5785 = vmatpush.xpose.msk.msra.mxu0 %vm420_vm1, %v11242_v44 }
 0x977   : > { %5696 = vmatmul.msk.f32.gmra.mxu0 %vm420_vm1, %v11243_v26 }
 0x978   : > { %5786 = vmatpush.xpose.msk.msra.mxu0 %vm420_vm1, %v11244_v19  ;;  %2178 = vadd.xlane.f32.xlu1 %v2177_v11  ;;  %v11255_v11 = vld [vmem:[#allocation58_spill] sm:$0xff] }
 0x97c   : > { %5787 = vmatpush.xpose.msk.msra.mxu0 %vm420_vm1, %v11245_v53 }
 0x97f   : > { %5697 = vmatmul.msk.f32.gmra.mxu0 %vm420_vm1, %v11246_v13  ;;  %v9358_v13 = vpop.xlane.xlu0 %2199 }
 0x980   : > { %5788 = vmatpush.xpose.msk.msra.mxu0 %vm420_vm1, %v11247_v63 }
 0x984   : > { %5789 = vmatpush.xpose.msk.msra.mxu0 %vm420_vm1, %v11248_v48 }
 0x987   : > { %5698 = vmatmul.msk.f32.gmra.mxu0 %vm420_vm1, %v11249_v45  ;;  %v9367_v28 = vpop.xlane.xlu0 %2208 }
 0x98f   : > { %5699 = vmatmul.msk.f32.gmra.mxu0 %vm420_vm1, %v11250_v35  ;;  %v11258_v35 = vld [vmem:[#allocation57_spill] sm:$0xff] }
 0x991   : > { %6185 = vrot.lane.b32.xlu1 %v6184_v59, %s6754_s5  ;;  %v2375_v5 = vpop.f32.mrf.mxu0 }
 0x992   : > { %v9335_v51 = vpop.xlane.xlu2 %2202  ;;  %2694 = vrot.lane.b32.xlu0 %v2375_v5, %s6755_s6 }
 0x997   : > { %5700 = vmatmul.msk.f32.gmra.mxu0 %vm420_vm1, %v11253_v50 }
 0x998   : > { %v2215_v41 = vpop.xlane.xlu1 %2214 }
 0x999   : > { %6430 = vrcp.f32 %v2215_v41  ;;  %v9342_v33 = vpop.f32.mrf.mxu0 }
 0x99a   : > { %v2687_v3 = vpop.permute.xlu2 %2686  ;;  %6432 = vrcp.f32 %v2218_v40 }
 0x99b   : > { %2783 = vst.msk [vmem:[%s8080_s29] sm:$0xff] %vm2782_vm3, %v2687_v3 }
 0x99f   : > { %v6431_v62 = vpop.eup %6430  ;;  %5701 = vmatmul.msk.f32.gmra.mxu0 %vm420_vm1, %v11254_v46 }
 0x9a0   : > { %v2170_v29 = vpop.xlane.xlu1 %2169  ;;  %v2291_v9 = vmul.f32 %v6431_v62, %v9245_v55  ;;  %v6433_v44 = vpop.eup %6432  ;;  %v11256_v55 = vld [vmem:[#allocation47_spill] sm:$0xff] }
 0x9a1   : > { %6434 = vrcp.f32 %v2170_v29  ;;  %v2381_v52 = vpop.f32.mrf.mxu0  ;;  %v2292_v19 = vmul.f32 %v6433_v44, %v11255_v11  ;;  %v2073_v53 = vsub.f32 %v11256_v55, %v9046_v34  ;;  %v2058_v34 = vsub.f32 %v11258_v35, %v9053_v36  ;;  %v11260_v29 = vld [vmem:[#allocation53_spill] sm:$0xff]  ;;  %v11261_v35 = vld [vmem:[#allocation78_spill] sm:$0xff] }
 0x9a2   : > { %5679 = vmatmul.msk.f32.gmra.mxu3 %vm785_vm2, %v2291_v9  ;;  %2698 = vrot.lane.b32.xlu2 %v2381_v52, %s6755_s6  ;;  %6436 = vrcp.f32 %v2173_v7 }
 0x9a3   : > { %6438 = vrcp.f32 %v9255_v14  ;;  %v2136_v7 = vmul.f32 1.442695, %v2073_v53  ;;  %v11257_v14 = vld [vmem:[#allocation119_spill] sm:$0xff] }
 0x9a4   : > { %6440 = vrcp.f32 %v9258_v42  ;;  %v2106_v42 = vmul.f32 1.442695, %v2058_v34 }
 0x9a5   : > { %6442 = vpow2.f32 %v2136_v7 }
 0x9a6   : > { %6444 = vpow2.f32 %v2106_v42 }
 0x9a7   : > { %v6435_v26 = vpop.eup %6434 }
 0x9a8   : > { %v2276_v40 = vmul.f32 %v6435_v26, %v9251_v54  ;;  %v6437_v63 = vpop.eup %6436 }
 0x9a9   : > { %v6439_v48 = vpop.eup %6438  ;;  %v2277_v45 = vmul.f32 %v6437_v63, %v11257_v14 }
 0x9aa   : > { %5664 = vmatmul.msk.f32.gmra.mxu1 %vm785_vm2, %v2276_v40  ;;  %5680 = vmatmul.msk.f32.gmra.mxu3 %vm785_vm2, %v2292_v19  ;;  %v2293_v54 = vmul.f32 %v6439_v48, %v9119_v22  ;;  %v6441_v59 = vpop.eup %6440  ;;  %v11259_v22 = vld [vmem:[#allocation61_spill] sm:$0xff] }
 0x9ab   : > { %v9373_v5 = vpop.eup %6442  ;;  %v2278_v50 = vmul.f32 %v6441_v59, %v9129_v10  ;;  %v2061_v41 = vsub.f32 %v11259_v22, %v9078_v37  ;;  %v2064_v10 = vsub.f32 %v11260_v29, %v9100_v20  ;;  %v11263_v22 = vld [vmem:[#allocation90_spill] sm:$0xff]  ;;  %v11269_v29 = vld [vmem:[#allocation105_spill] sm:$0xff] }
 0x9ac   : > { %v2231_v3 = vsel %vm785_vm2, %v9373_v5, 0.0  ;;  %v9383_v46 = vpop.eup %6444 }
 0x9ad   : > { %v2112_v62 = vmul.f32 1.442695, %v2061_v41  ;;  %v2186_v9 = vsel %vm785_vm2, %v9383_v46, 0.0  ;;  %v2118_v37 = vmul.f32 1.442695, %v2064_v10  ;;  %v11264_v41 = vld [vmem:[#allocation83_spill] sm:$0xff] }
 0x9af   : > { %6446 = vpow2.f32 %v2112_v62  ;;  %v11268_v62 = vld [vmem:[#allocation106_spill] sm:$0xff] }
 0x9b0   : > { %6448 = vpow2.f32 %v2118_v37  ;;  %v11271_v37 = vld [vmem:[#allocation102_spill] sm:$0xff] }
 0x9b1   : > { %v2693_v0 = vpop.permute.xlu2 %2692 }
 0x9b2   : > { %2786 = vst.msk [vmem:[%s8080_s29 + $0x18] sm:$0xff] %vm2782_vm3, %v2693_v0  ;;  %5665 = vmatmul.msk.f32.gmra.mxu1 %vm785_vm2, %v2277_v45  ;;  %5681 = vmatmul.msk.f32.gmra.mxu3 %vm785_vm2, %v2293_v54 }
 0x9b5   : > { %v9389_v52 = vpop.eup %6446 }
 0x9b6   : > { %v2195_v44 = vsel %vm785_vm2, %v9389_v52, 0.0  ;;  %v9393_v26 = vpop.eup %6448 }
 0x9b7   : > { %v2204_v40 = vsel %vm785_vm2, %v9393_v26, 0.0 }
 0x9b8   : > { %v9397_v11 = vpop.permute.xlu1 %6180 }
 0x9b9   : > { %v2689_v36 = vpop.permute.xlu0 %2688 }
 0x9ba   : > { %2784 = vst.msk [vmem:[%s8080_s29 + $0x8] sm:$0xff] %vm2782_vm3, %v2689_v36  ;;  %5666 = vmatmul.msk.f32.gmra.mxu1 %vm785_vm2, %v2278_v50  ;;  %v11262_v50 = vld [vmem:[#allocation49_spill] sm:$0xff] }
 0x9bb   : > { %2232 = vadd.xlane.f32.xlu1 %v2231_v3  ;;  %v11266_v36 = vld [vmem:[#allocation45_spill] sm:$0xff]  ;;  %v11267_v3 = vld [vmem:[#allocation50_spill] sm:$0xff] }
 0x9c3   : > { %2187 = vadd.xlane.f32.xlu1 %v2186_v9  ;;  %v11270_v9 = vld [vmem:[#allocation17_spill] sm:$0xff] }
 0x9cb   : > { %2196 = vadd.xlane.f32.xlu1 %v2195_v44 }
 0x9d3   : > { %2205 = vadd.xlane.f32.xlu1 %v2204_v40 }
 0x9dc   : > { %v2384_v20 = vpop.f32.mrf.mxu0 }
 0x9dd   : > { %2700 = vrot.lane.b32.xlu0 %v2384_v20, %s6755_s6  ;;  %v11272_v20 = vld [vmem:[#allocation25_spill] sm:$0xff] }
 0x9e3   : > { %v2224_v19 = vpop.xlane.xlu1 %2223 }
 0x9e4   : > { %6450 = vrcp.f32 %v2224_v19  ;;  %v9400_v55 = vpop.f32.mrf.mxu0 }
 0x9e5   : > { %v3235_v53 = vsel %vm785_vm2, %v9400_v55, -inf  ;;  %6452 = vrcp.f32 %v9326_v56 }
 0x9e6   : > { %3236 = vmax.xlane.f32.xlu2 %v3235_v53  ;;  %v11273_v53 = vld [vmem:[#allocation79_spill] sm:$0xff] }
 0x9ea   : > { %v6451_v63 = vpop.eup %6450 }
 0x9eb   : > { %v2179_v48 = vpop.xlane.xlu1 %2178  ;;  %v2294_v7 = vmul.f32 %v6451_v63, %v9286_v27  ;;  %v6453_v14 = vpop.eup %6452 }
 0x9ec   : > { %6454 = vrcp.f32 %v2179_v48  ;;  %2690 = vrot.lane.b32.xlu1 %v9268_v49, %s6755_s6  ;;  %v2295_v56 = vmul.f32 %v6453_v14, %v11261_v35  ;;  %v2452_v27 = vpop.f32.mrf.mxu1  ;;  %v9426_v59 = vpop.f32.mrf.mxu0  ;;  %v11274_v48 = vld [vmem:[#allocation103_spill] sm:$0xff]  ;;  %v11275_v35 = vld [vmem:[#allocation108_spill] sm:$0xff] }
 0x9ed   : > { %5682 = vmatmul.msk.f32.gmra.mxu3 %vm785_vm2, %v2294_v7  ;;  %6456 = vrcp.f32 %v9338_v6 }
 0x9ee   : > { %6458 = vrcp.f32 %v9278_v23 }
 0x9ef   : > { %6460 = vrcp.f32 %v9290_v8 }
 0x9f2   : > { %v6455_v45 = vpop.eup %6454 }
 0x9f3   : > { %v2279_v54 = vmul.f32 %v6455_v45, %v9298_v31  ;;  %v6457_v49 = vpop.eup %6456 }
 0x9f4   : > { %2696 = vrot.lane.b32.xlu1 %v9342_v33, %s6755_s6  ;;  %v6459_v34 = vpop.eup %6458  ;;  %v2280_v23 = vmul.f32 %v6457_v49, %v9063_v24  ;;  %v2455_v6 = vpop.f32.mrf.mxu1 }
 0x9f5   : > { %5667 = vmatmul.msk.f32.gmra.mxu1 %vm785_vm2, %v2279_v54  ;;  %5683 = vmatmul.msk.f32.gmra.mxu3 %vm785_vm2, %v2295_v56  ;;  %v2296_v31 = vmul.f32 %v6459_v34, %v9169_v15  ;;  %v6461_v33 = vpop.eup %6460  ;;  %v2630_v24 = vpop.f32.mrf.mxu3  ;;  %v3238_v15 = vsel %vm785_vm2, %v9426_v59, -inf }
 0x9f6   : > { %v2281_v8 = vmul.f32 %v6461_v33, %v9176_v47  ;;  %v11265_v47 = vld [vmem:[#allocation42_spill] sm:$0xff]  ;;  %v9451_v10 = vpop.f32.mrf.mxu0  ;;  %v11278_v33 = vld [vmem:[#allocation129_spill] sm:$0xff] }
 0x9f7   : > { %v3241_v44 = vsel %vm785_vm2, %v9451_v10, -inf }
 0x9fc   : > { %2702 = vrot.lane.b32.xlu1 %v2452_v27, %s6755_s6  ;;  %v2699_v0 = vpop.permute.xlu2 %2698 }
 0x9fd   : > { %5668 = vmatmul.msk.f32.gmra.mxu1 %vm785_vm2, %v2280_v23  ;;  %5684 = vmatmul.msk.f32.gmra.mxu3 %vm785_vm2, %v2296_v31  ;;  %2789 = vst.msk [vmem:[%s8080_s29 + $0x30] sm:$0xff] %vm2782_vm3, %v2699_v0  ;;  %v11276_v23 = vld [vmem:[#allocation109_spill] sm:$0xff] }
 0x9fe   : > { %2704 = vrot.lane.b32.xlu2 %v2455_v6, %s6755_s6  ;;  %v9466_v63 = vpop.f32.mrf.mxu0  ;;  %v11277_v6 = vld [vmem:[#allocation10_spill] sm:$0xff] }
 0x9ff   : > { %v3244_v14 = vsel %vm785_vm2, %v9466_v63, -inf  ;;  %v6123_v0 = vunpack.i.h.bf16 %v11277_v6 }
 0xa03   : > { %v9459_v40 = vpop.permute.xlu1 %6185 }
 0xa04   : > { %v2695_v42 = vpop.permute.xlu0 %2694 }
 0xa05   : > { %5669 = vmatmul.msk.f32.gmra.mxu1 %vm785_vm2, %v2281_v8  ;;  %2787 = vst.msk [vmem:[%s8080_s29 + $0x20] sm:$0xff] %vm2782_vm3, %v2695_v42  ;;  %v11279_v8 = vld [vmem:[#allocation33_spill] sm:$0xff] }
 0xa06   : > { %2734 = vrot.lane.b32.xlu2 %v2630_v24, %s6755_s6  ;;  %v11280_v24 = vld [vmem:[#allocation7_spill] sm:$0xff] }
 0xa07   : > { %3239 = vmax.xlane.f32.xlu0 %v3238_v15  ;;  %v6118_v42 = vunpack.i.h.bf16 %v11280_v24  ;;  %v6117_v15 = vunpack.i.l.bf16 %v11280_v24 }
 0xa0d   : > { %5710 = vmatmul.msk.f32.vlgmr.msrb.gmra.mxu1 %vm420_vm1, %v11262_v50  ;;  %v11281_v50 = vld [vmem:[#allocation97_spill] sm:$0xff] }
 0xa0e   : > { %5798 = vmatpush.xpose.msk.msrb.mxu1 %vm420_vm1, %v11263_v22 }
 0xa12   : > { %5799 = vmatpush.xpose.msk.msrb.mxu1 %vm420_vm1, %v11264_v41  ;;  %v11282_v41 = vld [vmem:[#allocation104_spill] sm:$0xff] }
 0xa15   : > { %5711 = vmatmul.msk.f32.gmra.mxu1 %vm420_vm1, %v11265_v47 }
 0xa16   : > { %5800 = vmatpush.xpose.msk.msrb.mxu1 %vm420_vm1, %v11266_v36  ;;  %v11283_v36 = vld [vmem:[#allocation4_spill] sm:$0xff] }
 0xa1a   : > { %5801 = vmatpush.xpose.msk.msrb.mxu1 %vm420_vm1, %v11267_v3  ;;  %v6113_v3 = vunpack.i.h.bf16 %v11283_v36 }
 0xa1d   : > { %5712 = vmatmul.msk.f32.gmra.mxu1 %vm420_vm1, %v11268_v62  ;;  %v11284_v62 = vld [vmem:[#allocation76_spill] sm:$0xff] }
 0xa1e   : > { %5802 = vmatpush.xpose.msk.msrb.mxu1 %vm420_vm1, %v11269_v29 }
 0xa22   : > { %5803 = vmatpush.xpose.msk.msrb.mxu1 %vm420_vm1, %v11270_v9  ;;  %v11285_v9 = vld [vmem:[#allocation95_spill] sm:$0xff] }
 0xa25   : > { %5713 = vmatmul.msk.f32.gmra.mxu1 %vm420_vm1, %v11271_v37  ;;  %v2633_v45 = vpop.f32.mrf.mxu3  ;;  %v11286_v37 = vld [vmem:[#allocation14_spill] sm:$0xff] }
 0xa26   : > { %5804 = vmatpush.xpose.msk.msrb.mxu1 %vm420_vm1, %v11272_v20  ;;  %3242 = vmax.xlane.f32.xlu1 %v3241_v44  ;;  %v6108_v44 = vunpack.i.h.bf16 %v11286_v37  ;;  %v6107_v20 = vunpack.i.l.bf16 %v11286_v37 }
 0xa27   : > { %v2458_v19 = vpop.f32.mrf.mxu1 }
 0xa28   : > { %2706 = vrot.lane.b32.xlu0 %v2458_v19, %s6755_s6 }
 0xa2a   : > { %5805 = vmatpush.xpose.msk.msrb.mxu1 %vm420_vm1, %v11273_v53  ;;  %v11287_v53 = vld [vmem:[#allocation98_spill] sm:$0xff] }
 0xa2d   : > { %5714 = vmatmul.msk.f32.gmra.mxu1 %vm420_vm1, %v11274_v48 }
 0xa2e   : > { %v2233_v7 = vpop.xlane.xlu1 %2232 }
 0xa2f   : > { %6462 = vrcp.f32 %v2233_v7  ;;  %3245 = vmax.xlane.f32.xlu2 %v3244_v14  ;;  %v2461_v49 = vpop.f32.mrf.mxu1  ;;  %v11288_v14 = vld [vmem:[#allocation121_spill] sm:$0xff] }
 0xa30   : > { %2736 = vrot.lane.b32.xlu0 %v2633_v45, %s6755_s6  ;;  %v11289_v45 = vld [vmem:[#allocation11_spill] sm:$0xff] }
 0xa35   : > { %v6463_v54 = vpop.eup %6462  ;;  %5715 = vmatmul.msk.f32.gmra.mxu1 %vm420_vm1, %v11275_v35  ;;  %v9520_v35 = vpop.f32.mrf.mxu0 }
 0xa36   : > { %v2188_v56 = vpop.xlane.xlu1 %2187  ;;  %v2297_v27 = vmul.f32 %v6463_v54, %v9373_v5  ;;  %v6122_v5 = vunpack.i.l.bf16 %v11277_v6 }
 0xa37   : > { %6464 = vrcp.f32 %v2188_v56  ;;  %v2464_v22 = vpop.f32.mrf.mxu1  ;;  %v11290_v56 = vld [vmem:[#allocation12_spill] sm:$0xff] }
 0xa38   : > { %5685 = vmatmul.msk.f32.gmra.mxu3 %vm785_vm2, %v2297_v27  ;;  %6466 = vrcp.f32 %v9349_v32 }
 0xa39   : > { %6468 = vrcp.f32 %v9324_v1  ;;  %v6112_v1 = vunpack.i.l.bf16 %v11283_v36  ;;  %v11297_v36 = vld [vmem:[#allocation132_spill] sm:$0xff] }
 0xa3d   : > { %v6465_v34 = vpop.eup %6464  ;;  %5716 = vmatmul.msk.f32.gmra.mxu1 %vm420_vm1, %v11276_v23  ;;  %v11292_v23 = vld [vmem:[#allocation16_spill] sm:$0xff]  ;;  %v9551_v24 = vpop.f32.mrf.mxu0 }
 0xa3e   : > { %v2282_v31 = vmul.f32 %v6465_v34, %v9383_v46  ;;  %v6467_v32 = vpop.eup %6466  ;;  %v2636_v46 = vpop.f32.mrf.mxu3 }
 0xa3f   : > { %2708 = vrot.lane.b32.xlu1 %v2461_v49, %s6755_s6  ;;  %v2283_v47 = vmul.f32 %v6467_v32, %v9080_v21  ;;  %v2197_v29 = vpop.xlane.xlu1 %2196  ;;  %v6469_v21 = vpop.eup %6468  ;;  %v11291_v49 = vld [vmem:[#allocation74_spill] sm:$0xff] }
 0xa40   : > { %5670 = vmatmul.msk.f32.vlgmr.msra.gmra.mxu2 %vm785_vm2, %v2282_v31  ;;  %5742 = vmatmul.msk.f32.vlgmr.msrb.gmra.mxu3 %vm420_vm1, %v11278_v33  ;;  %6470 = vrcp.f32 %v2197_v29  ;;  %v2284_v48 = vmul.f32 %v6469_v21, %v9221_v39  ;;  %v11294_v33 = vld [vmem:[#allocation72_spill] sm:$0xff]  ;;  %v11302_v21 = vld [vmem:[#allocation38_spill] sm:$0xff] }
 0xa41   : > { %3821 = vmatpush.msra.mxu2 %v6123_v0  ;;  %5830 = vmatpush.xpose.msk.msrb.mxu3 %vm420_vm1, %v11279_v8  ;;  %6472 = vrcp.f32 %v9358_v13  ;;  %v3247_v13 = vsel %vm785_vm2, %v9520_v35, -inf }
 0xa42   : > { %6474 = vrcp.f32 %v9335_v51 }
 0xa43   : > { %3822 = vmatpush.msra.mxu2 %v6122_v5 }
 0xa45   : > { %3823 = vmatpush.msra.mxu2 %v6118_v42  ;;  %5831 = vmatpush.xpose.msk.msrb.mxu3 %vm420_vm1, %v11281_v50  ;;  %v3250_v50 = vsel %vm785_vm2, %v9551_v24, -inf }
 0xa46   : > { %5717 = vmatmul.msk.f32.gmra.mxu1 %vm420_vm1, %v11282_v41  ;;  %v2639_v19 = vpop.f32.mrf.mxu3  ;;  %v6471_v54 = vpop.eup %6470 }
 0xa47   : > { %3824 = vmatpush.msra.mxu2 %v6117_v15  ;;  %2710 = vrot.lane.b32.xlu2 %v2464_v22, %s6755_s6  ;;  %v2206_v39 = vpop.xlane.xlu1 %2205  ;;  %v2285_v27 = vmul.f32 %v6471_v54, %v9389_v52  ;;  %v6473_v31 = vpop.eup %6472  ;;  %v11293_v52 = vld [vmem:[#allocation116_spill] sm:$0xff] }
 0xa48   : > { %2738 = vrot.lane.b32.xlu1 %v2636_v46, %s6755_s6  ;;  %5671 = vmatmul.msk.f32.gmra.mxu2 %vm785_vm2, %v2283_v47  ;;  %v2286_v0 = vmul.f32 %v6473_v31, %v9146_v4  ;;  %v6475_v8 = vpop.eup %6474  ;;  %6476 = vrcp.f32 %v2206_v39  ;;  %v11295_v4 = vld [vmem:[#allocation131_spill] sm:$0xff]  ;;  %v9563_v47 = vpop.f32.mrf.mxu0  ;;  %v11308_v54 = vld [vmem:[#allocation96_spill] sm:$0xff] }
 0xa49   : > { %5743 = vmatmul.msk.f32.gmra.mxu3 %vm420_vm1, %v11284_v62  ;;  %3825 = vmatpush.msra.mxu2 %v6113_v3  ;;  %v2287_v32 = vmul.f32 %v6475_v8, %v9240_v18  ;;  %6478 = vrcp.f32 %v9367_v28  ;;  %v11296_v18 = vld [vmem:[#allocation130_spill] sm:$0xff] }
 0xa4a   : > { %5832 = vmatpush.xpose.msk.msrb.mxu3 %vm420_vm1, %v11285_v9  ;;  %v11299_v62 = vld [vmem:[#allocation94_spill] sm:$0xff] }
 0xa4b   : > { %3826 = vmatpush.msra.mxu2 %v6112_v1  ;;  %v11298_v1 = vld [vmem:[#allocation107_spill] sm:$0xff]  ;;  %v11301_v9 = vld [vmem:[#allocation118_spill] sm:$0xff] }
 0xa4d   : > { %3827 = vmatpush.msra.mxu2 %v6108_v44  ;;  %v11303_v44 = vld [vmem:[#allocation35_spill] sm:$0xff] }
 0xa4e   : > { %5833 = vmatpush.xpose.msk.msrb.mxu3 %vm420_vm1, %v11287_v53  ;;  %v6477_v42 = vpop.eup %6476  ;;  %v11305_v53 = vld [vmem:[#allocation43_spill] sm:$0xff] }
 0xa4f   : > { %3828 = vmatpush.msra.mxu2 %v6107_v20  ;;  %v2701_v7 = vpop.permute.xlu0 %2700  ;;  %2740 = vrot.lane.b32.xlu2 %v2639_v19, %s6755_s6  ;;  %v2288_v15 = vmul.f32 %v6477_v42, %v9393_v26  ;;  %v6479_v41 = vpop.eup %6478  ;;  %v3253_v26 = vsel %vm785_vm2, %v9563_v47, -inf  ;;  %v11304_v19 = vld [vmem:[#allocation120_spill] sm:$0xff] }
 0xa50   : > { %2790 = vst.msk [vmem:[%s8080_s29 + $0x38] sm:$0xff] %vm2782_vm3, %v2701_v7  ;;  %5672 = vmatmul.msk.f32.gmra.mxu2 %vm785_vm2, %v2284_v48  ;;  %v2289_v28 = vmul.f32 %v6479_v41, %v9182_v60  ;;  %v11300_v60 = vld [vmem:[#allocation5_spill] sm:$0xff] }
 0xa51   : > { %5744 = vmatmul.msk.f32.gmra.mxu3 %vm420_vm1, %v11288_v14  ;;  %v11306_v7 = vld [vmem:[#allocation93_spill] sm:$0xff] }
 0xa52   : > { %5834 = vmatpush.xpose.msk.msrb.mxu3 %vm420_vm1, %v11289_v45  ;;  %v11307_v45 = vld [vmem:[#allocation110_spill] sm:$0xff] }
 0xa56   : > { %5835 = vmatpush.xpose.msk.msrb.mxu3 %vm420_vm1, %v11290_v56 }
 0xa58   : > { %5673 = vmatmul.msk.f32.gmra.mxu2 %vm785_vm2, %v2285_v27  ;;  %v11309_v27 = vld [vmem:[#allocation6_spill] sm:$0xff] }
 0xa59   : > { %5745 = vmatmul.msk.f32.gmra.mxu3 %vm420_vm1, %v11291_v49  ;;  %v9528_v34 = vpop.xlane.xlu2 %3236  ;;  %v11310_v49 = vld [vmem:[#allocation122_spill] sm:$0xff] }
 0xa5a   : > { %5836 = vmatpush.xpose.msk.msrb.mxu3 %vm420_vm1, %v11292_v23  ;;  %3248 = vmax.xlane.f32.xlu0 %v3247_v13  ;;  %v9608_v13 = vpop.f32.mrf.mxu0 }
 0xa5b   : > { %v3256_v31 = vsel %vm785_vm2, %v9608_v13, -inf }
 0xa5e   : > { %5837 = vmatpush.xpose.msk.msrb.mxu3 %vm420_vm1, %v11293_v52  ;;  %v2691_v6 = vpop.permute.xlu1 %2690  ;;  %v11311_v52 = vld [vmem:[#allocation123_spill] sm:$0xff] }
 0xa5f   : > { %2785 = vst.msk [vmem:[%s8080_s29 + $0x10] sm:$0xff] %vm2782_vm3, %v2691_v6 }
 0xa60   : > { %5674 = vmatmul.msk.f32.gmra.mxu2 %vm785_vm2, %v2286_v0 }
 0xa61   : > { %5746 = vmatmul.msk.f32.gmra.mxu3 %vm420_vm1, %v11294_v33  ;;  %v2705_v5 = vpop.permute.xlu2 %2704  ;;  %v11312_v33 = vld [vmem:[#allocation113_spill] sm:$0xff] }
 0xa62   : > { %2792 = vst.msk [vmem:[%s8080_s29 + $0x48] sm:$0xff] %vm2782_vm3, %v2705_v5 }
 0xa66   : > { %v2697_v51 = vpop.permute.xlu1 %2696 }
 0xa67   : > { %2788 = vst.msk [vmem:[%s8080_s29 + $0x28] sm:$0xff] %vm2782_vm3, %v2697_v51  ;;  %v11313_v51 = vld [vmem:[#allocation124_spill] sm:$0xff] }
 0xa68   : > { %5675 = vmatmul.msk.f32.gmra.mxu2 %vm785_vm2, %v2287_v32 }
 0xa69   : > { %5747 = vmatmul.msk.f32.gmra.mxu3 %vm420_vm1, %v11295_v4  ;;  %v9600_v39 = vpop.permute.xlu2 %2734 }
 0xa6a   : > { %2807 = vst.msk [vmem:[%s8080_s29 + $0xc0] sm:$0xff] %vm2782_vm3, %v9600_v39 }
 0xa6e   : > { %v2703_v46 = vpop.permute.xlu1 %2702 }
 0xa6f   : > { %2791 = vst.msk [vmem:[%s8080_s29 + $0x40] sm:$0xff] %vm2782_vm3, %v2703_v46 }
 0xa70   : > { %5676 = vmatmul.msk.f32.gmra.mxu2 %vm785_vm2, %v2288_v15  ;;  %v2642_v3 = vpop.f32.mrf.mxu3 }
 0xa71   : > { %5748 = vmatmul.msk.f32.gmra.mxu3 %vm420_vm1, %v11296_v18 }
 0xa72   : > { %3251 = vmax.xlane.f32.xlu1 %v3250_v50  ;;  %v2467_v22 = vpop.f32.mrf.mxu1 }
 0xa73   : > { %2712 = vrot.lane.b32.xlu0 %v2467_v22, %s6755_s6 }
 0xa78   : > { %5677 = vmatmul.msk.f32.gmra.mxu2 %vm785_vm2, %v2289_v28  ;;  %3254 = vmax.xlane.f32.xlu2 %v3253_v26  ;;  %v2645_v37 = vpop.f32.mrf.mxu3 }
 0xa79   : > { %5749 = vmatmul.msk.f32.gmra.mxu3 %vm420_vm1, %v11297_v36 }
 0xa7a   : > { %v2470_v29 = vpop.f32.mrf.mxu1  ;;  %v9590_v48 = vpop.xlane.xlu0 %3239 }
 0xa7b   : > { %2742 = vrot.lane.b32.xlu0 %v2642_v3, %s6755_s6 }
 0xa80   : > { %5726 = vmatmul.msk.f32.vlgmr.msrb.gmra.mxu2 %vm420_vm1, %v11298_v1  ;;  %v2648_v14 = vpop.f32.mrf.mxu3 }
 0xa81   : > { %5814 = vmatpush.xpose.msk.msrb.mxu2 %vm420_vm1, %v11299_v62 }
 0xa82   : > { %v2473_v20 = vpop.f32.mrf.mxu1 }
 0xa85   : > { %5815 = vmatpush.xpose.msk.msrb.mxu2 %vm420_vm1, %v11300_v60 }
 0xa88   : > { %5727 = vmatmul.msk.f32.gmra.mxu2 %vm420_vm1, %v11301_v9 }
 0xa89   : > { %5816 = vmatpush.xpose.msk.msrb.mxu2 %vm420_vm1, %v11302_v21 }
 0xa8a   : > { %v9624_v8 = vpop.f32.mrf.mxu1 }
 0xa8b   : > { %2714 = vrot.lane.b32.xlu1 %v2470_v29, %s6755_s6  ;;  %v3259_v4 = vsel %vm785_vm2, %v9624_v8, -inf }
 0xa8d   : > { %5817 = vmatpush.xpose.msk.msrb.mxu2 %vm420_vm1, %v11303_v44 }
 0xa90   : > { %5728 = vmatmul.msk.f32.gmra.mxu2 %vm420_vm1, %v11304_v19  ;;  %2716 = vrot.lane.b32.xlu2 %v2473_v20, %s6755_s6 }
 0xa91   : > { %5818 = vmatpush.xpose.msk.msrb.mxu2 %vm420_vm1, %v11305_v53 }
 0xa92   : > { %v9631_v42 = vpop.f32.mrf.mxu1 }
 0xa93   : > { %2744 = vrot.lane.b32.xlu1 %v2645_v37, %s6755_s6  ;;  %v3262_v46 = vsel %vm785_vm2, %v9631_v42, -inf }
 0xa95   : > { %5819 = vmatpush.xpose.msk.msrb.mxu2 %vm420_vm1, %v11306_v7 }
 0xa98   : > { %5729 = vmatmul.msk.f32.gmra.mxu2 %vm420_vm1, %v11307_v45  ;;  %2746 = vrot.lane.b32.xlu2 %v2648_v14, %s6755_s6 }
 0xa99   : > { %5820 = vmatpush.xpose.msk.msrb.mxu2 %vm420_vm1, %v11308_v54  ;;  %v9616_v6 = vpop.xlane.xlu1 %3242 }
 0xa9a   : > { %v2707_v56 = vpop.permute.xlu0 %2706  ;;  %v9650_v1 = vpop.f32.mrf.mxu1 }
 0xa9b   : > { %2793 = vst.msk [vmem:[%s8080_s29 + $0x50] sm:$0xff] %vm2782_vm3, %v2707_v56  ;;  %v3265_v60 = vsel %vm785_vm2, %v9650_v1, -inf }
 0xa9d   : > { %5821 = vmatpush.xpose.msk.msrb.mxu2 %vm420_vm1, %v11309_v27 }
 0xaa0   : > { %5730 = vmatmul.msk.f32.gmra.mxu2 %vm420_vm1, %v11310_v49 }
 0xaa2   : > { %v9610_v23 = vpop.xlane.xlu2 %3245  ;;  %v9640_v22 = vpop.permute.xlu0 %2736 }
 0xaa3   : > { %v9664_v20 = vpop.f32.mrf.mxu1  ;;  %2808 = vst.msk [vmem:[%s8080_s29 + $0xc8] sm:$0xff] %vm2782_vm3, %v9640_v22 }
 0xaa4   : > { %v3268_v53 = vsel %vm785_vm2, %v9664_v20, -inf }
 0xaa5   : > { %3257 = vmax.xlane.f32.xlu0 %v3256_v31 }
 0xaa8   : > { %5731 = vmatmul.msk.f32.gmra.mxu2 %vm420_vm1, %v11311_v52 }
 0xaaa   : > { %v2711_v0 = vpop.permute.xlu2 %2710 }
 0xaab   : > { %2795 = vst.msk [vmem:[%s8080_s29 + $0x60] sm:$0xff] %vm2782_vm3, %v2711_v0  ;;  %v9672_v14 = vpop.f32.mrf.mxu1 }
 0xaac   : > { %v3271_v56 = vsel %vm785_vm2, %v9672_v14, -inf }
 0xab0   : > { %5732 = vmatmul.msk.f32.gmra.mxu2 %vm420_vm1, %v11312_v33 }
 0xab1   : > { %v2709_v5 = vpop.permute.xlu1 %2708 }
 0xab2   : > { %2794 = vst.msk [vmem:[%s8080_s29 + $0x58] sm:$0xff] %vm2782_vm3, %v2709_v5  ;;  %v9646_v36 = vpop.permute.xlu2 %2740 }
 0xab3   : > { %2810 = vst.msk [vmem:[%s8080_s29 + $0xd8] sm:$0xff] %vm2782_vm3, %v9646_v36 }
 0xab8   : > { %5733 = vmatmul.msk.f32.gmra.mxu2 %vm420_vm1, %v11313_v51 }
 0xaba   : > { %v2739_v29 = vpop.permute.xlu1 %2738 }
 0xabb   : > { %v2651_v32 = vpop.f32.mrf.mxu3  ;;  %2809 = vst.msk [vmem:[%s8080_s29 + $0xd0] sm:$0xff] %vm2782_vm3, %v2739_v29  ;;  %v3332_v29 = vsub.f32 %v9426_v59, %v9590_v48 }
 0xabc   : > { %2748 = vrot.lane.b32.xlu0 %v2651_v32, %s6755_s6  ;;  %v9691_v32 = vpop.f32.mrf.mxu1 }
 0xabd   : > { %3260 = vmax.xlane.f32.xlu1 %v3259_v4 }
 0xac1   : > { %3263 = vmax.xlane.f32.xlu2 %v3262_v46  ;;  %v3274_v46 = vsel %vm785_vm2, %v9691_v32, -inf }
 0xac3   : > { %v2541_v15 = vpop.f32.mrf.mxu2  ;;  %v9636_v18 = vpop.f32.mrf.mxu3 }
 0xac4   : > { %2718 = vrot.lane.b32.xlu0 %v2541_v15, %s6755_s6  ;;  %v3307_v50 = vsel %vm785_vm2, %v9636_v18, -inf }
 0xac9   : > { %3308 = vmax.xlane.f32.xlu2 %v3307_v50 }
 0xacb   : > { %v2544_v41 = vpop.f32.mrf.mxu2 }
 0xacc   : > { %v9656_v9 = vpop.f32.mrf.mxu3 }
 0xacd   : > { %v9643_v28 = vpop.xlane.xlu0 %3248  ;;  %v3310_v44 = vsel %vm785_vm2, %v9656_v9, -inf }
 0xace   : > { %v3335_v59 = vsub.f32 %v9520_v35, %v9643_v28 }
 0xad3   : > { %v2547_v26 = vpop.f32.mrf.mxu2 }
 0xad4   : > { %v9670_v7 = vpop.f32.mrf.mxu3 }
 0xad5   : > { %v3313_v45 = vsel %vm785_vm2, %v9670_v7, -inf }
 0xad6   : > { %2720 = vrot.lane.b32.xlu1 %v2544_v41, %s6755_s6 }
 0xadb   : > { %v2550_v54 = vpop.f32.mrf.mxu2 }
 0xadc   : > { %v9679_v27 = vpop.f32.mrf.mxu3 }
 0xadd   : > { %v3316_v49 = vsel %vm785_vm2, %v9679_v27, -inf }
 0xae1   : > { %2722 = vrot.lane.b32.xlu2 %v2547_v26, %s6755_s6 }
 0xae3   : > { %v2553_v31 = vpop.f32.mrf.mxu2 }
 0xae4   : > { %v9699_v41 = vpop.f32.mrf.mxu3 }
 0xae5   : > { %v2713_v3 = vpop.permute.xlu0 %2712  ;;  %v9660_v37 = vpop.xlane.xlu1 %3251 }
 0xae6   : > { %2796 = vst.msk [vmem:[%s8080_s29 + $0x68] sm:$0xff] %vm2782_vm3, %v2713_v3 }
 0xaeb   : > { %v9652_v62 = vpop.xlane.xlu2 %3254  ;;  %v2556_v33 = vpop.f32.mrf.mxu2 }
 0xaed   : > { %v9683_v52 = vpop.permute.xlu0 %2742 }
 0xaee   : > { %3266 = vmax.xlane.f32.xlu0 %v3265_v60  ;;  %v3319_v60 = vsel %vm785_vm2, %v9699_v41, -inf  ;;  %2811 = vst.msk [vmem:[%s8080_s29 + $0xe0] sm:$0xff] %vm2782_vm3, %v9683_v52 }
 0xaf3   : > { %v2717_v21 = vpop.permute.xlu2 %2716  ;;  %v2559_v4 = vpop.f32.mrf.mxu2 }
 0xaf4   : > { %2798 = vst.msk [vmem:[%s8080_s29 + $0x78] sm:$0xff] %vm2782_vm3, %v2717_v21 }
 0xaf6   : > { %3311 = vmax.xlane.f32.xlu0 %v3310_v44 }
 0xafb   : > { %v9687_v5 = vpop.permute.xlu2 %2746  ;;  %v2562_v3 = vpop.f32.mrf.mxu2 }
 0xafc   : > { %2813 = vst.msk [vmem:[%s8080_s29 + $0xf0] sm:$0xff] %vm2782_vm3, %v9687_v5 }
 0xafd   : > { %v2715_v19 = vpop.permute.xlu1 %2714 }
 0xafe   : > { %2797 = vst.msk [vmem:[%s8080_s29 + $0x70] sm:$0xff] %vm2782_vm3, %v2715_v19 }
 0xb00   : > { %3269 = vmax.xlane.f32.xlu1 %v3268_v53  ;;  %v9712_v53 = vpop.f32.mrf.mxu1 }
 0xb01   : > { %v3277_v39 = vsel %vm785_vm2, %v9712_v53, -inf }
 0xb05   : > { %v9701_v26 = vpop.permute.xlu1 %2744 }
 0xb06   : > { %2812 = vst.msk [vmem:[%s8080_s29 + $0xe8] sm:$0xff] %vm2782_vm3, %v9701_v26 }
 0xb08   : > { %3314 = vmax.xlane.f32.xlu1 %v3313_v45  ;;  %v9714_v45 = vpop.f32.mrf.mxu2 }
 0xb0a   : > { %3272 = vmax.xlane.f32.xlu2 %v3271_v56  ;;  %2724 = vrot.lane.b32.xlu0 %v2550_v54, %s6755_s6  ;;  %v9727_v56 = vpop.f32.mrf.mxu3 }
 0xb12   : > { %3317 = vmax.xlane.f32.xlu2 %v3316_v49  ;;  %v9729_v49 = vpop.f32.mrf.mxu1 }
 0xb13   : > { %v3280_v22 = vsel %vm785_vm2, %v9729_v49, -inf }
 0xb18   : > { %v3258_v0 = vpop.xlane.xlu0 %3257 }
 0xb19   : > { %v3338_v35 = vsub.f32 %v9608_v13, %v3258_v0 }
 0xb21   : > { %2726 = vrot.lane.b32.xlu1 %v2553_v31, %s6755_s6  ;;  %v9731_v31 = vpop.f32.mrf.mxu2 }
 0xb2a   : > { %2728 = vrot.lane.b32.xlu2 %v2556_v33, %s6755_s6  ;;  %v3322_v33 = vsel %vm785_vm2, %v9727_v56, -inf }
 0xb2e   : > { %v9689_v51 = vpop.permute.xlu0 %2748 }
 0xb2f   : > { %2814 = vst.msk [vmem:[%s8080_s29 + $0xf8] sm:$0xff] %vm2782_vm3, %v9689_v51 }
 0xb30   : > { %v9710_v44 = vpop.xlane.xlu1 %3260 }
 0xb34   : > { %v9695_v15 = vpop.xlane.xlu2 %3263  ;;  %3275 = vmax.xlane.f32.xlu0 %v3274_v46  ;;  %v3365_v46 = vmul.f32 1.442695, %v3332_v29 }
 0xb36   : > { %v2719_v50 = vpop.permute.xlu0 %2718  ;;  %6480 = vpow2.f32 %v3365_v46 }
 0xb37   : > { %2799 = vst.msk [vmem:[%s8080_s29 + $0x80] sm:$0xff] %vm2782_vm3, %v2719_v50  ;;  %v9740_v50 = vpop.f32.mrf.mxu3 }
 0xb3c   : > { %v9708_v21 = vpop.xlane.xlu2 %3308  ;;  %3320 = vmax.xlane.f32.xlu0 %v3319_v60  ;;  %v9742_v60 = vpop.f32.mrf.mxu2 }
 0xb44   : > { %v2723_v19 = vpop.permute.xlu2 %2722 }
 0xb45   : > { %2801 = vst.msk [vmem:[%s8080_s29 + $0x90] sm:$0xff] %vm2782_vm3, %v2723_v19  ;;  %v9746_v19 = vpop.eup %6480 }
 0xb46   : > { %v3430_v48 = vsel %vm785_vm2, %v9746_v19, 0.0 }
 0xb48   : > { %v2721_v54 = vpop.permute.xlu1 %2720 }
 0xb49   : > { %2800 = vst.msk [vmem:[%s8080_s29 + $0x88] sm:$0xff] %vm2782_vm3, %v2721_v54  ;;  %v9752_v54 = vpop.f32.mrf.mxu2 }
 0xb4b   : > { %3278 = vmax.xlane.f32.xlu1 %v3277_v39  ;;  %v3371_v39 = vmul.f32 1.442695, %v3335_v59  ;;  %v3377_v59 = vmul.f32 1.442695, %v3338_v35 }
 0xb4d   : > { %6482 = vpow2.f32 %v3371_v39 }
 0xb4e   : > { %6484 = vpow2.f32 %v3377_v59 }
 0xb50   : > { %2730 = vrot.lane.b32.xlu0 %v2559_v4, %s6755_s6  ;;  %v3325_v4 = vsel %vm785_vm2, %v9740_v50, -inf }
 0xb53   : > { %3323 = vmax.xlane.f32.xlu1 %v3322_v33  ;;  %3281 = vmax.xlane.f32.xlu2 %v3280_v22  ;;  %v3289_v33 = vsel %vm785_vm2, %v9742_v60, -inf  ;;  %v9757_v22 = vpop.f32.mrf.mxu2  ;;  %v9759_v46 = vpop.eup %6482 }
 0xb54   : > { %11314 = vst [vmem:[#allocation84_spill] sm:$0xff] %v9759_v46  ;;  %v3439_v28 = vsel %vm785_vm2, %v9759_v46, 0.0 }
 0xb5b   : > { %3326 = vmax.xlane.f32.xlu2 %v3325_v4  ;;  %v9766_v39 = vpop.f32.mrf.mxu2 }
 0xb5c   : > { %v3298_v0 = vsel %vm785_vm2, %v9766_v39, -inf }
 0xb61   : > { %v3267_v29 = vpop.xlane.xlu0 %3266 }
 0xb63   : > { %3431 = vadd.xlane.f32.xlu2 %v3430_v48  ;;  %v9764_v48 = vpop.f32.mrf.mxu3  ;;  %v9833_v52 = vpop.f32.mrf.mxu2 }
 0xb64   : > { %v3328_v13 = vsel %vm785_vm2, %v9764_v48, -inf }
 0xb69   : > { %v3312_v4 = vpop.xlane.xlu0 %3311 }
 0xb6b   : > { %3290 = vmax.xlane.f32.xlu2 %v3289_v33  ;;  %v3341_v33 = vsub.f32 %v9650_v1, %v3267_v29  ;;  %v3283_v29 = vsel %vm785_vm2, %v9714_v45, -inf }
 0xb6c   : > { %2732 = vrot.lane.b32.xlu1 %v2562_v3, %s6755_s6  ;;  %v3333_v3 = vsub.f32 %v9451_v10, %v9616_v6  ;;  %v9782_v10 = vpop.eup %6484  ;;  %v3356_v6 = vsub.f32 %v9656_v9, %v3312_v4 }
 0xb6d   : > { %v3383_v16 = vmul.f32 1.442695, %v3341_v33  ;;  %v3448_v59 = vsel %vm785_vm2, %v9782_v10, 0.0 }
 0xb6e   : > { %v3413_v36 = vmul.f32 1.442695, %v3356_v6 }
 0xb73   : > { %3440 = vadd.xlane.f32.xlu2 %v3439_v28  ;;  %v3367_v28 = vmul.f32 1.442695, %v3333_v3  ;;  %v3270_v1 = vpop.xlane.xlu1 %3269  ;;  %v3331_v3 = vsub.f32 %v9400_v55, %v9528_v34 }
 0xb75   : > { %6486 = vpow2.f32 %v3367_v28  ;;  %v3363_v4 = vmul.f32 1.442695, %v3331_v3  ;;  %v3334_v3 = vsub.f32 %v9466_v63, %v9610_v23  ;;  %v3286_v23 = vsel %vm785_vm2, %v9731_v31, -inf }
 0xb76   : > { %6488 = vpow2.f32 %v3383_v16 }
 0xb77   : > { %6490 = vpow2.f32 %v3413_v36 }
 0xb78   : > { %6492 = vpow2.f32 %v3363_v4  ;;  %v3369_v4 = vmul.f32 1.442695, %v3334_v3 }
 0xb7a   : > { %3329 = vmax.xlane.f32.xlu0 %v3328_v13  ;;  %v3336_v13 = vsub.f32 %v9551_v24, %v9660_v37  ;;  %v3292_v24 = vsel %vm785_vm2, %v9752_v54, -inf }
 0xb7b   : > { %3299 = vmax.xlane.f32.xlu2 %v3298_v0  ;;  %v9793_v16 = vpop.eup %6486  ;;  %v3315_v34 = vpop.xlane.xlu1 %3314 }
 0xb7c   : > { %v2725_v35 = vpop.permute.xlu0 %2724  ;;  %v9795_v9 = vpop.eup %6488  ;;  %v3433_v0 = vsel %vm785_vm2, %v9793_v16, 0.0  ;;  %v3373_v28 = vmul.f32 1.442695, %v3336_v13  ;;  %v3339_v13 = vsub.f32 %v9624_v8, %v9710_v44  ;;  %v3337_v8 = vsub.f32 %v9563_v47, %v9652_v62 }
 0xb7d   : > { %2802 = vst.msk [vmem:[%s8080_s29 + $0x98] sm:$0xff] %vm2782_vm3, %v2725_v35  ;;  %v9777_v46 = vpop.xlane.xlu2 %3272  ;;  %v3457_v55 = vsel %vm785_vm2, %v9795_v9, 0.0  ;;  %v9805_v6 = vpop.eup %6490  ;;  %v3295_v62 = vsel %vm785_vm2, %v9757_v22, -inf }
 0xb7e   : > { %6494 = vpow2.f32 %v3373_v28  ;;  %v9812_v37 = vpop.eup %6492  ;;  %v3379_v63 = vmul.f32 1.442695, %v3339_v13  ;;  %v3301_v28 = vsel %vm785_vm2, %v9833_v52, -inf }
 0xb7f   : > { %v3427_v26 = vsel %vm785_vm2, %v9812_v37, 0.0  ;;  %6496 = vpow2.f32 %v3369_v4 }
 0xb80   : > { %6498 = vpow2.f32 %v3379_v63 }
 0xb82   : > { %3284 = vmax.xlane.f32.xlu0 %v3283_v29  ;;  %v3502_v29 = vsel %vm785_vm2, %v9805_v6, 0.0 }
 0xb83   : > { %3449 = vadd.xlane.f32.xlu2 %v3448_v59 }
 0xb84   : > { %v9825_v36 = vpop.eup %6494 }
 0xb85   : > { %v9791_v33 = vpop.xlane.xlu2 %3317 }
 0xb86   : > { %v3358_v5 = vsub.f32 %v9679_v27, %v9791_v33 }
 0xb8a   : > { %3434 = vadd.xlane.f32.xlu0 %v3433_v0  ;;  %v3442_v0 = vsel %vm785_vm2, %v9825_v36, 0.0 }
 0xb8b   : > { %3458 = vadd.xlane.f32.xlu2 %v3457_v55  ;;  %v3342_v55 = vsub.f32 %v9664_v20, %v3270_v1  ;;  %v3357_v20 = vsub.f32 %v9670_v7, %v3315_v34 }
 0xb8d   : > { %v2729_v35 = vpop.permute.xlu2 %2728  ;;  %v3385_v44 = vmul.f32 1.442695, %v3342_v55  ;;  %v3415_v47 = vmul.f32 1.442695, %v3357_v20 }
 0xb8e   : > { %2804 = vst.msk [vmem:[%s8080_s29 + $0xa8] sm:$0xff] %vm2782_vm3, %v2729_v35  ;;  %v9838_v35 = vpop.eup %6496 }
 0xb8f   : > { %6500 = vpow2.f32 %v3385_v44 }
 0xb92   : > { %3293 = vmax.xlane.f32.xlu0 %v3292_v24  ;;  %v3436_v24 = vsel %vm785_vm2, %v9838_v35, 0.0 }
 0xb93   : > { %v2727_v59 = vpop.permute.xlu1 %2726  ;;  %3503 = vadd.xlane.f32.xlu2 %v3502_v29  ;;  %v9844_v29 = vpop.eup %6498 }
 0xb94   : > { %2803 = vst.msk [vmem:[%s8080_s29 + $0xa0] sm:$0xff] %vm2782_vm3, %v2727_v59  ;;  %v3375_v59 = vmul.f32 1.442695, %v3337_v8 }
 0xb95   : > { %v9852_v13 = vpop.eup %6500 }
 0xb96   : > { %3428 = vadd.xlane.f32.xlu1 %v3427_v26  ;;  %v3451_v26 = vsel %vm785_vm2, %v9844_v29, 0.0  ;;  %6502 = vpow2.f32 %v3375_v59 }
 0xb9a   : > { %3443 = vadd.xlane.f32.xlu0 %v3442_v0 }
 0xb9c   : > { %v9855_v34 = vpop.eup %6502 }
 0xb9e   : > { %3287 = vmax.xlane.f32.xlu1 %v3286_v23 }
 0xba2   : > { %3302 = vmax.xlane.f32.xlu0 %v3301_v28  ;;  %v3340_v28 = vsub.f32 %v9631_v42, %v9695_v15  ;;  %v3355_v15 = vsub.f32 %v9636_v18, %v9708_v21  ;;  %v3343_v18 = vsub.f32 %v9672_v14, %v9777_v46 }
 0xba4   : > { %v3381_v44 = vmul.f32 1.442695, %v3340_v28 }
 0xba6   : > { %3437 = vadd.xlane.f32.xlu1 %v3436_v24 }
 0xba7   : > { %v3276_v3 = vpop.xlane.xlu0 %3275 }
 0xba8   : > { %v3344_v1 = vsub.f32 %v9691_v32, %v3276_v3  ;;  %v3460_v32 = vsel %vm785_vm2, %v9852_v13, 0.0  ;;  %v9873_v3 = vpop.f32.mrf.mxu2 }
 0xba9   : > { %v3304_v20 = vsel %vm785_vm2, %v9873_v3, -inf }
 0xbaa   : > { %v3389_v4 = vmul.f32 1.442695, %v3344_v1  ;;  %3452 = vadd.xlane.f32.xlu0 %v3451_v26 }
 0xbac   : > { %6504 = vpow2.f32 %v3389_v4  ;;  %v3411_v4 = vmul.f32 1.442695, %v3355_v15 }
 0xbad   : > { %6506 = vpow2.f32 %v3415_v47 }
 0xbae   : > { %3296 = vmax.xlane.f32.xlu1 %v3295_v62 }
 0xbaf   : > { %v3321_v0 = vpop.xlane.xlu0 %3320 }
 0xbb0   : > { %v3359_v7 = vsub.f32 %v9699_v41, %v3321_v0  ;;  %v3445_v41 = vsel %vm785_vm2, %v9855_v34, 0.0 }
 0xbb2   : > { %v9859_v63 = vpop.eup %6504  ;;  %v3419_v23 = vmul.f32 1.442695, %v3359_v7  ;;  %3461 = vadd.xlane.f32.xlu0 %v3460_v32 }
 0xbb3   : > { %v3466_v55 = vsel %vm785_vm2, %v9859_v63, 0.0  ;;  %v9867_v8 = vpop.eup %6506 }
 0xbb4   : > { %6508 = vpow2.f32 %v3419_v23  ;;  %3467 = vadd.xlane.f32.xlu2 %v3466_v55  ;;  %v3505_v24 = vsel %vm785_vm2, %v9867_v8, 0.0  ;;  %v3387_v23 = vmul.f32 1.442695, %v3343_v18 }
 0xbb5   : > { %6510 = vpow2.f32 %v3381_v44  ;;  %v3417_v44 = vmul.f32 1.442695, %v3358_v5 }
 0xbb6   : > { %3446 = vadd.xlane.f32.xlu1 %v3445_v41 }
 0xbba   : > { %v9871_v59 = vpop.eup %6508  ;;  %3506 = vadd.xlane.f32.xlu0 %v3505_v24 }
 0xbbb   : > { %v3511_v42 = vsel %vm785_vm2, %v9871_v59, 0.0  ;;  %v9882_v62 = vpop.eup %6510 }
 0xbbc   : > { %3512 = vadd.xlane.f32.xlu2 %v3511_v42  ;;  %v3454_v21 = vsel %vm785_vm2, %v9882_v62, 0.0 }
 0xbbe   : > { %v3279_v1 = vpop.xlane.xlu1 %3278  ;;  %3305 = vmax.xlane.f32.xlu1 %v3304_v20 }
 0xbbf   : > { %v3345_v26 = vsub.f32 %v9712_v53, %v3279_v1 }
 0xbc1   : > { %v3391_v47 = vmul.f32 1.442695, %v3345_v26 }
 0xbc2   : > { %v2731_v0 = vpop.permute.xlu0 %2730 }
 0xbc3   : > { %6512 = vpow2.f32 %v3391_v47  ;;  %2805 = vst.msk [vmem:[%s8080_s29 + $0xb0] sm:$0xff] %vm2782_vm3, %v2731_v0 }
 0xbc4   : > { %6514 = vpow2.f32 %v3411_v4 }
 0xbc6   : > { %3455 = vadd.xlane.f32.xlu1 %v3454_v21  ;;  %v3324_v53 = vpop.xlane.xlu1 %3323  ;;  %v3282_v7 = vpop.xlane.xlu2 %3281 }
 0xbc7   : > { %v3360_v32 = vsub.f32 %v9727_v56, %v3324_v53  ;;  %v3346_v20 = vsub.f32 %v9729_v49, %v3282_v7 }
 0xbc9   : > { %v9894_v55 = vpop.eup %6512  ;;  %v3421_v28 = vmul.f32 1.442695, %v3360_v32  ;;  %v3393_v1 = vmul.f32 1.442695, %v3346_v20 }
 0xbca   : > { %v9896_v41 = vpop.eup %6514  ;;  %v3469_v14 = vsel %vm785_vm2, %v9894_v55, 0.0 }
 0xbcb   : > { %6516 = vpow2.f32 %v3421_v28  ;;  %3470 = vadd.xlane.f32.xlu0 %v3469_v14  ;;  %v3499_v46 = vsel %vm785_vm2, %v9896_v41, 0.0 }
 0xbcc   : > { %6518 = vpow2.f32 %v3387_v23 }
 0xbcd   : > { %6520 = vpow2.f32 %v3417_v44 }
 0xbce   : > { %3500 = vadd.xlane.f32.xlu1 %v3499_v46  ;;  %v3327_v56 = vpop.xlane.xlu2 %3326  ;;  %6522 = vpow2.f32 %v3393_v1 }
 0xbcf   : > { %v3361_v4 = vsub.f32 %v9740_v50, %v3327_v56 }
 0xbd1   : > { %v9904_v24 = vpop.eup %6516  ;;  %v3423_v49 = vmul.f32 1.442695, %v3361_v4 }
 0xbd2   : > { %v9906_v42 = vpop.eup %6518  ;;  %v3514_v15 = vsel %vm785_vm2, %v9904_v24, 0.0 }
 0xbd3   : > { %3515 = vadd.xlane.f32.xlu0 %v3514_v15  ;;  %v3463_v27 = vsel %vm785_vm2, %v9906_v42, 0.0  ;;  %v9913_v26 = vpop.eup %6520  ;;  %6524 = vpow2.f32 %v3423_v49 }
 0xbd4   : > { %v3508_v47 = vsel %vm785_vm2, %v9913_v26, 0.0  ;;  %v9923_v21 = vpop.eup %6522 }
 0xbd5   : > { %v3472_v50 = vsel %vm785_vm2, %v9923_v21, 0.0 }
 0xbd6   : > { %3464 = vadd.xlane.f32.xlu1 %v3463_v27  ;;  %v3432_v33 = vpop.xlane.xlu2 %3431 }
 0xbd9   : > { %v9930_v23 = vpop.eup %6524 }
 0xbda   : > { %v3517_v28 = vsel %vm785_vm2, %v9930_v23, 0.0 }
 0xbde   : > { %3509 = vadd.xlane.f32.xlu1 %v3508_v47  ;;  %v2733_v0 = vpop.permute.xlu1 %2732  ;;  %v3291_v18 = vpop.xlane.xlu2 %3290 }
 0xbdf   : > { %2806 = vst.msk [vmem:[%s8080_s29 + $0xb8] sm:$0xff] %vm2782_vm3, %v2733_v0  ;;  %v3349_v53 = vsub.f32 %v9742_v60, %v3291_v18 }
 0xbe1   : > { %v3399_v32 = vmul.f32 1.442695, %v3349_v53 }
 0xbe3   : > { %6526 = vpow2.f32 %v3399_v32 }
 0xbe6   : > { %3473 = vadd.xlane.f32.xlu1 %v3472_v50  ;;  %v9928_v7 = vpop.xlane.xlu2 %3440 }
 0xbe9   : > { %v9936_v44 = vpop.eup %6526 }
 0xbea   : > { %v3481_v15 = vsel %vm785_vm2, %v9936_v44, 0.0 }
 0xbed   : > { %v3330_v14 = vpop.xlane.xlu0 %3329 }
 0xbee   : > { %3518 = vadd.xlane.f32.xlu1 %v3517_v28  ;;  %v3362_v51 = vsub.f32 %v9764_v48, %v3330_v14  ;;  %v3300_v5 = vpop.xlane.xlu2 %3299 }
 0xbef   : > { %v3352_v60 = vsub.f32 %v9766_v39, %v3300_v5 }
 0xbf0   : > { %v3425_v46 = vmul.f32 1.442695, %v3362_v51 }
 0xbf1   : > { %v3405_v56 = vmul.f32 1.442695, %v3352_v60 }
 0xbf2   : > { %6528 = vpow2.f32 %v3425_v46 }
 0xbf3   : > { %6530 = vpow2.f32 %v3405_v56 }
 0xbf5   : > { %v3285_v20 = vpop.xlane.xlu0 %3284 }
 0xbf6   : > { %3482 = vadd.xlane.f32.xlu1 %v3481_v15  ;;  %v3347_v27 = vsub.f32 %v9714_v45, %v3285_v20 }
 0xbf8   : > { %v9941_v1 = vpop.eup %6528  ;;  %v3395_v4 = vmul.f32 1.442695, %v3347_v27  ;;  %v6167_v27 = vunpack.i.l.bf16 %v9228_v61 }
 0xbf9   : > { %v3520_v48 = vsel %vm785_vm2, %v9941_v1, 0.0  ;;  %v9945_v39 = vpop.eup %6530 }
 0xbfa   : > { %6532 = vpow2.f32 %v3395_v4  ;;  %3521 = vadd.xlane.f32.xlu2 %v3520_v48  ;;  %v3490_v47 = vsel %vm785_vm2, %v9945_v39, 0.0 }
 0xbfd   : > { %v3435_v0 = vpop.xlane.xlu0 %3434 }
 0xbfe   : > { %3491 = vadd.xlane.f32.xlu1 %v3490_v47  ;;  %v6177_v47 = vunpack.i.l.bf16 %v9332_v2 }
 0xc00   : > { %v9949_v18 = vpop.eup %6532 }
 0xc01   : > { %v3475_v45 = vsel %vm785_vm2, %v9949_v18, 0.0 }
 0xc02   : > { %3476 = vadd.xlane.f32.xlu2 %v3475_v45 }
 0xc05   : > { %v3294_v49 = vpop.xlane.xlu0 %3293 }
 0xc06   : > { %v3350_v53 = vsub.f32 %v9752_v54, %v3294_v49  ;;  %v11315_v54 = vld [vmem:[#allocation128_spill] sm:$0xff] }
 0xc07   : > { %v6157_v15 = vunpack.i.l.bf16 %v11315_v54 }
 0xc08   : > { %v3401_v50 = vmul.f32 1.442695, %v3350_v53  ;;  %v6197_v53 = vunpack.i.l.bf16 %v9320_v57 }
 0xc09   : > { %v3429_v32 = vpop.xlane.xlu1 %3428 }
 0xc0a   : > { %6534 = vpow2.f32 %v3401_v50 }
 0xc0b   : > { %6536 = vrcp.f32 %v3429_v32 }
 0xc0c   : > { %6538 = vrcp.f32 %v3432_v33 }
 0xc0d   : > { %v9954_v28 = vpop.xlane.xlu0 %3443 }
 0xc10   : > { %v9956_v14 = vpop.eup %6534 }
 0xc11   : > { %v6537_v51 = vpop.eup %6536  ;;  %v3288_v5 = vpop.xlane.xlu1 %3287  ;;  %v3484_v60 = vsel %vm785_vm2, %v9956_v14, 0.0 }
 0xc12   : > { %v3555_v46 = vmul.f32 %v6537_v51, %v9812_v37  ;;  %v3348_v56 = vsub.f32 %v9731_v31, %v3288_v5  ;;  %3485 = vadd.xlane.f32.xlu2 %v3484_v60  ;;  %v6539_v48 = vpop.eup %6538  ;;  %v6187_v31 = vunpack.i.l.bf16 %v9459_v40  ;;  %v6217_v5 = vunpack.i.l.bf16 %v9316_v30 }
 0xc13   : > { %v3556_v49 = vmul.f32 %v6539_v48, %v9746_v19 }
 0xc14   : > { %v3397_v20 = vmul.f32 1.442695, %v3348_v56  ;;  %5750 = vmatmul.msk.f32.vlgmr.msrb.gmra.mxu0 %vm785_vm2, %v3555_v46 }
 0xc15   : > { %4932 = vmatpush.msrb.mxu0 %v6157_v15  ;;  %v3303_v4 = vpop.xlane.xlu0 %3302 }
 0xc16   : > { %6540 = vpow2.f32 %v3397_v20  ;;  %v3353_v33 = vsub.f32 %v9833_v52, %v3303_v4  ;;  %v6207_v52 = vunpack.i.l.bf16 %v9273_v12 }
 0xc17   : > { %4933 = vmatpush.msrb.mxu0 %v6167_v27  ;;  %6542 = vrcp.f32 %v3435_v0 }
 0xc18   : > { %v3407_v37 = vmul.f32 1.442695, %v3353_v33  ;;  %v6162_v33 = vunpack.i.l.bf16 %v9201_v25 }
 0xc19   : > { %4934 = vmatpush.msrb.mxu0 %v6177_v47  ;;  %v3438_v45 = vpop.xlane.xlu1 %3437  ;;  %v6172_v47 = vunpack.i.l.bf16 %v9266_v38 }
 0xc1a   : > { %6544 = vpow2.f32 %v3407_v37 }
 0xc1b   : > { %4935 = vmatpush.msrb.mxu0 %v6187_v31 }
 0xc1c   : > { %v9970_v50 = vpop.eup %6540  ;;  %5751 = vmatmul.msk.f32.gmra.mxu0 %vm785_vm2, %v3556_v49  ;;  %v6202_v49 = vunpack.i.l.bf16 %v9270_v43 }
 0xc1d   : > { %4936 = vmatpush.msrb.mxu0 %v6197_v53  ;;  %v3478_v32 = vsel %vm785_vm2, %v9970_v50, 0.0  ;;  %v3453_v51 = vpop.xlane.xlu0 %3452  ;;  %v6543_v0 = vpop.eup %6542  ;;  %v6212_v53 = vunpack.i.l.bf16 %v9306_v17 }
 0xc1e   : > { %3479 = vadd.xlane.f32.xlu0 %v3478_v32  ;;  %6546 = vrcp.f32 %v3453_v51  ;;  %v3557_v15 = vmul.f32 %v6543_v0, %v9793_v16  ;;  %v6182_v16 = vunpack.i.l.bf16 %v9397_v11  ;;  %v6218_v32 = vunpack.i.h.bf16 %v9316_v30  ;;  %v11316_v0 = vld [vmem:[#allocation84_spill] sm:$0xff] }
 0xc1f   : > { %4937 = vmatpush.msrb.mxu0 %v6207_v52  ;;  %6548 = vrcp.f32 %v3438_v45  ;;  %v3450_v52 = vpop.xlane.xlu2 %3449 }
 0xc20   : > { %v9977_v19 = vpop.eup %6544 }
 0xc21   : > { %4938 = vmatpush.msrb.mxu0 %v6217_v5  ;;  %v3297_v60 = vpop.xlane.xlu1 %3296  ;;  %v3493_v46 = vsel %vm785_vm2, %v9977_v19, 0.0 }
 0xc22   : > { %v3351_v56 = vsub.f32 %v9757_v22, %v3297_v60  ;;  %3494 = vadd.xlane.f32.xlu2 %v3493_v46 }
 0xc24   : > { %v6547_v20 = vpop.eup %6546  ;;  %v3403_v27 = vmul.f32 1.442695, %v3351_v56  ;;  %5752 = vmatmul.msk.f32.gmra.mxu0 %vm785_vm2, %v3557_v15 }
 0xc25   : > { %v3563_v4 = vmul.f32 %v6547_v20, %v9844_v29  ;;  %v6549_v48 = vpop.eup %6548  ;;  %v6192_v29 = vunpack.i.l.bf16 %v9264_v58 }
 0xc26   : > { %6550 = vpow2.f32 %v3403_v27  ;;  %v3558_v37 = vmul.f32 %v6549_v48, %v9838_v35  ;;  %v3462_v48 = vpop.xlane.xlu0 %3461 }
 0xc27   : > { %5758 = vmatmul.msk.f32.vlgmr.msra.gmra.mxu1 %vm785_vm2, %v3563_v4  ;;  %6552 = vrcp.f32 %v9928_v7  ;;  %v3459_v15 = vpop.xlane.xlu2 %3458 }
 0xc28   : > { %5021 = vmatpush.msra.mxu1 %v6162_v33  ;;  %6554 = vrcp.f32 %v9954_v28 }
 0xc29   : > { %v3447_v22 = vpop.xlane.xlu1 %3446 }
 0xc2a   : > { %5022 = vmatpush.msra.mxu1 %v6172_v47 }
 0xc2c   : > { %v9991_v31 = vpop.eup %6550  ;;  %5753 = vmatmul.msk.f32.gmra.mxu0 %vm785_vm2, %v3558_v37  ;;  %5023 = vmatpush.msra.mxu1 %v6182_v16 }
 0xc2d   : > { %v3487_v45 = vsel %vm785_vm2, %v9991_v31, 0.0  ;;  %v6553_v7 = vpop.eup %6552 }
 0xc2e   : > { %3488 = vadd.xlane.f32.xlu0 %v3487_v45  ;;  %5024 = vmatpush.msra.mxu1 %v6192_v29  ;;  %v3559_v5 = vmul.f32 %v6553_v7, %v11316_v0  ;;  %v6555_v46 = vpop.eup %6554 }
 0xc2f   : > { %v3560_v28 = vmul.f32 %v6555_v46, %v9825_v36  ;;  %v3504_v36 = vpop.xlane.xlu2 %3503  ;;  %v11319_v46 = vld [vmem:[#allocation28_spill] sm:$0xff] }
 0xc30   : > { %5025 = vmatpush.msra.mxu1 %v6202_v49  ;;  %v11317_v49 = vld [vmem:[#allocation126_spill] sm:$0xff] }
 0xc31   : > { %v3306_v35 = vpop.xlane.xlu1 %3305 }
 0xc32   : > { %v3354_v51 = vsub.f32 %v9873_v3, %v3306_v35  ;;  %5026 = vmatpush.msra.mxu1 %v6212_v53  ;;  %v3507_v35 = vpop.xlane.xlu0 %3506 }
 0xc34   : > { %v3409_v60 = vmul.f32 1.442695, %v3354_v51  ;;  %5754 = vmatmul.msk.f32.gmra.mxu0 %vm785_vm2, %v3559_v5  ;;  %5027 = vmatpush.msra.mxu1 %v6218_v32  ;;  %v6183_v5 = vunpack.i.h.bf16 %v9397_v11  ;;  %v6213_v11 = vunpack.i.h.bf16 %v9306_v17 }
 0xc36   : > { %6556 = vpow2.f32 %v3409_v60 }
 0xc37   : > { %6558 = vrcp.f32 %v3447_v22  ;;  %v3468_v60 = vpop.xlane.xlu2 %3467 }
 0xc39   : > { %v3456_v56 = vpop.xlane.xlu1 %3455 }
 0xc3a   : > { %6560 = vrcp.f32 %v3456_v56 }
 0xc3b   : > { %6562 = vrcp.f32 %v3459_v15 }
 0xc3c   : > { %v10005_v20 = vpop.eup %6556  ;;  %5755 = vmatmul.msk.f32.gmra.mxu0 %vm785_vm2, %v3560_v28  ;;  %6564 = vrcp.f32 %v3450_v52 }
 0xc3d   : > { %v3496_v30 = vsel %vm785_vm2, %v10005_v20, 0.0  ;;  %v6559_v3 = vpop.eup %6558 }
 0xc3e   : > { %3497 = vadd.xlane.f32.xlu0 %v3496_v30  ;;  %v3561_v47 = vmul.f32 %v6559_v3, %v9855_v34  ;;  %v11318_v34 = vld [vmem:[#allocation69_spill] sm:$0xff]  ;;  %v11320_v3 = vld [vmem:[#allocation22_spill] sm:$0xff] }
 0xc3f   : > { %v6153_v52 = vunpack.i.h.bf16 %v11318_v34  ;;  %v3513_v30 = vpop.xlane.xlu2 %3512 }
 0xc40   : > { %v6561_v27 = vpop.eup %6560 }
 0xc41   : > { %v3501_v4 = vpop.xlane.xlu1 %3500  ;;  %v3564_v33 = vmul.f32 %v6561_v27, %v9882_v62  ;;  %v6563_v22 = vpop.eup %6562  ;;  %v6148_v62 = vunpack.i.h.bf16 %v11317_v49 }
 0xc42   : > { %6566 = vrcp.f32 %v3501_v4  ;;  %v6565_v16 = vpop.eup %6564  ;;  %v3565_v45 = vmul.f32 %v6563_v22, %v9795_v9  ;;  %v6173_v9 = vunpack.i.h.bf16 %v9266_v38 }
 0xc43   : > { %5759 = vmatmul.msk.f32.gmra.mxu1 %vm785_vm2, %v3564_v33  ;;  %6568 = vrcp.f32 %v3504_v36  ;;  %v3562_v7 = vmul.f32 %v6565_v16, %v9782_v10  ;;  %v11321_v33 = vld [vmem:[#allocation40_spill] sm:$0xff] }
 0xc44   : > { %5756 = vmatmul.msk.f32.gmra.mxu0 %vm785_vm2, %v3561_v47  ;;  %6570 = vrcp.f32 %v3462_v48 }
 0xc45   : > { %6572 = vrcp.f32 %v3507_v35 }
 0xc48   : > { %v6567_v37 = vpop.eup %6566 }
 0xc49   : > { %v3579_v29 = vmul.f32 %v6567_v37, %v9896_v41  ;;  %v3465_v53 = vpop.xlane.xlu1 %3464  ;;  %v6569_v32 = vpop.eup %6568  ;;  %v6163_v41 = vunpack.i.h.bf16 %v9201_v25  ;;  %v6193_v25 = vunpack.i.h.bf16 %v9264_v58 }
 0xc4a   : > { %v6571_v51 = vpop.eup %6570  ;;  %6574 = vrcp.f32 %v3465_v53  ;;  %v3580_v0 = vmul.f32 %v6569_v32, %v9805_v6  ;;  %v3471_v58 = vpop.xlane.xlu0 %3470 }
 0xc4b   : > { %5760 = vmatmul.msk.f32.gmra.mxu1 %vm785_vm2, %v3565_v45  ;;  %5774 = vmatmul.msk.f32.vlgmr.msra.gmra.mxu3 %vm785_vm2, %v3579_v29  ;;  %v3566_v10 = vmul.f32 %v6571_v51, %v9852_v13  ;;  %v6573_v38 = vpop.eup %6572  ;;  %v6203_v13 = vunpack.i.h.bf16 %v9270_v43  ;;  %6576 = vrcp.f32 %v3468_v60  ;;  %v6147_v51 = vunpack.i.l.bf16 %v11317_v49  ;;  %v11330_v60 = vld [vmem:[#allocation59_spill] sm:$0xff] }
 0xc4c   : > { %5757 = vmatmul.msk.f32.gmra.mxu0 %vm785_vm2, %v3562_v7  ;;  %5199 = vmatpush.msra.mxu3 %v6148_v62  ;;  %v3581_v28 = vmul.f32 %v6573_v38, %v9867_v8  ;;  %v6178_v49 = vunpack.i.h.bf16 %v9332_v2 }
 0xc4e   : > { %5200 = vmatpush.msra.mxu3 %v6153_v52  ;;  %v11324_v52 = vld [vmem:[#allocation65_spill] sm:$0xff] }
 0xc50   : > { %5201 = vmatpush.msra.mxu3 %v6163_v41  ;;  %v6575_v15 = vpop.eup %6574  ;;  %v6152_v41 = vunpack.i.l.bf16 %v11318_v34  ;;  %v6188_v34 = vunpack.i.h.bf16 %v9459_v40  ;;  %v11332_v40 = vld [vmem:[#allocation63_spill] sm:$0xff] }
 0xc51   : > { %v3510_v56 = vpop.xlane.xlu1 %3509  ;;  %v3567_v6 = vmul.f32 %v6575_v15, %v9906_v42  ;;  %v6577_v43 = vpop.eup %6576  ;;  %v11333_v15 = vld [vmem:[#allocation70_spill] sm:$0xff] }
 0xc52   : > { %5202 = vmatpush.msra.mxu3 %v6173_v9  ;;  %6578 = vrcp.f32 %v3510_v56  ;;  %v3568_v17 = vmul.f32 %v6577_v43, %v9859_v63  ;;  %v3516_v8 = vpop.xlane.xlu0 %3515  ;;  %v11322_v63 = vld [vmem:[#allocation37_spill] sm:$0xff]  ;;  %v6158_v9 = vunpack.i.h.bf16 %v11315_v54  ;;  %v11328_v54 = vld [vmem:[#allocation71_spill] sm:$0xff] }
 0xc53   : > { %5761 = vmatmul.msk.f32.gmra.mxu1 %vm785_vm2, %v3566_v10  ;;  %5775 = vmatmul.msk.f32.gmra.mxu3 %vm785_vm2, %v3580_v0  ;;  %6580 = vrcp.f32 %v3513_v30  ;;  %v11326_v10 = vld [vmem:[#allocation92_spill] sm:$0xff]  ;;  %v11327_v0 = vld [vmem:[#allocation15_spill] sm:$0xff] }
 0xc54   : > { %5790 = vmatmul.msk.f32.vlgmr.msra.gmra.mxu0 %vm420_vm1, %v11319_v46  ;;  %5203 = vmatpush.msra.mxu3 %v6183_v5  ;;  %6582 = vrcp.f32 %v3471_v58  ;;  %v11329_v5 = vld [vmem:[#allocation34_spill] sm:$0xff]  ;;  %v11336_v30 = vld [vmem:[#allocation115_spill] sm:$0xff] }
 0xc55   : > { %6584 = vrcp.f32 %v3516_v8 }
 0xc56   : > { %5204 = vmatpush.msra.mxu3 %v6193_v25 }
 0xc58   : > { %5205 = vmatpush.msra.mxu3 %v6203_v13  ;;  %v6579_v27 = vpop.eup %6578  ;;  %v11334_v13 = vld [vmem:[#allocation81_spill] sm:$0xff] }
 0xc59   : > { %v3582_v42 = vmul.f32 %v6579_v27, %v9913_v26  ;;  %v3474_v4 = vpop.xlane.xlu1 %3473  ;;  %v6581_v48 = vpop.eup %6580 }
 0xc5a   : > { %5206 = vmatpush.msra.mxu3 %v6213_v11  ;;  %v6583_v47 = vpop.eup %6582  ;;  %6586 = vrcp.f32 %v3474_v4  ;;  %v3583_v22 = vmul.f32 %v6581_v48, %v9871_v59  ;;  %v11323_v59 = vld [vmem:[#allocation18_spill] sm:$0xff] }
 0xc5b   : > { %5762 = vmatmul.msk.f32.gmra.mxu1 %vm785_vm2, %v3567_v6  ;;  %5776 = vmatmul.msk.f32.gmra.mxu3 %vm785_vm2, %v3581_v28  ;;  %v3569_v36 = vmul.f32 %v6583_v47, %v9894_v55  ;;  %v6585_v26 = vpop.eup %6584  ;;  %v11340_v47 = vld [vmem:[#allocation64_spill] sm:$0xff] }
 0xc5c   : > { %5791 = vmatmul.msk.f32.gmra.mxu0 %vm420_vm1, %v11320_v3  ;;  %v3584_v62 = vmul.f32 %v6585_v26, %v9904_v24  ;;  %v11325_v24 = vld [vmem:[#allocation48_spill] sm:$0xff] }
 0xc60   : > { %v6587_v29 = vpop.eup %6586 }
 0xc61   : > { %v3519_v16 = vpop.xlane.xlu1 %3518  ;;  %v3570_v45 = vmul.f32 %v6587_v29, %v9923_v21 }
 0xc62   : > { %6588 = vrcp.f32 %v3519_v16 }
 0xc63   : > { %5763 = vmatmul.msk.f32.gmra.mxu1 %vm785_vm2, %v3568_v17  ;;  %5777 = vmatmul.msk.f32.gmra.mxu3 %vm785_vm2, %v3582_v42  ;;  %v11338_v42 = vld [vmem:[#allocation36_spill] sm:$0xff] }
 0xc64   : > { %5792 = vmatmul.msk.f32.gmra.mxu0 %vm420_vm1, %v11321_v33 }
 0xc68   : > { %v6589_v7 = vpop.eup %6588 }
 0xc69   : > { %v3585_v53 = vmul.f32 %v6589_v7, %v9930_v23  ;;  %v3483_v46 = vpop.xlane.xlu1 %3482 }
 0xc6b   : > { %5764 = vmatmul.msk.f32.gmra.mxu1 %vm785_vm2, %v3569_v36  ;;  %5778 = vmatmul.msk.f32.gmra.mxu3 %vm785_vm2, %v3583_v22 }
 0xc6c   : > { %5793 = vmatmul.msk.f32.gmra.mxu0 %vm420_vm1, %v11322_v63 }
 0xc6d   : > { %v3522_v37 = vpop.xlane.xlu2 %3521 }
 0xc71   : > { %v3492_v4 = vpop.xlane.xlu1 %3491 }
 0xc73   : > { %5765 = vmatmul.msk.f32.gmra.mxu1 %vm785_vm2, %v3570_v45  ;;  %5779 = vmatmul.msk.f32.gmra.mxu3 %vm785_vm2, %v3584_v62 }
 0xc74   : > { %5794 = vmatmul.msk.f32.gmra.mxu0 %vm420_vm1, %v11323_v59 }
 0xc75   : > { %v3477_v55 = vpop.xlane.xlu2 %3476 }
 0xc76   : > { %6590 = vrcp.f32 %v3477_v55 }
 0xc77   : > { %6592 = vrcp.f32 %v3522_v37 }
 0xc7b   : > { %5780 = vmatmul.msk.f32.gmra.mxu3 %vm785_vm2, %v3585_v53  ;;  %5806 = vmatmul.msk.f32.vlgmr.msrb.gmra.mxu1 %vm420_vm1, %v11324_v52  ;;  %v11344_v52 = vld [vmem:[#allocation29_spill] sm:$0xff] }
 0xc7c   : > { %v6591_v21 = vpop.eup %6590  ;;  %5795 = vmatmul.msk.f32.gmra.mxu0 %vm420_vm1, %v11325_v24  ;;  %v11345_v24 = vld [vmem:[#allocation52_spill] sm:$0xff] }
 0xc7d   : > { %v3571_v35 = vmul.f32 %v6591_v21, %v9949_v18  ;;  %v6593_v32 = vpop.eup %6592  ;;  %v6168_v18 = vunpack.i.h.bf16 %v9228_v61  ;;  %v6208_v61 = vunpack.i.h.bf16 %v9273_v12 }
 0xc7e   : > { %v3586_v23 = vmul.f32 %v6593_v32, %v9941_v1  ;;  %v6198_v1 = vunpack.i.h.bf16 %v9320_v57  ;;  %v11331_v57 = vld [vmem:[#allocation56_spill] sm:$0xff] }
 0xc7f   : > { %5766 = vmatmul.msk.f32.vlgmr.msra.gmra.mxu2 %vm785_vm2, %v3571_v35 }
 0xc80   : > { %5110 = vmatpush.msra.mxu2 %v6147_v51  ;;  %v11346_v51 = vld [vmem:[#allocation68_spill] sm:$0xff] }
 0xc82   : > { %5111 = vmatpush.msra.mxu2 %v6152_v41 }
 0xc83   : > { %5781 = vmatmul.msk.f32.gmra.mxu3 %vm785_vm2, %v3586_v23  ;;  %5807 = vmatmul.msk.f32.gmra.mxu1 %vm420_vm1, %v11326_v10 }
 0xc84   : > { %5796 = vmatmul.msk.f32.gmra.mxu0 %vm420_vm1, %v11327_v0  ;;  %5112 = vmatpush.msra.mxu2 %v6158_v9  ;;  %v11347_v9 = vld [vmem:[#allocation51_spill] sm:$0xff]  ;;  %v11348_v0 = vld [vmem:[#allocation112_spill] sm:$0xff] }
 0xc85   : > { %v3486_v11 = vpop.xlane.xlu2 %3485 }
 0xc86   : > { %5113 = vmatpush.msra.mxu2 %v6168_v18 }
 0xc88   : > { %5114 = vmatpush.msra.mxu2 %v6178_v49 }
 0xc8a   : > { %5115 = vmatpush.msra.mxu2 %v6188_v34 }
 0xc8b   : > { %5808 = vmatmul.msk.f32.gmra.mxu1 %vm420_vm1, %v11328_v54  ;;  %5838 = vmatmul.msk.f32.vlgmr.msrb.gmra.mxu3 %vm420_vm1, %v11329_v5  ;;  %v11349_v54 = vld [vmem:[#allocation60_spill] sm:$0xff] }
 0xc8c   : > { %5797 = vmatmul.msk.f32.gmra.mxu0 %vm420_vm1, %v11330_v60  ;;  %5116 = vmatpush.msra.mxu2 %v6198_v1  ;;  %v11350_v60 = vld [vmem:[#allocation21_spill] sm:$0xff] }
 0xc8e   : > { %5117 = vmatpush.msra.mxu2 %v6208_v61 }
 0xc91   : > { %v3652_v2 = vpop.f32.mrf.mxu0  ;;  %v3480_v25 = vpop.xlane.xlu0 %3479 }
 0xc92   : > { %3975 = vrot.lane.b32.xlu1 %v3652_v2, %s6756_s7  ;;  %6594 = vrcp.f32 %v3480_v25 }
 0xc93   : > { %5809 = vmatmul.msk.f32.gmra.mxu1 %vm420_vm1, %v11331_v57  ;;  %5839 = vmatmul.msk.f32.gmra.mxu3 %vm420_vm1, %v11332_v40  ;;  %6596 = vrcp.f32 %v3483_v46 }
 0xc94   : > { %6598 = vrcp.f32 %v3486_v11 }
 0xc95   : > { %v3495_v36 = vpop.xlane.xlu2 %3494 }
 0xc98   : > { %v6595_v38 = vpop.eup %6594 }
 0xc99   : > { %v3655_v12 = vpop.f32.mrf.mxu0  ;;  %v3572_v56 = vmul.f32 %v6595_v38, %v9970_v50  ;;  %v6597_v6 = vpop.eup %6596  ;;  %v11335_v50 = vld [vmem:[#allocation75_spill] sm:$0xff] }
 0xc9a   : > { %3977 = vrot.lane.b32.xlu0 %v3655_v12, %s6756_s7  ;;  %v3573_v58 = vmul.f32 %v6597_v6, %v9936_v44  ;;  %v6599_v43 = vpop.eup %6598  ;;  %v11337_v44 = vld [vmem:[#allocation73_spill] sm:$0xff] }
 0xc9b   : > { %5767 = vmatmul.msk.f32.gmra.mxu2 %vm785_vm2, %v3572_v56  ;;  %5810 = vmatmul.msk.f32.gmra.mxu1 %vm420_vm1, %v11333_v15  ;;  %v3574_v17 = vmul.f32 %v6599_v43, %v9956_v14  ;;  %v11339_v14 = vld [vmem:[#allocation133_spill] sm:$0xff] }
 0xc9c   : > { %5840 = vmatmul.msk.f32.gmra.mxu3 %vm420_vm1, %v11334_v13 }
 0xca1   : > { %v3658_v28 = vpop.f32.mrf.mxu0  ;;  %v3489_v3 = vpop.xlane.xlu0 %3488 }
 0xca2   : > { %3979 = vrot.lane.b32.xlu2 %v3658_v28, %s6756_s7  ;;  %6600 = vrcp.f32 %v3489_v3 }
 0xca3   : > { %5768 = vmatmul.msk.f32.gmra.mxu2 %vm785_vm2, %v3573_v58  ;;  %5811 = vmatmul.msk.f32.gmra.mxu1 %vm420_vm1, %v11335_v50  ;;  %6602 = vrcp.f32 %v3492_v4 }
 0xca4   : > { %5841 = vmatmul.msk.f32.gmra.mxu3 %vm420_vm1, %v11336_v30  ;;  %6604 = vrcp.f32 %v3495_v36  ;;  %v3741_v29 = vpop.f32.mrf.mxu1 }
 0xca8   : > { %v6601_v8 = vpop.eup %6600 }
 0xca9   : > { %v3661_v27 = vpop.f32.mrf.mxu0  ;;  %v3575_v48 = vmul.f32 %v6601_v8, %v9991_v31  ;;  %v6603_v22 = vpop.eup %6602  ;;  %v11341_v31 = vld [vmem:[#allocation82_spill] sm:$0xff] }
 0xcaa   : > { %3981 = vrot.lane.b32.xlu1 %v3661_v27, %s6756_s7  ;;  %v3576_v26 = vmul.f32 %v6603_v22, %v9945_v39  ;;  %v6605_v37 = vpop.eup %6604  ;;  %v11342_v39 = vld [vmem:[#allocation127_spill] sm:$0xff] }
 0xcab   : > { %5769 = vmatmul.msk.f32.gmra.mxu2 %vm785_vm2, %v3574_v17  ;;  %5812 = vmatmul.msk.f32.gmra.mxu1 %vm420_vm1, %v11337_v44  ;;  %v3577_v62 = vmul.f32 %v6605_v37, %v9977_v19  ;;  %v11343_v19 = vld [vmem:[#allocation85_spill] sm:$0xff] }
 0xcac   : > { %5842 = vmatmul.msk.f32.gmra.mxu3 %vm420_vm1, %v11338_v42 }
 0xcb1   : > { %v3664_v33 = vpop.f32.mrf.mxu0  ;;  %v3498_v16 = vpop.xlane.xlu0 %3497 }
 0xcb2   : > { %3983 = vrot.lane.b32.xlu0 %v3664_v33, %s6756_s7  ;;  %6606 = vrcp.f32 %v3498_v16 }
 0xcb3   : > { %5770 = vmatmul.msk.f32.gmra.mxu2 %vm785_vm2, %v3575_v48  ;;  %5813 = vmatmul.msk.f32.gmra.mxu1 %vm420_vm1, %v11339_v14 }
 0xcb4   : > { %5843 = vmatmul.msk.f32.gmra.mxu3 %vm420_vm1, %v11340_v47 }
 0xcb8   : > { %v6607_v59 = vpop.eup %6606 }
 0xcb9   : > { %v3667_v63 = vpop.f32.mrf.mxu0  ;;  %v3578_v7 = vmul.f32 %v6607_v59, %v10005_v20 }
 0xcba   : > { %3985 = vrot.lane.b32.xlu2 %v3667_v63, %s6756_s7 }
 0xcbb   : > { %5771 = vmatmul.msk.f32.gmra.mxu2 %vm785_vm2, %v3576_v26 }
 0xcbc   : > { %5844 = vmatmul.msk.f32.gmra.mxu3 %vm420_vm1, %v11341_v31 }
 0xcc0   : > { %v3744_v41 = vpop.f32.mrf.mxu1 }
 0xcc1   : > { %v3670_v45 = vpop.f32.mrf.mxu0 }
 0xcc2   : > { %3987 = vrot.lane.b32.xlu1 %v3670_v45, %s6756_s7  ;;  %3991 = vrot.lane.b32.xlu2 %v3741_v29, %s6756_s7 }
 0xcc3   : > { %5772 = vmatmul.msk.f32.gmra.mxu2 %vm785_vm2, %v3577_v62 }
 0xcc4   : > { %5845 = vmatmul.msk.f32.gmra.mxu3 %vm420_vm1, %v11342_v39 }
 0xcc8   : > { %v3747_v18 = vpop.f32.mrf.mxu1 }
 0xcc9   : > { %v3673_v55 = vpop.f32.mrf.mxu0 }
 0xcca   : > { %3989 = vrot.lane.b32.xlu0 %v3673_v55, %s6756_s7 }
 0xccb   : > { %5773 = vmatmul.msk.f32.gmra.mxu2 %vm785_vm2, %v3578_v7 }
 0xcce   : > { %v3919_v10 = vpop.f32.mrf.mxu3 }
 0xcd0   : > { %v3750_v1 = vpop.f32.mrf.mxu1 }
 0xcd1   : > { %v10133_v53 = vpop.f32.mrf.mxu0 }
 0xcd2   : > { %v4524_v32 = vsel %vm785_vm2, %v10133_v53, -inf }
 0xcd3   : > { %5822 = vmatmul.msk.f32.vlgmr.msrb.gmra.mxu2 %vm420_vm1, %v11343_v19 }
 0xcd6   : > { %v3922_v34 = vpop.f32.mrf.mxu3 }
 0xcd8   : > { %v3753_v6 = vpop.f32.mrf.mxu1 }
 0xcd9   : > { %v10139_v21 = vpop.f32.mrf.mxu0 }
 0xcda   : > { %v4527_v23 = vsel %vm785_vm2, %v10139_v21, -inf }
 0xcdb   : > { %5823 = vmatmul.msk.f32.gmra.mxu2 %vm420_vm1, %v11344_v52 }
 0xcde   : > { %v3925_v61 = vpop.f32.mrf.mxu3 }
 0xce0   : > { %v3756_v30 = vpop.f32.mrf.mxu1 }
 0xce1   : > { %v10143_v35 = vpop.f32.mrf.mxu0 }
 0xce2   : > { %v4530_v20 = vsel %vm785_vm2, %v10143_v35, -inf }
 0xce3   : > { %5824 = vmatmul.msk.f32.gmra.mxu2 %vm420_vm1, %v11345_v24 }
 0xce6   : > { %v3928_v50 = vpop.f32.mrf.mxu3 }
 0xce8   : > { %v3759_v43 = vpop.f32.mrf.mxu1 }
 0xce9   : > { %v10175_v57 = vpop.f32.mrf.mxu0 }
 0xcea   : > { %v4533_v11 = vsel %vm785_vm2, %v10175_v57, -inf }
 0xceb   : > { %4531 = vmax.xlane.f32.xlu2 %v4530_v20  ;;  %5825 = vmatmul.msk.f32.gmra.mxu2 %vm420_vm1, %v11346_v51 }
 0xcec   : > { %4525 = vmax.xlane.f32.xlu1 %v4524_v32 }
 0xcee   : > { %v3931_v3 = vpop.f32.mrf.mxu3 }
 0xcf0   : > { %v3762_v4 = vpop.f32.mrf.mxu1 }
 0xcf1   : > { %v10183_v12 = vpop.f32.mrf.mxu0 }
 0xcf2   : > { %v4536_v28 = vsel %vm785_vm2, %v10183_v12, -inf }
 0xcf3   : > { %5826 = vmatmul.msk.f32.gmra.mxu2 %vm420_vm1, %v11347_v9 }
 0xcf4   : > { %4528 = vmax.xlane.f32.xlu0 %v4527_v23 }
 0xcf6   : > { %v3934_v27 = vpop.f32.mrf.mxu3 }
 0xcf8   : > { %v10215_v36 = vpop.f32.mrf.mxu1 }
 0xcf9   : > { %v10185_v56 = vpop.f32.mrf.mxu0  ;;  %v4548_v26 = vsel %vm785_vm2, %v10215_v36, -inf }
 0xcfa   : > { %v4539_v15 = vsel %vm785_vm2, %v10185_v56, -inf }
 0xcfb   : > { %5827 = vmatmul.msk.f32.gmra.mxu2 %vm420_vm1, %v11348_v0 }
 0xcfc   : > { %v3980_v49 = vpop.permute.xlu2 %3979 }
 0xcfd   : > { %4074 = vst.msk [vmem:[%s8080_s29 + $0x10] sm:$0xff] %vm4071_vm4, %v3980_v49 }
 0xcfe   : > { %v3937_v42 = vpop.f32.mrf.mxu3 }
 0xd00   : > { %v10240_v55 = vpop.f32.mrf.mxu1 }
 0xd01   : > { %v10209_v33 = vpop.f32.mrf.mxu0  ;;  %v4551_v0 = vsel %vm785_vm2, %v10240_v55, -inf }
 0xd02   : > { %v4542_v37 = vsel %vm785_vm2, %v10209_v33, -inf  ;;  %v3830_v45 = vpop.f32.mrf.mxu2 }
 0xd03   : > { %3997 = vrot.lane.b32.xlu2 %v3750_v1, %s6756_s7  ;;  %5828 = vmatmul.msk.f32.gmra.mxu2 %vm420_vm1, %v11349_v54 }
 0xd04   : > { %v3976_v5 = vpop.permute.xlu1 %3975 }
 0xd05   : > { %4072 = vst.msk [vmem:[%s8080_s29] sm:$0xff] %vm4071_vm4, %v3976_v5  ;;  %3993 = vrot.lane.b32.xlu1 %v3744_v41, %s6756_s7 }
 0xd06   : > { %v3940_v14 = vpop.f32.mrf.mxu3 }
 0xd08   : > { %3995 = vrot.lane.b32.xlu0 %v3747_v18, %s6756_s7  ;;  %v10244_v24 = vpop.f32.mrf.mxu1 }
 0xd09   : > { %v10219_v63 = vpop.f32.mrf.mxu0  ;;  %v4554_v9 = vsel %vm785_vm2, %v10244_v24, -inf }
 0xd0a   : > { %v4545_v31 = vsel %vm785_vm2, %v10219_v63, -inf }
 0xd0b   : > { %4027 = vrot.lane.b32.xlu2 %v3925_v61, %s6756_s7  ;;  %5829 = vmatmul.msk.f32.gmra.mxu2 %vm420_vm1, %v11350_v60 }
 0xd0c   : > { %v3978_v2 = vpop.permute.xlu0 %3977 }
 0xd0d   : > { %4073 = vst.msk [vmem:[%s8080_s29 + $0x8] sm:$0xff] %vm4071_vm4, %v3978_v2  ;;  %4023 = vrot.lane.b32.xlu1 %v3919_v10, %s6756_s7 }
 0xd0e   : > { %v10225_v16 = vpop.f32.mrf.mxu3 }
 0xd0f   : > { %v4596_v29 = vsel %vm785_vm2, %v10225_v16, -inf }
 0xd10   : > { %4025 = vrot.lane.b32.xlu0 %v3922_v34, %s6756_s7  ;;  %v10252_v41 = vpop.f32.mrf.mxu1 }
 0xd11   : > { %v4557_v10 = vsel %vm785_vm2, %v10252_v41, -inf }
 0xd14   : > { %v3986_v25 = vpop.permute.xlu2 %3985 }
 0xd15   : > { %4077 = vst.msk [vmem:[%s8080_s29 + $0x28] sm:$0xff] %vm4071_vm4, %v3986_v25 }
 0xd16   : > { %v10260_v18 = vpop.f32.mrf.mxu3 }
 0xd17   : > { %v4599_v49 = vsel %vm785_vm2, %v10260_v18, -inf }
 0xd18   : > { %v10277_v25 = vpop.f32.mrf.mxu1 }
 0xd1c   : > { %v3982_v40 = vpop.permute.xlu1 %3981  ;;  %v3992_v46 = vpop.permute.xlu2 %3991 }
 0xd1d   : > { %4075 = vst.msk [vmem:[%s8080_s29 + $0x18] sm:$0xff] %vm4071_vm4, %v3982_v40 }
 0xd1e   : > { %4080 = vst.msk [vmem:[%s8080_s29 + $0x40] sm:$0xff] %vm4071_vm4, %v3992_v46  ;;  %v3833_v62 = vpop.f32.mrf.mxu2 }
 0xd1f   : > { %v10266_v1 = vpop.f32.mrf.mxu3 }
 0xd20   : > { %v4602_v54 = vsel %vm785_vm2, %v10266_v1, -inf }
 0xd24   : > { %v3984_v38 = vpop.permute.xlu0 %3983 }
 0xd25   : > { %4076 = vst.msk [vmem:[%s8080_s29 + $0x20] sm:$0xff] %vm4071_vm4, %v3984_v38 }
 0xd26   : > { %v3836_v34 = vpop.f32.mrf.mxu2 }
 0xd2e   : > { %v3839_v5 = vpop.f32.mrf.mxu2 }
 0xd34   : > { %v3988_v13 = vpop.permute.xlu1 %3987  ;;  %4540 = vmax.xlane.f32.xlu2 %v4539_v15  ;;  %v10283_v15 = vpop.f32.mrf.mxu3 }
 0xd35   : > { %4078 = vst.msk [vmem:[%s8080_s29 + $0x30] sm:$0xff] %vm4071_vm4, %v3988_v13 }
 0xd36   : > { %v3842_v60 = vpop.f32.mrf.mxu2 }
 0xd37   : > { %4534 = vmax.xlane.f32.xlu1 %v4533_v11  ;;  %v10287_v11 = vpop.f32.mrf.mxu1 }
 0xd3a   : > { %4537 = vmax.xlane.f32.xlu0 %v4536_v28  ;;  %v4563_v28 = vsel %vm785_vm2, %v10287_v11, -inf }
 0xd3c   : > { %v3990_v58 = vpop.permute.xlu0 %3989 }
 0xd3d   : > { %4079 = vst.msk [vmem:[%s8080_s29 + $0x38] sm:$0xff] %vm4071_vm4, %v3990_v58 }
 0xd4c   : > { %4003 = vrot.lane.b32.xlu2 %v3759_v43, %s6756_s7 }
 0xd4e   : > { %4001 = vrot.lane.b32.xlu0 %v3756_v30, %s6756_s7  ;;  %v10299_v30 = vpop.f32.mrf.mxu3 }
 0xd50   : > { %3999 = vrot.lane.b32.xlu1 %v3753_v6, %s6756_s7 }
 0xd54   : > { %4033 = vrot.lane.b32.xlu2 %v3934_v27, %s6756_s7 }
 0xd56   : > { %4031 = vrot.lane.b32.xlu0 %v3931_v3, %s6756_s7  ;;  %v4608_v3 = vsel %vm785_vm2, %v10299_v30, -inf }
 0xd58   : > { %4029 = vrot.lane.b32.xlu1 %v3928_v50, %s6756_s7 }
 0xd5e   : > { %v10203_v17 = vpop.xlane.xlu2 %4531 }
 0xd5f   : > { %v10207_v8 = vpop.xlane.xlu1 %4525 }
 0xd66   : > { %v3998_v44 = vpop.permute.xlu2 %3997 }
 0xd67   : > { %4083 = vst.msk [vmem:[%s8080_s29 + $0x58] sm:$0xff] %vm4071_vm4, %v3998_v44  ;;  %v10211_v48 = vpop.xlane.xlu0 %4528  ;;  %v4560_v44 = vsel %vm785_vm2, %v10277_v25, -inf }
 0xd6e   : > { %v10235_v39 = vpop.permute.xlu2 %4027 }
 0xd6f   : > { %4098 = vst.msk [vmem:[%s8080_s29 + $0xd0] sm:$0xff] %vm4071_vm4, %v10235_v39 }
 0xd77   : > { %v3994_v47 = vpop.permute.xlu1 %3993 }
 0xd78   : > { %4081 = vst.msk [vmem:[%s8080_s29 + $0x48] sm:$0xff] %vm4071_vm4, %v3994_v47  ;;  %v4605_v47 = vsel %vm785_vm2, %v10283_v15, -inf }
 0xd7a   : > { %v3996_v22 = vpop.permute.xlu0 %3995 }
 0xd7b   : > { %4082 = vst.msk [vmem:[%s8080_s29 + $0x50] sm:$0xff] %vm4071_vm4, %v3996_v22  ;;  %v10317_v22 = vpop.f32.mrf.mxu3 }
 0xd7d   : > { %4549 = vmax.xlane.f32.xlu2 %v4548_v26 }
 0xd7f   : > { %v4024_v52 = vpop.permute.xlu1 %4023 }
 0xd80   : > { %4546 = vmax.xlane.f32.xlu0 %v4545_v31  ;;  %4096 = vst.msk [vmem:[%s8080_s29 + $0xc0] sm:$0xff] %vm4071_vm4, %v4024_v52  ;;  %v4611_v31 = vsel %vm785_vm2, %v10317_v22, -inf }
 0xd82   : > { %4543 = vmax.xlane.f32.xlu1 %v4542_v37  ;;  %v4026_v19 = vpop.permute.xlu0 %4025 }
 0xd83   : > { %4097 = vst.msk [vmem:[%s8080_s29 + $0xc8] sm:$0xff] %vm4071_vm4, %v4026_v19 }
 0xd85   : > { %4597 = vmax.xlane.f32.xlu2 %v4596_v29 }
 0xd94   : > { %4037 = vrot.lane.b32.xlu0 %v3940_v14, %s6756_s7 }
 0xd9b   : > { %4005 = vrot.lane.b32.xlu1 %v3762_v4, %s6756_s7  ;;  %v10311_v4 = vpop.f32.mrf.mxu1 }
 0xd9c   : > { %4007 = vrot.lane.b32.xlu0 %v3830_v45, %s6756_s7  ;;  %v4566_v14 = vsel %vm785_vm2, %v10311_v4, -inf }
 0xd9d   : > { %4009 = vrot.lane.b32.xlu2 %v3833_v62, %s6756_s7 }
 0xda3   : > { %4035 = vrot.lane.b32.xlu1 %v3937_v42, %s6756_s7  ;;  %v3845_v42 = vpop.f32.mrf.mxu2 }
 0xda7   : > { %v10238_v59 = vpop.xlane.xlu2 %4540 }
 0xdaa   : > { %v10248_v32 = vpop.xlane.xlu1 %4534 }
 0xdab   : > { %v3848_v26 = vpop.f32.mrf.mxu2 }
 0xdad   : > { %v10246_v20 = vpop.xlane.xlu0 %4537 }
 0xdaf   : > { %v4004_v7 = vpop.permute.xlu2 %4003 }
 0xdb0   : > { %4086 = vst.msk [vmem:[%s8080_s29 + $0x70] sm:$0xff] %vm4071_vm4, %v4004_v7  ;;  %v10330_v7 = vpop.f32.mrf.mxu3 }
 0xdb3   : > { %v3851_v37 = vpop.f32.mrf.mxu2 }
 0xdb7   : > { %v10272_v61 = vpop.permute.xlu2 %4033 }
 0xdb8   : > { %4101 = vst.msk [vmem:[%s8080_s29 + $0xe8] sm:$0xff] %vm4071_vm4, %v10272_v61 }
 0xdbb   : > { %v10322_v29 = vpop.f32.mrf.mxu2 }
 0xdc0   : > { %v4002_v51 = vpop.permute.xlu0 %4001 }
 0xdc1   : > { %4085 = vst.msk [vmem:[%s8080_s29 + $0x68] sm:$0xff] %vm4071_vm4, %v4002_v51 }
 0xdc2   : > { %v4000_v23 = vpop.permute.xlu1 %3999 }
 0xdc3   : > { %4084 = vst.msk [vmem:[%s8080_s29 + $0x60] sm:$0xff] %vm4071_vm4, %v4000_v23  ;;  %v10328_v62 = vpop.f32.mrf.mxu2  ;;  %v10338_v23 = vpop.f32.mrf.mxu3 }
 0xdc6   : > { %4555 = vmax.xlane.f32.xlu0 %v4554_v9  ;;  %4558 = vmax.xlane.f32.xlu2 %v4557_v10  ;;  %v4622_v9 = vsub.f32 %v10143_v35, %v10203_v17 }
 0xdc8   : > { %v10279_v40 = vpop.permute.xlu0 %4031 }
 0xdc9   : > { %4100 = vst.msk [vmem:[%s8080_s29 + $0xe0] sm:$0xff] %vm4071_vm4, %v10279_v40 }
 0xdca   : > { %v4030_v38 = vpop.permute.xlu1 %4029 }
 0xdcb   : > { %v10334_v52 = vpop.f32.mrf.mxu2  ;;  %4099 = vst.msk [vmem:[%s8080_s29 + $0xd8] sm:$0xff] %vm4071_vm4, %v4030_v38 }
 0xdcd   : > { %4552 = vmax.xlane.f32.xlu1 %v4551_v0 }
 0xdce   : > { %4600 = vmax.xlane.f32.xlu2 %v4599_v49  ;;  %v4617_v49 = vsel %vm785_vm2, %v10338_v23, -inf }
 0xdd6   : > { %4603 = vmax.xlane.f32.xlu2 %v4602_v54 }
 0xdda   : > { %4013 = vrot.lane.b32.xlu0 %v3839_v5, %s6756_s7  ;;  %v4620_v5 = vsub.f32 %v10133_v53, %v10207_v8  ;;  %v10367_v8 = vpop.f32.mrf.mxu1 }
 0xddb   : > { %v4569_v40 = vsel %vm785_vm2, %v10367_v8, -inf }
 0xde6   : > { %4011 = vrot.lane.b32.xlu1 %v3836_v34, %s6756_s7  ;;  %v4656_v34 = vmul.f32 1.442695, %v4622_v9 }
 0xde8   : > { %6608 = vpow2.f32 %v4656_v34 }
 0xdee   : > { %4015 = vrot.lane.b32.xlu2 %v3842_v60, %s6756_s7  ;;  %v10352_v60 = vpop.f32.mrf.mxu2  ;;  %v10365_v53 = vpop.eup %6608 }
 0xdef   : > { %v4581_v39 = vsel %vm785_vm2, %v10352_v60, -inf }
 0xdf0   : > { %v10275_v2 = vpop.xlane.xlu2 %4549 }
 0xdf3   : > { %v10285_v13 = vpop.xlane.xlu0 %4546 }
 0xdf5   : > { %v10295_v58 = vpop.xlane.xlu1 %4543 }
 0xdf6   : > { %v10369_v38 = vpop.f32.mrf.mxu2 }
 0xdf8   : > { %v10281_v46 = vpop.xlane.xlu2 %4597 }
 0xe00   : > { %v4010_v6 = vpop.permute.xlu2 %4009 }
 0xe01   : > { %4089 = vst.msk [vmem:[%s8080_s29 + $0x88] sm:$0xff] %vm4071_vm4, %v4010_v6  ;;  %v4572_v6 = vsel %vm785_vm2, %v10322_v29, -inf }
 0xe04   : > { %4564 = vmax.xlane.f32.xlu0 %v4563_v28  ;;  %v4652_v28 = vmul.f32 1.442695, %v4620_v5 }
 0xe06   : > { %v10297_v50 = vpop.permute.xlu0 %4037  ;;  %6610 = vpow2.f32 %v4652_v28 }
 0xe07   : > { %4103 = vst.msk [vmem:[%s8080_s29 + $0xf8] sm:$0xff] %vm4071_vm4, %v10297_v50 }
 0xe0c   : > { %4609 = vmax.xlane.f32.xlu0 %v4608_v3 }
 0xe0d   : > { %v4006_v43 = vpop.permute.xlu1 %4005 }
 0xe0e   : > { %4087 = vst.msk [vmem:[%s8080_s29 + $0x78] sm:$0xff] %vm4071_vm4, %v4006_v43  ;;  %v4008_v27 = vpop.permute.xlu0 %4007  ;;  %v4621_v43 = vsub.f32 %v10139_v21, %v10211_v48  ;;  %v4628_v48 = vsub.f32 %v10215_v36, %v10275_v2  ;;  %v4575_v36 = vsel %vm785_vm2, %v10328_v62, -inf }
 0xe0f   : > { %4088 = vst.msk [vmem:[%s8080_s29 + $0x80] sm:$0xff] %vm4071_vm4, %v4008_v27  ;;  %v4722_v27 = vsel %vm785_vm2, %v10365_v53, 0.0 }
 0xe10   : > { %4561 = vmax.xlane.f32.xlu1 %v4560_v44  ;;  %v10382_v44 = vpop.eup %6610 }
 0xe11   : > { %v4716_v21 = vsel %vm785_vm2, %v10382_v44, 0.0 }
 0xe15   : > { %v10342_v10 = vpop.permute.xlu1 %4035 }
 0xe16   : > { %4102 = vst.msk [vmem:[%s8080_s29 + $0xf0] sm:$0xff] %vm4071_vm4, %v10342_v10 }
 0xe17   : > { %4567 = vmax.xlane.f32.xlu2 %v4566_v14  ;;  %v4623_v14 = vsub.f32 %v10175_v57, %v10248_v32  ;;  %v4668_v57 = vmul.f32 1.442695, %v4628_v48  ;;  %v4644_v32 = vsub.f32 %v10225_v16, %v10281_v46 }
 0xe18   : > { %4606 = vmax.xlane.f32.xlu1 %v4605_v47  ;;  %v10392_v47 = vpop.f32.mrf.mxu2 }
 0xe19   : > { %v4587_v2 = vsel %vm785_vm2, %v10392_v47, -inf  ;;  %v4700_v9 = vmul.f32 1.442695, %v4644_v32 }
 0xe1f   : > { %4612 = vmax.xlane.f32.xlu2 %v4611_v31  ;;  %v4614_v31 = vsel %vm785_vm2, %v10330_v7, -inf }
 0xe20   : > { %4019 = vrot.lane.b32.xlu0 %v3848_v26, %s6756_s7  ;;  %v4658_v26 = vmul.f32 1.442695, %v4623_v14 }
 0xe31   : > { %4017 = vrot.lane.b32.xlu1 %v3845_v42, %s6756_s7  ;;  %v4654_v42 = vmul.f32 1.442695, %v4621_v43 }
 0xe33   : > { %6612 = vpow2.f32 %v4654_v42 }
 0xe34   : > { %6614 = vpow2.f32 %v4658_v26 }
 0xe35   : > { %6616 = vpow2.f32 %v4668_v57 }
 0xe36   : > { %6618 = vpow2.f32 %v4700_v9  ;;  %v11351_v9 = vld [vmem:[#allocation2_spill] sm:$0xff] }
 0xe37   : > { %4021 = vrot.lane.b32.xlu2 %v3851_v37, %s6756_s7 }
 0xe39   : > { %v10326_v45 = vpop.xlane.xlu2 %4558  ;;  %v10336_v51 = vpop.xlane.xlu0 %4555 }
 0xe3a   : > { %v10398_v37 = vpop.eup %6612  ;;  %v4630_v48 = vsub.f32 %v10244_v24, %v10336_v51 }
 0xe3b   : > { %v10406_v34 = vpop.eup %6614 }
 0xe3c   : > { %v10410_v16 = vpop.eup %6616  ;;  %v4725_v46 = vsel %vm785_vm2, %v10406_v34, 0.0  ;;  %v4672_v26 = vmul.f32 1.442695, %v4630_v48 }
 0xe3d   : > { %v10420_v28 = vpop.eup %6618 }
 0xe40   : > { %v10356_v35 = vpop.xlane.xlu1 %4552 }
 0xe41   : > { %v10332_v19 = vpop.xlane.xlu2 %4600 }
 0xe42   : > { %v4645_v5 = vsub.f32 %v10260_v18, %v10332_v19  ;;  %v4629_v18 = vsub.f32 %v10240_v55, %v10356_v35 }
 0xe44   : > { %v4670_v42 = vmul.f32 1.442695, %v4629_v18 }
 0xe49   : > { %v10344_v0 = vpop.xlane.xlu2 %4603 }
 0xe4a   : > { %4618 = vmax.xlane.f32.xlu0 %v4617_v49  ;;  %v4719_v49 = vsel %vm785_vm2, %v10398_v37, 0.0 }
 0xe4c   : > { %v4014_v54 = vpop.permute.xlu0 %4013 }
 0xe4d   : > { %4091 = vst.msk [vmem:[%s8080_s29 + $0x98] sm:$0xff] %vm4071_vm4, %v4014_v54  ;;  %v10408_v54 = vpop.f32.mrf.mxu2 }
 0xe4e   : > { %v4590_v55 = vsel %vm785_vm2, %v10408_v54, -inf }
 0xe51   : > { %v4016_v17 = vpop.permute.xlu2 %4015 }
 0xe52   : > { %4092 = vst.msk [vmem:[%s8080_s29 + $0xa0] sm:$0xff] %vm4071_vm4, %v4016_v17  ;;  %4573 = vmax.xlane.f32.xlu0 %v4572_v6  ;;  %v4740_v17 = vsel %vm785_vm2, %v10410_v16, 0.0  ;;  %v4578_v6 = vsel %vm785_vm2, %v10334_v52, -inf }
 0xe55   : > { %v10422_v43 = vpop.f32.mrf.mxu2 }
 0xe56   : > { %v4593_v19 = vsel %vm785_vm2, %v10422_v43, -inf }
 0xe58   : > { %v4012_v3 = vpop.permute.xlu1 %4011 }
 0xe59   : > { %4090 = vst.msk [vmem:[%s8080_s29 + $0x90] sm:$0xff] %vm4071_vm4, %v4012_v3  ;;  %v4702_v3 = vmul.f32 1.442695, %v4645_v5 }
 0xe5a   : > { %4723 = vadd.xlane.f32.xlu0 %v4722_v27  ;;  %v4788_v27 = vsel %vm785_vm2, %v10420_v28, 0.0 }
 0xe5b   : > { %4570 = vmax.xlane.f32.xlu1 %v4569_v40  ;;  %6620 = vpow2.f32 %v4702_v3  ;;  %v4584_v40 = vsel %vm785_vm2, %v10369_v38, -inf }
 0xe5c   : > { %6622 = vpow2.f32 %v4670_v42  ;;  %v4646_v42 = vsub.f32 %v10266_v1, %v10344_v0 }
 0xe5d   : > { %6624 = vpow2.f32 %v4672_v26  ;;  %v4626_v26 = vsub.f32 %v10209_v33, %v10295_v58 }
 0xe5e   : > { %v4704_v48 = vmul.f32 1.442695, %v4646_v42 }
 0xe60   : > { %4717 = vadd.xlane.f32.xlu2 %v4716_v21 }
 0xe61   : > { %v10432_v14 = vpop.eup %6620 }
 0xe62   : > { %4582 = vmax.xlane.f32.xlu0 %v4581_v39  ;;  %v4791_v39 = vsel %vm785_vm2, %v10432_v14, 0.0 }
 0xe63   : > { %4615 = vmax.xlane.f32.xlu1 %v4614_v31  ;;  %v10442_v31 = vpop.eup %6622 }
 0xe64   : > { %v4743_v24 = vsel %vm785_vm2, %v10442_v31, 0.0  ;;  %v10453_v5 = vpop.eup %6624 }
 0xe68   : > { %4576 = vmax.xlane.f32.xlu2 %v4575_v36 }
 0xe6a   : > { %4588 = vmax.xlane.f32.xlu0 %v4587_v2 }
 0xe6b   : > { %4720 = vadd.xlane.f32.xlu1 %v4719_v49  ;;  %v11352_v49 = vld [vmem:[#allocation13_spill] sm:$0xff] }
 0xe70   : > { %4726 = vadd.xlane.f32.xlu2 %v4725_v46  ;;  %v6219_v46 = vpack.i.bf16 %v11352_v49, %v11351_v9 }
 0xe72   : > { %4741 = vadd.xlane.f32.xlu0 %v4740_v17  ;;  %v4624_v17 = vsub.f32 %v10183_v12, %v10246_v20 }
 0xe73   : > { %4579 = vmax.xlane.f32.xlu1 %v4578_v6 }
 0xe77   : > { %v4565_v21 = vpop.xlane.xlu0 %4564 }
 0xe78   : > { %4789 = vadd.xlane.f32.xlu2 %v4788_v27  ;;  %v4660_v27 = vmul.f32 1.442695, %v4624_v17 }
 0xe7a   : > { %4594 = vmax.xlane.f32.xlu0 %v4593_v19 }
 0xe7b   : > { %4585 = vmax.xlane.f32.xlu1 %v4584_v40 }
 0xe7f   : > { %v10444_v57 = vpop.xlane.xlu0 %4609 }
 0xe82   : > { %4792 = vadd.xlane.f32.xlu0 %v4791_v39  ;;  %v4633_v39 = vsub.f32 %v10287_v11, %v4565_v21 }
 0xe83   : > { %v10440_v35 = vpop.xlane.xlu1 %4561  ;;  %4591 = vmax.xlane.f32.xlu1 %v4590_v55 }
 0xe84   : > { %v4678_v50 = vmul.f32 1.442695, %v4633_v39 }
 0xe8a   : > { %v10446_v32 = vpop.xlane.xlu2 %4567 }
 0xe8b   : > { %v4607_v51 = vpop.xlane.xlu1 %4606  ;;  %4744 = vadd.xlane.f32.xlu1 %v4743_v24 }
 0xe8c   : > { %v4647_v36 = vsub.f32 %v10283_v15, %v4607_v51  ;;  %v4746_v15 = vsel %vm785_vm2, %v10453_v5, 0.0  ;;  %v4664_v51 = vmul.f32 1.442695, %v4626_v26 }
 0xe8e   : > { %v4706_v2 = vmul.f32 1.442695, %v4647_v36 }
 0xe90   : > { %6220 = vrot.lane.b32.xlu2 %v6219_v46, %s6754_s5  ;;  %6626 = vpow2.f32 %v4706_v2  ;;  %v4631_v2 = vsub.f32 %v10252_v41, %v10326_v45 }
 0xe91   : > { %6628 = vpow2.f32 %v4660_v27 }
 0xe92   : > { %v10458_v6 = vpop.xlane.xlu2 %4612  ;;  %v4020_v3 = vpop.permute.xlu0 %4019  ;;  %6630 = vpow2.f32 %v4704_v48 }
 0xe93   : > { %4094 = vst.msk [vmem:[%s8080_s29 + $0xb0] sm:$0xff] %vm4071_vm4, %v4020_v3  ;;  %4747 = vadd.xlane.f32.xlu1 %v4746_v15  ;;  %6632 = vpow2.f32 %v4678_v50 }
 0xe94   : > { %6634 = vpow2.f32 %v4664_v51 }
 0xe96   : > { %v10467_v18 = vpop.eup %6626 }
 0xe97   : > { %v4797_v20 = vsel %vm785_vm2, %v10467_v18, 0.0  ;;  %v10476_v19 = vpop.eup %6628 }
 0xe98   : > { %v4728_v40 = vsel %vm785_vm2, %v10476_v19, 0.0  ;;  %v10488_v55 = vpop.eup %6630 }
 0xe99   : > { %v4794_v24 = vsel %vm785_vm2, %v10488_v55, 0.0  ;;  %v10494_v61 = vpop.eup %6632 }
 0xe9a   : > { %v4022_v12 = vpop.permute.xlu2 %4021  ;;  %v4755_v11 = vsel %vm785_vm2, %v10494_v61, 0.0  ;;  %v10499_v21 = vpop.eup %6634 }
 0xe9b   : > { %4095 = vst.msk [vmem:[%s8080_s29 + $0xb8] sm:$0xff] %vm4071_vm4, %v4022_v12  ;;  %4798 = vadd.xlane.f32.xlu1 %v4797_v20  ;;  %v4734_v49 = vsel %vm785_vm2, %v10499_v21, 0.0 }
 0xea3   : > { %v4018_v10 = vpop.permute.xlu1 %4017  ;;  %4729 = vadd.xlane.f32.xlu1 %v4728_v40 }
 0xea4   : > { %4093 = vst.msk [vmem:[%s8080_s29 + $0xa8] sm:$0xff] %vm4071_vm4, %v4018_v10 }
 0xeb9   : > { %4795 = vadd.xlane.f32.xlu2 %v4794_v24 }
 0xebd   : > { %v4619_v36 = vpop.xlane.xlu0 %4618 }
 0xebe   : > { %v4651_v1 = vsub.f32 %v10338_v23, %v4619_v36  ;;  %v4674_v23 = vmul.f32 1.442695, %v4631_v2  ;;  %v4632_v36 = vsub.f32 %v10277_v25, %v10440_v35  ;;  %v4649_v25 = vsub.f32 %v10317_v22, %v10458_v6 }
 0xebf   : > { %v4625_v35 = vsub.f32 %v10185_v56, %v10238_v59 }
 0xec0   : > { %v4714_v0 = vmul.f32 1.442695, %v4651_v1 }
 0xec1   : > { %4756 = vadd.xlane.f32.xlu2 %v4755_v11  ;;  %v4676_v11 = vmul.f32 1.442695, %v4632_v36 }
 0xec2   : > { %6636 = vpow2.f32 %v4714_v0 }
 0xec5   : > { %v4574_v33 = vpop.xlane.xlu0 %4573 }
 0xec6   : > { %v4636_v58 = vsub.f32 %v10322_v29, %v4574_v33  ;;  %v4648_v29 = vsub.f32 %v10299_v30, %v10444_v57 }
 0xec8   : > { %v4684_v9 = vmul.f32 1.442695, %v4636_v58  ;;  %v10506_v46 = vpop.eup %6636  ;;  %v4708_v12 = vmul.f32 1.442695, %v4648_v29  ;;  %v4710_v29 = vmul.f32 1.442695, %v4649_v25 }
 0xec9   : > { %4735 = vadd.xlane.f32.xlu2 %v4734_v49  ;;  %v4809_v41 = vsel %vm785_vm2, %v10506_v46, 0.0 }
 0xeca   : > { %6638 = vpow2.f32 %v4684_v9 }
 0xecb   : > { %6640 = vpow2.f32 %v4674_v23 }
 0xecc   : > { %6642 = vpow2.f32 %v4708_v12 }
 0xecd   : > { %v10508_v17 = vpop.xlane.xlu0 %4723 }
 0xece   : > { %v10510_v3 = vpop.xlane.xlu1 %4570 }
 0xed0   : > { %v10512_v15 = vpop.eup %6638 }
 0xed1   : > { %4810 = vadd.xlane.f32.xlu2 %v4809_v41  ;;  %v4764_v45 = vsel %vm785_vm2, %v10512_v15, 0.0  ;;  %v10520_v40 = vpop.eup %6640  ;;  %v4662_v41 = vmul.f32 1.442695, %v4625_v35 }
 0xed2   : > { %4765 = vadd.xlane.f32.xlu0 %v4764_v45  ;;  %v4749_v30 = vsel %vm785_vm2, %v10520_v40, 0.0  ;;  %v10530_v26 = vpop.eup %6642 }
 0xed3   : > { %v4718_v27 = vpop.xlane.xlu2 %4717 }
 0xed5   : > { %v4583_v20 = vpop.xlane.xlu0 %4582 }
 0xed6   : > { %v10522_v10 = vpop.xlane.xlu1 %4615  ;;  %v4639_v42 = vsub.f32 %v10352_v60, %v4583_v20  ;;  %v4800_v60 = vsel %vm785_vm2, %v10530_v26, 0.0 }
 0xed8   : > { %v4690_v57 = vmul.f32 1.442695, %v4639_v42 }
 0xeda   : > { %4750 = vadd.xlane.f32.xlu0 %v4749_v30  ;;  %6644 = vpow2.f32 %v4690_v57 }
 0xedb   : > { %v4577_v48 = vpop.xlane.xlu2 %4576 }
 0xedc   : > { %v4637_v39 = vsub.f32 %v10328_v62, %v4577_v48 }
 0xedd   : > { %v10528_v50 = vpop.xlane.xlu0 %4588 }
 0xede   : > { %v4686_v24 = vmul.f32 1.442695, %v4637_v39  ;;  %v4721_v51 = vpop.xlane.xlu1 %4720 }
 0xee0   : > { %6646 = vpow2.f32 %v4686_v24  ;;  %v10538_v0 = vpop.eup %6644 }
 0xee1   : > { %6648 = vpow2.f32 %v4676_v11  ;;  %v4773_v23 = vsel %vm785_vm2, %v10538_v0, 0.0 }
 0xee2   : > { %4801 = vadd.xlane.f32.xlu0 %v4800_v60  ;;  %6650 = vrcp.f32 %v4718_v27 }
 0xee3   : > { %v10536_v1 = vpop.xlane.xlu2 %4726 }
 0xee5   : > { %v4742_v62 = vpop.xlane.xlu0 %4741 }
 0xee6   : > { %v10540_v33 = vpop.eup %6646  ;;  %v4580_v58 = vpop.xlane.xlu1 %4579  ;;  %6652 = vrcp.f32 %v4742_v62 }
 0xee7   : > { %v4638_v2 = vsub.f32 %v10334_v52, %v4580_v58  ;;  %v4767_v9 = vsel %vm785_vm2, %v10540_v33, 0.0  ;;  %v10553_v12 = vpop.eup %6648 }
 0xee8   : > { %4768 = vadd.xlane.f32.xlu1 %v4767_v9  ;;  %v6651_v6 = vpop.eup %6650  ;;  %v4752_v27 = vsel %vm785_vm2, %v10553_v12, 0.0 }
 0xee9   : > { %v4688_v49 = vmul.f32 1.442695, %v4638_v2  ;;  %v4844_v36 = vmul.f32 %v6651_v6, %v10382_v44  ;;  %v4634_v44 = vsub.f32 %v10311_v4, %v10446_v32 }
 0xeea   : > { %4774 = vadd.xlane.f32.xlu0 %v4773_v23 }
 0xeeb   : > { %6654 = vpow2.f32 %v4688_v49  ;;  %v4790_v52 = vpop.xlane.xlu2 %4789  ;;  %v4680_v49 = vmul.f32 1.442695, %v4634_v44 }
 0xeec   : > { %6656 = vrcp.f32 %v4790_v52  ;;  %v6653_v20 = vpop.eup %6652  ;;  %v4627_v52 = vsub.f32 %v10219_v63, %v10285_v13 }
 0xeed   : > { %v10551_v45 = vpop.xlane.xlu0 %4594  ;;  %6658 = vpow2.f32 %v4710_v29  ;;  %v4852_v60 = vmul.f32 %v6653_v20, %v10410_v16  ;;  %v4641_v16 = vsub.f32 %v10392_v47, %v10528_v50 }
 0xeee   : > { %v4586_v22 = vpop.xlane.xlu1 %4585  ;;  %6660 = vpow2.f32 %v4662_v41 }
 0xeef   : > { %v4640_v59 = vsub.f32 %v10369_v38, %v4586_v22  ;;  %6662 = vrcp.f32 %v4721_v51  ;;  %v4694_v4 = vmul.f32 1.442695, %v4641_v16  ;;  %v4666_v22 = vmul.f32 1.442695, %v4627_v52 }
 0xef1   : > { %v10555_v56 = vpop.eup %6654  ;;  %v4692_v38 = vmul.f32 1.442695, %v4640_v59 }
 0xef2   : > { %v6657_v42 = vpop.eup %6656  ;;  %4753 = vadd.xlane.f32.xlu0 %v4752_v27  ;;  %v4770_v30 = vsel %vm785_vm2, %v10555_v56, 0.0 }
 0xef3   : > { %v4868_v57 = vmul.f32 %v6657_v42, %v10420_v28  ;;  %v6221_v48 = vpop.permute.xlu2 %6220  ;;  %4771 = vadd.xlane.f32.xlu1 %v4770_v30  ;;  %v10566_v62 = vpop.eup %6658 }
 0xef4   : > { %v6223_v39 = vunpack.i.h.bf16 %v6221_v48  ;;  %v6222_v24 = vunpack.i.l.bf16 %v6221_v48  ;;  %v10568_v28 = vpop.eup %6660  ;;  %v4803_v9 = vsel %vm785_vm2, %v10566_v62, 0.0 }
 0xef5   : > { %5870 = vmatmul.msk.f32.vlgmr.msra.gmra.mxu3 %vm785_vm2, %v4868_v57  ;;  %v4793_v11 = vpop.xlane.xlu0 %4792  ;;  %v6663_v25 = vpop.eup %6662 }
 0xef6   : > { %6664 = vrcp.f32 %v4793_v11  ;;  %4939 = vmatpush.msrb.mxu0 %v6222_v24  ;;  %5028 = vmatpush.msra.mxu1 %v6223_v39  ;;  %v4592_v58 = vpop.xlane.xlu1 %4591  ;;  %v4845_v32 = vmul.f32 %v6663_v25, %v10398_v37 }
 0xef7   : > { %v4642_v51 = vsub.f32 %v10408_v54, %v4592_v58  ;;  %5846 = vmatmul.msk.f32.vlgmr.msrb.gmra.mxu0 %vm785_vm2, %v4844_v36  ;;  %5854 = vmatmul.msk.f32.vlgmr.msra.gmra.mxu1 %vm785_vm2, %v4852_v60  ;;  %6666 = vpow2.f32 %v4692_v38  ;;  %v4731_v54 = vsel %vm785_vm2, %v10568_v28, 0.0 }
 0xef9   : > { %v4696_v2 = vmul.f32 1.442695, %v4642_v51 }
 0xefa   : > { %4804 = vadd.xlane.f32.xlu0 %v4803_v9 }
 0xefb   : > { %6668 = vpow2.f32 %v4696_v2  ;;  %4732 = vadd.xlane.f32.xlu1 %v4731_v54 }
 0xefc   : > { %v6665_v35 = vpop.eup %6664  ;;  %6670 = vrcp.f32 %v10508_v17  ;;  %v4650_v17 = vsub.f32 %v10330_v7, %v10522_v10 }
 0xefd   : > { %v4869_v47 = vmul.f32 %v6665_v35, %v10432_v14  ;;  %v10584_v23 = vpop.eup %6666 }
 0xefe   : > { %v4745_v50 = vpop.xlane.xlu1 %4744  ;;  %v4776_v14 = vsel %vm785_vm2, %v10584_v23, 0.0  ;;  %v4712_v13 = vmul.f32 1.442695, %v4650_v17 }
 0xeff   : > { %6672 = vrcp.f32 %v4745_v50  ;;  %5847 = vmatmul.msk.f32.gmra.mxu0 %vm785_vm2, %v4845_v32  ;;  %5871 = vmatmul.msk.f32.gmra.mxu3 %vm785_vm2, %v4869_v47 }
 0xf00   : > { %6674 = vpow2.f32 %v4680_v49 }
 0xf01   : > { %v10590_v29 = vpop.eup %6668  ;;  %6676 = vpow2.f32 %v4694_v4 }
 0xf02   : > { %v6671_v37 = vpop.eup %6670  ;;  %v4782_v41 = vsel %vm785_vm2, %v10590_v29, 0.0  ;;  %6678 = vrcp.f32 %v10536_v1  ;;  %v4643_v1 = vsub.f32 %v10422_v43, %v10551_v45  ;;  %v4635_v43 = vsub.f32 %v10367_v8, %v10510_v3 }
 0xf03   : > { %4777 = vadd.xlane.f32.xlu1 %v4776_v14  ;;  %4783 = vadd.xlane.f32.xlu0 %v4782_v41  ;;  %v4846_v6 = vmul.f32 %v6671_v37, %v10365_v53 }
 0xf04   : > { %v4698_v30 = vmul.f32 1.442695, %v4643_v1  ;;  %v4682_v60 = vmul.f32 1.442695, %v4635_v43 }
 0xf05   : > { %v6673_v63 = vpop.eup %6672 }
 0xf06   : > { %v10600_v20 = vpop.eup %6674  ;;  %v4748_v7 = vpop.xlane.xlu1 %4747  ;;  %v4853_v10 = vmul.f32 %v6673_v63, %v10442_v31 }
 0xf07   : > { %v10603_v59 = vpop.eup %6676  ;;  %6680 = vrcp.f32 %v4748_v7  ;;  %5848 = vmatmul.msk.f32.gmra.mxu0 %vm785_vm2, %v4846_v6  ;;  %v4758_v53 = vsel %vm785_vm2, %v10600_v20, 0.0 }
 0xf08   : > { %6682 = vpow2.f32 %v4666_v22  ;;  %5855 = vmatmul.msk.f32.gmra.mxu1 %vm785_vm2, %v4853_v10  ;;  %v6679_v27 = vpop.eup %6678  ;;  %v4779_v42 = vsel %vm785_vm2, %v10603_v59, 0.0 }
 0xf09   : > { %6684 = vpow2.f32 %v4712_v13  ;;  %v4847_v57 = vmul.f32 %v6679_v27, %v10406_v34 }
 0xf0a   : > { %6686 = vpow2.f32 %v4698_v30 }
 0xf0b   : > { %4759 = vadd.xlane.f32.xlu0 %v4758_v53  ;;  %4780 = vadd.xlane.f32.xlu1 %v4779_v42 }
 0xf0d   : > { %v6681_v31 = vpop.eup %6680 }
 0xf0e   : > { %v10614_v48 = vpop.eup %6682  ;;  %v4799_v39 = vpop.xlane.xlu1 %4798  ;;  %v4854_v24 = vmul.f32 %v6681_v31, %v10453_v5 }
 0xf0f   : > { %v10617_v36 = vpop.eup %6684  ;;  %5849 = vmatmul.msk.f32.gmra.mxu0 %vm785_vm2, %v4847_v57  ;;  %v4737_v45 = vsel %vm785_vm2, %v10614_v48, 0.0 }
 0xf10   : > { %5856 = vmatmul.msk.f32.gmra.mxu1 %vm785_vm2, %v4854_v24  ;;  %v4806_v34 = vsel %vm785_vm2, %v10617_v36, 0.0  ;;  %v10627_v38 = vpop.eup %6686 }
 0xf11   : > { %v4785_v11 = vsel %vm785_vm2, %v10627_v38, 0.0 }
 0xf13   : > { %4738 = vadd.xlane.f32.xlu0 %v4737_v45  ;;  %4807 = vadd.xlane.f32.xlu1 %v4806_v34 }
 0xf16   : > { %v4730_v5 = vpop.xlane.xlu1 %4729 }
 0xf17   : > { %6688 = vrcp.f32 %v4730_v5 }
 0xf18   : > { %6690 = vpow2.f32 %v4682_v60 }
 0xf1b   : > { %4786 = vadd.xlane.f32.xlu1 %v4785_v11 }
 0xf1d   : > { %v6689_v8 = vpop.eup %6688 }
 0xf1e   : > { %v4848_v3 = vmul.f32 %v6689_v8, %v10476_v19  ;;  %v10632_v58 = vpop.eup %6690 }
 0xf1f   : > { %v4761_v51 = vsel %vm785_vm2, %v10632_v58, 0.0 }
 0xf20   : > { %5850 = vmatmul.msk.f32.gmra.mxu0 %vm785_vm2, %v4848_v3 }
 0xf23   : > { %4762 = vadd.xlane.f32.xlu1 %v4761_v51 }
 0xf2c   : > { %v4796_v44 = vpop.xlane.xlu2 %4795 }
 0xf2d   : > { %6692 = vrcp.f32 %v4796_v44 }
 0xf2e   : > { %6694 = vrcp.f32 %v4799_v39 }
 0xf33   : > { %v6693_v16 = vpop.eup %6692 }
 0xf34   : > { %v4870_v2 = vmul.f32 %v6693_v16, %v10488_v55  ;;  %v6695_v9 = vpop.eup %6694 }
 0xf35   : > { %v4871_v25 = vmul.f32 %v6695_v9, %v10467_v18 }
 0xf36   : > { %5872 = vmatmul.msk.f32.gmra.mxu3 %vm785_vm2, %v4870_v2 }
 0xf3e   : > { %5873 = vmatmul.msk.f32.gmra.mxu3 %vm785_vm2, %v4871_v25 }
 0xf45   : > { %v4766_v19 = vpop.xlane.xlu0 %4765 }
 0xf46   : > { %6696 = vrcp.f32 %v4766_v19 }
 0xf4c   : > { %v6697_v54 = vpop.eup %6696 }
 0xf4d   : > { %v4860_v35 = vmul.f32 %v6697_v54, %v10512_v15  ;;  %v4751_v49 = vpop.xlane.xlu0 %4750 }
 0xf4e   : > { %6698 = vrcp.f32 %v4751_v49 }
 0xf4f   : > { %5862 = vmatmul.msk.f32.vlgmr.msra.gmra.mxu2 %vm785_vm2, %v4860_v35 }
 0xf54   : > { %v6699_v4 = vpop.eup %6698 }
 0xf55   : > { %v4802_v32 = vpop.xlane.xlu0 %4801  ;;  %v4855_v55 = vmul.f32 %v6699_v4, %v10520_v40  ;;  %v4757_v40 = vpop.xlane.xlu2 %4756 }
 0xf56   : > { %6700 = vrcp.f32 %v4802_v32 }
 0xf57   : > { %5857 = vmatmul.msk.f32.gmra.mxu1 %vm785_vm2, %v4855_v55 }
 0xf5b   : > { %v4769_v47 = vpop.xlane.xlu1 %4768 }
 0xf5c   : > { %v6701_v18 = vpop.eup %6700  ;;  %6702 = vrcp.f32 %v4769_v47 }
 0xf5d   : > { %v4775_v50 = vpop.xlane.xlu0 %4774  ;;  %v4872_v52 = vmul.f32 %v6701_v18, %v10530_v26  ;;  %v4736_v7 = vpop.xlane.xlu2 %4735 }
 0xf5f   : > { %5874 = vmatmul.msk.f32.gmra.mxu3 %vm785_vm2, %v4872_v52 }
 0xf62   : > { %v6703_v15 = vpop.eup %6702 }
 0xf63   : > { %v4861_v17 = vmul.f32 %v6703_v15, %v10540_v33 }
 0xf65   : > { %5863 = vmatmul.msk.f32.gmra.mxu2 %vm785_vm2, %v4861_v17  ;;  %v4754_v37 = vpop.xlane.xlu0 %4753 }
 0xf66   : > { %6704 = vrcp.f32 %v4754_v37  ;;  %v4772_v14 = vpop.xlane.xlu1 %4771 }
 0xf67   : > { %6706 = vrcp.f32 %v4772_v14 }
 0xf68   : > { %6708 = vrcp.f32 %v4757_v40 }
 0xf69   : > { %6710 = vrcp.f32 %v4775_v50 }
 0xf6c   : > { %v6705_v41 = vpop.eup %6704 }
 0xf6d   : > { %v6707_v22 = vpop.eup %6706  ;;  %v4805_v63 = vpop.xlane.xlu0 %4804  ;;  %v4856_v13 = vmul.f32 %v6705_v41, %v10553_v12 }
 0xf6e   : > { %6712 = vrcp.f32 %v4805_v63  ;;  %v4733_v26 = vpop.xlane.xlu1 %4732  ;;  %v4862_v6 = vmul.f32 %v6707_v22, %v10555_v56  ;;  %v6709_v33 = vpop.eup %6708 }
 0xf6f   : > { %6714 = vrcp.f32 %v4733_v26  ;;  %5858 = vmatmul.msk.f32.gmra.mxu1 %vm785_vm2, %v4856_v13  ;;  %v6711_v10 = vpop.eup %6710  ;;  %v4857_v12 = vmul.f32 %v6709_v33, %v10494_v61 }
 0xf70   : > { %5864 = vmatmul.msk.f32.gmra.mxu2 %vm785_vm2, %v4862_v6  ;;  %6716 = vrcp.f32 %v4736_v7  ;;  %v4863_v57 = vmul.f32 %v6711_v10, %v10538_v0 }
 0xf74   : > { %v6713_v1 = vpop.eup %6712  ;;  %v4941_v27 = vpop.f32.mrf.mxu0 }
 0xf75   : > { %v6715_v53 = vpop.eup %6714  ;;  %5264 = vrot.lane.b32.xlu2 %v4941_v27, %s6757_s8  ;;  %v4873_v42 = vmul.f32 %v6713_v1, %v10566_v62 }
 0xf76   : > { %v4778_v56 = vpop.xlane.xlu1 %4777  ;;  %v4784_v31 = vpop.xlane.xlu0 %4783  ;;  %v4849_v30 = vmul.f32 %v6715_v53, %v10568_v28 }
 0xf77   : > { %6718 = vrcp.f32 %v4778_v56  ;;  %5859 = vmatmul.msk.f32.gmra.mxu1 %vm785_vm2, %v4857_v12  ;;  %5875 = vmatmul.msk.f32.gmra.mxu3 %vm785_vm2, %v4873_v42  ;;  %v6717_v39 = vpop.eup %6716 }
 0xf78   : > { %5851 = vmatmul.msk.f32.gmra.mxu0 %vm785_vm2, %v4849_v30  ;;  %5865 = vmatmul.msk.f32.gmra.mxu2 %vm785_vm2, %v4863_v57  ;;  %v4850_v28 = vmul.f32 %v6717_v39, %v10499_v21  ;;  %v5208_v37 = vpop.f32.mrf.mxu3 }
 0xf7c   : > { %v4944_v24 = vpop.f32.mrf.mxu0 }
 0xf7d   : > { %v6719_v61 = vpop.eup %6718  ;;  %5266 = vrot.lane.b32.xlu0 %v4944_v24, %s6757_s8 }
 0xf7e   : > { %v4781_v62 = vpop.xlane.xlu1 %4780  ;;  %v4760_v43 = vpop.xlane.xlu0 %4759  ;;  %v4864_v0 = vmul.f32 %v6719_v61, %v10584_v23 }
 0xf7f   : > { %6720 = vrcp.f32 %v4781_v62  ;;  %v4811_v23 = vpop.xlane.xlu2 %4810 }
 0xf80   : > { %6722 = vrcp.f32 %v4760_v43  ;;  %5852 = vmatmul.msk.f32.gmra.mxu0 %vm785_vm2, %v4850_v28  ;;  %5866 = vmatmul.msk.f32.gmra.mxu2 %vm785_vm2, %v4864_v0 }
 0xf81   : > { %6724 = vrcp.f32 %v4784_v31 }
 0xf82   : > { %v5211_v22 = vpop.f32.mrf.mxu3 }
 0xf84   : > { %v4947_v45 = vpop.f32.mrf.mxu0 }
 0xf85   : > { %v6721_v34 = vpop.eup %6720  ;;  %5268 = vrot.lane.b32.xlu1 %v4947_v45, %s6757_s8 }
 0xf86   : > { %v6723_v60 = vpop.eup %6722  ;;  %v4808_v5 = vpop.xlane.xlu1 %4807  ;;  %v4865_v8 = vmul.f32 %v6721_v34, %v10603_v59 }
 0xf87   : > { %v4739_v11 = vpop.xlane.xlu0 %4738  ;;  %6726 = vrcp.f32 %v4808_v5  ;;  %v4858_v21 = vmul.f32 %v6723_v60, %v10600_v20  ;;  %v6725_v3 = vpop.eup %6724 }
 0xf88   : > { %6728 = vrcp.f32 %v4739_v11  ;;  %5867 = vmatmul.msk.f32.gmra.mxu2 %vm785_vm2, %v4865_v8  ;;  %v4866_v9 = vmul.f32 %v6725_v3, %v10590_v29 }
 0xf89   : > { %5860 = vmatmul.msk.f32.gmra.mxu1 %vm785_vm2, %v4858_v21  ;;  %6730 = vrcp.f32 %v4811_v23 }
 0xf8c   : > { %v4950_v51 = vpop.f32.mrf.mxu0 }
 0xf8d   : > { %v6727_v44 = vpop.eup %6726  ;;  %5270 = vrot.lane.b32.xlu0 %v4950_v51, %s6757_s8 }
 0xf8e   : > { %v6729_v16 = vpop.eup %6728  ;;  %v4787_v2 = vpop.xlane.xlu1 %4786  ;;  %v4874_v59 = vmul.f32 %v6727_v44, %v10617_v36 }
 0xf8f   : > { %6732 = vrcp.f32 %v4787_v2  ;;  %v4851_v20 = vmul.f32 %v6729_v16, %v10614_v48  ;;  %v6731_v25 = vpop.eup %6730 }
 0xf90   : > { %5868 = vmatmul.msk.f32.gmra.mxu2 %vm785_vm2, %v4866_v9  ;;  %5876 = vmatmul.msk.f32.gmra.mxu3 %vm785_vm2, %v4874_v59  ;;  %v4875_v49 = vmul.f32 %v6731_v25, %v10506_v46  ;;  %v5030_v46 = vpop.f32.mrf.mxu1 }
 0xf91   : > { %5853 = vmatmul.msk.f32.gmra.mxu0 %vm785_vm2, %v4851_v20 }
 0xf95   : > { %v6733_v19 = vpop.eup %6732 }
 0xf96   : > { %v4763_v54 = vpop.xlane.xlu1 %4762  ;;  %v4867_v35 = vmul.f32 %v6733_v19, %v10627_v38 }
 0xf97   : > { %6734 = vrcp.f32 %v4763_v54 }
 0xf98   : > { %5869 = vmatmul.msk.f32.gmra.mxu2 %vm785_vm2, %v4867_v35  ;;  %5877 = vmatmul.msk.f32.gmra.mxu3 %vm785_vm2, %v4875_v49  ;;  %v5033_v4 = vpop.f32.mrf.mxu1 }
 0xf9d   : > { %v6735_v29 = vpop.eup %6734  ;;  %v4953_v48 = vpop.f32.mrf.mxu0 }
 0xf9e   : > { %5272 = vrot.lane.b32.xlu2 %v4953_v48, %s6757_s8  ;;  %v4859_v36 = vmul.f32 %v6735_v29, %v10632_v58 }
 0xfa0   : > { %5861 = vmatmul.msk.f32.gmra.mxu1 %vm785_vm2, %v4859_v36  ;;  %v5036_v47 = vpop.f32.mrf.mxu1 }
 0xfb9   : > { %v5214_v13 = vpop.f32.mrf.mxu3 }
 0xfc1   : > { %v5217_v1 = vpop.f32.mrf.mxu3 }
 0xfcf   : > { %v5265_v38 = vpop.permute.xlu2 %5264 }
 0xfd0   : > { %5361 = vst.msk [vmem:[%s8080_s29] sm:$0xff] %vm5360_vm5, %v5265_v38 }
 0xfd2   : > { %v5119_v32 = vpop.f32.mrf.mxu2 }
 0xfd4   : > { %v5039_v15 = vpop.f32.mrf.mxu1 }
 0xfe2   : > { %v5220_v12 = vpop.f32.mrf.mxu3 }
 0xfe8   : > { %v5122_v18 = vpop.f32.mrf.mxu2 }
 0xfec   : > { %v5042_v41 = vpop.f32.mrf.mxu1 }
 0xfef   : > { %v5267_v55 = vpop.permute.xlu0 %5266 }
 0xff0   : > { %5362 = vst.msk [vmem:[%s8080_s29 + $0x8] sm:$0xff] %vm5360_vm5, %v5267_v55 }
 0xff3   : > { %v5125_v17 = vpop.f32.mrf.mxu2 }
 0xff4   : > { %v5045_v26 = vpop.f32.mrf.mxu1 }
 0xff5   : > { %v4956_v50 = vpop.f32.mrf.mxu0 }
 0xff6   : > { %5274 = vrot.lane.b32.xlu0 %v4956_v50, %s6757_s8 }
 0xff7   : > { %v5269_v58 = vpop.permute.xlu1 %5268 }
 0xff8   : > { %5363 = vst.msk [vmem:[%s8080_s29 + $0x10] sm:$0xff] %vm5360_vm5, %v5269_v58  ;;  %v5273_v52 = vpop.permute.xlu2 %5272 }
 0xff9   : > { %5365 = vst.msk [vmem:[%s8080_s29 + $0x20] sm:$0xff] %vm5360_vm5, %v5273_v52 }
 0xffa   : > { %v5223_v56 = vpop.f32.mrf.mxu3 }
 0xffb   : > { %v5128_v63 = vpop.f32.mrf.mxu2 }
 0xffd   : > { %v4959_v14 = vpop.f32.mrf.mxu0 }
 0xffe   : > { %5276 = vrot.lane.b32.xlu2 %v4959_v14, %s6757_s8  ;;  %5280 = vrot.lane.b32.xlu0 %v5030_v46, %s6757_s8 }
 0xfff   : > { %v5271_v40 = vpop.permute.xlu0 %5270 }
0x1000   : > { %5364 = vst.msk [vmem:[%s8080_s29 + $0x18] sm:$0xff] %vm5360_vm5, %v5271_v40 }
0x1003   : > { %v5131_v33 = vpop.f32.mrf.mxu2 }
0x1006   : > { %5282 = vrot.lane.b32.xlu2 %v5033_v4, %s6757_s8  ;;  %5286 = vrot.lane.b32.xlu0 %v5039_v15, %s6757_s8  ;;  %v5048_v7 = vpop.f32.mrf.mxu1 }
0x100b   : > { %v5134_v10 = vpop.f32.mrf.mxu2 }
0x100e   : > { %v4962_v6 = vpop.f32.mrf.mxu0  ;;  %5312 = vrot.lane.b32.xlu2 %v5208_v37, %s6757_s8  ;;  %5316 = vrot.lane.b32.xlu0 %v5214_v13, %s6757_s8 }
0x100f   : > { %5278 = vrot.lane.b32.xlu1 %v4962_v6, %s6757_s8 }
0x1013   : > { %v5137_v27 = vpop.f32.mrf.mxu2  ;;  %v5226_v31 = vpop.f32.mrf.mxu3 }
0x1016   : > { %5288 = vrot.lane.b32.xlu2 %v5042_v41, %s6757_s8  ;;  %5292 = vrot.lane.b32.xlu0 %v5048_v7, %s6757_s8 }
0x1017   : > { %5284 = vrot.lane.b32.xlu1 %v5036_v47, %s6757_s8 }
0x101b   : > { %v5140_v42 = vpop.f32.mrf.mxu2  ;;  %v5229_v30 = vpop.f32.mrf.mxu3 }
0x101d   : > { %v5051_v53 = vpop.f32.mrf.mxu1 }
0x101e   : > { %5318 = vrot.lane.b32.xlu2 %v5217_v1, %s6757_s8  ;;  %5298 = vrot.lane.b32.xlu0 %v5122_v18, %s6757_s8 }
0x101f   : > { %5314 = vrot.lane.b32.xlu1 %v5211_v22, %s6757_s8 }
0x1026   : > { %5304 = vrot.lane.b32.xlu0 %v5131_v33, %s6757_s8  ;;  %5294 = vrot.lane.b32.xlu2 %v5051_v53, %s6757_s8 }
0x1027   : > { %5290 = vrot.lane.b32.xlu1 %v5045_v26, %s6757_s8 }
0x102e   : > { %5310 = vrot.lane.b32.xlu0 %v5140_v42, %s6757_s8  ;;  %5300 = vrot.lane.b32.xlu2 %v5125_v17, %s6757_s8 }
0x102f   : > { %5320 = vrot.lane.b32.xlu1 %v5220_v12, %s6757_s8 }
0x1036   : > { %5322 = vrot.lane.b32.xlu0 %v5223_v56, %s6757_s8  ;;  %5306 = vrot.lane.b32.xlu2 %v5134_v10, %s6757_s8 }
0x1037   : > { %5296 = vrot.lane.b32.xlu1 %v5119_v32, %s6757_s8 }
0x103e   : > { %5324 = vrot.lane.b32.xlu2 %v5226_v31, %s6757_s8 }
0x103f   : > { %5302 = vrot.lane.b32.xlu1 %v5128_v63, %s6757_s8 }
0x1047   : > { %5308 = vrot.lane.b32.xlu1 %v5137_v27, %s6757_s8 }
0x104f   : > { %5326 = vrot.lane.b32.xlu1 %v5229_v30, %s6757_s8 }
0x1058   : > { %v5277_v57 = vpop.permute.xlu2 %5276 }
0x1059   : > { %5367 = vst.msk [vmem:[%s8080_s29 + $0x30] sm:$0xff] %vm5360_vm5, %v5277_v57 }
0x1060   : > { %v5283_v39 = vpop.permute.xlu2 %5282 }
0x1061   : > { %5370 = vst.msk [vmem:[%s8080_s29 + $0x48] sm:$0xff] %vm5360_vm5, %v5283_v39 }
0x1068   : > { %v5313_v24 = vpop.permute.xlu2 %5312  ;;  %v5275_v61 = vpop.permute.xlu0 %5274 }
0x1069   : > { %5366 = vst.msk [vmem:[%s8080_s29 + $0x28] sm:$0xff] %vm5360_vm5, %v5275_v61 }
0x106a   : > { %5385 = vst.msk [vmem:[%s8080_s29 + $0xc0] sm:$0xff] %vm5360_vm5, %v5313_v24 }
0x1070   : > { %v5289_v62 = vpop.permute.xlu2 %5288  ;;  %v5281_v43 = vpop.permute.xlu0 %5280 }
0x1071   : > { %5373 = vst.msk [vmem:[%s8080_s29 + $0x60] sm:$0xff] %vm5360_vm5, %v5289_v62 }
0x1072   : > { %5369 = vst.msk [vmem:[%s8080_s29 + $0x40] sm:$0xff] %vm5360_vm5, %v5281_v43 }
0x1078   : > { %v5319_v28 = vpop.permute.xlu2 %5318  ;;  %v5287_v0 = vpop.permute.xlu0 %5286 }
0x1079   : > { %5372 = vst.msk [vmem:[%s8080_s29 + $0x58] sm:$0xff] %vm5360_vm5, %v5287_v0 }
0x107a   : > { %5388 = vst.msk [vmem:[%s8080_s29 + $0xd8] sm:$0xff] %vm5360_vm5, %v5319_v28 }
0x1080   : > { %v5295_v45 = vpop.permute.xlu2 %5294  ;;  %v5317_v34 = vpop.permute.xlu0 %5316 }
0x1081   : > { %v5279_v60 = vpop.permute.xlu1 %5278  ;;  %5376 = vst.msk [vmem:[%s8080_s29 + $0x78] sm:$0xff] %vm5360_vm5, %v5295_v45 }
0x1082   : > { %5368 = vst.msk [vmem:[%s8080_s29 + $0x38] sm:$0xff] %vm5360_vm5, %v5279_v60 }
0x1083   : > { %5387 = vst.msk [vmem:[%s8080_s29 + $0xd0] sm:$0xff] %vm5360_vm5, %v5317_v34 }
0x1088   : > { %v5301_v5 = vpop.permute.xlu2 %5300  ;;  %v5293_v11 = vpop.permute.xlu0 %5292 }
0x1089   : > { %v5285_v8 = vpop.permute.xlu1 %5284  ;;  %5375 = vst.msk [vmem:[%s8080_s29 + $0x70] sm:$0xff] %vm5360_vm5, %v5293_v11 }
0x108a   : > { %5371 = vst.msk [vmem:[%s8080_s29 + $0x50] sm:$0xff] %vm5360_vm5, %v5285_v8 }
0x108b   : > { %5379 = vst.msk [vmem:[%s8080_s29 + $0x90] sm:$0xff] %vm5360_vm5, %v5301_v5 }
0x1090   : > { %v5299_v21 = vpop.permute.xlu0 %5298  ;;  %v5307_v44 = vpop.permute.xlu2 %5306 }
0x1091   : > { %v5315_v23 = vpop.permute.xlu1 %5314  ;;  %5378 = vst.msk [vmem:[%s8080_s29 + $0x88] sm:$0xff] %vm5360_vm5, %v5299_v21 }
0x1092   : > { %5386 = vst.msk [vmem:[%s8080_s29 + $0xc8] sm:$0xff] %vm5360_vm5, %v5315_v23 }
0x1093   : > { %5382 = vst.msk [vmem:[%s8080_s29 + $0xa8] sm:$0xff] %vm5360_vm5, %v5307_v44 }
0x1098   : > { %v5305_v3 = vpop.permute.xlu0 %5304  ;;  %v5325_v19 = vpop.permute.xlu2 %5324 }
0x1099   : > { %v5291_v51 = vpop.permute.xlu1 %5290  ;;  %5381 = vst.msk [vmem:[%s8080_s29 + $0xa0] sm:$0xff] %vm5360_vm5, %v5305_v3 }
0x109a   : > { %5374 = vst.msk [vmem:[%s8080_s29 + $0x68] sm:$0xff] %vm5360_vm5, %v5291_v51 }
0x109b   : > { %5391 = vst.msk [vmem:[%s8080_s29 + $0xf0] sm:$0xff] %vm5360_vm5, %v5325_v19 }
0x10a0   : > { %v5311_v16 = vpop.permute.xlu0 %5310 }
0x10a1   : > { %v5321_v2 = vpop.permute.xlu1 %5320  ;;  %5384 = vst.msk [vmem:[%s8080_s29 + $0xb8] sm:$0xff] %vm5360_vm5, %v5311_v16 }
0x10a2   : > { %5389 = vst.msk [vmem:[%s8080_s29 + $0xe0] sm:$0xff] %vm5360_vm5, %v5321_v2 }
0x10a8   : > { %v5323_v9 = vpop.permute.xlu0 %5322 }
0x10a9   : > { %v5297_v59 = vpop.permute.xlu1 %5296  ;;  %5390 = vst.msk [vmem:[%s8080_s29 + $0xe8] sm:$0xff] %vm5360_vm5, %v5323_v9 }
0x10aa   : > { %5377 = vst.msk [vmem:[%s8080_s29 + $0x80] sm:$0xff] %vm5360_vm5, %v5297_v59 }
0x10b1   : > { %v5303_v20 = vpop.permute.xlu1 %5302 }
0x10b2   : > { %5380 = vst.msk [vmem:[%s8080_s29 + $0x98] sm:$0xff] %vm5360_vm5, %v5303_v20 }
0x10b9   : > { %v5309_v25 = vpop.permute.xlu1 %5308 }
0x10ba   : > { %5383 = vst.msk [vmem:[%s8080_s29 + $0xb0] sm:$0xff] %vm5360_vm5, %v5309_v25 }
0x10c1   : > { %v5327_v54 = vpop.permute.xlu1 %5326 }
0x10c2   : > { %5392 = vst.msk [vmem:[%s8080_s29 + $0xf8] sm:$0xff] %vm5360_vm5, %v5327_v54 }
0x10c3 PF: > { %s12_s9 = sadd.s32 1, %s6742_s9  }
0x10c4   : > { %p9_p4 = scmp.ge.s32.totalorder %s12_s9, 4  }
0x10c6   :  { %11 = sbr.rel (!%p9_p4) target bundleno = 1 (0x1), region = 58 }

</bundles_post_ra>
